<compile_context>
chip_gen: v5e
topology: v5e:2x2
jax: 0.10.0
libtpu: 0.0.40
codegen_flags: <defaults>
</compile_context>

<pallas_src>
import functools

import jax
import jax.numpy as jnp
from jax.experimental import pallas as pl
from jax.experimental.pallas import tpu as pltpu


# ----------------------------------------------------------------------------
# In-kernel helpers
# ----------------------------------------------------------------------------
def _max_pool_rows(y):
    """2x-downsample the H axis of (N, Heven, W, C) by pairwise max.

    Only reshapes that keep the last two (tiled) dims intact / regroup leading
    dims on 8-row boundaries are used, so they are layout no-ops.
    """
    n0, h, w, c = y.shape
    y = y.reshape(n0 * (h // 2), 2, w, c)
    return jnp.maximum(y[:, 0], y[:, 1]).reshape(n0, h // 2, w, c)


# ----------------------------------------------------------------------------
# Fused encoder kernel: conv1..conv4 (+BN, pool, relu) and fc, one batch tile
# ----------------------------------------------------------------------------
def _encoder_kernel(p1_ref, w1_ref, sh1_ref, w2_ref, sh2_ref, w3_ref, sh3_ref,
                    w4_ref, sh4_ref, wfc_ref, bfc_ref, o_ref,
                    t1, a1, t2, a2, t3, *, tb):
    f32 = jnp.float32
    bf16 = jnp.bfloat16
    B = tb

    # Zero ONLY the pad columns the block-2/3 im2col slices actually read
    # (a1 cols 16..17, a2 cols 8..9); everything else is overwritten below.
    a1[:, :, 16:24, :] = jnp.zeros((B, 15, 8, 32), f32)
    a2[:, :, 8:16, :] = jnp.zeros((B, 6, 8, 64), f32)

    # ---------------- block 1: conv3x3(3->32) [K=27] + pool + shift + relu ---
    y = jnp.dot(p1_ref[...].reshape(B * 960, 27), w1_ref[...],
                preferred_element_type=f32)                      # (B*960, 32)
    t1[...] = _max_pool_rows(y.reshape(B, 30, 32, 32))           # H-pool (B,15,32,32)
    p = jnp.maximum(t1[:, :, pl.ds(0, 16, stride=2), :],
                    t1[:, :, pl.ds(1, 16, stride=2), :])         # W-pool (B,15,16,32)
    # shift + relu applied only at pooled resolution (pool-first).
    a1[:, :, 0:16, :] = jnp.maximum(p + sh1_ref[...].reshape(1, 1, 1, 32), 0.0)
    # a1 real cols 0..14, col 15 = pooled pad, cols 16..23 = zeros.

    # ---------------- block 2: conv3x3(32->64), stacked-K matmul (K=288) -----
    x2 = jnp.concatenate([a1[:, dy:dy + 13, dx:dx + 16, :]
                          for dy in range(3) for dx in range(3)], axis=-1)
    y = jnp.dot(x2.reshape(B * 13 * 16, 288).astype(bf16), w2_ref[...],
                preferred_element_type=f32)                      # (B*208, 64)
    t2[...] = _max_pool_rows(y.reshape(B, 13, 16, 64)[:, 0:12])  # (B,6,16,64)
    p = jnp.maximum(t2[:, :, pl.ds(0, 8, stride=2), :],
                    t2[:, :, pl.ds(1, 8, stride=2), :])          # (B,6,8,64)
    a2[:, :, 0:8, :] = jnp.maximum(p + sh2_ref[...].reshape(1, 1, 1, 64), 0.0)
    # a2 real cols 0..5, cols 6..7 deterministic pad, cols 8..15 zeros.

    # ---------------- block 3: conv3x3(64->128), stacked-K matmul (K=576) ----
    x3 = jnp.concatenate([a2[:, dy:dy + 4, dx:dx + 8, :]
                          for dy in range(3) for dx in range(3)], axis=-1)
    y = jnp.dot(x3.reshape(B * 4 * 8, 576).astype(bf16), w3_ref[...],
                preferred_element_type=f32)                      # (B*32, 128)
    t3[...] = _max_pool_rows(y.reshape(B, 4, 8, 128))            # (B,2,8,128)

    # ---------------- block 4: conv2x2(128->128) as one K=512 matmul ---------
    sh3 = sh3_ref[...]                                           # (1, 128)
    pieces = []
    for dy in range(2):
        for dx in range(2):
            m = jnp.maximum(t3[:, dy, 2 * dx, :], t3[:, dy, 2 * dx + 1, :])
            pieces.append(jnp.maximum(m + sh3, 0.0).astype(bf16))
    x4 = jnp.concatenate(pieces, axis=-1)                        # (B, 512)
    y4 = jnp.maximum(jnp.dot(x4, w4_ref[...], preferred_element_type=f32)
                     + sh4_ref[...], 0.0)                        # (B, 128)

    # ---------------- fc(128 -> 128), lane-dense (B,128) store ---------------
    o_ref[...] = jnp.dot(y4.astype(bf16), wfc_ref[...],
                         preferred_element_type=f32) + bfc_ref[...]


# ----------------------------------------------------------------------------
# Wrapper: host-side layout plumbing + the single (batch-gridded) pallas_call
# ----------------------------------------------------------------------------
@jax.jit
def approximate_encoder(x_nchw, params):
    bf16 = jnp.bfloat16
    # Accept NCHW (PyTorch convention); kernel runs channels-last.  Cast to
    # bf16 BEFORE the im2col so the HBM intermediate is half-sized.
    x = jnp.transpose(x_nchw.astype(bf16), (0, 2, 3, 1))          # (B, 32, 32, 3)
    B, H, W, _ = x.shape
    assert (H, W) == (32, 32), "encoder expects 32x32 inputs (fc is 128->128)"

    # Batch tiling: tile of <= 8 images, batch padded to a tile multiple.
    TB = min(8, B)
    nb = -(-B // TB)
    Bp = nb * TB
    if Bp != B:
        x = jnp.pad(x, ((0, Bp - B), (0, 0), (0, 0), (0, 0)))

    blks = params["blocks"]

    # Fold BN scale into the conv weights; flatten HWIO -> (K*K*Cin, Cout) so a
    # single stacked-K matmul per block matches the in-kernel lane stacking.
    def fold(blk, kk, cin, cout):
        w = blk["w"] * blk["scale"].reshape(1, 1, 1, -1)
        return w.reshape(kk * cin, cout).astype(bf16), blk["shift"]

    w1, sh1 = fold(blks[0], 9, 3, 32)        # (27, 32)
    w2, sh2 = fold(blks[1], 9, 32, 64)       # (288, 64)
    w3, sh3 = fold(blks[2], 9, 64, 128)      # (576, 128)
    w4, sh4 = fold(blks[3], 4, 128, 128)     # (512, 128)
    wfc = params["fc_w_t"].astype(bf16)
    bfc = params["fc_b"]

    # Host-side im2col for block 1 (bf16): output W padded 30 -> 32.
    xp = jnp.pad(x, ((0, 0), (0, 0), (0, 2), (0, 0)))             # (Bp, 32, 34, 3)
    cols = [xp[:, dy:dy + 30, dx:dx + 32, :]
            for dy in range(3) for dx in range(3)]
    p1 = jnp.concatenate(cols, axis=-1).reshape(Bp, 960, 27)      # bf16

    def full_spec(a):
        n = a.ndim
        return pl.BlockSpec(a.shape, lambda i: (0,) * n)

    flops_per_img = 2 * (960 * 27 * 32 + 208 * 288 * 64 + 32 * 576 * 128
                         + 512 * 128 + 128 * 128)
    bytes_accessed = (p1.size * 2 + Bp * 128 * 4
                      + sum(int(a.size) * a.dtype.itemsize
                            for a in (w1, sh1, w2, sh2, w3, sh3, w4, sh4, wfc, bfc)))

    out = pl.pallas_call(
        functools.partial(_encoder_kernel, tb=TB),
        out_shape=jax.ShapeDtypeStruct((Bp, 128), jnp.float32),
        grid=(nb,),
        in_specs=[
            pl.BlockSpec((TB, 960, 27), lambda i: (i, 0, 0)),     # batch-tiled
            full_spec(w1), full_spec(sh1), full_spec(w2), full_spec(sh2),
            full_spec(w3), full_spec(sh3), full_spec(w4), full_spec(sh4),
            full_spec(wfc), full_spec(bfc),                       # resident weights
        ],
        out_specs=pl.BlockSpec((TB, 128), lambda i: (i, 0)),
        scratch_shapes=[
            pltpu.VMEM((TB, 15, 32, 32), jnp.float32),   # t1: H-pooled conv1 (raw)
            pltpu.VMEM((TB, 15, 24, 32), jnp.float32),   # a1: pooled1 activations
            pltpu.VMEM((TB, 6, 16, 64), jnp.float32),    # t2: H-pooled conv2 (raw)
            pltpu.VMEM((TB, 6, 16, 64), jnp.float32),    # a2: pooled2 activations
            pltpu.VMEM((TB, 2, 8, 128), jnp.float32),    # t3: H-pooled conv3 (raw)
        ],
        compiler_params=pltpu.CompilerParams(
            dimension_semantics=("parallel",),
            vmem_limit_bytes=32 * 1024 * 1024),
        cost_estimate=pl.CostEstimate(
            flops=int(flops_per_img) * int(Bp), transcendentals=0,
            bytes_accessed=int(bytes_accessed)),
    )(p1, w1, sh1, w2, sh2, w3, sh3, w4, sh4, wfc, bfc)
    return out[:B]


# ----------------------------------------------------------------------------
# Deterministic synthetic parameters (eval-mode BN folded to scale/shift)
# ----------------------------------------------------------------------------
def _make_block_params(key, cin, cout, k, with_bn):
    k1, k2, k3, k4, k5, k6 = jax.random.split(key, 6)
    w = jax.random.normal(k1, (k, k, cin, cout), jnp.float32) * 0.1      # HWIO
    bias = jax.random.normal(k2, (cout,), jnp.float32) * 0.05
    if with_bn:
        gamma = 1.0 + 0.1 * jax.random.normal(k3, (cout,), jnp.float32)
        beta = 0.05 * jax.random.normal(k4, (cout,), jnp.float32)
        r_mean = 0.05 * jax.random.normal(k5, (cout,), jnp.float32)
        r_var = 1.0 + 0.1 * jax.random.uniform(k6, (cout,), jnp.float32)
        scale = gamma / jnp.sqrt(r_var + 1e-5)
        shift = (bias - r_mean) * scale + beta
    else:
        scale = jnp.ones((cout,), jnp.float32)
        shift = bias
    return {"w": w, "scale": scale.reshape(1, cout),
            "shift": shift.reshape(1, cout)}


def init_params(key):
    k1, k2, k3, k4, k5, k6 = jax.random.split(key, 6)
    blocks = [
        dict(_make_block_params(k1, 3, 32, 3, True), pool=True),
        dict(_make_block_params(k2, 32, 64, 3, True), pool=True),
        dict(_make_block_params(k3, 64, 128, 3, True), pool=True),
        dict(_make_block_params(k4, 128, 128, 2, False), pool=False),
    ]
    fc_w_t = jax.random.normal(k5, (128, 128), jnp.float32) * 0.1        # (in, out)
    fc_b = (jax.random.normal(k6, (128,), jnp.float32) * 0.05).reshape(1, 128)
    return {"blocks": blocks, "fc_w_t": fc_w_t, "fc_b": fc_b}


# ----------------------------------------------------------------------------
# Pure-JAX f32 reference (module semantics) for the self-check
# ----------------------------------------------------------------------------
def reference_forward(x_nchw, params):
    x = jnp.transpose(x_nchw, (0, 2, 3, 1)).astype(jnp.float32)
    for blk in params["blocks"]:
        y = jax.lax.conv_general_dilated(
            x, blk["w"], window_strides=(1, 1), padding="VALID",
            dimension_numbers=("NHWC", "HWIO", "NHWC"))
        y = y * blk["scale"].reshape(1, 1, 1, -1) + blk["shift"].reshape(1, 1, 1, -1)
        if blk["pool"]:
            y = jax.lax.reduce_window(y, -jnp.inf, jax.lax.max,
                                      (1, 2, 2, 1), (1, 2, 2, 1), "VALID")
        x = jnp.maximum(y, 0.0)
    b = x.shape[0]
    return x.reshape(b, -1) @ params["fc_w_t"] + params["fc_b"]


if __name__ == "__main__":
    key = jax.random.PRNGKey(0)
    kx, kp = jax.random.split(key)
    # 32x32 spatial is implied by the conv/pool stack (-> 1x1x128 before fc).
    x = jax.random.normal(kx, (2, 3, 32, 32), jnp.float32)
    params = init_params(kp)

    out = jax.block_until_ready(approximate_encoder(x, params))
    assert out.shape == (2, 128), out.shape

    ref = jax.block_until_ready(reference_forward(x, params))
    rel = float(jnp.linalg.norm(out - ref) / (jnp.linalg.norm(ref) + 1e-6))
    assert rel < 5e-2, f"relative error too large: {rel}"

    print("KERNEL_OK")
</pallas_src>

<mosaic_0001>
module attributes {stable_mosaic.version = 11 : i64} {
  func.func @_encoder_kernel(%arg0: i32, %arg1: memref<2x960x27xbf16, #tpu.memory_space<vmem>>, %arg2: memref<27x32xbf16, #tpu.memory_space<vmem>>, %arg3: memref<1x32xf32, #tpu.memory_space<vmem>>, %arg4: memref<288x64xbf16, #tpu.memory_space<vmem>>, %arg5: memref<1x64xf32, #tpu.memory_space<vmem>>, %arg6: memref<576x128xbf16, #tpu.memory_space<vmem>>, %arg7: memref<1x128xf32, #tpu.memory_space<vmem>>, %arg8: memref<512x128xbf16, #tpu.memory_space<vmem>>, %arg9: memref<1x128xf32, #tpu.memory_space<vmem>>, %arg10: memref<128x128xbf16, #tpu.memory_space<vmem>>, %arg11: memref<1x128xf32, #tpu.memory_space<vmem>>, %arg12: memref<2x128xf32, #tpu.memory_space<vmem>>, %arg13: memref<2x15x32x32xf32, #tpu.memory_space<vmem>>, %arg14: memref<2x15x24x32xf32, #tpu.memory_space<vmem>>, %arg15: memref<2x6x16x64xf32, #tpu.memory_space<vmem>>, %arg16: memref<2x6x16x64xf32, #tpu.memory_space<vmem>>, %arg17: memref<2x2x8x128xf32, #tpu.memory_space<vmem>>) attributes {dimension_semantics = [#tpu.dimension_semantics<parallel>], iteration_bounds = array<i64: 1>, scalar_prefetch = 0 : i64, scratch_operands = 5 : i64, tpu.core_type = #tpu.core_type<tc>, window_params = [{transform_indices = @transform_0, window_bounds = array<i64: 2, 960, 27>}, {pipeline_mode = #tpu.pipeline_mode<synchronous>, transform_indices = @transform_1, window_bounds = array<i64: 27, 32>}, {pipeline_mode = #tpu.pipeline_mode<synchronous>, transform_indices = @transform_2, window_bounds = array<i64: 1, 32>}, {pipeline_mode = #tpu.pipeline_mode<synchronous>, transform_indices = @transform_3, window_bounds = array<i64: 288, 64>}, {pipeline_mode = #tpu.pipeline_mode<synchronous>, transform_indices = @transform_4, window_bounds = array<i64: 1, 64>}, {pipeline_mode = #tpu.pipeline_mode<synchronous>, transform_indices = @transform_5, window_bounds = array<i64: 576, 128>}, {pipeline_mode = #tpu.pipeline_mode<synchronous>, transform_indices = @transform_6, window_bounds = array<i64: 1, 128>}, {pipeline_mode = #tpu.pipeline_mode<synchronous>, transform_indices = @transform_7, window_bounds = array<i64: 512, 128>}, {pipeline_mode = #tpu.pipeline_mode<synchronous>, transform_indices = @transform_8, window_bounds = array<i64: 1, 128>}, {pipeline_mode = #tpu.pipeline_mode<synchronous>, transform_indices = @transform_9, window_bounds = array<i64: 128, 128>}, {pipeline_mode = #tpu.pipeline_mode<synchronous>, transform_indices = @transform_10, window_bounds = array<i64: 1, 128>}, {transform_indices = @transform_11, window_bounds = array<i64: 2, 128>}]} {
    %cst = arith.constant 0.000000e+00 : f32
    %0 = vector.broadcast %cst : f32 to vector<2x15x8x32xf32>
    %c0 = arith.constant 0 : index
    %c0_0 = arith.constant 0 : index
    %c16 = arith.constant 16 : index
    %c0_1 = arith.constant 0 : index
    %1 = vector.load %arg14[%c0, %c0_0, %c16, %c0_1] : memref<2x15x24x32xf32, #tpu.memory_space<vmem>>, vector<2x15x8x32xf32>
    tpu.vector_store %arg14[%c0, %c0_0, %c16, %c0_1], %0 {strides = array<i32>} : memref<2x15x24x32xf32, #tpu.memory_space<vmem>>, vector<2x15x8x32xf32>,
    %cst_2 = arith.constant 0.000000e+00 : f32
    %2 = vector.broadcast %cst_2 : f32 to vector<2x6x8x64xf32>
    %c0_3 = arith.constant 0 : index
    %c0_4 = arith.constant 0 : index
    %c8 = arith.constant 8 : index
    %c0_5 = arith.constant 0 : index
    %3 = vector.load %arg16[%c0_3, %c0_4, %c8, %c0_5] : memref<2x6x16x64xf32, #tpu.memory_space<vmem>>, vector<2x6x8x64xf32>
    tpu.vector_store %arg16[%c0_3, %c0_4, %c8, %c0_5], %2 {strides = array<i32>} : memref<2x6x16x64xf32, #tpu.memory_space<vmem>>, vector<2x6x8x64xf32>,
    %c0_6 = arith.constant 0 : index
    %c0_7 = arith.constant 0 : index
    %c0_8 = arith.constant 0 : index
    %4 = vector.load %arg1[%c0_6, %c0_7, %c0_8] : memref<2x960x27xbf16, #tpu.memory_space<vmem>>, vector<2x960x27xbf16>
    %5 = vector.shape_cast %4 : vector<2x960x27xbf16> to vector<1920x27xbf16>
    %c0_9 = arith.constant 0 : index
    %c0_10 = arith.constant 0 : index
    %6 = vector.load %arg2[%c0_9, %c0_10] : memref<27x32xbf16, #tpu.memory_space<vmem>>, vector<27x32xbf16>
    %cst_11 = arith.constant dense<0.000000e+00> : vector<1920x32xf32>
    %7 = tpu.matmul %5, %6, %cst_11 {dimension_numbers = #tpu.dot_dimension_numbers<[1], [0], [0], [1], [0, 0, 1, 1], [], []>} : vector<1920x27xbf16>, vector<27x32xbf16>, vector<1920x32xf32> -> vector<1920x32xf32>
    %8 = vector.shape_cast %7 : vector<1920x32xf32> to vector<2x30x32x32xf32>
    %9 = vector.shape_cast %8 : vector<2x30x32x32xf32> to vector<30x2x32x32xf32>
    %10 = vector.extract_strided_slice %9 {offsets = [0, 0, 0, 0], sizes = [30, 1, 32, 32], strides = [1, 1, 1, 1]} : vector<30x2x32x32xf32> to vector<30x1x32x32xf32>
    %11 = vector.shape_cast %10 : vector<30x1x32x32xf32> to vector<30x32x32xf32>
    %12 = vector.extract_strided_slice %9 {offsets = [0, 1, 0, 0], sizes = [30, 1, 32, 32], strides = [1, 1, 1, 1]} : vector<30x2x32x32xf32> to vector<30x1x32x32xf32>
    %13 = vector.shape_cast %12 : vector<30x1x32x32xf32> to vector<30x32x32xf32>
    %14 = arith.maximumf %11, %13 : vector<30x32x32xf32>
    %15 = vector.shape_cast %14 : vector<30x32x32xf32> to vector<2x15x32x32xf32>
    %c0_12 = arith.constant 0 : index
    %c0_13 = arith.constant 0 : index
    %c0_14 = arith.constant 0 : index
    %c0_15 = arith.constant 0 : index
    %16 = vector.load %arg13[%c0_12, %c0_13, %c0_14, %c0_15] : memref<2x15x32x32xf32, #tpu.memory_space<vmem>>, vector<2x15x32x32xf32>
    tpu.vector_store %arg13[%c0_12, %c0_13, %c0_14, %c0_15], %15 {strides = array<i32>} : memref<2x15x32x32xf32, #tpu.memory_space<vmem>>, vector<2x15x32x32xf32>,
    %c0_16 = arith.constant 0 : index
    %c0_17 = arith.constant 0 : index
    %c0_18 = arith.constant 0 : index
    %c0_19 = arith.constant 0 : index
    %17 = tpu.strided_load %arg13[%c0_16, %c0_17, %c0_18, %c0_19] {strides = array<i32: 1, 1, 2, 1>} : memref<2x15x32x32xf32, #tpu.memory_space<vmem>>, vector<2x15x16x32xf32>
    %c0_20 = arith.constant 0 : index
    %c0_21 = arith.constant 0 : index
    %c1 = arith.constant 1 : index
    %c0_22 = arith.constant 0 : index
    %18 = tpu.strided_load %arg13[%c0_20, %c0_21, %c1, %c0_22] {strides = array<i32: 1, 1, 2, 1>} : memref<2x15x32x32xf32, #tpu.memory_space<vmem>>, vector<2x15x16x32xf32>
    %19 = arith.maximumf %17, %18 : vector<2x15x16x32xf32>
    %c0_23 = arith.constant 0 : index
    %c0_24 = arith.constant 0 : index
    %20 = vector.load %arg3[%c0_23, %c0_24] : memref<1x32xf32, #tpu.memory_space<vmem>>, vector<1x32xf32>
    %21 = vector.shape_cast %20 : vector<1x32xf32> to vector<1x1x1x32xf32>
    %22 = vector.broadcast %21 : vector<1x1x1x32xf32> to vector<2x15x16x32xf32>
    %23 = arith.addf %19, %22 : vector<2x15x16x32xf32>
    %cst_25 = arith.constant 0.000000e+00 : f32
    %24 = vector.broadcast %cst_25 : f32 to vector<2x15x16x32xf32>
    %25 = arith.maximumf %23, %24 : vector<2x15x16x32xf32>
    %c0_26 = arith.constant 0 : index
    %c0_27 = arith.constant 0 : index
    %c0_28 = arith.constant 0 : index
    %c0_29 = arith.constant 0 : index
    %26 = vector.load %arg14[%c0_26, %c0_27, %c0_28, %c0_29] : memref<2x15x24x32xf32, #tpu.memory_space<vmem>>, vector<2x15x16x32xf32>
    tpu.vector_store %arg14[%c0_26, %c0_27, %c0_28, %c0_29], %25 {strides = array<i32>} : memref<2x15x24x32xf32, #tpu.memory_space<vmem>>, vector<2x15x16x32xf32>,
    %c0_30 = arith.constant 0 : index
    %c0_31 = arith.constant 0 : index
    %c0_32 = arith.constant 0 : index
    %c0_33 = arith.constant 0 : index
    %27 = vector.load %arg14[%c0_30, %c0_31, %c0_32, %c0_33] : memref<2x15x24x32xf32, #tpu.memory_space<vmem>>, vector<2x13x16x32xf32>
    %c0_34 = arith.constant 0 : index
    %c0_35 = arith.constant 0 : index
    %c1_36 = arith.constant 1 : index
    %c0_37 = arith.constant 0 : index
    %28 = vector.load %arg14[%c0_34, %c0_35, %c1_36, %c0_37] : memref<2x15x24x32xf32, #tpu.memory_space<vmem>>, vector<2x13x16x32xf32>
    %c0_38 = arith.constant 0 : index
    %c0_39 = arith.constant 0 : index
    %c2 = arith.constant 2 : index
    %c0_40 = arith.constant 0 : index
    %29 = vector.load %arg14[%c0_38, %c0_39, %c2, %c0_40] : memref<2x15x24x32xf32, #tpu.memory_space<vmem>>, vector<2x13x16x32xf32>
    %c0_41 = arith.constant 0 : index
    %c1_42 = arith.constant 1 : index
    %c0_43 = arith.constant 0 : index
    %c0_44 = arith.constant 0 : index
    %30 = vector.load %arg14[%c0_41, %c1_42, %c0_43, %c0_44] : memref<2x15x24x32xf32, #tpu.memory_space<vmem>>, vector<2x13x16x32xf32>
    %c0_45 = arith.constant 0 : index
    %c1_46 = arith.constant 1 : index
    %c1_47 = arith.constant 1 : index
    %c0_48 = arith.constant 0 : index
    %31 = vector.load %arg14[%c0_45, %c1_46, %c1_47, %c0_48] : memref<2x15x24x32xf32, #tpu.memory_space<vmem>>, vector<2x13x16x32xf32>
    %c0_49 = arith.constant 0 : index
    %c1_50 = arith.constant 1 : index
    %c2_51 = arith.constant 2 : index
    %c0_52 = arith.constant 0 : index
    %32 = vector.load %arg14[%c0_49, %c1_50, %c2_51, %c0_52] : memref<2x15x24x32xf32, #tpu.memory_space<vmem>>, vector<2x13x16x32xf32>
    %c0_53 = arith.constant 0 : index
    %c2_54 = arith.constant 2 : index
    %c0_55 = arith.constant 0 : index
    %c0_56 = arith.constant 0 : index
    %33 = vector.load %arg14[%c0_53, %c2_54, %c0_55, %c0_56] : memref<2x15x24x32xf32, #tpu.memory_space<vmem>>, vector<2x13x16x32xf32>
    %c0_57 = arith.constant 0 : index
    %c2_58 = arith.constant 2 : index
    %c1_59 = arith.constant 1 : index
    %c0_60 = arith.constant 0 : index
    %34 = vector.load %arg14[%c0_57, %c2_58, %c1_59, %c0_60] : memref<2x15x24x32xf32, #tpu.memory_space<vmem>>, vector<2x13x16x32xf32>
    %c0_61 = arith.constant 0 : index
    %c2_62 = arith.constant 2 : index
    %c2_63 = arith.constant 2 : index
    %c0_64 = arith.constant 0 : index
    %35 = vector.load %arg14[%c0_61, %c2_62, %c2_63, %c0_64] : memref<2x15x24x32xf32, #tpu.memory_space<vmem>>, vector<2x13x16x32xf32>
    %36 = tpu.concatenate %27, %28, %29, %30, %31, %32, %33, %34, %35 in 3 : vector<2x13x16x32xf32>, vector<2x13x16x32xf32>, vector<2x13x16x32xf32>, vector<2x13x16x32xf32>, vector<2x13x16x32xf32>, vector<2x13x16x32xf32>, vector<2x13x16x32xf32>, vector<2x13x16x32xf32>, vector<2x13x16x32xf32> -> vector<2x13x16x288xf32>
    %37 = vector.shape_cast %36 : vector<2x13x16x288xf32> to vector<416x288xf32>
    %38 = arith.truncf %37 : vector<416x288xf32> to vector<416x288xbf16>
    %c0_65 = arith.constant 0 : index
    %c0_66 = arith.constant 0 : index
    %39 = vector.load %arg4[%c0_65, %c0_66] : memref<288x64xbf16, #tpu.memory_space<vmem>>, vector<288x64xbf16>
    %cst_67 = arith.constant dense<0.000000e+00> : vector<416x64xf32>
    %40 = tpu.matmul %38, %39, %cst_67 {dimension_numbers = #tpu.dot_dimension_numbers<[1], [0], [0], [1], [0, 0, 1, 1], [], []>} : vector<416x288xbf16>, vector<288x64xbf16>, vector<416x64xf32> -> vector<416x64xf32>
    %41 = vector.shape_cast %40 : vector<416x64xf32> to vector<2x13x16x64xf32>
    %42 = vector.extract_strided_slice %41 {offsets = [0, 0, 0, 0], sizes = [2, 12, 16, 64], strides = [1, 1, 1, 1]} : vector<2x13x16x64xf32> to vector<2x12x16x64xf32>
    %43 = vector.shape_cast %42 : vector<2x12x16x64xf32> to vector<12x2x16x64xf32>
    %44 = vector.extract_strided_slice %43 {offsets = [0, 0, 0, 0], sizes = [12, 1, 16, 64], strides = [1, 1, 1, 1]} : vector<12x2x16x64xf32> to vector<12x1x16x64xf32>
    %45 = vector.shape_cast %44 : vector<12x1x16x64xf32> to vector<12x16x64xf32>
    %46 = vector.extract_strided_slice %43 {offsets = [0, 1, 0, 0], sizes = [12, 1, 16, 64], strides = [1, 1, 1, 1]} : vector<12x2x16x64xf32> to vector<12x1x16x64xf32>
    %47 = vector.shape_cast %46 : vector<12x1x16x64xf32> to vector<12x16x64xf32>
    %48 = arith.maximumf %45, %47 : vector<12x16x64xf32>
    %49 = vector.shape_cast %48 : vector<12x16x64xf32> to vector<2x6x16x64xf32>
    %c0_68 = arith.constant 0 : index
    %c0_69 = arith.constant 0 : index
    %c0_70 = arith.constant 0 : index
    %c0_71 = arith.constant 0 : index
    %50 = vector.load %arg15[%c0_68, %c0_69, %c0_70, %c0_71] : memref<2x6x16x64xf32, #tpu.memory_space<vmem>>, vector<2x6x16x64xf32>
    tpu.vector_store %arg15[%c0_68, %c0_69, %c0_70, %c0_71], %49 {strides = array<i32>} : memref<2x6x16x64xf32, #tpu.memory_space<vmem>>, vector<2x6x16x64xf32>,
    %c0_72 = arith.constant 0 : index
    %c0_73 = arith.constant 0 : index
    %c0_74 = arith.constant 0 : index
    %c0_75 = arith.constant 0 : index
    %51 = tpu.strided_load %arg15[%c0_72, %c0_73, %c0_74, %c0_75] {strides = array<i32: 1, 1, 2, 1>} : memref<2x6x16x64xf32, #tpu.memory_space<vmem>>, vector<2x6x8x64xf32>
    %c0_76 = arith.constant 0 : index
    %c0_77 = arith.constant 0 : index
    %c1_78 = arith.constant 1 : index
    %c0_79 = arith.constant 0 : index
    %52 = tpu.strided_load %arg15[%c0_76, %c0_77, %c1_78, %c0_79] {strides = array<i32: 1, 1, 2, 1>} : memref<2x6x16x64xf32, #tpu.memory_space<vmem>>, vector<2x6x8x64xf32>
    %53 = arith.maximumf %51, %52 : vector<2x6x8x64xf32>
    %c0_80 = arith.constant 0 : index
    %c0_81 = arith.constant 0 : index
    %54 = vector.load %arg5[%c0_80, %c0_81] : memref<1x64xf32, #tpu.memory_space<vmem>>, vector<1x64xf32>
    %55 = vector.shape_cast %54 : vector<1x64xf32> to vector<1x1x1x64xf32>
    %56 = vector.broadcast %55 : vector<1x1x1x64xf32> to vector<2x6x8x64xf32>
    %57 = arith.addf %53, %56 : vector<2x6x8x64xf32>
    %cst_82 = arith.constant 0.000000e+00 : f32
    %58 = vector.broadcast %cst_82 : f32 to vector<2x6x8x64xf32>
    %59 = arith.maximumf %57, %58 : vector<2x6x8x64xf32>
    %c0_83 = arith.constant 0 : index
    %c0_84 = arith.constant 0 : index
    %c0_85 = arith.constant 0 : index
    %c0_86 = arith.constant 0 : index
    %60 = vector.load %arg16[%c0_83, %c0_84, %c0_85, %c0_86] : memref<2x6x16x64xf32, #tpu.memory_space<vmem>>, vector<2x6x8x64xf32>
    tpu.vector_store %arg16[%c0_83, %c0_84, %c0_85, %c0_86], %59 {strides = array<i32>} : memref<2x6x16x64xf32, #tpu.memory_space<vmem>>, vector<2x6x8x64xf32>,
    %c0_87 = arith.constant 0 : index
    %c0_88 = arith.constant 0 : index
    %c0_89 = arith.constant 0 : index
    %c0_90 = arith.constant 0 : index
    %61 = vector.load %arg16[%c0_87, %c0_88, %c0_89, %c0_90] : memref<2x6x16x64xf32, #tpu.memory_space<vmem>>, vector<2x4x8x64xf32>
    %c0_91 = arith.constant 0 : index
    %c0_92 = arith.constant 0 : index
    %c1_93 = arith.constant 1 : index
    %c0_94 = arith.constant 0 : index
    %62 = vector.load %arg16[%c0_91, %c0_92, %c1_93, %c0_94] : memref<2x6x16x64xf32, #tpu.memory_space<vmem>>, vector<2x4x8x64xf32>
    %c0_95 = arith.constant 0 : index
    %c0_96 = arith.constant 0 : index
    %c2_97 = arith.constant 2 : index
    %c0_98 = arith.constant 0 : index
    %63 = vector.load %arg16[%c0_95, %c0_96, %c2_97, %c0_98] : memref<2x6x16x64xf32, #tpu.memory_space<vmem>>, vector<2x4x8x64xf32>
    %c0_99 = arith.constant 0 : index
    %c1_100 = arith.constant 1 : index
    %c0_101 = arith.constant 0 : index
    %c0_102 = arith.constant 0 : index
    %64 = vector.load %arg16[%c0_99, %c1_100, %c0_101, %c0_102] : memref<2x6x16x64xf32, #tpu.memory_space<vmem>>, vector<2x4x8x64xf32>
    %c0_103 = arith.constant 0 : index
    %c1_104 = arith.constant 1 : index
    %c1_105 = arith.constant 1 : index
    %c0_106 = arith.constant 0 : index
    %65 = vector.load %arg16[%c0_103, %c1_104, %c1_105, %c0_106] : memref<2x6x16x64xf32, #tpu.memory_space<vmem>>, vector<2x4x8x64xf32>
    %c0_107 = arith.constant 0 : index
    %c1_108 = arith.constant 1 : index
    %c2_109 = arith.constant 2 : index
    %c0_110 = arith.constant 0 : index
    %66 = vector.load %arg16[%c0_107, %c1_108, %c2_109, %c0_110] : memref<2x6x16x64xf32, #tpu.memory_space<vmem>>, vector<2x4x8x64xf32>
    %c0_111 = arith.constant 0 : index
    %c2_112 = arith.constant 2 : index
    %c0_113 = arith.constant 0 : index
    %c0_114 = arith.constant 0 : index
    %67 = vector.load %arg16[%c0_111, %c2_112, %c0_113, %c0_114] : memref<2x6x16x64xf32, #tpu.memory_space<vmem>>, vector<2x4x8x64xf32>
    %c0_115 = arith.constant 0 : index
    %c2_116 = arith.constant 2 : index
    %c1_117 = arith.constant 1 : index
    %c0_118 = arith.constant 0 : index
    %68 = vector.load %arg16[%c0_115, %c2_116, %c1_117, %c0_118] : memref<2x6x16x64xf32, #tpu.memory_space<vmem>>, vector<2x4x8x64xf32>
    %c0_119 = arith.constant 0 : index
    %c2_120 = arith.constant 2 : index
    %c2_121 = arith.constant 2 : index
    %c0_122 = arith.constant 0 : index
    %69 = vector.load %arg16[%c0_119, %c2_120, %c2_121, %c0_122] : memref<2x6x16x64xf32, #tpu.memory_space<vmem>>, vector<2x4x8x64xf32>
    %70 = tpu.concatenate %61, %62, %63, %64, %65, %66, %67, %68, %69 in 3 : vector<2x4x8x64xf32>, vector<2x4x8x64xf32>, vector<2x4x8x64xf32>, vector<2x4x8x64xf32>, vector<2x4x8x64xf32>, vector<2x4x8x64xf32>, vector<2x4x8x64xf32>, vector<2x4x8x64xf32>, vector<2x4x8x64xf32> -> vector<2x4x8x576xf32>
    %71 = vector.shape_cast %70 : vector<2x4x8x576xf32> to vector<64x576xf32>
    %72 = arith.truncf %71 : vector<64x576xf32> to vector<64x576xbf16>
    %c0_123 = arith.constant 0 : index
    %c0_124 = arith.constant 0 : index
    %73 = vector.load %arg6[%c0_123, %c0_124] : memref<576x128xbf16, #tpu.memory_space<vmem>>, vector<576x128xbf16>
    %cst_125 = arith.constant dense<0.000000e+00> : vector<64x128xf32>
    %74 = tpu.matmul %72, %73, %cst_125 {dimension_numbers = #tpu.dot_dimension_numbers<[1], [0], [0], [1], [0, 0, 1, 1], [], []>} : vector<64x576xbf16>, vector<576x128xbf16>, vector<64x128xf32> -> vector<64x128xf32>
    %75 = vector.shape_cast %74 : vector<64x128xf32> to vector<2x4x8x128xf32>
    %76 = vector.shape_cast %75 : vector<2x4x8x128xf32> to vector<4x2x8x128xf32>
    %77 = vector.extract_strided_slice %76 {offsets = [0, 0, 0, 0], sizes = [4, 1, 8, 128], strides = [1, 1, 1, 1]} : vector<4x2x8x128xf32> to vector<4x1x8x128xf32>
    %78 = vector.shape_cast %77 : vector<4x1x8x128xf32> to vector<4x8x128xf32>
    %79 = vector.extract_strided_slice %76 {offsets = [0, 1, 0, 0], sizes = [4, 1, 8, 128], strides = [1, 1, 1, 1]} : vector<4x2x8x128xf32> to vector<4x1x8x128xf32>
    %80 = vector.shape_cast %79 : vector<4x1x8x128xf32> to vector<4x8x128xf32>
    %81 = arith.maximumf %78, %80 : vector<4x8x128xf32>
    %82 = vector.shape_cast %81 : vector<4x8x128xf32> to vector<2x2x8x128xf32>
    %c0_126 = arith.constant 0 : index
    %c0_127 = arith.constant 0 : index
    %c0_128 = arith.constant 0 : index
    %c0_129 = arith.constant 0 : index
    %83 = vector.load %arg17[%c0_126, %c0_127, %c0_128, %c0_129] : memref<2x2x8x128xf32, #tpu.memory_space<vmem>>, vector<2x2x8x128xf32>
    tpu.vector_store %arg17[%c0_126, %c0_127, %c0_128, %c0_129], %82 {strides = array<i32>} : memref<2x2x8x128xf32, #tpu.memory_space<vmem>>, vector<2x2x8x128xf32>,
    %c0_130 = arith.constant 0 : index
    %c0_131 = arith.constant 0 : index
    %84 = vector.load %arg7[%c0_130, %c0_131] : memref<1x128xf32, #tpu.memory_space<vmem>>, vector<1x128xf32>
    %c0_132 = arith.constant 0 : index
    %c0_133 = arith.constant 0 : index
    %c0_134 = arith.constant 0 : index
    %c0_135 = arith.constant 0 : index
    %85 = vector.load %arg17[%c0_132, %c0_133, %c0_134, %c0_135] : memref<2x2x8x128xf32, #tpu.memory_space<vmem>>, vector<2x1x1x128xf32>
    %86 = vector.shape_cast %85 : vector<2x1x1x128xf32> to vector<2x128xf32>
    %c0_136 = arith.constant 0 : index
    %c0_137 = arith.constant 0 : index
    %c1_138 = arith.constant 1 : index
    %c0_139 = arith.constant 0 : index
    %87 = vector.load %arg17[%c0_136, %c0_137, %c1_138, %c0_139] : memref<2x2x8x128xf32, #tpu.memory_space<vmem>>, vector<2x1x1x128xf32>
    %88 = vector.shape_cast %87 : vector<2x1x1x128xf32> to vector<2x128xf32>
    %89 = arith.maximumf %86, %88 : vector<2x128xf32>
    %90 = vector.broadcast %84 : vector<1x128xf32> to vector<2x128xf32>
    %91 = arith.addf %89, %90 : vector<2x128xf32>
    %cst_140 = arith.constant 0.000000e+00 : f32
    %92 = vector.broadcast %cst_140 : f32 to vector<2x128xf32>
    %93 = arith.maximumf %91, %92 : vector<2x128xf32>
    %94 = arith.truncf %93 : vector<2x128xf32> to vector<2x128xbf16>
    %c0_141 = arith.constant 0 : index
    %c0_142 = arith.constant 0 : index
    %c2_143 = arith.constant 2 : index
    %c0_144 = arith.constant 0 : index
    %95 = vector.load %arg17[%c0_141, %c0_142, %c2_143, %c0_144] : memref<2x2x8x128xf32, #tpu.memory_space<vmem>>, vector<2x1x1x128xf32>
    %96 = vector.shape_cast %95 : vector<2x1x1x128xf32> to vector<2x128xf32>
    %c0_145 = arith.constant 0 : index
    %c0_146 = arith.constant 0 : index
    %c3 = arith.constant 3 : index
    %c0_147 = arith.constant 0 : index
    %97 = vector.load %arg17[%c0_145, %c0_146, %c3, %c0_147] : memref<2x2x8x128xf32, #tpu.memory_space<vmem>>, vector<2x1x1x128xf32>
    %98 = vector.shape_cast %97 : vector<2x1x1x128xf32> to vector<2x128xf32>
    %99 = arith.maximumf %96, %98 : vector<2x128xf32>
    %100 = vector.broadcast %84 : vector<1x128xf32> to vector<2x128xf32>
    %101 = arith.addf %99, %100 : vector<2x128xf32>
    %cst_148 = arith.constant 0.000000e+00 : f32
    %102 = vector.broadcast %cst_148 : f32 to vector<2x128xf32>
    %103 = arith.maximumf %101, %102 : vector<2x128xf32>
    %104 = arith.truncf %103 : vector<2x128xf32> to vector<2x128xbf16>
    %c0_149 = arith.constant 0 : index
    %c1_150 = arith.constant 1 : index
    %c0_151 = arith.constant 0 : index
    %c0_152 = arith.constant 0 : index
    %105 = vector.load %arg17[%c0_149, %c1_150, %c0_151, %c0_152] : memref<2x2x8x128xf32, #tpu.memory_space<vmem>>, vector<2x1x1x128xf32>
    %106 = vector.shape_cast %105 : vector<2x1x1x128xf32> to vector<2x128xf32>
    %c0_153 = arith.constant 0 : index
    %c1_154 = arith.constant 1 : index
    %c1_155 = arith.constant 1 : index
    %c0_156 = arith.constant 0 : index
    %107 = vector.load %arg17[%c0_153, %c1_154, %c1_155, %c0_156] : memref<2x2x8x128xf32, #tpu.memory_space<vmem>>, vector<2x1x1x128xf32>
    %108 = vector.shape_cast %107 : vector<2x1x1x128xf32> to vector<2x128xf32>
    %109 = arith.maximumf %106, %108 : vector<2x128xf32>
    %110 = vector.broadcast %84 : vector<1x128xf32> to vector<2x128xf32>
    %111 = arith.addf %109, %110 : vector<2x128xf32>
    %cst_157 = arith.constant 0.000000e+00 : f32
    %112 = vector.broadcast %cst_157 : f32 to vector<2x128xf32>
    %113 = arith.maximumf %111, %112 : vector<2x128xf32>
    %114 = arith.truncf %113 : vector<2x128xf32> to vector<2x128xbf16>
    %c0_158 = arith.constant 0 : index
    %c1_159 = arith.constant 1 : index
    %c2_160 = arith.constant 2 : index
    %c0_161 = arith.constant 0 : index
    %115 = vector.load %arg17[%c0_158, %c1_159, %c2_160, %c0_161] : memref<2x2x8x128xf32, #tpu.memory_space<vmem>>, vector<2x1x1x128xf32>
    %116 = vector.shape_cast %115 : vector<2x1x1x128xf32> to vector<2x128xf32>
    %c0_162 = arith.constant 0 : index
    %c1_163 = arith.constant 1 : index
    %c3_164 = arith.constant 3 : index
    %c0_165 = arith.constant 0 : index
    %117 = vector.load %arg17[%c0_162, %c1_163, %c3_164, %c0_165] : memref<2x2x8x128xf32, #tpu.memory_space<vmem>>, vector<2x1x1x128xf32>
    %118 = vector.shape_cast %117 : vector<2x1x1x128xf32> to vector<2x128xf32>
    %119 = arith.maximumf %116, %118 : vector<2x128xf32>
    %120 = vector.broadcast %84 : vector<1x128xf32> to vector<2x128xf32>
    %121 = arith.addf %119, %120 : vector<2x128xf32>
    %cst_166 = arith.constant 0.000000e+00 : f32
    %122 = vector.broadcast %cst_166 : f32 to vector<2x128xf32>
    %123 = arith.maximumf %121, %122 : vector<2x128xf32>
    %124 = arith.truncf %123 : vector<2x128xf32> to vector<2x128xbf16>
    %125 = tpu.concatenate %94, %104, %114, %124 in 1 : vector<2x128xbf16>, vector<2x128xbf16>, vector<2x128xbf16>, vector<2x128xbf16> -> vector<2x512xbf16>
    %c0_167 = arith.constant 0 : index
    %c0_168 = arith.constant 0 : index
    %126 = vector.load %arg8[%c0_167, %c0_168] : memref<512x128xbf16, #tpu.memory_space<vmem>>, vector<512x128xbf16>
    %cst_169 = arith.constant dense<0.000000e+00> : vector<2x128xf32>
    %127 = tpu.matmul %125, %126, %cst_169 {dimension_numbers = #tpu.dot_dimension_numbers<[1], [0], [0], [1], [0, 0, 1, 1], [], []>} : vector<2x512xbf16>, vector<512x128xbf16>, vector<2x128xf32> -> vector<2x128xf32>
    %c0_170 = arith.constant 0 : index
    %c0_171 = arith.constant 0 : index
    %128 = vector.load %arg9[%c0_170, %c0_171] : memref<1x128xf32, #tpu.memory_space<vmem>>, vector<1x128xf32>
    %129 = vector.broadcast %128 : vector<1x128xf32> to vector<2x128xf32>
    %130 = arith.addf %127, %129 : vector<2x128xf32>
    %cst_172 = arith.constant 0.000000e+00 : f32
    %131 = vector.broadcast %cst_172 : f32 to vector<2x128xf32>
    %132 = arith.maximumf %130, %131 : vector<2x128xf32>
    %133 = arith.truncf %132 : vector<2x128xf32> to vector<2x128xbf16>
    %c0_173 = arith.constant 0 : index
    %c0_174 = arith.constant 0 : index
    %134 = vector.load %arg10[%c0_173, %c0_174] : memref<128x128xbf16, #tpu.memory_space<vmem>>, vector<128x128xbf16>
    %cst_175 = arith.constant dense<0.000000e+00> : vector<2x128xf32>
    %135 = tpu.matmul %133, %134, %cst_175 {dimension_numbers = #tpu.dot_dimension_numbers<[1], [0], [0], [1], [0, 0, 1, 1], [], []>} : vector<2x128xbf16>, vector<128x128xbf16>, vector<2x128xf32> -> vector<2x128xf32>
    %c0_176 = arith.constant 0 : index
    %c0_177 = arith.constant 0 : index
    %136 = vector.load %arg11[%c0_176, %c0_177] : memref<1x128xf32, #tpu.memory_space<vmem>>, vector<1x128xf32>
    %137 = vector.broadcast %136 : vector<1x128xf32> to vector<2x128xf32>
    %138 = arith.addf %135, %137 : vector<2x128xf32>
    %c0_178 = arith.constant 0 : index
    %c0_179 = arith.constant 0 : index
    %139 = vector.load %arg12[%c0_178, %c0_179] : memref<2x128xf32, #tpu.memory_space<vmem>>, vector<2x128xf32>
    tpu.vector_store %arg12[%c0_178, %c0_179], %138 {strides = array<i32>} : memref<2x128xf32, #tpu.memory_space<vmem>>, vector<2x128xf32>,
    return
  }
  func.func @transform_0(%arg0: i32) -> (i32, i32, i32) {
    %c0_i32 = arith.constant 0 : i32
    %c0_i32_0 = arith.constant 0 : i32
    %c0_i32_1 = arith.constant 0 : i32
    return %arg0, %c0_i32, %c0_i32_0 : i32, i32, i32
  }
  func.func @transform_1(%arg0: i32) -> (i32, i32) {
    %c0_i32 = arith.constant 0 : i32
    %c0_i32_0 = arith.constant 0 : i32
    %c0_i32_1 = arith.constant 0 : i32
    return %c0_i32, %c0_i32_0 : i32, i32
  }
  func.func @transform_2(%arg0: i32) -> (i32, i32) {
    %c0_i32 = arith.constant 0 : i32
    %c0_i32_0 = arith.constant 0 : i32
    %c0_i32_1 = arith.constant 0 : i32
    return %c0_i32, %c0_i32_0 : i32, i32
  }
  func.func @transform_3(%arg0: i32) -> (i32, i32) {
    %c0_i32 = arith.constant 0 : i32
    %c0_i32_0 = arith.constant 0 : i32
    %c0_i32_1 = arith.constant 0 : i32
    return %c0_i32, %c0_i32_0 : i32, i32
  }
  func.func @transform_4(%arg0: i32) -> (i32, i32) {
    %c0_i32 = arith.constant 0 : i32
    %c0_i32_0 = arith.constant 0 : i32
    %c0_i32_1 = arith.constant 0 : i32
    return %c0_i32, %c0_i32_0 : i32, i32
  }
  func.func @transform_5(%arg0: i32) -> (i32, i32) {
    %c0_i32 = arith.constant 0 : i32
    %c0_i32_0 = arith.constant 0 : i32
    %c0_i32_1 = arith.constant 0 : i32
    return %c0_i32, %c0_i32_0 : i32, i32
  }
  func.func @transform_6(%arg0: i32) -> (i32, i32) {
    %c0_i32 = arith.constant 0 : i32
    %c0_i32_0 = arith.constant 0 : i32
    %c0_i32_1 = arith.constant 0 : i32
    return %c0_i32, %c0_i32_0 : i32, i32
  }
  func.func @transform_7(%arg0: i32) -> (i32, i32) {
    %c0_i32 = arith.constant 0 : i32
    %c0_i32_0 = arith.constant 0 : i32
    %c0_i32_1 = arith.constant 0 : i32
    return %c0_i32, %c0_i32_0 : i32, i32
  }
  func.func @transform_8(%arg0: i32) -> (i32, i32) {
    %c0_i32 = arith.constant 0 : i32
    %c0_i32_0 = arith.constant 0 : i32
    %c0_i32_1 = arith.constant 0 : i32
    return %c0_i32, %c0_i32_0 : i32, i32
  }
  func.func @transform_9(%arg0: i32) -> (i32, i32) {
    %c0_i32 = arith.constant 0 : i32
    %c0_i32_0 = arith.constant 0 : i32
    %c0_i32_1 = arith.constant 0 : i32
    return %c0_i32, %c0_i32_0 : i32, i32
  }
  func.func @transform_10(%arg0: i32) -> (i32, i32) {
    %c0_i32 = arith.constant 0 : i32
    %c0_i32_0 = arith.constant 0 : i32
    %c0_i32_1 = arith.constant 0 : i32
    return %c0_i32, %c0_i32_0 : i32, i32
  }
  func.func @transform_11(%arg0: i32) -> (i32, i32) {
    %c0_i32 = arith.constant 0 : i32
    %c0_i32_0 = arith.constant 0 : i32
    return %arg0, %c0_i32 : i32, i32
  }
}

</mosaic_0001>

<bundles_post_ra>
// kernel: approximate_encoder.1
= control target key start
LH: loop header
LB: loop body
LE: loop exit
PB: predicated region body
PF: predicated region fallthrough
CT: control target
= control target key end

     0   :  { %vm1300_vm0 = vcmask 1044480   ;;  %vm1301_vm1 = vcmask 1045504   ;;  %v8918_v3 = vmov 65535   ;;  %s11779_s0 = inlined_call_operand.vmem [shape: bf16[2,960,27], index: 0, kind: input, shape index: {}]   ;;  %s11780_s1 = inlined_call_operand.vmem [shape: bf16[27,32], index: 1, kind: input, shape index: {}]   ;;  %s11781_s2 = inlined_call_operand.vmem [shape: f32[1,32], index: 2, kind: input, shape index: {}]   ;;  %s11782_s3 = inlined_call_operand.vmem [shape: bf16[288,64], index: 3, kind: input, shape index: {}]   ;;  %s11783_s4 = inlined_call_operand.vmem [shape: f32[1,64], index: 4, kind: input, shape index: {}]   ;;  %s11784_s5 = inlined_call_operand.vmem [shape: bf16[576,128], index: 5, kind: input, shape index: {}]   ;;  %s11785_s6 = inlined_call_operand.vmem [shape: f32[1,128], index: 6, kind: input, shape index: {}]   ;;  %s11786_s7 = inlined_call_operand.vmem [shape: bf16[512,128], index: 7, kind: input, shape index: {}]   ;;  %s11787_s8 = inlined_call_operand.vmem [shape: f32[1,128], index: 8, kind: input, shape index: {}]   ;;  %s11788_s9 = inlined_call_operand.vmem [shape: bf16[128,128], index: 9, kind: input, shape index: {}]   ;;  %s11789_s10 = inlined_call_operand.vmem [shape: f32[1,128], index: 10, kind: input, shape index: {}]   ;;  %s11790_s11 = inlined_call_operand.hbm [shape: f32[2,128], index: 11, kind: output, shape index: {}]  }
   0x1   :  { %v7229_v0 = vld [vmem:[%s11780_s1 + $0x8] sm:$0xf]  ;;  %v7886_v1 = vld [vmem:[%s11780_s1 + $0x8] sm:$0x30]  ;;  %v1302_v4 = vsel %vm1300_vm0, 4294967295, %v8918_v3 }
   0x2   :  { %v7230_v2 = vor.u32 %v7886_v1, %v7229_v0  ;;  %v1303_v5 = vsel %vm1301_vm1, %v1302_v4, 0 }
   0x4   :  { %v1305_v6 = vand.u32 %v7230_v2, %v1303_v5 }
   0x5   :  { %16 = vsyncpa [#allocation8], 0  ;;  %v7885_v7 = vld [vmem:[%s11780_s1] sm:$0xff]  ;;  %vm939_vm2 = vcmask 220160   ;;  %v7766_v9 = vld [vmem:[%s11779_s0 + $0x8] sm:$0xff]  ;;  %vm40_vm3 = vcmask 261120  }
   0x6   :  { %1313 = vmatpush.bf16.msra.mxu0 %v1305_v6  ;;  %7982 = vmatpush.bf16.msra.mxu3 %v1305_v6  ;;  %v7765_v8 = vld [vmem:[%s11779_s0] sm:$0xff]  ;;  %v7767_v10 = vld [vmem:[%s11779_s0 + $0x10] sm:$0xff]  ;;  %v7768_v11 = vld [vmem:[%s11779_s0 + $0x18] sm:$0xff]  ;;  %v8919_v27 = vmov 0.0   ;;  %s8920_s13 = smov 32   ;;  %s8921_s14 = smov 64  }
   0x7   :  { %7981 = vmatpush.bf16.msra.mxu2 %v1305_v6  ;;  %v7769_v12 = vld [vmem:[%s11779_s0 + $0x20] sm:$0xff]  ;;  %v7770_v13 = vld [vmem:[%s11779_s0 + $0x28] sm:$0xff]  ;;  %v7771_v14 = vld [vmem:[%s11779_s0 + $0x30] sm:$0xff]  ;;  %41 = vst.msk [vmem:[#allocation3 + $0x10] sm:$0xff] %vm40_vm3, %v8919_v27  ;;  %s8922_s30 = smov 96   ;;  %vm71_vm4 = vcmask 523264  }
   0x8   :  { %v7772_v15 = vld [vmem:[%s11779_s0 + $0x38] sm:$0xff]  ;;  %v7773_v16 = vld [vmem:[%s11779_s0 + $0x40] sm:$0xff]  ;;  %v7774_v19 = vld [vmem:[%s11779_s0 + $0x48] sm:$0xff]  ;;  %42 = vst.msk [vmem:[#allocation3 + $0x28] sm:$0xff] %vm40_vm3, %v8919_v27  ;;  %vm4461_vm5 = vcmask 785408   ;;  %vm6291_vm6 = vcmask 1041409  }
   0x9   :  { %v7775_v22 = vld [vmem:[%s11779_s0 + $0x50] sm:$0xff]  ;;  %43 = vst.msk [vmem:[#allocation3 + $0x40] sm:$0xff] %vm40_vm3, %v8919_v27  ;;  %v7776_v28 = vld [vmem:[%s11779_s0 + $0x58] sm:$0xff]  ;;  %v9059_v31 = vld [vmem:[%s11781_s2] ss:$0 sm:$0xff] }
   0xa   :  { %1314 = vmatpush.bf16.msra.mxu0 %v7885_v7  ;;  %7984 = vmatpush.bf16.msra.mxu3 %v7885_v7  ;;  %44 = vst.msk [vmem:[#allocation3 + $0x58] sm:$0xff] %vm40_vm3, %v8919_v27  ;;  %v7777_v39 = vld [vmem:[%s11779_s0 + $0x60] sm:$0xff]  ;;  %v7778_v47 = vld [vmem:[%s11779_s0 + $0x68] sm:$0xff]  ;;  %v7779_v57 = vld [vmem:[%s11779_s0 + $0x70] sm:$0xff] }
   0xb   :  { %7983 = vmatpush.bf16.msra.mxu2 %v7885_v7  ;;  %45 = vst.msk [vmem:[#allocation3 + $0x70] sm:$0xff] %vm40_vm3, %v8919_v27  ;;  %v7837_v56 = vld [vmem:[%s11779_s0 + $0x240] sm:$0xff]  ;;  %v7838_v62 = vld [vmem:[%s11779_s0 + $0x248] sm:$0xff]  ;;  %v7780_v63 = vld [vmem:[%s11779_s0 + $0x78] sm:$0xff] }
   0xc   :  { %46 = vst.msk [vmem:[#allocation3 + $0x88] sm:$0xff] %vm40_vm3, %v8919_v27 }
   0xd   :  { %7231 = vmatmul.msk.bf16.vlgmr.msra.gmra.mxu0 %vm939_vm2, %v7765_v8  ;;  %47 = vst.msk [vmem:[#allocation3 + $0xa0] sm:$0xff] %vm40_vm3, %v8919_v27  ;;  %7303 = vmatmul.msk.bf16.vlgmr.msra.gmra.mxu3 %vm939_vm2, %v7837_v56 }
   0xe   :  { %48 = vst.msk [vmem:[#allocation3 + $0xb8] sm:$0xff] %vm40_vm3, %v8919_v27 }
   0xf   :  { %49 = vst.msk [vmem:[#allocation3 + $0xd0] sm:$0xff] %vm40_vm3, %v8919_v27 }
  0x10   :  { %50 = vst.msk [vmem:[#allocation3 + $0xe8] sm:$0xff] %vm40_vm3, %v8919_v27 }
  0x11   :  { %51 = vst.msk [vmem:[#allocation3 + $0x100] sm:$0xff] %vm40_vm3, %v8919_v27 }
  0x12   :  { %52 = vst.msk [vmem:[#allocation3 + $0x118] sm:$0xff] %vm40_vm3, %v8919_v27 }
  0x13   :  { %53 = vst.msk [vmem:[#allocation3 + $0x130] sm:$0xff] %vm40_vm3, %v8919_v27 }
  0x14   :  { %54 = vst.msk [vmem:[#allocation3 + $0x148] sm:$0xff] %vm40_vm3, %v8919_v27 }
  0x15   :  { %55 = vst.msk [vmem:[#allocation3 + $0x160] sm:$0xff] %vm40_vm3, %v8919_v27 }
  0x16   :  { %56 = vst.msk [vmem:[#allocation3 + $0x178] sm:$0xff] %vm40_vm3, %v8919_v27 }
  0x17   :  { %57 = vst.msk [vmem:[#allocation3 + $0x190] sm:$0xff] %vm40_vm3, %v8919_v27 }
  0x18   :  { %58 = vst.msk [vmem:[#allocation3 + $0x1a8] sm:$0xff] %vm40_vm3, %v8919_v27 }
  0x19   :  { %59 = vst.msk [vmem:[#allocation3 + $0x1c0] sm:$0xff] %vm40_vm3, %v8919_v27 }
  0x1a   :  { %60 = vst.msk [vmem:[#allocation3 + $0x1d8] sm:$0xff] %vm40_vm3, %v8919_v27 }
  0x1b   :  { %61 = vst.msk [vmem:[#allocation3 + $0x1f0] sm:$0xff] %vm40_vm3, %v8919_v27 }
  0x1c   :  { %62 = vst.msk [vmem:[#allocation3 + $0x208] sm:$0xff] %vm40_vm3, %v8919_v27 }
  0x1d   :  { %7232 = vmatmul.msk.bf16.gmra.mxu0 %vm939_vm2, %v7766_v9  ;;  %63 = vst.msk [vmem:[#allocation3 + $0x220] sm:$0xff] %vm40_vm3, %v8919_v27  ;;  %7304 = vmatmul.msk.bf16.gmra.mxu3 %vm939_vm2, %v7838_v62  ;;  %v7839_v9 = vld [vmem:[%s11779_s0 + $0x250] sm:$0xff] }
  0x1e   :  { %64 = vst.msk [vmem:[#allocation3 + $0x238] sm:$0xff] %vm40_vm3, %v8919_v27  ;;  %v7893_v62 = vld [vmem:[%s11782_s3 + $0x30] sm:$0xff] }
  0x1f   :  { %65 = vst.msk [vmem:[#allocation3 + $0x250] sm:$0xff] %vm40_vm3, %v8919_v27 }
  0x20   :  { %66 = vst.msk [vmem:[#allocation3 + $0x268] sm:$0xff] %vm40_vm3, %v8919_v27 }
  0x21   :  { %67 = vst.msk [vmem:[#allocation3 + $0x280] sm:$0xff] %vm40_vm3, %v8919_v27 }
  0x22   :  { %68 = vst.msk [vmem:[#allocation3 + $0x298] sm:$0xff] %vm40_vm3, %v8919_v27 }
  0x23   :  { %69 = vst.msk [vmem:[#allocation3 + $0x2b0] sm:$0xff] %vm40_vm3, %v8919_v27 }
  0x24   :  { %70 = vst.msk [vmem:[#allocation3 + $0x2c8] sm:$0xff] %vm40_vm3, %v8919_v27 }
  0x25   :  { %72 = vst.msk [vmem:[#allocation5 + $0x8] sm:$0xff] %vm71_vm4, %v8919_v27 }
  0x26   :  { %73 = vst.msk [vmem:[#allocation5 + $0x18] sm:$0xff] %vm71_vm4, %v8919_v27 }
  0x27   :  { %74 = vst.msk [vmem:[#allocation5 + $0x28] sm:$0xff] %vm71_vm4, %v8919_v27 }
  0x28   :  { %75 = vst.msk [vmem:[#allocation5 + $0x38] sm:$0xff] %vm71_vm4, %v8919_v27 }
  0x29   :  { %76 = vst.msk [vmem:[#allocation5 + $0x48] sm:$0xff] %vm71_vm4, %v8919_v27 }
  0x2a   :  { %77 = vst.msk [vmem:[#allocation5 + $0x58] sm:$0xff] %vm71_vm4, %v8919_v27 }
  0x2b   :  { %78 = vst.msk [vmem:[#allocation5 + $0x68] sm:$0xff] %vm71_vm4, %v8919_v27 }
  0x2c   :  { %79 = vst.msk [vmem:[#allocation5 + $0x78] sm:$0xff] %vm71_vm4, %v8919_v27 }
  0x2d   :  { %7233 = vmatmul.msk.bf16.gmra.mxu0 %vm939_vm2, %v7767_v10  ;;  %7305 = vmatmul.msk.bf16.gmra.mxu3 %vm939_vm2, %v7839_v9  ;;  %v7781_v10 = vld [vmem:[%s11779_s0 + $0x80] sm:$0xff]  ;;  %80 = vst.msk [vmem:[#allocation5 + $0x88] sm:$0xff] %vm71_vm4, %v8919_v27 }
  0x2e   :  { %81 = vst.msk [vmem:[#allocation5 + $0x98] sm:$0xff] %vm71_vm4, %v8919_v27  ;;  %v7891_v9 = vld [vmem:[%s11782_s3 + $0x20] sm:$0xff] }
  0x2f   :  { %82 = vst.msk [vmem:[#allocation5 + $0xa8] sm:$0xff] %vm71_vm4, %v8919_v27 }
  0x30   :  { %83 = vst.msk [vmem:[#allocation5 + $0xb8] sm:$0xff] %vm71_vm4, %v8919_v27  ;;  %v7844_v27 = vld [vmem:[%s11779_s0 + $0x278] sm:$0xff] }
  0x3d   :  { %7234 = vmatmul.msk.bf16.gmra.mxu0 %vm939_vm2, %v7768_v11 }
  0x4d   :  { %7235 = vmatmul.msk.bf16.gmra.mxu0 %vm939_vm2, %v7769_v12 }
  0x5d   :  { %7236 = vmatmul.msk.bf16.gmra.mxu0 %vm939_vm2, %v7770_v13 }
  0x6d   :  { %7237 = vmatmul.msk.bf16.gmra.mxu0 %vm939_vm2, %v7771_v14 }
  0x7d   :  { %7238 = vmatmul.msk.bf16.gmra.mxu0 %vm939_vm2, %v7772_v15 }
  0x8a   :  { %v1316_v17 = vpop.f32.mrf.mxu0 }
  0x8d   :  { %7239 = vmatmul.msk.bf16.gmra.mxu0 %vm939_vm2, %v7773_v16 }
  0x92   :  { %v1318_v18 = vpop.f32.mrf.mxu0 }
  0x9a   :  { %v1321_v20 = vpop.f32.mrf.mxu0 }
  0x9d   :  { %7240 = vmatmul.msk.bf16.gmra.mxu0 %vm939_vm2, %v7774_v19  ;;  %v7782_v19 = vld [vmem:[%s11779_s0 + $0x88] sm:$0xff] }
  0xa2   :  { %v1323_v21 = vpop.f32.mrf.mxu0 }
  0xaa   :  { %v1326_v23 = vpop.f32.mrf.mxu0 }
  0xab   :  { %v1916_v24 = vmax.f32 %v1316_v17, %v1326_v23 }
  0xad   :  { %2036 = vst.msk [vmem:[#allocation2] sm:$0xff] %vm40_vm3, %v1916_v24  ;;  %7241 = vmatmul.msk.bf16.gmra.mxu0 %vm939_vm2, %v7775_v22 }
  0xb2   :  { %v1328_v25 = vpop.f32.mrf.mxu0 }
  0xb3   :  { %v1917_v26 = vmax.f32 %v1318_v18, %v1328_v25  ;;  %v7840_v18 = vld [vmem:[%s11779_s0 + $0x258] sm:$0xff] }
  0xb4   :  { %7306 = vmatmul.msk.bf16.gmra.mxu3 %vm939_vm2, %v7840_v18  ;;  %v7888_v18 = vld [vmem:[%s11782_s3 + $0x8] sm:$0xff] }
  0xb5   :  { %2037 = vst.msk [vmem:[#allocation2 + $0x8] sm:$0xff] %vm40_vm3, %v1917_v26 }
  0xba   :  { %v1331_v29 = vpop.f32.mrf.mxu0 }
  0xbb   :  { %v1918_v30 = vmax.f32 %v1321_v20, %v1331_v29 }
  0xbc   :  { %v2156_v32 = vld [vmem:[#allocation2] ss:$2 sm:$0xff]  ;;  %v2276_v33 = vld [vmem:[#allocation2 + $0x1] ss:$2 sm:$0xff] }
  0xbd   :  { %v2395_v34 = vmax.f32 %v2156_v32, %v2276_v33  ;;  %2038 = vst.msk [vmem:[#allocation2 + $0x10] sm:$0xff] %vm40_vm3, %v1918_v30  ;;  %7242 = vmatmul.msk.bf16.gmra.mxu0 %vm939_vm2, %v7776_v28  ;;  %v7841_v33 = vld [vmem:[%s11779_s0 + $0x260] sm:$0xff] }
  0xbf   :  { %v2459_v35 = vadd.f32 %v9059_v31, %v2395_v34  ;;  %v7783_v34 = vld [vmem:[%s11779_s0 + $0x90] sm:$0xff] }
  0xc1   :  { %v2519_v36 = vmax.f32 %v2459_v35, 0.0 }
  0xc2   :  { %v1333_v37 = vpop.f32.mrf.mxu0 }
  0xc3   :  { %v1919_v38 = vmax.f32 %v1323_v21, %v1333_v37  ;;  %2579 = vst.msk [vmem:[#allocation3] sm:$0xff] %vm40_vm3, %v2519_v36 }
  0xc4   :  { %7307 = vmatmul.msk.bf16.gmra.mxu3 %vm939_vm2, %v7841_v33 }
  0xc5   :  { %2039 = vst.msk [vmem:[#allocation2 + $0x18] sm:$0xff] %vm40_vm3, %v1919_v38 }
  0xca   :  { %v1336_v40 = vpop.f32.mrf.mxu0 }
  0xcc   :  { %v2158_v41 = vld [vmem:[#allocation2 + $0x10] ss:$2 sm:$0xff]  ;;  %v2278_v42 = vld [vmem:[#allocation2 + $0x11] ss:$2 sm:$0xff] }
  0xcd   :  { %v2396_v43 = vmax.f32 %v2158_v41, %v2278_v42  ;;  %7243 = vmatmul.msk.bf16.gmra.mxu0 %vm939_vm2, %v7777_v39  ;;  %v7842_v39 = vld [vmem:[%s11779_s0 + $0x268] sm:$0xff] }
  0xcf   :  { %v2460_v44 = vadd.f32 %v9059_v31, %v2396_v43 }
  0xd1   :  { %v2520_v45 = vmax.f32 %v2460_v44, 0.0 }
  0xd2   :  { %v1338_v46 = vpop.f32.mrf.mxu0 }
  0xd3   :  { %2580 = vst.msk [vmem:[#allocation3 + $0x8] sm:$0xff] %vm40_vm3, %v2520_v45 }
  0xd4   :  { %7308 = vmatmul.msk.bf16.gmra.mxu3 %vm939_vm2, %v7842_v39 }
  0xda   :  { %v1341_v48 = vpop.f32.mrf.mxu0  ;;  %v2691_v49 = vld [vmem:[#allocation3 + $0x1] sm:$0xff]  ;;  %v2692_v50 = vld [vmem:[#allocation3 + $0x9] sm:$0xff] }
  0xdb   :  { %v8003_v51 = vpack.i.bf16 %v2692_v50, %v2691_v49  ;;  %v2743_v52 = vld [vmem:[#allocation3 + $0x2] sm:$0xff]  ;;  %v2744_v53 = vld [vmem:[#allocation3 + $0xa] sm:$0xff] }
  0xdc   :  { %v8008_v55 = vpack.i.bf16 %v2744_v53, %v2743_v52  ;;  %v7843_v50 = vld [vmem:[%s11779_s0 + $0x270] sm:$0xff] }
  0xdd   :  { %7244 = vmatmul.msk.bf16.gmra.mxu0 %vm939_vm2, %v7778_v47  ;;  %8004 = vrot.lane.b32.xlu0 %v8003_v51, %s8920_s13  ;;  %v7785_v51 = vld [vmem:[%s11779_s0 + $0xa0] sm:$0xff] }
  0xe2   :  { %v1343_v54 = vpop.f32.mrf.mxu0 }
  0xe4   :  { %7309 = vmatmul.msk.bf16.gmra.mxu3 %vm939_vm2, %v7843_v50 }
  0xe5   :  { %8009 = vrot.lane.b32.xlu0 %v8008_v55, %s8921_s14 }
  0xea   :  { %v1346_v58 = vpop.f32.mrf.mxu0 }
  0xeb   :  { %v1920_v59 = vmax.f32 %v1336_v40, %v1346_v58  ;;  %v7784_v40 = vld [vmem:[%s11779_s0 + $0x98] sm:$0xff] }
  0xed   :  { %2040 = vst.msk [vmem:[#allocation2 + $0x20] sm:$0xff] %vm40_vm3, %v1920_v59  ;;  %7245 = vmatmul.msk.bf16.gmra.mxu0 %vm939_vm2, %v7779_v57  ;;  %v7894_v59 = vld [vmem:[%s11782_s3 + $0x38] sm:$0xff] }
  0xee   :  { %4970 = vmatpush.bf16.msra.mxu1 %v7894_v59  ;;  %7985 = vmatpush.bf16.msrb.mxu2 %v7894_v59 }
  0xf2   :  { %v1348_v60 = vpop.f32.mrf.mxu0  ;;  %4971 = vmatpush.bf16.msra.mxu1 %v7893_v62  ;;  %7986 = vmatpush.bf16.msrb.mxu2 %v7893_v62 }
  0xf3   :  { %v1921_v61 = vmax.f32 %v1338_v46, %v1348_v60  ;;  %v7786_v60 = vld [vmem:[%s11779_s0 + $0xa8] sm:$0xff] }
  0xf4   :  { %7310 = vmatmul.msk.bf16.gmra.mxu3 %vm939_vm2, %v7844_v27 }
  0xf5   :  { %2041 = vst.msk [vmem:[#allocation2 + $0x28] sm:$0xff] %vm40_vm3, %v1921_v61 }
  0xfa   :  { %v1351_v0 = vpop.f32.mrf.mxu0 }
  0xfb   :  { %v1922_v1 = vmax.f32 %v1341_v48, %v1351_v0 }
  0xfc   :  { %v2160_v2 = vld [vmem:[#allocation2 + $0x20] ss:$2 sm:$0xff]  ;;  %v2280_v3 = vld [vmem:[#allocation2 + $0x21] ss:$2 sm:$0xff] }
  0xfd   :  { %v2397_v4 = vmax.f32 %v2160_v2, %v2280_v3  ;;  %2042 = vst.msk [vmem:[#allocation2 + $0x30] sm:$0xff] %vm40_vm3, %v1922_v1  ;;  %7246 = vmatmul.msk.bf16.gmra.mxu0 %vm939_vm2, %v7780_v63 }
  0xff   :  { %v2461_v5 = vadd.f32 %v9059_v31, %v2397_v4 }
 0x101   :  { %v2521_v6 = vmax.f32 %v2461_v5, 0.0 }
 0x102   :  { %v1353_v7 = vpop.f32.mrf.mxu0 }
 0x103   :  { %v1923_v8 = vmax.f32 %v1343_v54, %v1353_v7  ;;  %2581 = vst.msk [vmem:[#allocation3 + $0x18] sm:$0xff] %vm40_vm3, %v2521_v6 }
 0x105   :  { %2043 = vst.msk [vmem:[#allocation2 + $0x38] sm:$0xff] %vm40_vm3, %v1923_v8  ;;  %v7892_v8 = vld [vmem:[%s11782_s3 + $0x28] sm:$0xff] }
 0x106   :  { %4972 = vmatpush.bf16.msra.mxu1 %v7892_v8  ;;  %7987 = vmatpush.bf16.msrb.mxu2 %v7892_v8  ;;  %v7790_v8 = vld [vmem:[%s11779_s0 + $0xc8] sm:$0xff] }
 0x10a   :  { %v1356_v11 = vpop.f32.mrf.mxu0  ;;  %v9163_v20 = vld [vmem:[#allocation3 + $0x18] sm:$0xff]  ;;  %4973 = vmatpush.bf16.msra.mxu1 %v7891_v9  ;;  %7988 = vmatpush.bf16.msrb.mxu2 %v7891_v9 }
 0x10c   :  { %v2162_v12 = vld [vmem:[#allocation2 + $0x30] ss:$2 sm:$0xff]  ;;  %v2282_v13 = vld [vmem:[#allocation2 + $0x31] ss:$2 sm:$0xff] }
 0x10d   :  { %v2398_v14 = vmax.f32 %v2162_v12, %v2282_v13  ;;  %7247 = vmatmul.msk.bf16.gmra.mxu0 %vm939_vm2, %v7781_v10  ;;  %v7845_v12 = vld [vmem:[%s11779_s0 + $0x280] sm:$0xff]  ;;  %v7787_v13 = vld [vmem:[%s11779_s0 + $0xb0] sm:$0xff] }
 0x10e   :  { %7311 = vmatmul.msk.bf16.gmra.mxu3 %vm939_vm2, %v7845_v12 }
 0x10f   :  { %v2462_v15 = vadd.f32 %v9059_v31, %v2398_v14  ;;  %v7889_v14 = vld [vmem:[%s11782_s3 + $0x10] sm:$0xff] }
 0x111   :  { %v2522_v16 = vmax.f32 %v2462_v15, 0.0 }
 0x112   :  { %v1358_v17 = vpop.f32.mrf.mxu0 }
 0x113   :  { %2582 = vst.msk [vmem:[#allocation3 + $0x20] sm:$0xff] %vm40_vm3, %v2522_v16 }
 0x11a   :  { %v1361_v21 = vpop.f32.mrf.mxu0  ;;  %v9165_v22 = vld [vmem:[#allocation3 + $0x20] sm:$0xff] }
 0x11b   :  { %v2745_v23 = vld [vmem:[#allocation3 + $0x1a] sm:$0xff]  ;;  %v2746_v24 = vld [vmem:[#allocation3 + $0x22] sm:$0xff]  ;;  %v8013_v25 = vpack.i.bf16 %v9165_v22, %v9163_v20 }
 0x11c   :  { %v8023_v26 = vpack.i.bf16 %v2746_v24, %v2745_v23  ;;  %v2693_v28 = vld [vmem:[#allocation3 + $0x19] sm:$0xff]  ;;  %v2694_v29 = vld [vmem:[#allocation3 + $0x21] sm:$0xff] }
 0x11d   :  { %7248 = vmatmul.msk.bf16.gmra.mxu0 %vm939_vm2, %v7782_v19  ;;  %8014 = vrot.lane.b32.xlu1 %v8013_v25, %s8922_s30  ;;  %v8018_v32 = vpack.i.bf16 %v2694_v29, %v2693_v28  ;;  %v7887_v19 = vld [vmem:[%s11782_s3] sm:$0xff]  ;;  %v7846_v25 = vld [vmem:[%s11779_s0 + $0x288] sm:$0xff] }
 0x11e   :  { %8024 = vrot.lane.b32.xlu2 %v8023_v26, %s8921_s14  ;;  %7312 = vmatmul.msk.bf16.gmra.mxu3 %vm939_vm2, %v7846_v25  ;;  %v7788_v26 = vld [vmem:[%s11779_s0 + $0xb8] sm:$0xff] }
 0x122   :  { %v1363_v30 = vpop.f32.mrf.mxu0 }
 0x125   :  { %8019 = vrot.lane.b32.xlu1 %v8018_v32, %s8920_s13 }
 0x12a   :  { %v1366_v35 = vpop.f32.mrf.mxu0 }
 0x12b   :  { %v1924_v36 = vmax.f32 %v1356_v11, %v1366_v35  ;;  %v7890_v11 = vld [vmem:[%s11782_s3 + $0x18] sm:$0xff] }
 0x12c   :  { %4974 = vmatpush.bf16.msra.mxu1 %v7890_v11  ;;  %7989 = vmatpush.bf16.msrb.mxu2 %v7890_v11 }
 0x12d   :  { %2044 = vst.msk [vmem:[#allocation2 + $0x40] sm:$0xff] %vm40_vm3, %v1924_v36  ;;  %7249 = vmatmul.msk.bf16.gmra.mxu0 %vm939_vm2, %v7783_v34 }
 0x130   :  { %4975 = vmatpush.bf16.msra.mxu1 %v7889_v14  ;;  %7990 = vmatpush.bf16.msrb.mxu2 %v7889_v14 }
 0x132   :  { %v1368_v37 = vpop.f32.mrf.mxu0 }
 0x133   :  { %v1925_v38 = vmax.f32 %v1358_v17, %v1368_v37  ;;  %v1676_v17 = vpop.f32.mrf.mxu3 }
 0x134   :  { %4976 = vmatpush.bf16.msra.mxu1 %v7888_v18  ;;  %7991 = vmatpush.bf16.msrb.mxu2 %v7888_v18 }
 0x135   :  { %2045 = vst.msk [vmem:[#allocation2 + $0x48] sm:$0xff] %vm40_vm3, %v1925_v38 }
 0x138   :  { %4977 = vmatpush.bf16.msra.mxu1 %v7887_v19  ;;  %7992 = vmatpush.bf16.msrb.mxu2 %v7887_v19 }
 0x13a   :  { %v1371_v41 = vpop.f32.mrf.mxu0 }
 0x13b   :  { %v1926_v42 = vmax.f32 %v1361_v21, %v1371_v41  ;;  %v9279_v24 = vpop.f32.mrf.mxu3  ;;  %v7847_v41 = vld [vmem:[%s11779_s0 + $0x290] sm:$0xff] }
 0x13c   :  { %v2164_v43 = vld [vmem:[#allocation2 + $0x40] ss:$2 sm:$0xff]  ;;  %v2284_v44 = vld [vmem:[#allocation2 + $0x41] ss:$2 sm:$0xff]  ;;  %7313 = vmatmul.msk.bf16.gmra.mxu3 %vm939_vm2, %v7847_v41 }
 0x13d   :  { %v2399_v45 = vmax.f32 %v2164_v43, %v2284_v44  ;;  %2046 = vst.msk [vmem:[#allocation2 + $0x50] sm:$0xff] %vm40_vm3, %v1926_v42  ;;  %7250 = vmatmul.msk.bf16.gmra.mxu0 %vm939_vm2, %v7784_v40  ;;  %v7789_v42 = vld [vmem:[%s11779_s0 + $0xc0] sm:$0xff] }
 0x13f   :  { %v2463_v46 = vadd.f32 %v9059_v31, %v2399_v45 }
 0x141   :  { %v2523_v47 = vmax.f32 %v2463_v46, 0.0 }
 0x142   :  { %v1373_v48 = vpop.f32.mrf.mxu0 }
 0x143   :  { %v1927_v49 = vmax.f32 %v1363_v30, %v1373_v48  ;;  %2583 = vst.msk [vmem:[#allocation3 + $0x30] sm:$0xff] %vm40_vm3, %v2523_v47  ;;  %v9289_v30 = vpop.f32.mrf.mxu3 }
 0x145   :  { %2047 = vst.msk [vmem:[#allocation2 + $0x58] sm:$0xff] %vm40_vm3, %v1927_v49 }
 0x14a   :  { %v1376_v52 = vpop.f32.mrf.mxu0  ;;  %v9239_v61 = vld [vmem:[#allocation3 + $0x30] sm:$0xff] }
 0x14b   :  { %v9295_v40 = vpop.f32.mrf.mxu3 }
 0x14c   :  { %v2166_v53 = vld [vmem:[#allocation2 + $0x50] ss:$2 sm:$0xff]  ;;  %v2286_v54 = vld [vmem:[#allocation2 + $0x51] ss:$2 sm:$0xff] }
 0x14d   :  { %v2400_v55 = vmax.f32 %v2166_v53, %v2286_v54  ;;  %7251 = vmatmul.msk.bf16.gmra.mxu0 %vm939_vm2, %v7785_v51 }
 0x14f   :  { %v2464_v56 = vadd.f32 %v9059_v31, %v2400_v55  ;;  %v8005_v36 = vpop.permute.xlu0 %8004 }
 0x150   :  { %v8007_v46 = vunpack.i.h.bf16 %v8005_v36  ;;  %v8006_v47 = vunpack.i.l.bf16 %v8005_v36 }
 0x151   :  { %v2524_v57 = vmax.f32 %v2464_v56, 0.0  ;;  %v2639_v56 = vld [vmem:[#allocation3] sm:$0xff] }
 0x152   :  { %v1378_v58 = vpop.f32.mrf.mxu0  ;;  %v4357_v27 = vsel %vm40_vm3, %v2639_v56, %v8006_v47 }
 0x153   :  { %2584 = vst.msk [vmem:[#allocation3 + $0x38] sm:$0xff] %vm40_vm3, %v2524_v57  ;;  %v1686_v45 = vpop.f32.mrf.mxu3  ;;  %v2640_v57 = vld [vmem:[#allocation3 + $0x8] sm:$0xff] }
 0x154   :  { %v1988_v53 = vmax.f32 %v1676_v17, %v1686_v45 }
 0x156   :  { %2108 = vst.msk [vmem:[#allocation2 + $0x240] sm:$0xff] %vm40_vm3, %v1988_v53 }
 0x157   :  { %v8010_v43 = vpop.permute.xlu0 %8009 }
 0x158   :  { %v8012_v50 = vunpack.i.h.bf16 %v8010_v43  ;;  %v8011_v51 = vunpack.i.l.bf16 %v8010_v43 }
 0x15a   :  { %v1381_v63 = vpop.f32.mrf.mxu0  ;;  %v9244_v0 = vld [vmem:[#allocation3 + $0x38] sm:$0xff]  ;;  %v4409_v62 = vsel %vm71_vm4, %v4357_v27, %v8011_v51  ;;  %v7850_v51 = vld [vmem:[%s11779_s0 + $0x2a8] sm:$0xff] }
 0x15b   :  { %v2747_v1 = vld [vmem:[#allocation3 + $0x32] sm:$0xff]  ;;  %v2748_v2 = vld [vmem:[#allocation3 + $0x3a] sm:$0xff]  ;;  %v8028_v3 = vpack.i.bf16 %v9244_v0, %v9239_v61 }
 0x15c   :  { %v8038_v4 = vpack.i.bf16 %v2748_v2, %v2747_v1  ;;  %v2695_v5 = vld [vmem:[#allocation3 + $0x31] sm:$0xff]  ;;  %v2696_v6 = vld [vmem:[#allocation3 + $0x39] sm:$0xff] }
 0x15d   :  { %v8033_v7 = vpack.i.bf16 %v2696_v6, %v2695_v5  ;;  %7252 = vmatmul.msk.bf16.gmra.mxu0 %vm939_vm2, %v7786_v60  ;;  %8029 = vrot.lane.b32.xlu2 %v8028_v3, %s8922_s30  ;;  %v4358_v60 = vsel %vm40_vm3, %v2640_v57, %v8007_v46  ;;  %v1688_v6 = vpop.f32.mrf.mxu3 }
 0x15e   :  { %8039 = vrot.lane.b32.xlu1 %v8038_v4, %s8921_s14 }
 0x15f   :  { %8034 = vrot.lane.b32.xlu0 %v8033_v7, %s8920_s13  ;;  %v7848_v7 = vld [vmem:[%s11779_s0 + $0x298] sm:$0xff] }
 0x160   :  { %7314 = vmatmul.msk.bf16.gmra.mxu3 %vm939_vm2, %v7848_v7 }
 0x162   :  { %v1383_v10 = vpop.f32.mrf.mxu0 }
 0x165   :  { %v1691_v18 = vpop.f32.mrf.mxu3 }
 0x16a   :  { %v1386_v15 = vpop.f32.mrf.mxu0 }
 0x16b   :  { %v1928_v16 = vmax.f32 %v1376_v52, %v1386_v15 }
 0x16d   :  { %2048 = vst.msk [vmem:[#allocation2 + $0x60] sm:$0xff] %vm40_vm3, %v1928_v16  ;;  %7253 = vmatmul.msk.bf16.gmra.mxu0 %vm939_vm2, %v7787_v13 }
 0x172   :  { %v1388_v21 = vpop.f32.mrf.mxu0 }
 0x173   :  { %v1929_v23 = vmax.f32 %v1378_v58, %v1388_v21  ;;  %v1989_v21 = vmax.f32 %v9279_v24, %v1688_v6  ;;  %v7791_v24 = vld [vmem:[%s11779_s0 + $0xd0] sm:$0xff] }
 0x175   :  { %2049 = vst.msk [vmem:[#allocation2 + $0x68] sm:$0xff] %vm40_vm3, %v1929_v23  ;;  %v1990_v23 = vmax.f32 %v9289_v30, %v1691_v18 }
 0x176   :  { %2109 = vst.msk [vmem:[#allocation2 + $0x248] sm:$0xff] %vm40_vm3, %v1989_v21 }
 0x177   :  { %2110 = vst.msk [vmem:[#allocation2 + $0x250] sm:$0xff] %vm40_vm3, %v1990_v23 }
 0x17a   :  { %v1391_v28 = vpop.f32.mrf.mxu0 }
 0x17b   :  { %v1930_v29 = vmax.f32 %v1381_v63, %v1391_v28  ;;  %v4410_v63 = vsel %vm71_vm4, %v4358_v60, %v8012_v50 }
 0x17c   :  { %v2168_v32 = vld [vmem:[#allocation2 + $0x60] ss:$2 sm:$0xff]  ;;  %v2288_v33 = vld [vmem:[#allocation2 + $0x61] ss:$2 sm:$0xff] }
 0x17d   :  { %v2401_v34 = vmax.f32 %v2168_v32, %v2288_v33  ;;  %2050 = vst.msk [vmem:[#allocation2 + $0x70] sm:$0xff] %vm40_vm3, %v1930_v29  ;;  %7254 = vmatmul.msk.bf16.gmra.mxu0 %vm939_vm2, %v7788_v26  ;;  %v1693_v26 = vpop.f32.mrf.mxu3  ;;  %v7849_v29 = vld [vmem:[%s11779_s0 + $0x2a0] sm:$0xff] }
 0x17e   :  { %v1991_v28 = vmax.f32 %v9295_v40, %v1693_v26  ;;  %v2228_v32 = vld [vmem:[#allocation2 + $0x240] ss:$2 sm:$0xff]  ;;  %v2348_v33 = vld [vmem:[#allocation2 + $0x241] ss:$2 sm:$0xff]  ;;  %7315 = vmatmul.msk.bf16.gmra.mxu3 %vm939_vm2, %v7849_v29  ;;  %v8025_v40 = vpop.permute.xlu2 %8024  ;;  %v7852_v29 = vld [vmem:[%s11779_s0 + $0x2b8] sm:$0xff] }
 0x17f   :  { %v2465_v35 = vadd.f32 %v9059_v31, %v2401_v34 }
 0x180   :  { %2111 = vst.msk [vmem:[#allocation2 + $0x258] sm:$0xff] %vm40_vm3, %v1991_v28 }
 0x181   :  { %v2525_v37 = vmax.f32 %v2465_v35, 0.0  ;;  %v2431_v35 = vmax.f32 %v2228_v32, %v2348_v33  ;;  %v7794_v32 = vld [vmem:[%s11779_s0 + $0xe8] sm:$0xff] }
 0x182   :  { %v1393_v38 = vpop.f32.mrf.mxu0 }
 0x183   :  { %v1931_v39 = vmax.f32 %v1383_v10, %v1393_v38  ;;  %2585 = vst.msk [vmem:[#allocation3 + $0x48] sm:$0xff] %vm40_vm3, %v2525_v37 }
 0x185   :  { %2051 = vst.msk [vmem:[#allocation2 + $0x78] sm:$0xff] %vm40_vm3, %v1931_v39  ;;  %v9352_v36 = vpop.f32.mrf.mxu3 }
 0x187   :  { %v2230_v37 = vld [vmem:[#allocation2 + $0x250] ss:$2 sm:$0xff]  ;;  %v2350_v38 = vld [vmem:[#allocation2 + $0x251] ss:$2 sm:$0xff] }
 0x188   :  { %v2432_v39 = vmax.f32 %v2230_v37, %v2350_v38 }
 0x18a   :  { %v9305_v44 = vpop.f32.mrf.mxu0  ;;  %v9324_v9 = vld [vmem:[#allocation3 + $0x48] sm:$0xff]  ;;  %v2496_v43 = vadd.f32 %v9059_v31, %v2432_v39 }
 0x18c   :  { %v2170_v48 = vld [vmem:[#allocation2 + $0x70] ss:$2 sm:$0xff]  ;;  %v2290_v49 = vld [vmem:[#allocation2 + $0x71] ss:$2 sm:$0xff]  ;;  %v2556_v50 = vmax.f32 %v2496_v43, 0.0 }
 0x18d   :  { %v2402_v52 = vmax.f32 %v2170_v48, %v2290_v49  ;;  %7255 = vmatmul.msk.bf16.gmra.mxu0 %vm939_vm2, %v7789_v42  ;;  %v2495_v42 = vadd.f32 %v9059_v31, %v2431_v35  ;;  %v9358_v48 = vpop.f32.mrf.mxu3 }
 0x18e   :  { %2616 = vst.msk [vmem:[#allocation3 + $0x1b8] sm:$0xff] %vm40_vm3, %v2556_v50  ;;  %7316 = vmatmul.msk.bf16.gmra.mxu3 %vm939_vm2, %v7850_v51 }
 0x18f   :  { %v2466_v54 = vadd.f32 %v9059_v31, %v2402_v52  ;;  %v8015_v55 = vpop.permute.xlu1 %8014  ;;  %v2555_v49 = vmax.f32 %v2495_v42, 0.0 }
 0x190   :  { %v8017_v58 = vunpack.i.h.bf16 %v8015_v55  ;;  %v8016_v59 = vunpack.i.l.bf16 %v8015_v55  ;;  %v8026_v55 = vunpack.i.l.bf16 %v8025_v40 }
 0x191   :  { %v2526_v1 = vmax.f32 %v2466_v54, 0.0  ;;  %2615 = vst.msk [vmem:[#allocation3 + $0x1b0] sm:$0xff] %vm40_vm3, %v2555_v49  ;;  %v8027_v54 = vunpack.i.h.bf16 %v8025_v40 }
 0x192   :  { %v1398_v2 = vpop.f32.mrf.mxu0  ;;  %v4462_v3 = vsel %vm4461_vm5, %v4409_v62, %v8016_v59  ;;  %v4463_v4 = vsel %vm4461_vm5, %v4410_v63, %v8017_v58  ;;  %v7792_v59 = vld [vmem:[%s11779_s0 + $0xd8] sm:$0xff] }
 0x193   :  { %v4670_v5 = vpack.c.bf16 %v4463_v4, %v4462_v3  ;;  %2586 = vst.msk [vmem:[#allocation3 + $0x50] sm:$0xff] %vm40_vm3, %v2526_v1 }
 0x195   :  { %4978 = vmatmul.bf16.vlgmr.msra.gmra.mxu1 %v4670_v5 }
 0x197   :  { %v8020_v41 = vpop.permute.xlu1 %8019 }
 0x198   :  { %v8022_v45 = vunpack.i.h.bf16 %v8020_v41  ;;  %v8021_v46 = vunpack.i.l.bf16 %v8020_v41 }
 0x19a   :  { %v9326_v10 = vpop.f32.mrf.mxu0  ;;  %v9328_v11 = vld [vmem:[#allocation3 + $0x50] sm:$0xff]  ;;  %v4359_v52 = vsel %vm40_vm3, %v9163_v20, %v8021_v46  ;;  %v4360_v53 = vsel %vm40_vm3, %v9165_v22, %v8022_v45 }
 0x19b   :  { %v2749_v12 = vld [vmem:[#allocation3 + $0x4a] sm:$0xff]  ;;  %v2750_v13 = vld [vmem:[#allocation3 + $0x52] sm:$0xff]  ;;  %v8043_v14 = vpack.i.bf16 %v9328_v11, %v9324_v9  ;;  %v4411_v20 = vsel %vm71_vm4, %v4359_v52, %v8026_v55  ;;  %v4412_v27 = vsel %vm71_vm4, %v4360_v53, %v8027_v54 }
 0x19c   :  { %v8053_v15 = vpack.i.bf16 %v2750_v13, %v2749_v12  ;;  %v2697_v16 = vld [vmem:[#allocation3 + $0x49] sm:$0xff]  ;;  %v2698_v17 = vld [vmem:[#allocation3 + $0x51] sm:$0xff] }
 0x19d   :  { %v8048_v19 = vpack.i.bf16 %v2698_v17, %v2697_v16  ;;  %7256 = vmatmul.msk.bf16.gmra.mxu0 %vm939_vm2, %v7790_v8  ;;  %8044 = vrot.lane.b32.xlu2 %v8043_v14, %s8922_s30  ;;  %v7793_v14 = vld [vmem:[%s11779_s0 + $0xe0] sm:$0xff] }
 0x19e   :  { %8054 = vrot.lane.b32.xlu1 %v8053_v15, %s8921_s14 }
 0x19f   :  { %8049 = vrot.lane.b32.xlu0 %v8048_v19, %s8920_s13 }
 0x1a2   :  { %v9339_v25 = vpop.f32.mrf.mxu0 }
 0x1aa   :  { %v1406_v30 = vpop.f32.mrf.mxu0 }
 0x1ab   :  { %v1932_v34 = vmax.f32 %v9305_v44, %v1406_v30 }
 0x1ad   :  { %2052 = vst.msk [vmem:[#allocation2 + $0x80] sm:$0xff] %vm40_vm3, %v1932_v34  ;;  %7257 = vmatmul.msk.bf16.gmra.mxu0 %vm939_vm2, %v7791_v24 }
 0x1b2   :  { %v1408_v47 = vpop.f32.mrf.mxu0 }
 0x1b3   :  { %v1933_v44 = vmax.f32 %v1398_v2, %v1408_v47  ;;  %v1701_v2 = vpop.f32.mrf.mxu3 }
 0x1b5   :  { %2053 = vst.msk [vmem:[#allocation2 + $0x88] sm:$0xff] %vm40_vm3, %v1933_v44  ;;  %v7853_v44 = vld [vmem:[%s11779_s0 + $0x2c0] sm:$0xff] }
 0x1b7   :  { %v8030_v56 = vpop.permute.xlu2 %8029 }
 0x1b8   :  { %v8032_v57 = vunpack.i.h.bf16 %v8030_v56  ;;  %v8031_v58 = vunpack.i.l.bf16 %v8030_v56 }
 0x1ba   :  { %v1411_v22 = vpop.f32.mrf.mxu0  ;;  %v4464_v60 = vsel %vm4461_vm5, %v4411_v20, %v8031_v58  ;;  %v4465_v62 = vsel %vm4461_vm5, %v4412_v27, %v8032_v57 }
 0x1bb   :  { %v1934_v63 = vmax.f32 %v9326_v10, %v1411_v22  ;;  %v4673_v1 = vpack.c.bf16 %v4465_v62, %v4464_v60  ;;  %v1703_v13 = vpop.f32.mrf.mxu3  ;;  %v7851_v10 = vld [vmem:[%s11779_s0 + $0x2b0] sm:$0xff] }
 0x1bc   :  { %v2172_v3 = vld [vmem:[#allocation2 + $0x80] ss:$2 sm:$0xff]  ;;  %v2292_v4 = vld [vmem:[#allocation2 + $0x81] ss:$2 sm:$0xff]  ;;  %7317 = vmatmul.msk.bf16.gmra.mxu3 %vm939_vm2, %v7851_v10 }
 0x1bd   :  { %v2403_v5 = vmax.f32 %v2172_v3, %v2292_v4  ;;  %2054 = vst.msk [vmem:[#allocation2 + $0x90] sm:$0xff] %vm40_vm3, %v1934_v63  ;;  %7258 = vmatmul.msk.bf16.gmra.mxu0 %vm939_vm2, %v7792_v59  ;;  %4983 = vmatmul.bf16.gmra.mxu1 %v4673_v1 }
 0x1bf   :  { %v2467_v6 = vadd.f32 %v9059_v31, %v2403_v5 }
 0x1c1   :  { %v2527_v7 = vmax.f32 %v2467_v6, 0.0  ;;  %v7854_v6 = vld [vmem:[%s11779_s0 + $0x2c8] sm:$0xff] }
 0x1c2   :  { %v1413_v8 = vpop.f32.mrf.mxu0 }
 0x1c3   :  { %v1935_v12 = vmax.f32 %v9339_v25, %v1413_v8  ;;  %2587 = vst.msk [vmem:[#allocation3 + $0x60] sm:$0xff] %vm40_vm3, %v2527_v7  ;;  %v1706_v18 = vpop.f32.mrf.mxu3 }
 0x1c4   :  { %v1992_v21 = vmax.f32 %v9352_v36, %v1706_v18 }
 0x1c5   :  { %2055 = vst.msk [vmem:[#allocation2 + $0x98] sm:$0xff] %vm40_vm3, %v1935_v12 }
 0x1c6   :  { %2112 = vst.msk [vmem:[#allocation2 + $0x260] sm:$0xff] %vm40_vm3, %v1992_v21 }
 0x1ca   :  { %v1416_v15 = vpop.f32.mrf.mxu0  ;;  %v9406_v24 = vld [vmem:[#allocation3 + $0x60] sm:$0xff] }
 0x1cb   :  { %v1708_v28 = vpop.f32.mrf.mxu3 }
 0x1cc   :  { %v2174_v16 = vld [vmem:[#allocation2 + $0x90] ss:$2 sm:$0xff]  ;;  %v2294_v17 = vld [vmem:[#allocation2 + $0x91] ss:$2 sm:$0xff]  ;;  %7318 = vmatmul.msk.bf16.gmra.mxu3 %vm939_vm2, %v7852_v29  ;;  %v1993_v42 = vmax.f32 %v9358_v48, %v1708_v28 }
 0x1cd   :  { %v2404_v19 = vmax.f32 %v2174_v16, %v2294_v17  ;;  %7259 = vmatmul.msk.bf16.gmra.mxu0 %vm939_vm2, %v7793_v14  ;;  %v7795_v48 = vld [vmem:[%s11779_s0 + $0xf0] sm:$0xff]  ;;  %v7796_v14 = vld [vmem:[%s11779_s0 + $0xf8] sm:$0xff] }
 0x1ce   :  { %2113 = vst.msk [vmem:[#allocation2 + $0x268] sm:$0xff] %vm40_vm3, %v1993_v42 }
 0x1cf   :  { %v2468_v23 = vadd.f32 %v9059_v31, %v2404_v19 }
 0x1d0   :  { %v8040_v27 = vpop.permute.xlu1 %8039 }
 0x1d1   :  { %v2528_v26 = vmax.f32 %v2468_v23, 0.0  ;;  %v8035_v57 = vpop.permute.xlu0 %8034  ;;  %v8042_v4 = vunpack.i.h.bf16 %v8040_v27  ;;  %v8041_v5 = vunpack.i.l.bf16 %v8040_v27 }
 0x1d2   :  { %v1418_v25 = vpop.f32.mrf.mxu0  ;;  %v8037_v22 = vunpack.i.h.bf16 %v8035_v57  ;;  %v8036_v60 = vunpack.i.l.bf16 %v8035_v57 }
 0x1d3   :  { %2588 = vst.msk [vmem:[#allocation3 + $0x68] sm:$0xff] %vm40_vm3, %v2528_v26  ;;  %v1711_v40 = vpop.f32.mrf.mxu3 }
 0x1d4   :  { %v1994_v43 = vmax.f32 %v1701_v2, %v1711_v40  ;;  %v4361_v7 = vsel %vm40_vm3, %v9239_v61, %v8036_v60  ;;  %v4362_v8 = vsel %vm40_vm3, %v9244_v0, %v8037_v22 }
 0x1d5   :  { %v2232_v49 = vld [vmem:[#allocation2 + $0x260] ss:$2 sm:$0xff]  ;;  %v2352_v50 = vld [vmem:[#allocation2 + $0x261] ss:$2 sm:$0xff]  ;;  %v4414_v16 = vsel %vm71_vm4, %v4362_v8, %v8042_v4 }
 0x1d6   :  { %2114 = vst.msk [vmem:[#allocation2 + $0x270] sm:$0xff] %vm40_vm3, %v1994_v43  ;;  %v2433_v53 = vmax.f32 %v2232_v49, %v2352_v50  ;;  %v7798_v49 = vld [vmem:[%s11779_s0 + $0x108] sm:$0xff] }
 0x1d8   :  { %v2497_v58 = vadd.f32 %v9059_v31, %v2433_v53 }
 0x1da   :  { %v9404_v33 = vpop.f32.mrf.mxu0  ;;  %v9408_v30 = vld [vmem:[#allocation3 + $0x68] sm:$0xff]  ;;  %v2557_v1 = vmax.f32 %v2497_v58, 0.0 }
 0x1db   :  { %v2751_v34 = vld [vmem:[#allocation3 + $0x62] sm:$0xff]  ;;  %v2752_v35 = vld [vmem:[#allocation3 + $0x6a] sm:$0xff]  ;;  %v8058_v36 = vpack.i.bf16 %v9408_v30, %v9406_v24  ;;  %v1713_v46 = vpop.f32.mrf.mxu3 }
 0x1dc   :  { %v8068_v37 = vpack.i.bf16 %v2752_v35, %v2751_v34  ;;  %v2699_v38 = vld [vmem:[#allocation3 + $0x61] sm:$0xff]  ;;  %v2700_v39 = vld [vmem:[#allocation3 + $0x69] sm:$0xff]  ;;  %v1995_v47 = vmax.f32 %v1703_v13, %v1713_v46  ;;  %7319 = vmatmul.msk.bf16.gmra.mxu3 %vm939_vm2, %v7853_v44  ;;  %2617 = vst.msk [vmem:[#allocation3 + $0x1c8] sm:$0xff] %vm40_vm3, %v2557_v1  ;;  %v7856_v44 = vld [vmem:[%s11779_s0 + $0x2d8] sm:$0xff] }
 0x1dd   :  { %7260 = vmatmul.msk.bf16.gmra.mxu0 %vm939_vm2, %v7794_v32  ;;  %v8063_v41 = vpack.i.bf16 %v2700_v39, %v2699_v38  ;;  %8059 = vrot.lane.b32.xlu2 %v8058_v36, %s8922_s30  ;;  %v7797_v36 = vld [vmem:[%s11779_s0 + $0x100] sm:$0xff] }
 0x1de   :  { %8069 = vrot.lane.b32.xlu1 %v8068_v37, %s8921_s14  ;;  %2115 = vst.msk [vmem:[#allocation2 + $0x278] sm:$0xff] %vm40_vm3, %v1995_v47 }
 0x1df   :  { %8064 = vrot.lane.b32.xlu0 %v8063_v41, %s8920_s13 }
 0x1e2   :  { %v9418_v45 = vpop.f32.mrf.mxu0 }
 0x1e3   :  { %v9429_v54 = vpop.f32.mrf.mxu3 }
 0x1e5   :  { %v2234_v55 = vld [vmem:[#allocation2 + $0x270] ss:$2 sm:$0xff]  ;;  %v2354_v56 = vld [vmem:[#allocation2 + $0x271] ss:$2 sm:$0xff] }
 0x1e6   :  { %v2434_v59 = vmax.f32 %v2234_v55, %v2354_v56 }
 0x1e8   :  { %v2498_v20 = vadd.f32 %v9059_v31, %v2434_v59 }
 0x1ea   :  { %v1426_v51 = vpop.f32.mrf.mxu0  ;;  %v2558_v2 = vmax.f32 %v2498_v20, 0.0 }
 0x1eb   :  { %v1936_v52 = vmax.f32 %v1416_v15, %v1426_v51  ;;  %v9435_v3 = vpop.f32.mrf.mxu3  ;;  %v4413_v15 = vsel %vm71_vm4, %v4361_v7, %v8041_v5 }
 0x1ec   :  { %2618 = vst.msk [vmem:[#allocation3 + $0x1d0] sm:$0xff] %vm40_vm3, %v2558_v2  ;;  %7320 = vmatmul.msk.bf16.gmra.mxu3 %vm939_vm2, %v7854_v6  ;;  %v7799_v2 = vld [vmem:[%s11779_s0 + $0x110] sm:$0xff] }
 0x1ed   :  { %2056 = vst.msk [vmem:[#allocation2 + $0xa0] sm:$0xff] %vm40_vm3, %v1936_v52  ;;  %7261 = vmatmul.msk.bf16.gmra.mxu0 %vm939_vm2, %v7795_v48 }
 0x1f2   :  { %v1428_v62 = vpop.f32.mrf.mxu0 }
 0x1f3   :  { %v1937_v63 = vmax.f32 %v1418_v25, %v1428_v62  ;;  %v1721_v25 = vpop.f32.mrf.mxu3  ;;  %v7857_v62 = vld [vmem:[%s11779_s0 + $0x2e0] sm:$0xff] }
 0x1f5   :  { %2057 = vst.msk [vmem:[#allocation2 + $0xa8] sm:$0xff] %vm40_vm3, %v1937_v63 }
 0x1f7   :  { %v8045_v12 = vpop.permute.xlu2 %8044 }
 0x1f8   :  { %v8047_v13 = vunpack.i.h.bf16 %v8045_v12  ;;  %v8046_v10 = vunpack.i.l.bf16 %v8045_v12 }
 0x1fa   :  { %v1431_v61 = vpop.f32.mrf.mxu0  ;;  %v4466_v0 = vsel %vm4461_vm5, %v4413_v15, %v8046_v10  ;;  %v4467_v17 = vsel %vm4461_vm5, %v4414_v16, %v8047_v13  ;;  %v9513_v13 = vld [vmem:[%s11781_s2] ss:$0 sm:$0xff] }
 0x1fb   :  { %v1938_v18 = vmax.f32 %v9404_v33, %v1431_v61  ;;  %v4676_v19 = vpack.c.bf16 %v4467_v17, %v4466_v0  ;;  %v1723_v35 = vpop.f32.mrf.mxu3  ;;  %v7855_v33 = vld [vmem:[%s11779_s0 + $0x2d0] sm:$0xff] }
 0x1fc   :  { %v2176_v21 = vld [vmem:[#allocation2 + $0xa0] ss:$2 sm:$0xff]  ;;  %v2296_v23 = vld [vmem:[#allocation2 + $0xa1] ss:$2 sm:$0xff]  ;;  %7321 = vmatmul.msk.bf16.gmra.mxu3 %vm939_vm2, %v7855_v33 }
 0x1fd   :  { %v2405_v26 = vmax.f32 %v2176_v21, %v2296_v23  ;;  %2058 = vst.msk [vmem:[#allocation2 + $0xb0] sm:$0xff] %vm40_vm3, %v1938_v18  ;;  %7262 = vmatmul.msk.bf16.gmra.mxu0 %vm939_vm2, %v7796_v14  ;;  %4988 = vmatmul.bf16.gmra.mxu1 %v4676_v19 }
 0x1ff   :  { %v2469_v28 = vadd.f32 %v9059_v31, %v2405_v26 }
 0x201   :  { %v2529_v29 = vmax.f32 %v2469_v28, 0.0 }
 0x202   :  { %v1433_v32 = vpop.f32.mrf.mxu0 }
 0x203   :  { %v1939_v34 = vmax.f32 %v9418_v45, %v1433_v32  ;;  %2589 = vst.msk [vmem:[#allocation3 + $0x78] sm:$0xff] %vm40_vm3, %v2529_v29  ;;  %v1726_v40 = vpop.f32.mrf.mxu3 }
 0x204   :  { %v1996_v42 = vmax.f32 %v9429_v54, %v1726_v40 }
 0x205   :  { %2059 = vst.msk [vmem:[#allocation2 + $0xb8] sm:$0xff] %vm40_vm3, %v1939_v34 }
 0x206   :  { %2116 = vst.msk [vmem:[#allocation2 + $0x280] sm:$0xff] %vm40_vm3, %v1996_v42 }
 0x20a   :  { %v1436_v37 = vpop.f32.mrf.mxu0 }
 0x20b   :  { %v1728_v47 = vpop.f32.mrf.mxu3 }
 0x20c   :  { %v2178_v38 = vld [vmem:[#allocation2 + $0xb0] ss:$2 sm:$0xff]  ;;  %v2298_v39 = vld [vmem:[#allocation2 + $0xb1] ss:$2 sm:$0xff]  ;;  %7322 = vmatmul.msk.bf16.gmra.mxu3 %vm939_vm2, %v7856_v44  ;;  %v1997_v59 = vmax.f32 %v9435_v3, %v1728_v47 }
 0x20d   :  { %v2406_v41 = vmax.f32 %v2178_v38, %v2298_v39  ;;  %7263 = vmatmul.msk.bf16.gmra.mxu0 %vm939_vm2, %v7797_v36  ;;  %v7800_v36 = vld [vmem:[%s11779_s0 + $0x118] sm:$0xff] }
 0x20e   :  { %2117 = vst.msk [vmem:[#allocation2 + $0x288] sm:$0xff] %vm40_vm3, %v1997_v59 }
 0x20f   :  { %v2470_v43 = vadd.f32 %v9059_v31, %v2406_v41  ;;  %v9483_v31 = vld [vmem:[#allocation3 + $0x78] sm:$0xff] }
 0x210   :  { %v8055_v0 = vpop.permute.xlu1 %8054 }
 0x211   :  { %v2530_v46 = vmax.f32 %v2470_v43, 0.0  ;;  %v8050_v12 = vpop.permute.xlu0 %8049  ;;  %v8057_v26 = vunpack.i.h.bf16 %v8055_v0  ;;  %v8056_v28 = vunpack.i.l.bf16 %v8055_v0  ;;  %v7823_v0 = vld [vmem:[%s11779_s0 + $0x1d0] sm:$0xff] }
 0x212   :  { %v1438_v45 = vpop.f32.mrf.mxu0  ;;  %v8052_v16 = vunpack.i.h.bf16 %v8050_v12  ;;  %v8051_v17 = vunpack.i.l.bf16 %v8050_v12 }
 0x213   :  { %2590 = vst.msk [vmem:[#allocation3 + $0x80] sm:$0xff] %vm40_vm3, %v2530_v46  ;;  %v1731_v57 = vpop.f32.mrf.mxu3 }
 0x214   :  { %v1998_v20 = vmax.f32 %v1721_v25, %v1731_v57  ;;  %v7858_v25 = vld [vmem:[%s11779_s0 + $0x2e8] sm:$0xff]  ;;  %v4363_v29 = vsel %vm40_vm3, %v9324_v9, %v8051_v17  ;;  %v4364_v32 = vsel %vm40_vm3, %v9328_v11, %v8052_v16 }
 0x215   :  { %v2236_v63 = vld [vmem:[#allocation2 + $0x280] ss:$2 sm:$0xff]  ;;  %v2356_v1 = vld [vmem:[#allocation2 + $0x281] ss:$2 sm:$0xff]  ;;  %v4415_v38 = vsel %vm71_vm4, %v4363_v29, %v8056_v28  ;;  %v4416_v39 = vsel %vm71_vm4, %v4364_v32, %v8057_v26  ;;  %v7803_v26 = vld [vmem:[%s11779_s0 + $0x130] sm:$0xff] }
 0x216   :  { %2118 = vst.msk [vmem:[#allocation2 + $0x290] sm:$0xff] %vm40_vm3, %v1998_v20  ;;  %v2435_v5 = vmax.f32 %v2236_v63, %v2356_v1  ;;  %v7822_v20 = vld [vmem:[%s11779_s0 + $0x1c8] sm:$0xff]  ;;  %v7860_v63 = vld [vmem:[%s11779_s0 + $0x2f8] sm:$0xff] }
 0x217   :  { %7288 = vmatmul.msk.bf16.vlgmr.msra.gmra.mxu2 %vm939_vm2, %v7822_v20  ;;  %v7802_v1 = vld [vmem:[%s11779_s0 + $0x128] sm:$0xff] }
 0x218   :  { %v2499_v10 = vadd.f32 %v9513_v13, %v2435_v5 }
 0x21a   :  { %v9481_v50 = vpop.f32.mrf.mxu0  ;;  %v9485_v48 = vld [vmem:[#allocation3 + $0x80] sm:$0xff]  ;;  %v2559_v19 = vmax.f32 %v2499_v10, 0.0 }
 0x21b   :  { %v2753_v51 = vld [vmem:[#allocation3 + $0x7a] sm:$0xff]  ;;  %v2754_v52 = vld [vmem:[#allocation3 + $0x82] sm:$0xff]  ;;  %v8073_v53 = vpack.i.bf16 %v9485_v48, %v9483_v31  ;;  %v1733_v22 = vpop.f32.mrf.mxu3 }
 0x21c   :  { %v8083_v54 = vpack.i.bf16 %v2754_v52, %v2753_v51  ;;  %v2701_v55 = vld [vmem:[#allocation3 + $0x79] sm:$0xff]  ;;  %v2702_v56 = vld [vmem:[#allocation3 + $0x81] sm:$0xff]  ;;  %v1999_v60 = vmax.f32 %v1723_v35, %v1733_v22  ;;  %7323 = vmatmul.msk.bf16.gmra.mxu3 %vm939_vm2, %v7857_v62  ;;  %2619 = vst.msk [vmem:[#allocation3 + $0x1e0] sm:$0xff] %vm40_vm3, %v2559_v19  ;;  %v7859_v52 = vld [vmem:[%s11779_s0 + $0x2f0] sm:$0xff] }
 0x21d   :  { %7264 = vmatmul.msk.bf16.gmra.mxu0 %vm939_vm2, %v7798_v49  ;;  %v8078_v58 = vpack.i.bf16 %v2702_v56, %v2701_v55  ;;  %8074 = vrot.lane.b32.xlu2 %v8073_v53, %s8922_s30  ;;  %v7801_v53 = vld [vmem:[%s11779_s0 + $0x120] sm:$0xff] }
 0x21e   :  { %8084 = vrot.lane.b32.xlu1 %v8083_v54, %s8921_s14  ;;  %2119 = vst.msk [vmem:[#allocation2 + $0x298] sm:$0xff] %vm40_vm3, %v1999_v60 }
 0x21f   :  { %8079 = vrot.lane.b32.xlu0 %v8078_v58, %s8920_s13 }
 0x222   :  { %v9495_v27 = vpop.f32.mrf.mxu0 }
 0x223   :  { %v9506_v6 = vpop.f32.mrf.mxu3 }
 0x225   :  { %v2238_v7 = vld [vmem:[#allocation2 + $0x290] ss:$2 sm:$0xff]  ;;  %v2358_v8 = vld [vmem:[#allocation2 + $0x291] ss:$2 sm:$0xff] }
 0x226   :  { %v2436_v14 = vmax.f32 %v2238_v7, %v2358_v8 }
 0x227   :  { %7289 = vmatmul.msk.bf16.gmra.mxu2 %vm939_vm2, %v7823_v0 }
 0x228   :  { %v2500_v15 = vadd.f32 %v9513_v13, %v2436_v14 }
 0x22a   :  { %v1446_v3 = vpop.f32.mrf.mxu0  ;;  %v2560_v21 = vmax.f32 %v2500_v15, 0.0 }
 0x22b   :  { %v1940_v4 = vmax.f32 %v1436_v37, %v1446_v3  ;;  %v9517_v23 = vpop.f32.mrf.mxu3 }
 0x22c   :  { %2620 = vst.msk [vmem:[#allocation3 + $0x1e8] sm:$0xff] %vm40_vm3, %v2560_v21  ;;  %7324 = vmatmul.msk.bf16.gmra.mxu3 %vm939_vm2, %v7858_v25  ;;  %v7861_v21 = vld [vmem:[%s11779_s0 + $0x300] sm:$0xff] }
 0x22d   :  { %2060 = vst.msk [vmem:[#allocation2 + $0xc0] sm:$0xff] %vm40_vm3, %v1940_v4  ;;  %7265 = vmatmul.msk.bf16.gmra.mxu0 %vm939_vm2, %v7799_v2 }
 0x232   :  { %v1448_v61 = vpop.f32.mrf.mxu0 }
 0x233   :  { %v1941_v18 = vmax.f32 %v1438_v45, %v1448_v61  ;;  %v1741_v45 = vpop.f32.mrf.mxu3 }
 0x235   :  { %2061 = vst.msk [vmem:[#allocation2 + $0xc8] sm:$0xff] %vm40_vm3, %v1941_v18 }
 0x237   :  { %v8060_v34 = vpop.permute.xlu2 %8059 }
 0x238   :  { %v8062_v35 = vunpack.i.h.bf16 %v8060_v34  ;;  %v8061_v33 = vunpack.i.l.bf16 %v8060_v34 }
 0x23a   :  { %v1451_v37 = vpop.f32.mrf.mxu0  ;;  %v4468_v11 = vsel %vm4461_vm5, %v4415_v38, %v8061_v33  ;;  %v4469_v40 = vsel %vm4461_vm5, %v4416_v39, %v8062_v35  ;;  %v7824_v39 = vld [vmem:[%s11779_s0 + $0x1d8] sm:$0xff] }
 0x23b   :  { %v1942_v9 = vmax.f32 %v9481_v50, %v1451_v37  ;;  %v4679_v43 = vpack.c.bf16 %v4469_v40, %v4468_v11  ;;  %v1743_v51 = vpop.f32.mrf.mxu3  ;;  %7290 = vmatmul.msk.bf16.gmra.mxu2 %vm939_vm2, %v7824_v39 }
 0x23c   :  { %v2180_v41 = vld [vmem:[#allocation2 + $0xc0] ss:$2 sm:$0xff]  ;;  %v2300_v42 = vld [vmem:[#allocation2 + $0xc1] ss:$2 sm:$0xff]  ;;  %7325 = vmatmul.msk.bf16.gmra.mxu3 %vm939_vm2, %v7859_v52 }
 0x23d   :  { %v2407_v46 = vmax.f32 %v2180_v41, %v2300_v42  ;;  %2062 = vst.msk [vmem:[#allocation2 + $0xd0] sm:$0xff] %vm40_vm3, %v1942_v9  ;;  %7266 = vmatmul.msk.bf16.gmra.mxu0 %vm939_vm2, %v7800_v36  ;;  %4993 = vmatmul.bf16.gmra.mxu1 %v4679_v43 }
 0x23f   :  { %v2471_v47 = vadd.f32 %v9513_v13, %v2407_v46 }
 0x241   :  { %v2531_v44 = vmax.f32 %v2471_v47, 0.0 }
 0x242   :  { %v1453_v49 = vpop.f32.mrf.mxu0 }
 0x243   :  { %v1943_v50 = vmax.f32 %v9495_v27, %v1453_v49  ;;  %2591 = vst.msk [vmem:[#allocation3 + $0x90] sm:$0xff] %vm40_vm3, %v2531_v44  ;;  %v1746_v57 = vpop.f32.mrf.mxu3  ;;  %v7862_v44 = vld [vmem:[%s11779_s0 + $0x308] sm:$0xff] }
 0x244   :  { %v2000_v59 = vmax.f32 %v9506_v6, %v1746_v57 }
 0x245   :  { %2063 = vst.msk [vmem:[#allocation2 + $0xd8] sm:$0xff] %vm40_vm3, %v1943_v50 }
 0x246   :  { %2120 = vst.msk [vmem:[#allocation2 + $0x2a0] sm:$0xff] %vm40_vm3, %v2000_v59 }
 0x24a   :  { %v1456_v54 = vpop.f32.mrf.mxu0  ;;  %v9566_v2 = vld [vmem:[#allocation3 + $0x90] sm:$0xff] }
 0x24b   :  { %v1748_v62 = vpop.f32.mrf.mxu3 }
 0x24c   :  { %v2182_v55 = vld [vmem:[#allocation2 + $0xd0] ss:$2 sm:$0xff]  ;;  %v2302_v56 = vld [vmem:[#allocation2 + $0xd1] ss:$2 sm:$0xff]  ;;  %7326 = vmatmul.msk.bf16.gmra.mxu3 %vm939_vm2, %v7860_v63  ;;  %v2001_v16 = vmax.f32 %v9517_v23, %v1748_v62 }
 0x24d   :  { %v2408_v58 = vmax.f32 %v2182_v55, %v2302_v56  ;;  %7267 = vmatmul.msk.bf16.gmra.mxu0 %vm939_vm2, %v7801_v53  ;;  %v7804_v56 = vld [vmem:[%s11779_s0 + $0x138] sm:$0xff] }
 0x24e   :  { %2121 = vst.msk [vmem:[#allocation2 + $0x2a8] sm:$0xff] %vm40_vm3, %v2001_v16 }
 0x24f   :  { %v2472_v27 = vadd.f32 %v9513_v13, %v2408_v58 }
 0x250   :  { %v8070_v41 = vpop.permute.xlu1 %8069 }
 0x251   :  { %v2532_v22 = vmax.f32 %v2472_v27, 0.0  ;;  %v8065_v36 = vpop.permute.xlu0 %8064  ;;  %v8072_v49 = vunpack.i.h.bf16 %v8070_v41  ;;  %v8071_v50 = vunpack.i.l.bf16 %v8070_v41 }
 0x252   :  { %v1458_v60 = vpop.f32.mrf.mxu0  ;;  %v8067_v11 = vunpack.i.h.bf16 %v8065_v36  ;;  %v8066_v42 = vunpack.i.l.bf16 %v8065_v36 }
 0x253   :  { %2592 = vst.msk [vmem:[#allocation3 + $0x98] sm:$0xff] %vm40_vm3, %v2532_v22  ;;  %v1751_v15 = vpop.f32.mrf.mxu3 }
 0x254   :  { %v2002_v61 = vmax.f32 %v1741_v45, %v1751_v15  ;;  %v4366_v52 = vsel %vm40_vm3, %v9408_v30, %v8067_v11 }
 0x255   :  { %v2240_v23 = vld [vmem:[#allocation2 + $0x2a0] ss:$2 sm:$0xff]  ;;  %v2360_v25 = vld [vmem:[#allocation2 + $0x2a1] ss:$2 sm:$0xff]  ;;  %v4418_v59 = vsel %vm71_vm4, %v4366_v52, %v8072_v49 }
 0x256   :  { %2122 = vst.msk [vmem:[#allocation2 + $0x2b0] sm:$0xff] %vm40_vm3, %v2002_v61  ;;  %v2437_v32 = vmax.f32 %v2240_v23, %v2360_v25 }
 0x258   :  { %v2501_v37 = vadd.f32 %v9513_v13, %v2437_v32 }
 0x25a   :  { %v9569_v3 = vpop.f32.mrf.mxu0  ;;  %v9571_v4 = vld [vmem:[#allocation3 + $0x98] sm:$0xff]  ;;  %v2561_v45 = vmax.f32 %v2501_v37, 0.0 }
 0x25b   :  { %v2755_v5 = vld [vmem:[#allocation3 + $0x92] sm:$0xff]  ;;  %v2756_v6 = vld [vmem:[#allocation3 + $0x9a] sm:$0xff]  ;;  %v8088_v7 = vpack.i.bf16 %v9571_v4, %v9566_v2  ;;  %v1753_v18 = vpop.f32.mrf.mxu3 }
 0x25c   :  { %v8098_v8 = vpack.i.bf16 %v2756_v6, %v2755_v5  ;;  %v2703_v12 = vld [vmem:[#allocation3 + $0x91] sm:$0xff]  ;;  %v2704_v10 = vld [vmem:[#allocation3 + $0x99] sm:$0xff]  ;;  %v2003_v19 = vmax.f32 %v1743_v51, %v1753_v18  ;;  %7327 = vmatmul.msk.bf16.gmra.mxu3 %vm939_vm2, %v7861_v21  ;;  %2621 = vst.msk [vmem:[#allocation3 + $0x1f8] sm:$0xff] %vm40_vm3, %v2561_v45  ;;  %v4365_v51 = vsel %vm40_vm3, %v9406_v24, %v8066_v42  ;;  %v7826_v18 = vld [vmem:[%s11779_s0 + $0x1e8] sm:$0xff] }
 0x25d   :  { %v8093_v14 = vpack.i.bf16 %v2704_v10, %v2703_v12  ;;  %7268 = vmatmul.msk.bf16.gmra.mxu0 %vm939_vm2, %v7802_v1  ;;  %8089 = vrot.lane.b32.xlu2 %v8088_v7, %s8922_s30  ;;  %v4417_v58 = vsel %vm71_vm4, %v4365_v51, %v8071_v50  ;;  %v7825_v1 = vld [vmem:[%s11779_s0 + $0x1e0] sm:$0xff]  ;;  %v7863_v12 = vld [vmem:[%s11779_s0 + $0x310] sm:$0xff] }
 0x25e   :  { %8099 = vrot.lane.b32.xlu1 %v8098_v8, %s8921_s14  ;;  %2123 = vst.msk [vmem:[#allocation2 + $0x2b8] sm:$0xff] %vm40_vm3, %v2003_v19  ;;  %7291 = vmatmul.msk.bf16.gmra.mxu2 %vm939_vm2, %v7825_v1  ;;  %v7805_v10 = vld [vmem:[%s11779_s0 + $0x140] sm:$0xff]  ;;  %v7827_v42 = vld [vmem:[%s11779_s0 + $0x1f0] sm:$0xff] }
 0x25f   :  { %8094 = vrot.lane.b32.xlu0 %v8093_v14, %s8920_s13  ;;  %v7807_v50 = vld [vmem:[%s11779_s0 + $0x150] sm:$0xff] }
 0x262   :  { %v9585_v17 = vpop.f32.mrf.mxu0 }
 0x263   :  { %v9596_v34 = vpop.f32.mrf.mxu3 }
 0x265   :  { %v2242_v35 = vld [vmem:[#allocation2 + $0x2b0] ss:$2 sm:$0xff]  ;;  %v2362_v33 = vld [vmem:[#allocation2 + $0x2b1] ss:$2 sm:$0xff] }
 0x266   :  { %v2438_v38 = vmax.f32 %v2242_v35, %v2362_v33 }
 0x268   :  { %v2502_v9 = vadd.f32 %v9513_v13, %v2438_v38 }
 0x26a   :  { %v1466_v28 = vpop.f32.mrf.mxu0  ;;  %v2562_v46 = vmax.f32 %v2502_v9, 0.0 }
 0x26b   :  { %v1944_v29 = vmax.f32 %v1456_v54, %v1466_v28  ;;  %v9606_v47 = vpop.f32.mrf.mxu3  ;;  %v7806_v28 = vld [vmem:[%s11779_s0 + $0x148] sm:$0xff] }
 0x26c   :  { %2622 = vst.msk [vmem:[#allocation3 + $0x200] sm:$0xff] %vm40_vm3, %v2562_v46  ;;  %7328 = vmatmul.msk.bf16.gmra.mxu3 %vm939_vm2, %v7862_v44 }
 0x26d   :  { %2064 = vst.msk [vmem:[#allocation2 + $0xe0] sm:$0xff] %vm40_vm3, %v1944_v29  ;;  %7269 = vmatmul.msk.bf16.gmra.mxu0 %vm939_vm2, %v7803_v26  ;;  %v7864_v26 = vld [vmem:[%s11779_s0 + $0x318] sm:$0xff] }
 0x26e   :  { %7292 = vmatmul.msk.bf16.gmra.mxu2 %vm939_vm2, %v7826_v18 }
 0x272   :  { %v1468_v40 = vpop.f32.mrf.mxu0 }
 0x273   :  { %v1945_v43 = vmax.f32 %v1458_v60, %v1468_v40  ;;  %v1761_v62 = vpop.f32.mrf.mxu3 }
 0x275   :  { %2065 = vst.msk [vmem:[#allocation2 + $0xe8] sm:$0xff] %vm40_vm3, %v1945_v43 }
 0x277   :  { %v8075_v53 = vpop.permute.xlu2 %8074 }
 0x278   :  { %v8077_v54 = vunpack.i.h.bf16 %v8075_v53  ;;  %v8076_v55 = vunpack.i.l.bf16 %v8075_v53 }
 0x27a   :  { %v1471_v57 = vpop.f32.mrf.mxu0  ;;  %v4470_v30 = vsel %vm4461_vm5, %v4417_v58, %v8076_v55  ;;  %v4471_v20 = vsel %vm4461_vm5, %v4418_v59, %v8077_v54 }
 0x27b   :  { %v1946_v24 = vmax.f32 %v9569_v3, %v1471_v57  ;;  %v4682_v60 = vpack.c.bf16 %v4471_v20, %v4470_v30  ;;  %v1763_v8 = vpop.f32.mrf.mxu3 }
 0x27c   :  { %v2184_v27 = vld [vmem:[#allocation2 + $0xe0] ss:$2 sm:$0xff]  ;;  %v2304_v22 = vld [vmem:[#allocation2 + $0xe1] ss:$2 sm:$0xff]  ;;  %7329 = vmatmul.msk.bf16.gmra.mxu3 %vm939_vm2, %v7863_v12 }
 0x27d   :  { %v2409_v63 = vmax.f32 %v2184_v27, %v2304_v22  ;;  %2066 = vst.msk [vmem:[#allocation2 + $0xf0] sm:$0xff] %vm40_vm3, %v1946_v24  ;;  %7270 = vmatmul.msk.bf16.gmra.mxu0 %vm939_vm2, %v7804_v56  ;;  %4998 = vmatmul.bf16.gmra.mxu1 %v4682_v60  ;;  %v7828_v24 = vld [vmem:[%s11779_s0 + $0x1f8] sm:$0xff] }
 0x27e   :  { %7293 = vmatmul.msk.bf16.gmra.mxu2 %vm939_vm2, %v7827_v42 }
 0x27f   :  { %v2473_v3 = vadd.f32 %v9513_v13, %v2409_v63 }
 0x281   :  { %v2533_v5 = vmax.f32 %v2473_v3, 0.0 }
 0x282   :  { %v1473_v6 = vpop.f32.mrf.mxu0 }
 0x283   :  { %v1947_v7 = vmax.f32 %v9585_v17, %v1473_v6  ;;  %2593 = vst.msk [vmem:[#allocation3 + $0xa8] sm:$0xff] %vm40_vm3, %v2533_v5  ;;  %v1766_v61 = vpop.f32.mrf.mxu3 }
 0x284   :  { %v2004_v17 = vmax.f32 %v9596_v34, %v1766_v61 }
 0x285   :  { %2067 = vst.msk [vmem:[#allocation2 + $0xf8] sm:$0xff] %vm40_vm3, %v1947_v7  ;;  %v7866_v7 = vld [vmem:[%s11779_s0 + $0x328] sm:$0xff] }
 0x286   :  { %2124 = vst.msk [vmem:[#allocation2 + $0x2c0] sm:$0xff] %vm40_vm3, %v2004_v17 }
 0x28a   :  { %v1476_v14 = vpop.f32.mrf.mxu0  ;;  %v9659_v29 = vld [vmem:[#allocation3 + $0xa8] sm:$0xff] }
 0x28b   :  { %v1768_v25 = vpop.f32.mrf.mxu3 }
 0x28c   :  { %v2186_v15 = vld [vmem:[#allocation2 + $0xf0] ss:$2 sm:$0xff]  ;;  %v2306_v16 = vld [vmem:[#allocation2 + $0xf1] ss:$2 sm:$0xff]  ;;  %7330 = vmatmul.msk.bf16.gmra.mxu3 %vm939_vm2, %v7864_v26  ;;  %v2005_v40 = vmax.f32 %v9606_v47, %v1768_v25  ;;  %v7865_v47 = vld [vmem:[%s11779_s0 + $0x320] sm:$0xff] }
 0x28d   :  { %v2410_v0 = vmax.f32 %v2186_v15, %v2306_v16  ;;  %7271 = vmatmul.msk.bf16.gmra.mxu0 %vm939_vm2, %v7805_v10  ;;  %v7808_v16 = vld [vmem:[%s11779_s0 + $0x158] sm:$0xff] }
 0x28e   :  { %2125 = vst.msk [vmem:[#allocation2 + $0x2c8] sm:$0xff] %vm40_vm3, %v2005_v40  ;;  %7294 = vmatmul.msk.bf16.gmra.mxu2 %vm939_vm2, %v7828_v24 }
 0x28f   :  { %v2474_v19 = vadd.f32 %v9513_v13, %v2410_v0 }
 0x290   :  { %v8085_v20 = vpop.permute.xlu1 %8084 }
 0x291   :  { %v2534_v21 = vmax.f32 %v2474_v19, 0.0  ;;  %v8080_v57 = vpop.permute.xlu0 %8079  ;;  %v8087_v5 = vunpack.i.h.bf16 %v8085_v20  ;;  %v8086_v6 = vunpack.i.l.bf16 %v8085_v20 }
 0x292   :  { %v1478_v23 = vpop.f32.mrf.mxu0  ;;  %v8082_v27 = vunpack.i.h.bf16 %v8080_v57  ;;  %v8081_v22 = vunpack.i.l.bf16 %v8080_v57 }
 0x293   :  { %2594 = vst.msk [vmem:[#allocation3 + $0xb0] sm:$0xff] %vm40_vm3, %v2534_v21  ;;  %v1771_v11 = vpop.f32.mrf.mxu3 }
 0x294   :  { %v2006_v41 = vmax.f32 %v1761_v62, %v1771_v11  ;;  %v4368_v12 = vsel %vm40_vm3, %v9485_v48, %v8082_v27 }
 0x295   :  { %v2244_v44 = vld [vmem:[#allocation2 + $0x2c0] ss:$2 sm:$0xff]  ;;  %v2364_v49 = vld [vmem:[#allocation2 + $0x2c1] ss:$2 sm:$0xff]  ;;  %v4420_v0 = vsel %vm71_vm4, %v4368_v12, %v8087_v5 }
 0x296   :  { %2126 = vst.msk [vmem:[#allocation2 + $0x2d0] sm:$0xff] %vm40_vm3, %v2006_v41  ;;  %v2439_v53 = vmax.f32 %v2244_v44, %v2364_v49 }
 0x298   :  { %v2503_v58 = vadd.f32 %v9513_v13, %v2439_v53 }
 0x29a   :  { %v9662_v32 = vpop.f32.mrf.mxu0  ;;  %v9664_v34 = vld [vmem:[#allocation3 + $0xb0] sm:$0xff]  ;;  %v2563_v63 = vmax.f32 %v2503_v58, 0.0  ;;  %v9748_v49 = vpop.f32.mrf.mxu2 }
 0x29b   :  { %v2757_v35 = vld [vmem:[#allocation3 + $0xaa] sm:$0xff]  ;;  %v2758_v33 = vld [vmem:[#allocation3 + $0xb2] sm:$0xff]  ;;  %v8103_v36 = vpack.i.bf16 %v9664_v34, %v9659_v29  ;;  %v1773_v45 = vpop.f32.mrf.mxu3 }
 0x29c   :  { %v8113_v37 = vpack.i.bf16 %v2758_v33, %v2757_v35  ;;  %v2705_v38 = vld [vmem:[#allocation3 + $0xa9] sm:$0xff]  ;;  %v2706_v39 = vld [vmem:[#allocation3 + $0xb1] sm:$0xff]  ;;  %v2007_v46 = vmax.f32 %v1763_v8, %v1773_v45  ;;  %7331 = vmatmul.msk.bf16.gmra.mxu3 %vm939_vm2, %v7865_v47  ;;  %v4367_v8 = vsel %vm40_vm3, %v9483_v31, %v8081_v22  ;;  %2623 = vst.msk [vmem:[#allocation3 + $0x210] sm:$0xff] %vm40_vm3, %v2563_v63  ;;  %v7829_v35 = vld [vmem:[%s11779_s0 + $0x200] sm:$0xff] }
 0x29d   :  { %v8108_v9 = vpack.i.bf16 %v2706_v39, %v2705_v38  ;;  %7272 = vmatmul.msk.bf16.gmra.mxu0 %vm939_vm2, %v7806_v28  ;;  %8104 = vrot.lane.b32.xlu2 %v8103_v36, %s8922_s30  ;;  %v4419_v61 = vsel %vm71_vm4, %v4367_v8, %v8086_v6  ;;  %v7867_v38 = vld [vmem:[%s11779_s0 + $0x330] sm:$0xff]  ;;  %v7809_v39 = vld [vmem:[%s11779_s0 + $0x160] sm:$0xff]  ;;  %v7830_v45 = vld [vmem:[%s11779_s0 + $0x208] sm:$0xff] }
 0x29e   :  { %8114 = vrot.lane.b32.xlu1 %v8113_v37, %s8921_s14  ;;  %2127 = vst.msk [vmem:[#allocation2 + $0x2d8] sm:$0xff] %vm40_vm3, %v2007_v46  ;;  %7295 = vmatmul.msk.bf16.gmra.mxu2 %vm939_vm2, %v7829_v35  ;;  %v7831_v63 = vld [vmem:[%s11779_s0 + $0x210] sm:$0xff] }
 0x29f   :  { %8109 = vrot.lane.b32.xlu0 %v8108_v9, %s8920_s13 }
 0x2a2   :  { %v9678_v43 = vpop.f32.mrf.mxu0  ;;  %v9765_v20 = vpop.f32.mrf.mxu2 }
 0x2a3   :  { %v9689_v54 = vpop.f32.mrf.mxu3 }
 0x2a5   :  { %v2246_v55 = vld [vmem:[#allocation2 + $0x2d0] ss:$2 sm:$0xff]  ;;  %v2366_v56 = vld [vmem:[#allocation2 + $0x2d1] ss:$2 sm:$0xff] }
 0x2a6   :  { %v2440_v59 = vmax.f32 %v2246_v55, %v2366_v56 }
 0x2a8   :  { %v2504_v30 = vadd.f32 %v9513_v13, %v2440_v59 }
 0x2aa   :  { %v1486_v51 = vpop.f32.mrf.mxu0  ;;  %v2564_v1 = vmax.f32 %v2504_v30, 0.0  ;;  %v9780_v5 = vpop.f32.mrf.mxu2 }
 0x2ab   :  { %v1948_v52 = vmax.f32 %v1476_v14, %v1486_v51  ;;  %v9699_v3 = vpop.f32.mrf.mxu3  ;;  %v7868_v51 = vld [vmem:[%s11779_s0 + $0x338] sm:$0xff] }
 0x2ac   :  { %2624 = vst.msk [vmem:[#allocation3 + $0x218] sm:$0xff] %vm40_vm3, %v2564_v1  ;;  %7332 = vmatmul.msk.bf16.gmra.mxu3 %vm939_vm2, %v7866_v7 }
 0x2ad   :  { %2068 = vst.msk [vmem:[#allocation2 + $0x100] sm:$0xff] %vm40_vm3, %v1948_v52  ;;  %7273 = vmatmul.msk.bf16.gmra.mxu0 %vm939_vm2, %v7807_v50  ;;  %v7810_v52 = vld [vmem:[%s11779_s0 + $0x168] sm:$0xff] }
 0x2ae   :  { %7296 = vmatmul.msk.bf16.gmra.mxu2 %vm939_vm2, %v7830_v45 }
 0x2b2   :  { %v1488_v60 = vpop.f32.mrf.mxu0 }
 0x2b3   :  { %v1949_v62 = vmax.f32 %v1478_v23, %v1488_v60  ;;  %v1781_v25 = vpop.f32.mrf.mxu3 }
 0x2b5   :  { %2069 = vst.msk [vmem:[#allocation2 + $0x108] sm:$0xff] %vm40_vm3, %v1949_v62 }
 0x2b7   :  { %v8090_v10 = vpop.permute.xlu2 %8089 }
 0x2b8   :  { %v8092_v14 = vunpack.i.h.bf16 %v8090_v10  ;;  %v8091_v15 = vunpack.i.l.bf16 %v8090_v10  ;;  %v7811_v10 = vld [vmem:[%s11779_s0 + $0x170] sm:$0xff] }
 0x2ba   :  { %v1491_v31 = vpop.f32.mrf.mxu0  ;;  %v4472_v48 = vsel %vm4461_vm5, %v4419_v61, %v8091_v15  ;;  %v4473_v17 = vsel %vm4461_vm5, %v4420_v0, %v8092_v14  ;;  %v9790_v61 = vpop.f32.mrf.mxu2 }
 0x2bb   :  { %v1950_v18 = vmax.f32 %v9662_v32, %v1491_v31  ;;  %v4685_v19 = vpack.c.bf16 %v4473_v17, %v4472_v48  ;;  %v1783_v37 = vpop.f32.mrf.mxu3 }
 0x2bc   :  { %v2188_v21 = vld [vmem:[#allocation2 + $0x100] ss:$2 sm:$0xff]  ;;  %v2308_v23 = vld [vmem:[#allocation2 + $0x101] ss:$2 sm:$0xff]  ;;  %7333 = vmatmul.msk.bf16.gmra.mxu3 %vm939_vm2, %v7867_v38 }
 0x2bd   :  { %v2411_v26 = vmax.f32 %v2188_v21, %v2308_v23  ;;  %2070 = vst.msk [vmem:[#allocation2 + $0x110] sm:$0xff] %vm40_vm3, %v1950_v18  ;;  %7274 = vmatmul.msk.bf16.gmra.mxu0 %vm939_vm2, %v7808_v16  ;;  %5003 = vmatmul.bf16.gmra.mxu1 %v4685_v19  ;;  %v7832_v21 = vld [vmem:[%s11779_s0 + $0x218] sm:$0xff] }
 0x2be   :  { %7297 = vmatmul.msk.bf16.gmra.mxu2 %vm939_vm2, %v7831_v63 }
 0x2bf   :  { %v2475_v28 = vadd.f32 %v9513_v13, %v2411_v26 }
 0x2c1   :  { %v2535_v33 = vmax.f32 %v2475_v28, 0.0 }
 0x2c2   :  { %v1493_v32 = vpop.f32.mrf.mxu0 }
 0x2c3   :  { %v1951_v36 = vmax.f32 %v9678_v43, %v1493_v32  ;;  %2595 = vst.msk [vmem:[#allocation3 + $0xc0] sm:$0xff] %vm40_vm3, %v2535_v33  ;;  %v1786_v41 = vpop.f32.mrf.mxu3 }
 0x2c4   :  { %v2008_v43 = vmax.f32 %v9689_v54, %v1786_v41 }
 0x2c5   :  { %2071 = vst.msk [vmem:[#allocation2 + $0x118] sm:$0xff] %vm40_vm3, %v1951_v36  ;;  %v1611_v36 = vpop.f32.mrf.mxu2 }
 0x2c6   :  { %2128 = vst.msk [vmem:[#allocation2 + $0x2e0] sm:$0xff] %vm40_vm3, %v2008_v43 }
 0x2ca   :  { %v1496_v9 = vpop.f32.mrf.mxu0  ;;  %v9759_v54 = vld [vmem:[#allocation3 + $0xc0] sm:$0xff] }
 0x2cb   :  { %v1788_v50 = vpop.f32.mrf.mxu3 }
 0x2cc   :  { %v2190_v11 = vld [vmem:[#allocation2 + $0x110] ss:$2 sm:$0xff]  ;;  %v2310_v40 = vld [vmem:[#allocation2 + $0x111] ss:$2 sm:$0xff]  ;;  %7334 = vmatmul.msk.bf16.gmra.mxu3 %vm939_vm2, %v7868_v51  ;;  %v2009_v60 = vmax.f32 %v9699_v3, %v1788_v50  ;;  %v7869_v3 = vld [vmem:[%s11779_s0 + $0x340] sm:$0xff] }
 0x2cd   :  { %v2412_v42 = vmax.f32 %v2190_v11, %v2310_v40  ;;  %7275 = vmatmul.msk.bf16.gmra.mxu0 %vm939_vm2, %v7809_v39  ;;  %v1974_v11 = vmax.f32 %v9748_v49, %v1611_v36  ;;  %v7870_v40 = vld [vmem:[%s11779_s0 + $0x348] sm:$0xff] }
 0x2ce   :  { %2129 = vst.msk [vmem:[#allocation2 + $0x2e8] sm:$0xff] %vm40_vm3, %v2009_v60  ;;  %7298 = vmatmul.msk.bf16.gmra.mxu2 %vm939_vm2, %v7832_v21 }
 0x2cf   :  { %v2476_v46 = vadd.f32 %v9513_v13, %v2412_v42  ;;  %2094 = vst.msk [vmem:[#allocation2 + $0x1d0] sm:$0xff] %vm40_vm3, %v1974_v11 }
 0x2d1   :  { %v2536_v44 = vmax.f32 %v2476_v46, 0.0  ;;  %v8095_v17 = vpop.permute.xlu0 %8094 }
 0x2d2   :  { %v9745_v47 = vpop.f32.mrf.mxu0  ;;  %v8097_v26 = vunpack.i.h.bf16 %v8095_v17  ;;  %v8096_v28 = vunpack.i.l.bf16 %v8095_v17 }
 0x2d3   :  { %2596 = vst.msk [vmem:[#allocation3 + $0xc8] sm:$0xff] %vm40_vm3, %v2536_v44  ;;  %v1791_v27 = vpop.f32.mrf.mxu3 }
 0x2d4   :  { %v2010_v62 = vmax.f32 %v1781_v25, %v1791_v27  ;;  %v8100_v25 = vpop.permute.xlu1 %8099  ;;  %v4369_v41 = vsel %vm40_vm3, %v9566_v2, %v8096_v28  ;;  %v4370_v42 = vsel %vm40_vm3, %v9571_v4, %v8097_v26 }
 0x2d5   :  { %v2248_v8 = vld [vmem:[#allocation2 + $0x2e0] ss:$2 sm:$0xff]  ;;  %v2368_v12 = vld [vmem:[#allocation2 + $0x2e1] ss:$2 sm:$0xff]  ;;  %v8102_v39 = vunpack.i.h.bf16 %v8100_v25 }
 0x2d6   :  { %2130 = vst.msk [vmem:[#allocation2 + $0x2f0] sm:$0xff] %vm40_vm3, %v2010_v62  ;;  %v2441_v16 = vmax.f32 %v2248_v8, %v2368_v12 }
 0x2d7   :  { %v4422_v2 = vsel %vm71_vm4, %v4370_v42, %v8102_v39 }
 0x2d8   :  { %v2505_v18 = vadd.f32 %v9513_v13, %v2441_v16  ;;  %v7834_v16 = vld [vmem:[%s11779_s0 + $0x228] sm:$0xff] }
 0x2da   :  { %v9757_v53 = vpop.f32.mrf.mxu0  ;;  %v9761_v55 = vld [vmem:[#allocation3 + $0xc8] sm:$0xff]  ;;  %v2565_v32 = vmax.f32 %v2505_v18, 0.0 }
 0x2db   :  { %v2759_v56 = vld [vmem:[#allocation3 + $0xc2] sm:$0xff]  ;;  %v2760_v57 = vld [vmem:[#allocation3 + $0xca] sm:$0xff]  ;;  %v8118_v58 = vpack.i.bf16 %v9761_v55, %v9759_v54  ;;  %v1793_v6 = vpop.f32.mrf.mxu3 }
 0x2dc   :  { %v8128_v59 = vpack.i.bf16 %v2760_v57, %v2759_v56  ;;  %v2707_v24 = vld [vmem:[#allocation3 + $0xc1] sm:$0xff]  ;;  %v2708_v30 = vld [vmem:[#allocation3 + $0xc9] sm:$0xff]  ;;  %v2011_v7 = vmax.f32 %v1783_v37, %v1793_v6  ;;  %7335 = vmatmul.msk.bf16.gmra.mxu3 %vm939_vm2, %v7869_v3  ;;  %2625 = vst.msk [vmem:[#allocation3 + $0x228] sm:$0xff] %vm40_vm3, %v2565_v32 }
 0x2dd   :  { %7276 = vmatmul.msk.bf16.gmra.mxu0 %vm939_vm2, %v7810_v52  ;;  %v8123_v22 = vpack.i.bf16 %v2708_v30, %v2707_v24  ;;  %8119 = vrot.lane.b32.xlu2 %v8118_v58, %s8922_s30  ;;  %v1613_v58 = vpop.f32.mrf.mxu2 }
 0x2de   :  { %8129 = vrot.lane.b32.xlu1 %v8128_v59, %s8921_s14  ;;  %2131 = vst.msk [vmem:[#allocation2 + $0x2f8] sm:$0xff] %vm40_vm3, %v2011_v7  ;;  %v1975_v30 = vmax.f32 %v9765_v20, %v1613_v58  ;;  %v7871_v20 = vld [vmem:[%s11779_s0 + $0x350] sm:$0xff]  ;;  %v7813_v7 = vld [vmem:[%s11779_s0 + $0x180] sm:$0xff] }
 0x2df   :  { %8124 = vrot.lane.b32.xlu0 %v8123_v22, %s8920_s13 }
 0x2e0   :  { %2095 = vst.msk [vmem:[#allocation2 + $0x1d8] sm:$0xff] %vm40_vm3, %v1975_v30 }
 0x2e2   :  { %v9777_v1 = vpop.f32.mrf.mxu0 }
 0x2e3   :  { %v9792_v0 = vpop.f32.mrf.mxu3 }
 0x2e5   :  { %v2250_v31 = vld [vmem:[#allocation2 + $0x2f0] ss:$2 sm:$0xff]  ;;  %v2370_v48 = vld [vmem:[#allocation2 + $0x2f1] ss:$2 sm:$0xff]  ;;  %v9839_v63 = vpop.f32.mrf.mxu2 }
 0x2e6   :  { %v2442_v19 = vmax.f32 %v2250_v31, %v2370_v48 }
 0x2e7   :  { %v2214_v21 = vld [vmem:[#allocation2 + $0x1d0] ss:$2 sm:$0xff] }
 0x2e8   :  { %v2506_v23 = vadd.f32 %v9513_v13, %v2442_v19 }
 0x2ea   :  { %v1506_v14 = vpop.f32.mrf.mxu0  ;;  %v2566_v38 = vmax.f32 %v2506_v23, 0.0  ;;  %v2334_v23 = vld [vmem:[#allocation2 + $0x1d1] ss:$2 sm:$0xff] }
 0x2eb   :  { %v1952_v15 = vmax.f32 %v1496_v9, %v1506_v14  ;;  %v9803_v37 = vpop.f32.mrf.mxu3  ;;  %v8101_v9 = vunpack.i.l.bf16 %v8100_v25  ;;  %v7814_v25 = vld [vmem:[%s11779_s0 + $0x188] sm:$0xff] }
 0x2ec   :  { %2626 = vst.msk [vmem:[#allocation3 + $0x230] sm:$0xff] %vm40_vm3, %v2566_v38  ;;  %7336 = vmatmul.msk.bf16.gmra.mxu3 %vm939_vm2, %v7870_v40 }
 0x2ed   :  { %2072 = vst.msk [vmem:[#allocation2 + $0x120] sm:$0xff] %vm40_vm3, %v1952_v15  ;;  %7277 = vmatmul.msk.bf16.gmra.mxu0 %vm939_vm2, %v7811_v10  ;;  %v4421_v44 = vsel %vm71_vm4, %v4369_v41, %v8101_v9  ;;  %v9851_v12 = vpop.f32.mrf.mxu2 }
 0x2f2   :  { %v1508_v35 = vpop.f32.mrf.mxu0 }
 0x2f3   :  { %v1953_v33 = vmax.f32 %v9745_v47, %v1508_v35  ;;  %v7812_v47 = vld [vmem:[%s11779_s0 + $0x178] sm:$0xff]  ;;  %v9826_v59 = vpop.f32.mrf.mxu3  ;;  %v2424_v35 = vmax.f32 %v2214_v21, %v2334_v23 }
 0x2f5   :  { %2073 = vst.msk [vmem:[#allocation2 + $0x128] sm:$0xff] %vm40_vm3, %v1953_v33  ;;  %v9864_v18 = vpop.f32.mrf.mxu2 }
 0x2f7   :  { %v8105_v43 = vpop.permute.xlu2 %8104 }
 0x2f8   :  { %v8107_v45 = vunpack.i.h.bf16 %v8105_v43  ;;  %v8106_v46 = vunpack.i.l.bf16 %v8105_v43  ;;  %v2488_v43 = vadd.f32 %v9513_v13, %v2424_v35 }
 0x2fa   :  { %v1511_v4 = vpop.f32.mrf.mxu0  ;;  %v4474_v49 = vsel %vm4461_vm5, %v4421_v44, %v8106_v46  ;;  %v4475_v50 = vsel %vm4461_vm5, %v4422_v2, %v8107_v45  ;;  %v2548_v2 = vmax.f32 %v2488_v43, 0.0 }
 0x2fb   :  { %v1954_v51 = vmax.f32 %v9757_v53, %v1511_v4  ;;  %v4688_v52 = vpack.c.bf16 %v4475_v50, %v4474_v49  ;;  %v7833_v53 = vld [vmem:[%s11779_s0 + $0x220] sm:$0xff]  ;;  %v1803_v6 = vpop.f32.mrf.mxu3 }
 0x2fc   :  { %v2192_v56 = vld [vmem:[#allocation2 + $0x120] ss:$2 sm:$0xff]  ;;  %v2312_v57 = vld [vmem:[#allocation2 + $0x121] ss:$2 sm:$0xff]  ;;  %7299 = vmatmul.msk.bf16.gmra.mxu2 %vm939_vm2, %v7833_v53  ;;  %7337 = vmatmul.msk.bf16.gmra.mxu3 %vm939_vm2, %v7871_v20  ;;  %2608 = vst.msk [vmem:[#allocation3 + $0x158] sm:$0xff] %vm40_vm3, %v2548_v2  ;;  %v7836_v20 = vld [vmem:[%s11779_s0 + $0x238] sm:$0xff] }
 0x2fd   :  { %v2413_v24 = vmax.f32 %v2192_v56, %v2312_v57  ;;  %2074 = vst.msk [vmem:[#allocation2 + $0x130] sm:$0xff] %vm40_vm3, %v1954_v51  ;;  %7278 = vmatmul.msk.bf16.gmra.mxu0 %vm939_vm2, %v7812_v47  ;;  %5008 = vmatmul.bf16.gmra.mxu1 %v4688_v52  ;;  %v9881_v40 = vpop.f32.mrf.mxu2  ;;  %v7835_v47 = vld [vmem:[%s11779_s0 + $0x230] sm:$0xff] }
 0x2fe   :  { %v7815_v56 = vld [vmem:[%s11779_s0 + $0x190] sm:$0xff] }
 0x2ff   :  { %v2477_v27 = vadd.f32 %v9513_v13, %v2413_v24 }
 0x301   :  { %v2537_v22 = vmax.f32 %v2477_v27, 0.0 }
 0x302   :  { %v1513_v60 = vpop.f32.mrf.mxu0 }
 0x303   :  { %v1955_v62 = vmax.f32 %v9777_v1, %v1513_v60  ;;  %2597 = vst.msk [vmem:[#allocation3 + $0xd8] sm:$0xff] %vm40_vm3, %v2537_v22  ;;  %v1806_v10 = vpop.f32.mrf.mxu3 }
 0x304   :  { %v2012_v15 = vmax.f32 %v9792_v0, %v1806_v10  ;;  %v7872_v0 = vld [vmem:[%s11779_s0 + $0x358] sm:$0xff] }
 0x305   :  { %2075 = vst.msk [vmem:[#allocation2 + $0x138] sm:$0xff] %vm40_vm3, %v1955_v62  ;;  %v1626_v4 = vpop.f32.mrf.mxu2 }
 0x306   :  { %2132 = vst.msk [vmem:[#allocation2 + $0x300] sm:$0xff] %vm40_vm3, %v2012_v15  ;;  %v1976_v60 = vmax.f32 %v9839_v63, %v1626_v4 }
 0x308   :  { %2096 = vst.msk [vmem:[#allocation2 + $0x1e0] sm:$0xff] %vm40_vm3, %v1976_v60 }
 0x30a   :  { %v9849_v3 = vpop.f32.mrf.mxu0  ;;  %v9875_v28 = vld [vmem:[#allocation3 + $0xd8] sm:$0xff] }
 0x30b   :  { %v1808_v19 = vpop.f32.mrf.mxu3 }
 0x30c   :  { %v2194_v1 = vld [vmem:[#allocation2 + $0x130] ss:$2 sm:$0xff]  ;;  %v2314_v8 = vld [vmem:[#allocation2 + $0x131] ss:$2 sm:$0xff]  ;;  %7300 = vmatmul.msk.bf16.gmra.mxu2 %vm939_vm2, %v7834_v16  ;;  %7338 = vmatmul.msk.bf16.gmra.mxu3 %vm939_vm2, %v7872_v0  ;;  %v2013_v45 = vmax.f32 %v9803_v37, %v1808_v19  ;;  %v7873_v37 = vld [vmem:[%s11779_s0 + $0x360] sm:$0xff] }
 0x30d   :  { %v2414_v14 = vmax.f32 %v2194_v1, %v2314_v8  ;;  %7279 = vmatmul.msk.bf16.gmra.mxu0 %vm939_vm2, %v7813_v7  ;;  %v1628_v24 = vpop.f32.mrf.mxu2  ;;  %v7874_v19 = vld [vmem:[%s11779_s0 + $0x368] sm:$0xff] }
 0x30e   :  { %2133 = vst.msk [vmem:[#allocation2 + $0x308] sm:$0xff] %vm40_vm3, %v2013_v45 }
 0x30f   :  { %v2478_v31 = vadd.f32 %v9513_v13, %v2414_v14 }
 0x310   :  { %v8115_v8 = vpop.permute.xlu1 %8114 }
 0x311   :  { %v2538_v17 = vmax.f32 %v2478_v31, 0.0  ;;  %v8110_v7 = vpop.permute.xlu0 %8109  ;;  %v8117_v0 = vunpack.i.h.bf16 %v8115_v8  ;;  %v8116_v21 = vunpack.i.l.bf16 %v8115_v8 }
 0x312   :  { %v9861_v48 = vpop.f32.mrf.mxu0  ;;  %v8112_v10 = vunpack.i.h.bf16 %v8110_v7  ;;  %v8111_v63 = vunpack.i.l.bf16 %v8110_v7 }
 0x313   :  { %2598 = vst.msk [vmem:[#allocation3 + $0xe0] sm:$0xff] %vm40_vm3, %v2538_v17  ;;  %v1811_v41 = vpop.f32.mrf.mxu3 }
 0x314   :  { %v2014_v46 = vmax.f32 %v9826_v59, %v1811_v41  ;;  %v4372_v23 = vsel %vm40_vm3, %v9664_v34, %v8112_v10 }
 0x315   :  { %v2252_v51 = vld [vmem:[#allocation2 + $0x300] ss:$2 sm:$0xff]  ;;  %v2372_v52 = vld [vmem:[#allocation2 + $0x301] ss:$2 sm:$0xff]  ;;  %v1631_v15 = vpop.f32.mrf.mxu2 }
 0x316   :  { %2134 = vst.msk [vmem:[#allocation2 + $0x310] sm:$0xff] %vm40_vm3, %v2014_v46  ;;  %v2443_v59 = vmax.f32 %v2252_v51, %v2372_v52  ;;  %v1978_v17 = vmax.f32 %v9864_v18, %v1631_v15  ;;  %v7818_v15 = vld [vmem:[%s11779_s0 + $0x1a8] sm:$0xff] }
 0x318   :  { %v2507_v22 = vadd.f32 %v9513_v13, %v2443_v59  ;;  %2098 = vst.msk [vmem:[#allocation2 + $0x1f0] sm:$0xff] %vm40_vm3, %v1978_v17 }
 0x31a   :  { %v9873_v26 = vpop.f32.mrf.mxu0  ;;  %v9877_v33 = vld [vmem:[#allocation3 + $0xe0] sm:$0xff] }
 0x31b   :  { %v2761_v32 = vld [vmem:[#allocation3 + $0xda] sm:$0xff]  ;;  %v2762_v36 = vld [vmem:[#allocation3 + $0xe2] sm:$0xff]  ;;  %v8133_v38 = vpack.i.bf16 %v9877_v33, %v9875_v28  ;;  %v1813_v49 = vpop.f32.mrf.mxu3 }
 0x31c   :  { %v8143_v39 = vpack.i.bf16 %v2762_v36, %v2761_v32  ;;  %v2709_v9 = vld [vmem:[#allocation3 + $0xd9] sm:$0xff]  ;;  %v2710_v11 = vld [vmem:[#allocation3 + $0xe1] sm:$0xff]  ;;  %7301 = vmatmul.msk.bf16.gmra.mxu2 %vm939_vm2, %v7835_v47  ;;  %v2015_v50 = vmax.f32 %v1803_v6, %v1813_v49  ;;  %7339 = vmatmul.msk.bf16.gmra.mxu3 %vm939_vm2, %v7873_v37  ;;  %v1977_v6 = vmax.f32 %v9851_v12, %v1628_v24  ;;  %v2567_v12 = vmax.f32 %v2507_v22, 0.0 }
 0x31d   :  { %7280 = vmatmul.msk.bf16.gmra.mxu0 %vm939_vm2, %v7814_v25  ;;  %v8138_v42 = vpack.i.bf16 %v2710_v11, %v2709_v9  ;;  %8134 = vrot.lane.b32.xlu2 %v8133_v38, %s8922_s30  ;;  %v7816_v32 = vld [vmem:[%s11779_s0 + $0x198] sm:$0xff]  ;;  %v1633_v43 = vpop.f32.mrf.mxu2 }
 0x31e   :  { %8144 = vrot.lane.b32.xlu1 %v8143_v39, %s8921_s14  ;;  %2135 = vst.msk [vmem:[#allocation2 + $0x318] sm:$0xff] %vm40_vm3, %v2015_v50  ;;  %v1979_v47 = vmax.f32 %v9881_v40, %v1633_v43  ;;  %v7875_v40 = vld [vmem:[%s11779_s0 + $0x370] sm:$0xff] }
 0x31f   :  { %8139 = vrot.lane.b32.xlu0 %v8138_v42, %s8920_s13  ;;  %2097 = vst.msk [vmem:[#allocation2 + $0x1e8] sm:$0xff] %vm40_vm3, %v1977_v6 }
 0x320   :  { %2627 = vst.msk [vmem:[#allocation3 + $0x240] sm:$0xff] %vm40_vm3, %v2567_v12 }
 0x321   :  { %2099 = vst.msk [vmem:[#allocation2 + $0x1f8] sm:$0xff] %vm40_vm3, %v1979_v47 }
 0x322   :  { %v9895_v44 = vpop.f32.mrf.mxu0 }
 0x323   :  { %v9908_v30 = vpop.f32.mrf.mxu3 }
 0x325   :  { %v2254_v27 = vld [vmem:[#allocation2 + $0x310] ss:$2 sm:$0xff]  ;;  %v2374_v53 = vld [vmem:[#allocation2 + $0x311] ss:$2 sm:$0xff]  ;;  %v9955_v50 = vpop.f32.mrf.mxu2 }
 0x326   :  { %v2444_v62 = vmax.f32 %v2254_v27, %v2374_v53  ;;  %v2216_v51 = vld [vmem:[#allocation2 + $0x1e0] ss:$2 sm:$0xff]  ;;  %v2336_v52 = vld [vmem:[#allocation2 + $0x1e1] ss:$2 sm:$0xff] }
 0x32a   :  { %v1526_v57 = vpop.f32.mrf.mxu0 }
 0x32b   :  { %v1956_v58 = vmax.f32 %v9849_v3, %v1526_v57  ;;  %v2508_v3 = vadd.f32 %v9513_v13, %v2444_v62  ;;  %v9923_v16 = vpop.f32.mrf.mxu3  ;;  %v2425_v57 = vmax.f32 %v2216_v51, %v2336_v52  ;;  %v9970_v62 = vld [vmem:[%s11781_s2] ss:$0 sm:$0xff] }
 0x32c   :  { %7302 = vmatmul.msk.bf16.gmra.mxu2 %vm939_vm2, %v7836_v20  ;;  %7340 = vmatmul.msk.bf16.gmra.mxu3 %vm939_vm2, %v7874_v19 }
 0x32d   :  { %2076 = vst.msk [vmem:[#allocation2 + $0x140] sm:$0xff] %vm40_vm3, %v1956_v58  ;;  %7281 = vmatmul.msk.bf16.gmra.mxu0 %vm939_vm2, %v7815_v56  ;;  %v2568_v31 = vmax.f32 %v2508_v3, 0.0  ;;  %v2338_v56 = vld [vmem:[#allocation2 + $0x1f1] ss:$2 sm:$0xff]  ;;  %v9965_v53 = vpop.f32.mrf.mxu2  ;;  %v2489_v6 = vadd.f32 %v9970_v62, %v2425_v57 }
 0x32f   :  { %2628 = vst.msk [vmem:[#allocation3 + $0x248] sm:$0xff] %vm40_vm3, %v2568_v31  ;;  %v2549_v8 = vmax.f32 %v2489_v6, 0.0  ;;  %v7878_v6 = vld [vmem:[%s11779_s0 + $0x388] sm:$0xff] }
 0x331   :  { %2609 = vst.msk [vmem:[#allocation3 + $0x168] sm:$0xff] %vm40_vm3, %v2549_v8 }
 0x332   :  { %v1528_v1 = vpop.f32.mrf.mxu0 }
 0x333   :  { %v1957_v14 = vmax.f32 %v9861_v48, %v1528_v1  ;;  %v4371_v48 = vsel %vm40_vm3, %v9659_v29, %v8111_v63  ;;  %v4424_v29 = vsel %vm71_vm4, %v4372_v23, %v8117_v0  ;;  %v9946_v45 = vpop.f32.mrf.mxu3 }
 0x334   :  { %v4423_v38 = vsel %vm71_vm4, %v4371_v48, %v8116_v21 }
 0x335   :  { %2077 = vst.msk [vmem:[#allocation2 + $0x148] sm:$0xff] %vm40_vm3, %v1957_v14  ;;  %v9981_v14 = vpop.f32.mrf.mxu2 }
 0x337   :  { %v8120_v25 = vpop.permute.xlu2 %8119 }
 0x338   :  { %v8122_v18 = vunpack.i.h.bf16 %v8120_v25  ;;  %v8121_v35 = vunpack.i.l.bf16 %v8120_v25 }
 0x33a   :  { %v1531_v36 = vpop.f32.mrf.mxu0  ;;  %v4476_v39 = vsel %vm4461_vm5, %v4423_v38, %v8121_v35  ;;  %v4477_v9 = vsel %vm4461_vm5, %v4424_v29, %v8122_v18 }
 0x33b   :  { %v1958_v34 = vmax.f32 %v9873_v26, %v1531_v36  ;;  %v4691_v42 = vpack.c.bf16 %v4477_v9, %v4476_v39  ;;  %v1823_v37 = vpop.f32.mrf.mxu3 }
 0x33c   :  { %v2196_v11 = vld [vmem:[#allocation2 + $0x140] ss:$2 sm:$0xff]  ;;  %v2316_v41 = vld [vmem:[#allocation2 + $0x141] ss:$2 sm:$0xff]  ;;  %7341 = vmatmul.msk.bf16.gmra.mxu3 %vm939_vm2, %v7875_v40 }
 0x33d   :  { %v2415_v46 = vmax.f32 %v2196_v11, %v2316_v41  ;;  %2078 = vst.msk [vmem:[#allocation2 + $0x150] sm:$0xff] %vm40_vm3, %v1958_v34  ;;  %7282 = vmatmul.msk.bf16.gmra.mxu0 %vm939_vm2, %v7816_v32  ;;  %5013 = vmatmul.bf16.gmra.mxu1 %v4691_v42  ;;  %v10000_v32 = vpop.f32.mrf.mxu2  ;;  %v7877_v41 = vld [vmem:[%s11779_s0 + $0x380] sm:$0xff]  ;;  %v7819_v42 = vld [vmem:[%s11779_s0 + $0x1b0] sm:$0xff] }
 0x33f   :  { %v2479_v26 = vadd.f32 %v9513_v13, %v2415_v46  ;;  %v2218_v13 = vld [vmem:[#allocation2 + $0x1f0] ss:$2 sm:$0xff] }
 0x340   :  { %v2426_v59 = vmax.f32 %v2218_v13, %v2338_v56 }
 0x341   :  { %v2539_v2 = vmax.f32 %v2479_v26, 0.0 }
 0x342   :  { %v1533_v4 = vpop.f32.mrf.mxu0  ;;  %v2490_v7 = vadd.f32 %v9970_v62, %v2426_v59 }
 0x343   :  { %v1959_v49 = vmax.f32 %v9895_v44, %v1533_v4  ;;  %2599 = vst.msk [vmem:[#allocation3 + $0xf0] sm:$0xff] %vm40_vm3, %v2539_v2  ;;  %v7817_v44 = vld [vmem:[%s11779_s0 + $0x1a0] sm:$0xff]  ;;  %v1826_v22 = vpop.f32.mrf.mxu3 }
 0x344   :  { %v2016_v20 = vmax.f32 %v9908_v30, %v1826_v22  ;;  %v2550_v63 = vmax.f32 %v2490_v7, 0.0  ;;  %v7876_v30 = vld [vmem:[%s11779_s0 + $0x378] sm:$0xff] }
 0x345   :  { %2079 = vst.msk [vmem:[#allocation2 + $0x158] sm:$0xff] %vm40_vm3, %v1959_v49  ;;  %v1646_v39 = vpop.f32.mrf.mxu2 }
 0x346   :  { %2136 = vst.msk [vmem:[#allocation2 + $0x320] sm:$0xff] %vm40_vm3, %v2016_v20  ;;  %v1980_v59 = vmax.f32 %v9955_v50, %v1646_v39 }
 0x347   :  { %2610 = vst.msk [vmem:[#allocation3 + $0x170] sm:$0xff] %vm40_vm3, %v2550_v63 }
 0x348   :  { %2100 = vst.msk [vmem:[#allocation2 + $0x200] sm:$0xff] %vm40_vm3, %v1980_v59 }
 0x34a   :  { %v1536_v58 = vpop.f32.mrf.mxu0  ;;  %v9991_v31 = vld [vmem:[#allocation3 + $0xf0] sm:$0xff] }
 0x34b   :  { %v1828_v12 = vpop.f32.mrf.mxu3 }
 0x34c   :  { %v2198_v24 = vld [vmem:[#allocation2 + $0x150] ss:$2 sm:$0xff]  ;;  %v2318_v27 = vld [vmem:[#allocation2 + $0x151] ss:$2 sm:$0xff]  ;;  %7342 = vmatmul.msk.bf16.gmra.mxu3 %vm939_vm2, %v7876_v30  ;;  %v2017_v29 = vmax.f32 %v9923_v16, %v1828_v12 }
 0x34d   :  { %v2416_v60 = vmax.f32 %v2198_v24, %v2318_v27  ;;  %7283 = vmatmul.msk.bf16.gmra.mxu0 %vm939_vm2, %v7817_v44  ;;  %v1648_v47 = vpop.f32.mrf.mxu2 }
 0x34e   :  { %2137 = vst.msk [vmem:[#allocation2 + $0x328] sm:$0xff] %vm40_vm3, %v2017_v29  ;;  %v1981_v24 = vmax.f32 %v9965_v53, %v1648_v47 }
 0x34f   :  { %v2480_v3 = vadd.f32 %v9970_v62, %v2416_v60 }
 0x350   :  { %v8130_v57 = vpop.permute.xlu1 %8129  ;;  %2101 = vst.msk [vmem:[#allocation2 + $0x208] sm:$0xff] %vm40_vm3, %v1981_v24 }
 0x351   :  { %v2540_v1 = vmax.f32 %v2480_v3, 0.0  ;;  %v8132_v7 = vunpack.i.h.bf16 %v8130_v57  ;;  %v8131_v3 = vunpack.i.l.bf16 %v8130_v57 }
 0x352   :  { %v9978_v10 = vpop.f32.mrf.mxu0 }
 0x353   :  { %2600 = vst.msk [vmem:[#allocation3 + $0xf8] sm:$0xff] %vm40_vm3, %v2540_v1  ;;  %v1831_v36 = vpop.f32.mrf.mxu3 }
 0x354   :  { %v2018_v34 = vmax.f32 %v9946_v45, %v1831_v36 }
 0x355   :  { %v2256_v45 = vld [vmem:[#allocation2 + $0x320] ss:$2 sm:$0xff]  ;;  %v2376_v46 = vld [vmem:[#allocation2 + $0x321] ss:$2 sm:$0xff]  ;;  %v1651_v27 = vpop.f32.mrf.mxu2 }
 0x356   :  { %2138 = vst.msk [vmem:[#allocation2 + $0x330] sm:$0xff] %vm40_vm3, %v2018_v34  ;;  %v2445_v2 = vmax.f32 %v2256_v45, %v2376_v46  ;;  %v1982_v60 = vmax.f32 %v9981_v14, %v1651_v27  ;;  %v7820_v14 = vld [vmem:[%s11779_s0 + $0x1b8] sm:$0xff]  ;;  %v7821_v46 = vld [vmem:[%s11779_s0 + $0x1c0] sm:$0xff] }
 0x358   :  { %v2509_v51 = vadd.f32 %v9970_v62, %v2445_v2  ;;  %2102 = vst.msk [vmem:[#allocation2 + $0x210] sm:$0xff] %vm40_vm3, %v1982_v60 }
 0x35a   :  { %v9994_v17 = vpop.f32.mrf.mxu0  ;;  %v9996_v19 = vld [vmem:[#allocation3 + $0xf8] sm:$0xff]  ;;  %v2569_v20 = vmax.f32 %v2509_v51, 0.0 }
 0x35b   :  { %v2763_v0 = vld [vmem:[#allocation3 + $0xf2] sm:$0xff]  ;;  %v2764_v21 = vld [vmem:[#allocation3 + $0xfa] sm:$0xff]  ;;  %v8148_v48 = vpack.i.bf16 %v9996_v19, %v9991_v31  ;;  %v1833_v9 = vpop.f32.mrf.mxu3 }
 0x35c   :  { %v8158_v23 = vpack.i.bf16 %v2764_v21, %v2763_v0  ;;  %v2711_v25 = vld [vmem:[#allocation3 + $0xf1] sm:$0xff]  ;;  %v2712_v18 = vld [vmem:[#allocation3 + $0xf9] sm:$0xff]  ;;  %v2019_v11 = vmax.f32 %v1823_v37, %v1833_v9  ;;  %7343 = vmatmul.msk.bf16.gmra.mxu3 %vm939_vm2, %v7877_v41  ;;  %v8125_v37 = vpop.permute.xlu0 %8124  ;;  %2629 = vst.msk [vmem:[#allocation3 + $0x258] sm:$0xff] %vm40_vm3, %v2569_v20 }
 0x35d   :  { %v8153_v35 = vpack.i.bf16 %v2712_v18, %v2711_v25  ;;  %7284 = vmatmul.msk.bf16.gmra.mxu0 %vm939_vm2, %v7818_v15  ;;  %8149 = vrot.lane.b32.xlu2 %v8148_v48, %s8922_s30  ;;  %v8127_v52 = vunpack.i.h.bf16 %v8125_v37  ;;  %v8126_v44 = vunpack.i.l.bf16 %v8125_v37  ;;  %v1653_v25 = vpop.f32.mrf.mxu2  ;;  %v2220_v41 = vld [vmem:[#allocation2 + $0x200] ss:$2 sm:$0xff] }
 0x35e   :  { %8159 = vrot.lane.b32.xlu1 %v8158_v23, %s8921_s14  ;;  %2139 = vst.msk [vmem:[#allocation2 + $0x338] sm:$0xff] %vm40_vm3, %v2019_v11  ;;  %v1983_v36 = vmax.f32 %v10000_v32, %v1653_v25  ;;  %v7879_v32 = vld [vmem:[%s11779_s0 + $0x390] sm:$0xff] }
 0x35f   :  { %8154 = vrot.lane.b32.xlu0 %v8153_v35, %s8920_s13  ;;  %v4373_v50 = vsel %vm40_vm3, %v9759_v54, %v8126_v44  ;;  %v4374_v53 = vsel %vm40_vm3, %v9761_v55, %v8127_v52 }
 0x360   :  { %v4425_v54 = vsel %vm71_vm4, %v4373_v50, %v8131_v3  ;;  %v4426_v55 = vsel %vm71_vm4, %v4374_v53, %v8132_v7  ;;  %2103 = vst.msk [vmem:[#allocation2 + $0x218] sm:$0xff] %vm40_vm3, %v1983_v36 }
 0x362   :  { %v10006_v38 = vpop.f32.mrf.mxu0 }
 0x363   :  { %v10020_v26 = vpop.f32.mrf.mxu3 }
 0x365   :  { %v2258_v4 = vld [vmem:[#allocation2 + $0x330] ss:$2 sm:$0xff]  ;;  %v2378_v49 = vld [vmem:[#allocation2 + $0x331] ss:$2 sm:$0xff] }
 0x366   :  { %v2446_v40 = vmax.f32 %v2258_v4, %v2378_v49 }
 0x368   :  { %v2510_v56 = vadd.f32 %v9970_v62, %v2446_v40 }
 0x36a   :  { %v1546_v16 = vpop.f32.mrf.mxu0  ;;  %v2570_v1 = vmax.f32 %v2510_v56, 0.0 }
 0x36b   :  { %v1960_v43 = vmax.f32 %v1536_v58, %v1546_v16  ;;  %v10029_v22 = vpop.f32.mrf.mxu3  ;;  %v2222_v16 = vld [vmem:[#allocation2 + $0x210] ss:$2 sm:$0xff] }
 0x36c   :  { %7344 = vmatmul.msk.bf16.gmra.mxu3 %vm939_vm2, %v7878_v6  ;;  %2630 = vst.msk [vmem:[#allocation3 + $0x260] sm:$0xff] %vm40_vm3, %v2570_v1 }
 0x36d   :  { %2080 = vst.msk [vmem:[#allocation2 + $0x160] sm:$0xff] %vm40_vm3, %v1960_v43  ;;  %7285 = vmatmul.msk.bf16.gmra.mxu0 %vm939_vm2, %v7819_v42  ;;  %v2340_v42 = vld [vmem:[#allocation2 + $0x201] ss:$2 sm:$0xff]  ;;  %v2342_v43 = vld [vmem:[#allocation2 + $0x211] ss:$2 sm:$0xff] }
 0x36e   :  { %v2427_v45 = vmax.f32 %v2220_v41, %v2340_v42  ;;  %v2428_v47 = vmax.f32 %v2222_v16, %v2342_v43 }
 0x370   :  { %v2491_v51 = vadd.f32 %v9970_v62, %v2427_v45 }
 0x372   :  { %v1548_v13 = vpop.f32.mrf.mxu0  ;;  %v2551_v44 = vmax.f32 %v2491_v51, 0.0 }
 0x373   :  { %v1961_v58 = vmax.f32 %v9978_v10, %v1548_v13  ;;  %v10054_v18 = vpop.f32.mrf.mxu3  ;;  %v2492_v13 = vadd.f32 %v9970_v62, %v2428_v47 }
 0x374   :  { %2611 = vst.msk [vmem:[#allocation3 + $0x180] sm:$0xff] %vm40_vm3, %v2551_v44 }
 0x375   :  { %2081 = vst.msk [vmem:[#allocation2 + $0x168] sm:$0xff] %vm40_vm3, %v1961_v58  ;;  %v2552_v59 = vmax.f32 %v2492_v13, 0.0 }
 0x377   :  { %v8135_v8 = vpop.permute.xlu2 %8134  ;;  %2612 = vst.msk [vmem:[#allocation3 + $0x188] sm:$0xff] %vm40_vm3, %v2552_v59 }
 0x378   :  { %v8137_v10 = vunpack.i.h.bf16 %v8135_v8  ;;  %v8136_v63 = vunpack.i.l.bf16 %v8135_v8 }
 0x37a   :  { %v1551_v12 = vpop.f32.mrf.mxu0  ;;  %v4478_v15 = vsel %vm4461_vm5, %v4425_v54, %v8136_v63  ;;  %v4479_v0 = vsel %vm4461_vm5, %v4426_v55, %v8137_v10 }
 0x37b   :  { %v1962_v30 = vmax.f32 %v9994_v17, %v1551_v12  ;;  %v4694_v23 = vpack.c.bf16 %v4479_v0, %v4478_v15  ;;  %v1843_v11 = vpop.f32.mrf.mxu3 }
 0x37c   :  { %v2200_v21 = vld [vmem:[#allocation2 + $0x160] ss:$2 sm:$0xff]  ;;  %v2320_v48 = vld [vmem:[#allocation2 + $0x161] ss:$2 sm:$0xff]  ;;  %7345 = vmatmul.msk.bf16.gmra.mxu3 %vm939_vm2, %v7879_v32 }
 0x37d   :  { %v2417_v35 = vmax.f32 %v2200_v21, %v2320_v48  ;;  %2082 = vst.msk [vmem:[#allocation2 + $0x170] sm:$0xff] %vm40_vm3, %v1962_v30  ;;  %7286 = vmatmul.msk.bf16.gmra.mxu0 %vm939_vm2, %v7820_v14  ;;  %5018 = vmatmul.bf16.gmra.mxu1 %v4694_v23  ;;  %v7904_v30 = vld [vmem:[%s11782_s3 + $0x88] sm:$0xff] }
 0x37e   :  { %5246 = vmatpush.bf16.msrb.mxu1 %v7904_v30 }
 0x37f   :  { %v2481_v17 = vadd.f32 %v9970_v62, %v2417_v35  ;;  %v10063_v9 = vpop.f32.mrf.mxu2 }
 0x381   :  { %v2541_v29 = vmax.f32 %v2481_v17, 0.0 }
 0x382   :  { %v1553_v34 = vpop.f32.mrf.mxu0 }
 0x383   :  { %2601 = vst.msk [vmem:[#allocation3 + $0x108] sm:$0xff] %vm40_vm3, %v2541_v29  ;;  %v1963_v39 = vmax.f32 %v10006_v38, %v1553_v34  ;;  %v1846_v37 = vpop.f32.mrf.mxu3 }
 0x384   :  { %v2020_v52 = vmax.f32 %v10020_v26, %v1846_v37  ;;  %v7880_v26 = vld [vmem:[%s11779_s0 + $0x398] sm:$0xff] }
 0x385   :  { %2083 = vst.msk [vmem:[#allocation2 + $0x178] sm:$0xff] %vm40_vm3, %v1963_v39 }
 0x386   :  { %2140 = vst.msk [vmem:[#allocation2 + $0x340] sm:$0xff] %vm40_vm3, %v2020_v52 }
 0x387   :  { %v10073_v49 = vpop.f32.mrf.mxu2 }
 0x38a   :  { %v1556_v38 = vpop.f32.mrf.mxu0  ;;  %v10089_v60 = vld [vmem:[#allocation3 + $0x108] sm:$0xff] }
 0x38b   :  { %v1848_v27 = vpop.f32.mrf.mxu3 }
 0x38c   :  { %v2202_v2 = vld [vmem:[#allocation2 + $0x170] ss:$2 sm:$0xff]  ;;  %v2322_v4 = vld [vmem:[#allocation2 + $0x171] ss:$2 sm:$0xff]  ;;  %7346 = vmatmul.msk.bf16.gmra.mxu3 %vm939_vm2, %v7880_v26  ;;  %v2021_v54 = vmax.f32 %v10029_v22, %v1848_v27 }
 0x38d   :  { %v2418_v40 = vmax.f32 %v2202_v2, %v2322_v4  ;;  %7287 = vmatmul.msk.bf16.gmra.mxu0 %vm939_vm2, %v7821_v46 }
 0x38e   :  { %2141 = vst.msk [vmem:[#allocation2 + $0x348] sm:$0xff] %vm40_vm3, %v2021_v54 }
 0x38f   :  { %v2482_v56 = vadd.f32 %v9970_v62, %v2418_v40  ;;  %v10082_v24 = vpop.f32.mrf.mxu2 }
 0x390   :  { %v8145_v32 = vpop.permute.xlu1 %8144 }
 0x391   :  { %v2542_v57 = vmax.f32 %v2482_v56, 0.0  ;;  %v8140_v34 = vpop.permute.xlu0 %8139  ;;  %v8147_v4 = vunpack.i.h.bf16 %v8145_v32  ;;  %v8146_v37 = vunpack.i.l.bf16 %v8145_v32 }
 0x392   :  { %v1558_v58 = vpop.f32.mrf.mxu0  ;;  %v8142_v41 = vunpack.i.h.bf16 %v8140_v34  ;;  %v8141_v42 = vunpack.i.l.bf16 %v8140_v34 }
 0x393   :  { %2602 = vst.msk [vmem:[#allocation3 + $0x110] sm:$0xff] %vm40_vm3, %v2542_v57  ;;  %v1851_v14 = vpop.f32.mrf.mxu3 }
 0x394   :  { %v2022_v55 = vmax.f32 %v10054_v18, %v1851_v14  ;;  %v4376_v52 = vsel %vm40_vm3, %v9877_v33, %v8142_v41  ;;  %v4375_v13 = vsel %vm40_vm3, %v9875_v28, %v8141_v42 }
 0x395   :  { %v2260_v25 = vld [vmem:[#allocation2 + $0x340] ss:$2 sm:$0xff]  ;;  %v2380_v22 = vld [vmem:[#allocation2 + $0x341] ss:$2 sm:$0xff]  ;;  %v4427_v44 = vsel %vm71_vm4, %v4375_v13, %v8146_v37 }
 0x396   :  { %2142 = vst.msk [vmem:[#allocation2 + $0x350] sm:$0xff] %vm40_vm3, %v2022_v55  ;;  %v2447_v36 = vmax.f32 %v2260_v25, %v2380_v22  ;;  %v2717_v13 = vld [vmem:[#allocation3 + $0x169] sm:$0xff] }
 0x397   :  { %v10098_v63 = vpop.f32.mrf.mxu2 }
 0x39a   :  { %v10092_v6 = vpop.f32.mrf.mxu0  ;;  %v10094_v20 = vld [vmem:[#allocation3 + $0x110] sm:$0xff] }
 0x39b   :  { %v2765_v7 = vld [vmem:[#allocation3 + $0x10a] sm:$0xff]  ;;  %v2766_v3 = vld [vmem:[#allocation3 + $0x112] sm:$0xff]  ;;  %v8163_v1 = vpack.i.bf16 %v10094_v20, %v10089_v60  ;;  %v1853_v0 = vpop.f32.mrf.mxu3 }
 0x39c   :  { %v8173_v50 = vpack.i.bf16 %v2766_v3, %v2765_v7  ;;  %v2713_v53 = vld [vmem:[#allocation3 + $0x109] sm:$0xff]  ;;  %v2714_v8 = vld [vmem:[#allocation3 + $0x111] sm:$0xff]  ;;  %v2023_v21 = vmax.f32 %v1843_v11, %v1853_v0  ;;  %v2511_v11 = vadd.f32 %v9970_v62, %v2447_v36 }
 0x39d   :  { %v8168_v10 = vpack.i.bf16 %v2714_v8, %v2713_v53  ;;  %8164 = vrot.lane.b32.xlu2 %v8163_v1, %s8922_s30 }
 0x39e   :  { %8174 = vrot.lane.b32.xlu1 %v8173_v50, %s8921_s14  ;;  %2143 = vst.msk [vmem:[#allocation2 + $0x358] sm:$0xff] %vm40_vm3, %v2023_v21  ;;  %v2571_v51 = vmax.f32 %v2511_v11, 0.0 }
 0x39f   :  { %8169 = vrot.lane.b32.xlu0 %v8168_v10, %s8920_s13  ;;  %v1666_v15 = vpop.f32.mrf.mxu2 }
 0x3a0   :  { %v1984_v46 = vmax.f32 %v10063_v9, %v1666_v15  ;;  %2631 = vst.msk [vmem:[#allocation3 + $0x270] sm:$0xff] %vm40_vm3, %v2571_v51  ;;  %v2769_v51 = vld [vmem:[#allocation3 + $0x16a] sm:$0xff] }
 0x3a2   :  { %v10103_v12 = vpop.f32.mrf.mxu0  ;;  %2104 = vst.msk [vmem:[#allocation2 + $0x220] sm:$0xff] %vm40_vm3, %v1984_v46 }
 0x3a3   :  { %v10113_v18 = vpop.f32.mrf.mxu3 }
 0x3a5   :  { %v2262_v17 = vld [vmem:[#allocation2 + $0x350] ss:$2 sm:$0xff]  ;;  %v2382_v29 = vld [vmem:[#allocation2 + $0x351] ss:$2 sm:$0xff] }
 0x3a6   :  { %v2448_v39 = vmax.f32 %v2262_v17, %v2382_v29 }
 0x3a7   :  { %v1668_v35 = vpop.f32.mrf.mxu2 }
 0x3a8   :  { %v2512_v43 = vadd.f32 %v9970_v62, %v2448_v39 }
 0x3aa   :  { %v1566_v48 = vpop.f32.mrf.mxu0  ;;  %v2572_v9 = vmax.f32 %v2512_v43, 0.0 }
 0x3ab   :  { %v1964_v23 = vmax.f32 %v1556_v38, %v1566_v48  ;;  %v1985_v38 = vmax.f32 %v10073_v49, %v1668_v35  ;;  %v10120_v2 = vpop.f32.mrf.mxu3 }
 0x3ac   :  { %2632 = vst.msk [vmem:[#allocation3 + $0x278] sm:$0xff] %vm40_vm3, %v2572_v9  ;;  %v2718_v9 = vld [vmem:[#allocation3 + $0x171] sm:$0xff] }
 0x3ad   :  { %2084 = vst.msk [vmem:[#allocation2 + $0x180] sm:$0xff] %vm40_vm3, %v1964_v23 }
 0x3ae   :  { %2105 = vst.msk [vmem:[#allocation2 + $0x228] sm:$0xff] %vm40_vm3, %v1985_v38 }
 0x3af   :  { %v1671_v47 = vpop.f32.mrf.mxu2 }
 0x3b0   :  { %v1986_v40 = vmax.f32 %v10082_v24, %v1671_v47 }
 0x3b2   :  { %v1568_v16 = vpop.f32.mrf.mxu0  ;;  %2106 = vst.msk [vmem:[#allocation2 + $0x230] sm:$0xff] %vm40_vm3, %v1986_v40 }
 0x3b3   :  { %v1965_v45 = vmax.f32 %v1558_v58, %v1568_v16  ;;  %v4428_v58 = vsel %vm71_vm4, %v4376_v52, %v8147_v4  ;;  %v10138_v1 = vpop.f32.mrf.mxu3  ;;  %v2770_v52 = vld [vmem:[#allocation3 + $0x172] sm:$0xff] }
 0x3b5   :  { %2085 = vst.msk [vmem:[#allocation2 + $0x188] sm:$0xff] %vm40_vm3, %v1965_v45  ;;  %v2224_v10 = vld [vmem:[#allocation2 + $0x220] ss:$2 sm:$0xff]  ;;  %v2344_v14 = vld [vmem:[#allocation2 + $0x221] ss:$2 sm:$0xff] }
 0x3b6   :  { %v2429_v30 = vmax.f32 %v2224_v10, %v2344_v14 }
 0x3b7   :  { %v8150_v49 = vpop.permute.xlu2 %8149  ;;  %v1673_v3 = vpop.f32.mrf.mxu2 }
 0x3b8   :  { %v8152_v56 = vunpack.i.h.bf16 %v8150_v49  ;;  %v8151_v57 = vunpack.i.l.bf16 %v8150_v49  ;;  %v1987_v53 = vmax.f32 %v10098_v63, %v1673_v3  ;;  %v2493_v63 = vadd.f32 %v9970_v62, %v2429_v30 }
 0x3ba   :  { %v1571_v33 = vpop.f32.mrf.mxu0  ;;  %v4480_v59 = vsel %vm4461_vm5, %v4427_v44, %v8151_v57  ;;  %v4481_v28 = vsel %vm4461_vm5, %v4428_v58, %v8152_v56  ;;  %2107 = vst.msk [vmem:[#allocation2 + $0x238] sm:$0xff] %vm40_vm3, %v1987_v53  ;;  %v2553_v22 = vmax.f32 %v2493_v63, 0.0  ;;  %v8203_v56 = vpack.i.bf16 %v2770_v52, %v2769_v51 }
 0x3bb   :  { %v1966_v24 = vmax.f32 %v10092_v6, %v1571_v33  ;;  %v4697_v27 = vpack.c.bf16 %v4481_v28, %v4480_v59  ;;  %v1863_v15 = vpop.f32.mrf.mxu3  ;;  %v8198_v58 = vpack.i.bf16 %v2718_v9, %v2717_v13  ;;  %v2771_v28 = vld [vmem:[#allocation3 + $0x182] sm:$0xff] }
 0x3bc   :  { %v2204_v26 = vld [vmem:[#allocation2 + $0x180] ss:$2 sm:$0xff]  ;;  %v2324_v7 = vld [vmem:[#allocation2 + $0x181] ss:$2 sm:$0xff]  ;;  %2613 = vst.msk [vmem:[#allocation3 + $0x198] sm:$0xff] %vm40_vm3, %v2553_v22 }
 0x3bd   :  { %v2419_v50 = vmax.f32 %v2204_v26, %v2324_v7  ;;  %2086 = vst.msk [vmem:[#allocation2 + $0x190] sm:$0xff] %vm40_vm3, %v1966_v24  ;;  %5023 = vmatmul.bf16.gmra.mxu1 %v4697_v27  ;;  %v2772_v24 = vld [vmem:[#allocation3 + $0x18a] sm:$0xff]  ;;  %v2719_v27 = vld [vmem:[#allocation3 + $0x181] sm:$0xff] }
 0x3be   :  { %v2720_v26 = vld [vmem:[#allocation3 + $0x189] sm:$0xff]  ;;  %v8218_v3 = vpack.i.bf16 %v2772_v24, %v2771_v28 }
 0x3bf   :  { %v2483_v8 = vadd.f32 %v9970_v62, %v2419_v50 }
 0x3c1   :  { %v2543_v54 = vmax.f32 %v2483_v8, 0.0  ;;  %v2226_v0 = vld [vmem:[#allocation2 + $0x230] ss:$2 sm:$0xff]  ;;  %v2346_v21 = vld [vmem:[#allocation2 + $0x231] ss:$2 sm:$0xff] }
 0x3c2   :  { %v1573_v6 = vpop.f32.mrf.mxu0  ;;  %v2430_v48 = vmax.f32 %v2226_v0, %v2346_v21 }
 0x3c3   :  { %2603 = vst.msk [vmem:[#allocation3 + $0x120] sm:$0xff] %vm40_vm3, %v2543_v54  ;;  %v1967_v55 = vmax.f32 %v10103_v12, %v1573_v6  ;;  %v1866_v29 = vpop.f32.mrf.mxu3 }
 0x3c4   :  { %v2494_v23 = vadd.f32 %v9970_v62, %v2430_v48  ;;  %v2024_v12 = vmax.f32 %v10113_v18, %v1866_v29 }
 0x3c5   :  { %2087 = vst.msk [vmem:[#allocation2 + $0x198] sm:$0xff] %vm40_vm3, %v1967_v55 }
 0x3c6   :  { %v2554_v35 = vmax.f32 %v2494_v23, 0.0  ;;  %2144 = vst.msk [vmem:[#allocation2 + $0x360] sm:$0xff] %vm40_vm3, %v2024_v12 }
 0x3c8   :  { %2614 = vst.msk [vmem:[#allocation3 + $0x1a0] sm:$0xff] %vm40_vm3, %v2554_v35 }
 0x3ca   :  { %v1576_v25 = vpop.f32.mrf.mxu0  ;;  %v10157_v42 = vld [vmem:[#allocation3 + $0x120] sm:$0xff] }
 0x3cb   :  { %v1868_v41 = vpop.f32.mrf.mxu3 }
 0x3cc   :  { %v2206_v36 = vld [vmem:[#allocation2 + $0x190] ss:$2 sm:$0xff]  ;;  %v2326_v17 = vld [vmem:[#allocation2 + $0x191] ss:$2 sm:$0xff]  ;;  %v2025_v57 = vmax.f32 %v10120_v2, %v1868_v41 }
 0x3cd   :  { %v2420_v34 = vmax.f32 %v2206_v36, %v2326_v17 }
 0x3ce   :  { %2145 = vst.msk [vmem:[#allocation2 + $0x368] sm:$0xff] %vm40_vm3, %v2025_v57 }
 0x3cf   :  { %v2484_v39 = vadd.f32 %v9970_v62, %v2420_v34  ;;  %v2773_v14 = vld [vmem:[#allocation3 + $0x19a] sm:$0xff]  ;;  %v2774_v54 = vld [vmem:[#allocation3 + $0x1a2] sm:$0xff] }
 0x3d0   :  { %v2721_v0 = vld [vmem:[#allocation3 + $0x199] sm:$0xff]  ;;  %v2722_v21 = vld [vmem:[#allocation3 + $0x1a1] sm:$0xff]  ;;  %v8233_v48 = vpack.i.bf16 %v2774_v54, %v2773_v14  ;;  %v2788_v54 = vld [vmem:[#allocation3 + $0x24a] sm:$0xff] }
 0x3d1   :  { %v2544_v11 = vmax.f32 %v2484_v39, 0.0  ;;  %v8155_v30 = vpop.permute.xlu0 %8154  ;;  %v8228_v17 = vpack.i.bf16 %v2722_v21, %v2721_v0  ;;  %v2787_v14 = vld [vmem:[#allocation3 + $0x242] sm:$0xff] }
 0x3d2   :  { %v10154_v32 = vpop.f32.mrf.mxu0  ;;  %v8157_v22 = vunpack.i.h.bf16 %v8155_v30  ;;  %v8156_v35 = vunpack.i.l.bf16 %v8155_v30  ;;  %v8278_v0 = vpack.i.bf16 %v2788_v54, %v2787_v14  ;;  %v2739_v14 = vld [vmem:[#allocation3 + $0x271] sm:$0xff]  ;;  %v2740_v54 = vld [vmem:[#allocation3 + $0x279] sm:$0xff] }
 0x3d3   :  { %2604 = vst.msk [vmem:[#allocation3 + $0x128] sm:$0xff] %vm40_vm3, %v2544_v11  ;;  %v1871_v40 = vpop.f32.mrf.mxu3 }
 0x3d4   :  { %v2026_v44 = vmax.f32 %v10138_v1, %v1871_v40  ;;  %v8213_v1 = vpack.i.bf16 %v2720_v26, %v2719_v27  ;;  %v2734_v40 = vld [vmem:[#allocation3 + $0x231] sm:$0xff]  ;;  %v2776_v26 = vld [vmem:[#allocation3 + $0x1ba] sm:$0xff] }
 0x3d5   :  { %v2264_v50 = vld [vmem:[#allocation2 + $0x360] ss:$2 sm:$0xff]  ;;  %v2384_v53 = vld [vmem:[#allocation2 + $0x361] ss:$2 sm:$0xff]  ;;  %v2775_v27 = vld [vmem:[#allocation3 + $0x1b2] sm:$0xff] }
 0x3d6   :  { %2146 = vst.msk [vmem:[#allocation2 + $0x370] sm:$0xff] %vm40_vm3, %v2026_v44  ;;  %v2449_v10 = vmax.f32 %v2264_v50, %v2384_v53  ;;  %v8263_v50 = vpack.i.bf16 %v2776_v26, %v2775_v27  ;;  %v10244_v27 = vpop.f32.mrf.mxu1 }
 0x3d7   :  { %11793 = vst [vmem:[#allocation10_spill] sm:$0xff] %v10244_v27 }
 0x3da   :  { %v10159_v16 = vpop.f32.mrf.mxu0  ;;  %v10161_v43 = vld [vmem:[#allocation3 + $0x128] sm:$0xff] }
 0x3db   :  { %v2767_v18 = vld [vmem:[#allocation3 + $0x122] sm:$0xff]  ;;  %v2768_v45 = vld [vmem:[#allocation3 + $0x12a] sm:$0xff]  ;;  %v8178_v46 = vpack.i.bf16 %v10161_v43, %v10157_v42  ;;  %v1873_v33 = vpop.f32.mrf.mxu3 }
 0x3dc   :  { %v8188_v38 = vpack.i.bf16 %v2768_v45, %v2767_v18  ;;  %v2715_v47 = vld [vmem:[#allocation3 + $0x121] sm:$0xff]  ;;  %v2716_v4 = vld [vmem:[#allocation3 + $0x129] sm:$0xff]  ;;  %v2027_v59 = vmax.f32 %v1863_v15, %v1873_v33  ;;  %v2513_v15 = vadd.f32 %v9970_v62, %v2449_v10  ;;  %v4378_v18 = vsel %vm40_vm3, %v9996_v19, %v8157_v22  ;;  %v7912_v22 = vld [vmem:[%s11784_s5 + $0x38] sm:$0xff] }
 0x3dd   :  { %v8183_v37 = vpack.i.bf16 %v2716_v4, %v2715_v47  ;;  %8179 = vrot.lane.b32.xlu2 %v8178_v46, %s8922_s30  ;;  %v4377_v45 = vsel %vm40_vm3, %v9991_v31, %v8156_v35  ;;  %v2785_v47 = vld [vmem:[#allocation3 + $0x22a] sm:$0xff]  ;;  %v2786_v4 = vld [vmem:[#allocation3 + $0x232] sm:$0xff]  ;;  %6076 = vmatpush.bf16.msrb.mxu3 %v7912_v22 }
 0x3de   :  { %8189 = vrot.lane.b32.xlu1 %v8188_v38, %s8921_s14  ;;  %2147 = vst.msk [vmem:[#allocation2 + $0x378] sm:$0xff] %vm40_vm3, %v2027_v59  ;;  %v2573_v34 = vmax.f32 %v2513_v15, 0.0  ;;  %v2777_v35 = vld [vmem:[#allocation3 + $0x1ca] sm:$0xff] }
 0x3df   :  { %8184 = vrot.lane.b32.xlu0 %v8183_v37, %s8920_s13  ;;  %v2733_v37 = vld [vmem:[#allocation3 + $0x229] sm:$0xff] }
 0x3e0   :  { %2633 = vst.msk [vmem:[#allocation3 + $0x288] sm:$0xff] %vm40_vm3, %v2573_v34  ;;  %v8243_v33 = vpack.i.bf16 %v2734_v40, %v2733_v37  ;;  %v2726_v34 = vld [vmem:[#allocation3 + $0x1d1] sm:$0xff] }
 0x3e2   :  { %v10168_v49 = vpop.f32.mrf.mxu0 }
 0x3e3   :  { %v10177_v8 = vpop.f32.mrf.mxu3 }
 0x3e5   :  { %v2266_v6 = vld [vmem:[#allocation2 + $0x370] ss:$2 sm:$0xff]  ;;  %v2386_v55 = vld [vmem:[#allocation2 + $0x371] ss:$2 sm:$0xff] }
 0x3e6   :  { %8204 = vrot.lane.b32.xlu1 %v8203_v56, %s8921_s14  ;;  %v2450_v63 = vmax.f32 %v2266_v6, %v2386_v55  ;;  %v8248_v56 = vpack.i.bf16 %v2786_v4, %v2785_v47  ;;  %v2735_v6 = vld [vmem:[#allocation3 + $0x241] sm:$0xff]  ;;  %v2736_v55 = vld [vmem:[#allocation3 + $0x249] sm:$0xff] }
 0x3e7   :  { %8199 = vrot.lane.b32.xlu0 %v8198_v58, %s8920_s13  ;;  %v2738_v47 = vld [vmem:[#allocation3 + $0x261] sm:$0xff] }
 0x3e8   :  { %v2514_v23 = vadd.f32 %v9970_v62, %v2450_v63  ;;  %v8273_v63 = vpack.i.bf16 %v2736_v55, %v2735_v6 }
 0x3ea   :  { %v1586_v2 = vpop.f32.mrf.mxu0  ;;  %v2574_v12 = vmax.f32 %v2514_v23, 0.0 }
 0x3eb   :  { %v1968_v7 = vmax.f32 %v1576_v25, %v1586_v2  ;;  %v8160_v25 = vpop.permute.xlu1 %8159  ;;  %v10185_v39 = vpop.f32.mrf.mxu3  ;;  %v2723_v2 = vld [vmem:[#allocation3 + $0x1b1] sm:$0xff] }
 0x3ec   :  { %v8162_v11 = vunpack.i.h.bf16 %v8160_v25  ;;  %v8161_v41 = vunpack.i.l.bf16 %v8160_v25  ;;  %2634 = vst.msk [vmem:[#allocation3 + $0x290] sm:$0xff] %vm40_vm3, %v2574_v12 }
 0x3ed   :  { %2088 = vst.msk [vmem:[#allocation2 + $0x1a0] sm:$0xff] %vm40_vm3, %v1968_v7  ;;  %v2724_v7 = vld [vmem:[#allocation3 + $0x1b9] sm:$0xff] }
 0x3ee   :  { %8219 = vrot.lane.b32.xlu1 %v8218_v3, %s8921_s14  ;;  %v4429_v51 = vsel %vm71_vm4, %v4377_v45, %v8161_v41  ;;  %v4430_v19 = vsel %vm71_vm4, %v4378_v18, %v8162_v11  ;;  %v8258_v53 = vpack.i.bf16 %v2724_v7, %v2723_v2 }
 0x3ef   :  { %8214 = vrot.lane.b32.xlu0 %v8213_v1, %s8920_s13 }
 0x3f2   :  { %v1588_v36 = vpop.f32.mrf.mxu0 }
 0x3f3   :  { %v1969_v29 = vmax.f32 %v10154_v32, %v1588_v36  ;;  %v10201_v59 = vpop.f32.mrf.mxu3  ;;  %v2778_v36 = vld [vmem:[#allocation3 + $0x1d2] sm:$0xff] }
 0x3f4   :  { %v8293_v11 = vpack.i.bf16 %v2778_v36, %v2777_v35  ;;  %v2781_v35 = vld [vmem:[#allocation3 + $0x1fa] sm:$0xff]  ;;  %v2782_v36 = vld [vmem:[#allocation3 + $0x202] sm:$0xff] }
 0x3f5   :  { %2089 = vst.msk [vmem:[#allocation2 + $0x1a8] sm:$0xff] %vm40_vm3, %v1969_v29  ;;  %v2725_v29 = vld [vmem:[#allocation3 + $0x1c9] sm:$0xff] }
 0x3f6   :  { %8234 = vrot.lane.b32.xlu1 %v8233_v48, %s8921_s14  ;;  %v8288_v41 = vpack.i.bf16 %v2726_v34, %v2725_v29  ;;  %v2730_v29 = vld [vmem:[#allocation3 + $0x201] sm:$0xff] }
 0x3f7   :  { %8229 = vrot.lane.b32.xlu0 %v8228_v17, %s8920_s13  ;;  %v8165_v32 = vpop.permute.xlu2 %8164 }
 0x3f8   :  { %v8167_v46 = vunpack.i.h.bf16 %v8165_v32  ;;  %v8166_v38 = vunpack.i.l.bf16 %v8165_v32  ;;  %v2789_v32 = vld [vmem:[#allocation3 + $0x25a] sm:$0xff] }
 0x3fa   :  { %v1591_v52 = vpop.f32.mrf.mxu0  ;;  %v4482_v31 = vsel %vm4461_vm5, %v4429_v51, %v8166_v38  ;;  %v4483_v13 = vsel %vm4461_vm5, %v4430_v19, %v8167_v46  ;;  %v2790_v46 = vld [vmem:[#allocation3 + $0x262] sm:$0xff]  ;;  %v2737_v38 = vld [vmem:[#allocation3 + $0x259] sm:$0xff] }
 0x3fb   :  { %v1970_v9 = vmax.f32 %v10159_v16, %v1591_v52  ;;  %v4700_v57 = vpack.c.bf16 %v4483_v13, %v4482_v31  ;;  %v10209_v10 = vpop.f32.mrf.mxu3  ;;  %v8308_v40 = vpack.i.bf16 %v2790_v46, %v2789_v32  ;;  %v8303_v52 = vpack.i.bf16 %v2738_v47, %v2737_v38 }
 0x3fc   :  { %v2208_v44 = vld [vmem:[#allocation2 + $0x1a0] ss:$2 sm:$0xff]  ;;  %v2328_v58 = vld [vmem:[#allocation2 + $0x1a1] ss:$2 sm:$0xff] }
 0x3fd   :  { %v2421_v28 = vmax.f32 %v2208_v44, %v2328_v58  ;;  %2090 = vst.msk [vmem:[#allocation2 + $0x1b0] sm:$0xff] %vm40_vm3, %v1970_v9  ;;  %5028 = vmatmul.bf16.gmra.mxu1 %v4700_v57  ;;  %v10240_v57 = vld [vmem:[#allocation3 + $0x180] sm:$0xff]  ;;  %v10242_v44 = vld [vmem:[#allocation3 + $0x188] sm:$0xff] }
 0x3fe   :  { %8249 = vrot.lane.b32.xlu1 %v8248_v56, %s8921_s14  ;;  %v2779_v56 = vld [vmem:[#allocation3 + $0x1e2] sm:$0xff]  ;;  %v2780_v58 = vld [vmem:[#allocation3 + $0x1ea] sm:$0xff] }
 0x3ff   :  { %8244 = vrot.lane.b32.xlu0 %v8243_v33, %s8920_s13  ;;  %v2485_v24 = vadd.f32 %v9970_v62, %v2421_v28  ;;  %v2727_v28 = vld [vmem:[#allocation3 + $0x1e1] sm:$0xff]  ;;  %v8323_v26 = vpack.i.bf16 %v2780_v58, %v2779_v56 }
 0x401   :  { %v2545_v16 = vmax.f32 %v2485_v24, 0.0  ;;  %v2728_v24 = vld [vmem:[#allocation3 + $0x1e9] sm:$0xff] }
 0x402   :  { %v1593_v3 = vpop.f32.mrf.mxu0 }
 0x403   :  { %2605 = vst.msk [vmem:[#allocation3 + $0x138] sm:$0xff] %vm40_vm3, %v2545_v16  ;;  %v1971_v1 = vmax.f32 %v10168_v49, %v1593_v3  ;;  %v1886_v48 = vpop.f32.mrf.mxu3  ;;  %v8318_v16 = vpack.i.bf16 %v2728_v24, %v2727_v28  ;;  %v2791_v3 = vld [vmem:[#allocation3 + $0x272] sm:$0xff] }
 0x404   :  { %v2028_v25 = vmax.f32 %v10177_v8, %v1886_v48 }
 0x405   :  { %2091 = vst.msk [vmem:[#allocation2 + $0x1b8] sm:$0xff] %vm40_vm3, %v1971_v1  ;;  %v2792_v1 = vld [vmem:[#allocation3 + $0x27a] sm:$0xff] }
 0x406   :  { %8264 = vrot.lane.b32.xlu1 %v8263_v50, %s8921_s14  ;;  %2148 = vst.msk [vmem:[#allocation2 + $0x380] sm:$0xff] %vm40_vm3, %v2028_v25  ;;  %v10254_v50 = vld [vmem:[#allocation3 + $0x198] sm:$0xff] }
 0x407   :  { %8259 = vrot.lane.b32.xlu0 %v8258_v53, %s8920_s13  ;;  %v10256_v53 = vld [vmem:[#allocation3 + $0x1a0] sm:$0xff] }
 0x40a   :  { %v1596_v30 = vpop.f32.mrf.mxu0  ;;  %v2820_v4 = vld [vmem:[#allocation3 + $0x138] sm:$0xff] }
 0x40b   :  { %v1972_v15 = vmax.f32 %v1596_v30, %v9780_v5  ;;  %v1888_v18 = vpop.f32.mrf.mxu3  ;;  %v10260_v30 = vpack.i.bf16 %v10256_v53, %v10254_v50 }
 0x40c   :  { %v2210_v21 = vld [vmem:[#allocation2 + $0x1b0] ss:$2 sm:$0xff]  ;;  %v2330_v49 = vld [vmem:[#allocation2 + $0x1b1] ss:$2 sm:$0xff]  ;;  %v2029_v45 = vmax.f32 %v10185_v39, %v1888_v18  ;;  %v8353_v18 = vpack.i.bf16 %v2782_v36, %v2781_v35 }
 0x40d   :  { %v2422_v23 = vmax.f32 %v2210_v21, %v2330_v49  ;;  %2092 = vst.msk [vmem:[#allocation2 + $0x1c0] sm:$0xff] %vm40_vm3, %v1972_v15  ;;  %v8338_v15 = vpack.i.bf16 %v2792_v1, %v2791_v3  ;;  %v2783_v3 = vld [vmem:[#allocation3 + $0x212] sm:$0xff]  ;;  %v2784_v1 = vld [vmem:[#allocation3 + $0x21a] sm:$0xff] }
 0x40e   :  { %8279 = vrot.lane.b32.xlu1 %v8278_v0, %s8921_s14  ;;  %2149 = vst.msk [vmem:[#allocation2 + $0x388] sm:$0xff] %vm40_vm3, %v2029_v45  ;;  %v8333_v0 = vpack.i.bf16 %v2740_v54, %v2739_v14  ;;  %v2731_v14 = vld [vmem:[#allocation3 + $0x211] sm:$0xff]  ;;  %v2732_v54 = vld [vmem:[#allocation3 + $0x219] sm:$0xff] }
 0x40f   :  { %8274 = vrot.lane.b32.xlu0 %v8273_v63, %s8920_s13  ;;  %v2486_v5 = vadd.f32 %v9970_v62, %v2422_v23  ;;  %v10268_v23 = vld [vmem:[#allocation3 + $0x1b0] sm:$0xff] }
 0x410   :  { %v2953_v35 = vld [vmem:[#allocation3 + $0x30] sm:$0xff] }
 0x411   :  { %v2546_v17 = vmax.f32 %v2486_v5, 0.0  ;;  %v8170_v48 = vpop.permute.xlu0 %8169  ;;  %v10271_v5 = vld [vmem:[#allocation3 + $0x1b8] sm:$0xff] }
 0x412   :  { %v1598_v12 = vpop.f32.mrf.mxu0 }
 0x413   :  { %2606 = vst.msk [vmem:[#allocation3 + $0x140] sm:$0xff] %vm40_vm3, %v2546_v17  ;;  %v1973_v8 = vmax.f32 %v1598_v12, %v9790_v61  ;;  %v1891_v31 = vpop.f32.mrf.mxu3  ;;  %v2729_v17 = vld [vmem:[#allocation3 + $0x1f9] sm:$0xff]  ;;  %v8175_v12 = vpop.permute.xlu1 %8174 }
 0x414   :  { %v2030_v39 = vmax.f32 %v10201_v59, %v1891_v31  ;;  %v8208_v59 = vpack.i.bf16 %v10242_v44, %v10240_v57  ;;  %v8348_v32 = vpack.i.bf16 %v2730_v29, %v2729_v17  ;;  %v8177_v47 = vunpack.i.h.bf16 %v8175_v12  ;;  %v10292_v31 = vld [vmem:[#allocation3 + $0x248] sm:$0xff] }
 0x415   :  { %2093 = vst.msk [vmem:[#allocation2 + $0x1c8] sm:$0xff] %vm40_vm3, %v1973_v8  ;;  %v2268_v6 = vld [vmem:[#allocation2 + $0x380] ss:$2 sm:$0xff]  ;;  %v2388_v55 = vld [vmem:[#allocation2 + $0x381] ss:$2 sm:$0xff]  ;;  %v8172_v8 = vunpack.i.h.bf16 %v8170_v48 }
 0x416   :  { %8294 = vrot.lane.b32.xlu1 %v8293_v11, %s8921_s14  ;;  %2150 = vst.msk [vmem:[#allocation2 + $0x390] sm:$0xff] %vm40_vm3, %v2030_v39  ;;  %v2451_v21 = vmax.f32 %v2268_v6, %v2388_v55  ;;  %v8171_v11 = vunpack.i.l.bf16 %v8170_v48  ;;  %v2794_v39 = vld [vmem:[#allocation3 + $0x292] sm:$0xff]  ;;  %v8383_v55 = vpack.i.bf16 %v2784_v1, %v2783_v3  ;;  %v2906_v3 = vld [vmem:[#allocation3 + $0x62] sm:$0xff]  ;;  %v2907_v1 = vld [vmem:[#allocation3 + $0x6a] sm:$0xff] }
 0x417   :  { %8289 = vrot.lane.b32.xlu0 %v8288_v41, %s8920_s13  ;;  %v10276_v41 = vpack.i.bf16 %v10271_v5, %v10268_v23  ;;  %v2954_v48 = vld [vmem:[#allocation3 + $0x38] sm:$0xff] }
 0x418   :  { %v2515_v22 = vadd.f32 %v9970_v62, %v2451_v21  ;;  %v8398_v17 = vpack.i.bf16 %v2954_v48, %v2953_v35  ;;  %v2962_v35 = vld [vmem:[#allocation3 + $0x98] sm:$0xff] }
 0x41a   :  { %v2821_v37 = vld [vmem:[#allocation3 + $0x140] sm:$0xff]  ;;  %v2575_v46 = vmax.f32 %v2515_v22, 0.0 }
 0x41b   :  { %v10231_v61 = vpack.i.bf16 %v2821_v37, %v2820_v4  ;;  %v1893_v2 = vpop.f32.mrf.mxu3  ;;  %v8176_v4 = vunpack.i.l.bf16 %v8175_v12  ;;  %v4379_v37 = vsel %vm40_vm3, %v10089_v60, %v8171_v11  ;;  %v2901_v22 = vld [vmem:[#allocation3 + $0x22] sm:$0xff]  ;;  %v2956_v11 = vld [vmem:[#allocation3 + $0x50] sm:$0xff] }
 0x41c   :  { %v2212_v51 = vld [vmem:[#allocation2 + $0x1c0] ss:$2 sm:$0xff]  ;;  %v2332_v19 = vld [vmem:[#allocation2 + $0x1c1] ss:$2 sm:$0xff]  ;;  %v2031_v7 = vmax.f32 %v10209_v10, %v1893_v2  ;;  %v10262_v10 = vpop.f32.mrf.mxu1  ;;  %2635 = vst.msk [vmem:[#allocation3 + $0x2a0] sm:$0xff] %vm40_vm3, %v2575_v46 }
 0x41d   :  { %v2423_v13 = vmax.f32 %v2212_v51, %v2332_v19  ;;  %8194 = vrot.lane.b32.xlu2 %v10231_v61, %s8922_s30  ;;  %11794 = vst [vmem:[#allocation11_spill] sm:$0xff] %v10262_v10  ;;  %v10289_v51 = vld [vmem:[#allocation3 + $0x240] sm:$0xff]  ;;  %v4431_v56 = vsel %vm71_vm4, %v4379_v37, %v8176_v4  ;;  %v10305_v2 = vld [vmem:[#allocation3 + $0x1c8] sm:$0xff] }
 0x41e   :  { %8309 = vrot.lane.b32.xlu1 %v8308_v40, %s8921_s14  ;;  %2151 = vst.msk [vmem:[#allocation2 + $0x398] sm:$0xff] %vm40_vm3, %v2031_v7  ;;  %v8253_v28 = vpack.i.bf16 %v10292_v31, %v10289_v51  ;;  %v10307_v7 = vld [vmem:[#allocation3 + $0x1d0] sm:$0xff]  ;;  %v10333_v12 = vld [vmem:[#allocation3 + $0x1e0] sm:$0xff]  ;;  %v2955_v46 = vld [vmem:[#allocation3 + $0x48] sm:$0xff] }
 0x41f   :  { %8304 = vrot.lane.b32.xlu0 %v8303_v52, %s8920_s13  ;;  %v2487_v9 = vadd.f32 %v9970_v62, %v2423_v13  ;;  %v2793_v13 = vld [vmem:[#allocation3 + $0x28a] sm:$0xff]  ;;  %v10311_v6 = vpack.i.bf16 %v10307_v7, %v10305_v2  ;;  %v8413_v4 = vpack.i.bf16 %v2956_v11, %v2955_v46 }
 0x420   :  { %v8368_v24 = vpack.i.bf16 %v2794_v39, %v2793_v13  ;;  %v2958_v13 = vld [vmem:[#allocation3 + $0x68] sm:$0xff] }
 0x421   :  { %v2547_v33 = vmax.f32 %v2487_v9, 0.0  ;;  %v2741_v9 = vld [vmem:[#allocation3 + $0x289] sm:$0xff] }
 0x422   :  { %v2904_v39 = vld [vmem:[#allocation3 + $0x4a] sm:$0xff] }
 0x423   :  { %2607 = vst.msk [vmem:[#allocation3 + $0x150] sm:$0xff] %vm40_vm3, %v2547_v33 }
 0x424   :  { %v10278_v45 = vpop.f32.mrf.mxu1 }
 0x425   :  { %8209 = vrot.lane.b32.xlu2 %v8208_v59, %s8922_s30  ;;  %v2270_v49 = vld [vmem:[#allocation2 + $0x390] ss:$2 sm:$0xff]  ;;  %v2390_v63 = vld [vmem:[#allocation2 + $0x391] ss:$2 sm:$0xff]  ;;  %11795 = vst [vmem:[#allocation12_spill] sm:$0xff] %v10278_v45 }
 0x426   :  { %8324 = vrot.lane.b32.xlu1 %v8323_v26, %s8921_s14  ;;  %v2452_v25 = vmax.f32 %v2270_v49, %v2390_v63  ;;  %v10322_v49 = vld [vmem:[#allocation3 + $0x258] sm:$0xff]  ;;  %v10324_v63 = vld [vmem:[#allocation3 + $0x260] sm:$0xff] }
 0x427   :  { %8319 = vrot.lane.b32.xlu0 %v8318_v16, %s8920_s13  ;;  %v8283_v36 = vpack.i.bf16 %v10324_v63, %v10322_v49 }
 0x428   :  { %v2516_v34 = vadd.f32 %v9970_v62, %v2452_v25  ;;  %v4380_v62 = vsel %vm40_vm3, %v10094_v20, %v8172_v8  ;;  %v2742_v20 = vld [vmem:[#allocation3 + $0x291] sm:$0xff]  ;;  %v2900_v25 = vld [vmem:[#allocation3 + $0x1a] sm:$0xff]  ;;  %v10335_v8 = vld [vmem:[#allocation3 + $0x1e8] sm:$0xff] }
 0x429   :  { %v4432_v60 = vsel %vm71_vm4, %v4380_v62, %v8177_v47  ;;  %v8363_v26 = vpack.i.bf16 %v2742_v20, %v2741_v9  ;;  %v8393_v29 = vpack.i.bf16 %v2901_v22, %v2900_v25  ;;  %v10341_v47 = vpack.i.bf16 %v10335_v8, %v10333_v12  ;;  %v2905_v9 = vld [vmem:[#allocation3 + $0x52] sm:$0xff]  ;;  %v2957_v20 = vld [vmem:[#allocation3 + $0x60] sm:$0xff]  ;;  %v10380_v25 = vld [vmem:[#allocation3 + $0x288] sm:$0xff] }
 0x42a   :  { %v2576_v38 = vmax.f32 %v2516_v34, 0.0  ;;  %v10382_v22 = vld [vmem:[#allocation3 + $0x290] sm:$0xff] }
 0x42c   :  { %2636 = vst.msk [vmem:[#allocation3 + $0x2a8] sm:$0xff] %vm40_vm3, %v2576_v38  ;;  %v10302_v16 = vpop.f32.mrf.mxu1 }
 0x42d   :  { %8224 = vrot.lane.b32.xlu2 %v10260_v30, %s8922_s30  ;;  %11796 = vst [vmem:[#allocation13_spill] sm:$0xff] %v10302_v16 }
 0x42e   :  { %8339 = vrot.lane.b32.xlu1 %v8338_v15, %s8921_s14  ;;  %v7903_v15 = vld [vmem:[%s11782_s3 + $0x80] sm:$0xff] }
 0x42f   :  { %8334 = vrot.lane.b32.xlu0 %v8333_v0, %s8920_s13  ;;  %v8378_v0 = vpack.i.bf16 %v2732_v54, %v2731_v14  ;;  %5247 = vmatpush.bf16.msrb.mxu1 %v7903_v15  ;;  %v2959_v54 = vld [vmem:[#allocation3 + $0x78] sm:$0xff] }
 0x434   :  { %v10319_v21 = vpop.f32.mrf.mxu1 }
 0x435   :  { %8239 = vrot.lane.b32.xlu2 %v10276_v41, %s8922_s30  ;;  %11797 = vst [vmem:[#allocation14_spill] sm:$0xff] %v10319_v21 }
 0x436   :  { %8354 = vrot.lane.b32.xlu1 %v8353_v18, %s8921_s14  ;;  %v2902_v18 = vld [vmem:[#allocation3 + $0x32] sm:$0xff] }
 0x437   :  { %8349 = vrot.lane.b32.xlu0 %v8348_v32, %s8920_s13  ;;  %v8180_v40 = vpop.permute.xlu2 %8179  ;;  %v2903_v32 = vld [vmem:[#allocation3 + $0x3a] sm:$0xff] }
 0x438   :  { %v8182_v19 = vunpack.i.h.bf16 %v8180_v40  ;;  %v8181_v52 = vunpack.i.l.bf16 %v8180_v40  ;;  %v8408_v62 = vpack.i.bf16 %v2903_v32, %v2902_v18  ;;  %v2961_v18 = vld [vmem:[#allocation3 + $0x90] sm:$0xff]  ;;  %v8343_v32 = vpack.i.bf16 %v10382_v22, %v10380_v25 }
 0x439   :  { %v8458_v46 = vpack.i.bf16 %v2962_v35, %v2961_v18 }
 0x43a   :  { %v4484_v58 = vsel %vm4461_vm5, %v4431_v56, %v8181_v52  ;;  %v4485_v33 = vsel %vm4461_vm5, %v4432_v60, %v8182_v19  ;;  %v10351_v19 = vld [vmem:[#allocation3 + $0x270] sm:$0xff]  ;;  %v10353_v52 = vld [vmem:[#allocation3 + $0x278] sm:$0xff]  ;;  %v8428_v60 = vpack.i.bf16 %v2958_v13, %v2957_v20 }
 0x43b   :  { %v4703_v59 = vpack.c.bf16 %v4485_v33, %v4484_v58  ;;  %v8313_v56 = vpack.i.bf16 %v10353_v52, %v10351_v19  ;;  %v8423_v58 = vpack.i.bf16 %v2905_v9, %v2904_v39  ;;  %v10395_v13 = vld [vmem:[#allocation3 + $0x218] sm:$0xff]  ;;  %v2964_v39 = vld [vmem:[#allocation3 + $0xb0] sm:$0xff] }
 0x43c   :  { %v10331_v34 = vpop.f32.mrf.mxu1  ;;  %v2910_v20 = vld [vmem:[#allocation3 + $0x92] sm:$0xff] }
 0x43d   :  { %8254 = vrot.lane.b32.xlu2 %v8253_v28, %s8922_s30  ;;  %5033 = vmatmul.bf16.gmra.mxu1 %v4703_v59  ;;  %11798 = vst [vmem:[#allocation15_spill] sm:$0xff] %v10331_v34  ;;  %v10366_v59 = vld [vmem:[#allocation3 + $0x200] sm:$0xff] }
 0x43e   :  { %8369 = vrot.lane.b32.xlu1 %v8368_v24, %s8921_s14  ;;  %v10364_v24 = vld [vmem:[#allocation3 + $0x1f8] sm:$0xff] }
 0x43f   :  { %8364 = vrot.lane.b32.xlu0 %v8363_v26, %s8920_s13  ;;  %v2960_v26 = vld [vmem:[#allocation3 + $0x80] sm:$0xff] }
 0x440   :  { %v8443_v15 = vpack.i.bf16 %v2960_v26, %v2959_v54  ;;  %v2963_v26 = vld [vmem:[#allocation3 + $0xa8] sm:$0xff]  ;;  %v7911_v54 = vld [vmem:[%s11784_s5 + $0x30] sm:$0xff] }
 0x441   :  { %6077 = vmatpush.bf16.msrb.mxu3 %v7911_v54 }
 0x444   :  { %v10349_v40 = vpop.f32.mrf.mxu1 }
 0x445   :  { %8269 = vrot.lane.b32.xlu2 %v10311_v6, %s8922_s30  ;;  %11799 = vst [vmem:[#allocation16_spill] sm:$0xff] %v10349_v40 }
 0x446   :  { %8384 = vrot.lane.b32.xlu1 %v8383_v55, %s8921_s14  ;;  %v10372_v55 = vpack.i.bf16 %v10366_v59, %v10364_v24 }
 0x447   :  { %8379 = vrot.lane.b32.xlu0 %v8378_v0, %s8920_s13  ;;  %v8438_v0 = vpack.i.bf16 %v2907_v1, %v2906_v3  ;;  %v8473_v1 = vpack.i.bf16 %v2964_v39, %v2963_v26  ;;  %v2846_v39 = vld [vmem:[#allocation3 + $0x2a0] sm:$0xff]  ;;  %v2913_v26 = vld [vmem:[#allocation3 + $0xb2] sm:$0xff] }
 0x44c   :  { %v10368_v14 = vpop.f32.mrf.mxu1 }
 0x44d   :  { %8284 = vrot.lane.b32.xlu2 %v8283_v36, %s8922_s30  ;;  %11800 = vst [vmem:[#allocation17_spill] sm:$0xff] %v10368_v14  ;;  %v2908_v36 = vld [vmem:[#allocation3 + $0x7a] sm:$0xff] }
 0x44e   :  { %8399 = vrot.lane.b32.xlu1 %v8398_v17, %s8921_s14  ;;  %v2909_v17 = vld [vmem:[#allocation3 + $0x82] sm:$0xff] }
 0x44f   :  { %8394 = vrot.lane.b32.xlu0 %v8393_v29, %s8920_s13 }
 0x450   :  { %v10346_v37 = vpop.permute.xlu1 %8189 }
 0x451   :  { %v10337_v38 = vpop.permute.xlu0 %8184 }
 0x454   :  { %v10384_v29 = vpop.f32.mrf.mxu1 }
 0x455   :  { %8299 = vrot.lane.b32.xlu2 %v10341_v47, %s8922_s30  ;;  %11801 = vst [vmem:[#allocation18_spill] sm:$0xff] %v10384_v29  ;;  %v2965_v29 = vld [vmem:[#allocation3 + $0xc0] sm:$0xff] }
 0x456   :  { %8414 = vrot.lane.b32.xlu1 %v8413_v4, %s8921_s14  ;;  %v8453_v4 = vpack.i.bf16 %v2909_v17, %v2908_v36  ;;  %v8192_v36 = vunpack.i.h.bf16 %v10346_v37  ;;  %v8191_v17 = vunpack.i.l.bf16 %v10346_v37  ;;  %v2966_v37 = vld [vmem:[#allocation3 + $0xc8] sm:$0xff] }
 0x457   :  { %8409 = vrot.lane.b32.xlu0 %v8408_v62, %s8920_s13  ;;  %v10393_v62 = vld [vmem:[#allocation3 + $0x210] sm:$0xff]  ;;  %v8488_v54 = vpack.i.bf16 %v2966_v37, %v2965_v29 }
 0x458   :  { %v10362_v28 = vpop.permute.xlu1 %8204  ;;  %v10403_v3 = vpack.i.bf16 %v10395_v13, %v10393_v62 }
 0x459   :  { %v10357_v33 = vpop.permute.xlu0 %8199 }
 0x45a   :  { %v8202_v29 = vunpack.i.h.bf16 %v10357_v33 }
 0x45d   :  { %8314 = vrot.lane.b32.xlu2 %v8313_v56, %s8922_s30  ;;  %v2911_v56 = vld [vmem:[#allocation3 + $0x9a] sm:$0xff] }
 0x45e   :  { %8429 = vrot.lane.b32.xlu1 %v8428_v60, %s8921_s14  ;;  %v8187_v60 = vunpack.i.h.bf16 %v10337_v38  ;;  %v8468_v35 = vpack.i.bf16 %v2911_v56, %v2910_v20  ;;  %v2847_v20 = vld [vmem:[#allocation3 + $0x2a8] sm:$0xff] }
 0x45f   :  { %8424 = vrot.lane.b32.xlu0 %v8423_v58, %s8920_s13  ;;  %v8186_v58 = vunpack.i.l.bf16 %v10337_v38  ;;  %v2912_v56 = vld [vmem:[#allocation3 + $0xaa] sm:$0xff] }
 0x460   :  { %v10386_v11 = vpop.permute.xlu1 %8219  ;;  %v4382_v38 = vsel %vm40_vm3, %v10161_v43, %v8187_v60  ;;  %v8483_v14 = vpack.i.bf16 %v2913_v26, %v2912_v56  ;;  %v8206_v26 = vunpack.i.l.bf16 %v10362_v28 }
 0x461   :  { %v10378_v48 = vpop.permute.xlu0 %8214  ;;  %v4381_v18 = vsel %vm40_vm3, %v10157_v42, %v8186_v58  ;;  %v8373_v58 = vpack.i.bf16 %v2847_v20, %v2846_v39  ;;  %v2915_v39 = vld [vmem:[#allocation3 + $0xca] sm:$0xff]  ;;  %v2967_v20 = vld [vmem:[#allocation3 + $0xd8] sm:$0xff] }
 0x465   :  { %8329 = vrot.lane.b32.xlu2 %v10372_v55, %s8922_s30 }
 0x466   :  { %8444 = vrot.lane.b32.xlu1 %v8443_v15, %s8921_s14  ;;  %v10408_v15 = vpop.f32.mrf.mxu1 }
 0x467   :  { %8439 = vrot.lane.b32.xlu0 %v8438_v0, %s8920_s13  ;;  %11802 = vst [vmem:[#allocation19_spill] sm:$0xff] %v10408_v15  ;;  %v4433_v15 = vsel %vm71_vm4, %v4381_v18, %v8191_v17  ;;  %v2968_v18 = vld [vmem:[#allocation3 + $0xe0] sm:$0xff] }
 0x468   :  { %v10410_v0 = vpop.permute.xlu1 %8234  ;;  %v8503_v56 = vpack.i.bf16 %v2968_v18, %v2967_v20 }
 0x469   :  { %v10397_v9 = vpop.permute.xlu0 %8229 }
 0x46d   :  { %8344 = vrot.lane.b32.xlu2 %v8343_v32, %s8922_s30 }
 0x46e   :  { %8459 = vrot.lane.b32.xlu1 %v8458_v46, %s8921_s14 }
 0x46f   :  { %8454 = vrot.lane.b32.xlu0 %v8453_v4, %s8920_s13 }
 0x470   :  { %v10432_v17 = vpop.permute.xlu1 %8249 }
 0x471   :  { %v10426_v60 = vpop.permute.xlu0 %8244  ;;  %v8252_v45 = vunpack.i.h.bf16 %v10432_v17  ;;  %v8251_v27 = vunpack.i.l.bf16 %v10432_v17 }
 0x475   :  { %8359 = vrot.lane.b32.xlu2 %v10403_v3, %s8922_s30 }
 0x476   :  { %8474 = vrot.lane.b32.xlu1 %v8473_v1, %s8921_s14  ;;  %v4434_v1 = vsel %vm71_vm4, %v4382_v38, %v8192_v36  ;;  %v10435_v36 = vld [vmem:[#allocation3 + $0x228] sm:$0xff]  ;;  %v10437_v38 = vld [vmem:[#allocation3 + $0x230] sm:$0xff] }
 0x477   :  { %8469 = vrot.lane.b32.xlu0 %v8468_v35, %s8920_s13  ;;  %v8195_v32 = vpop.permute.xlu2 %8194  ;;  %v10443_v37 = vpack.i.bf16 %v10437_v38, %v10435_v36 }
 0x478   :  { %v8197_v46 = vunpack.i.h.bf16 %v8195_v32  ;;  %v8196_v4 = vunpack.i.l.bf16 %v8195_v32  ;;  %v10428_v32 = vpop.f32.mrf.mxu1 }
 0x479   :  { %11803 = vst [vmem:[#allocation20_spill] sm:$0xff] %v10428_v32 }
 0x47a   :  { %v4486_v43 = vsel %vm4461_vm5, %v4433_v15, %v8196_v4  ;;  %v4487_v42 = vsel %vm4461_vm5, %v4434_v1, %v8197_v46  ;;  %v8201_v46 = vunpack.i.l.bf16 %v10357_v33  ;;  %v2914_v4 = vld [vmem:[#allocation3 + $0xc2] sm:$0xff]  ;;  %v10449_v33 = vpop.permute.xlu0 %8259 }
 0x47b   :  { %v4706_v35 = vpack.c.bf16 %v4487_v42, %v4486_v43  ;;  %v2665_v1 = vld [vmem:[#allocation3 + $0x168] sm:$0xff]  ;;  %v2666_v43 = vld [vmem:[#allocation3 + $0x170] sm:$0xff]  ;;  %v8498_v42 = vpack.i.bf16 %v2915_v39, %v2914_v4  ;;  %v10459_v4 = vpop.permute.xlu1 %8264  ;;  %v2970_v39 = vld [vmem:[#allocation3 + $0xf8] sm:$0xff] }
 0x47d   :  { %8374 = vrot.lane.b32.xlu2 %v8373_v58, %s8922_s30  ;;  %5038 = vmatmul.bf16.gmra.mxu1 %v4706_v35  ;;  %v4384_v58 = vsel %vm40_vm3, %v2666_v43, %v8202_v29  ;;  %v10461_v29 = vld [vmem:[#allocation3 + $0x31] sm:$0xff]  ;;  %v2917_v43 = vld [vmem:[#allocation3 + $0xe2] sm:$0xff] }
 0x47e   :  { %8489 = vrot.lane.b32.xlu1 %v8488_v54, %s8921_s14  ;;  %v4383_v54 = vsel %vm40_vm3, %v2665_v1, %v8201_v46  ;;  %v10463_v46 = vld [vmem:[#allocation3 + $0x39] sm:$0xff] }
 0x47f   :  { %8484 = vrot.lane.b32.xlu0 %v8483_v14, %s8920_s13  ;;  %v8210_v15 = vpop.permute.xlu2 %8209  ;;  %v8207_v14 = vunpack.i.h.bf16 %v10362_v28  ;;  %v2916_v1 = vld [vmem:[#allocation3 + $0xda] sm:$0xff]  ;;  %v8403_v34 = vpack.i.bf16 %v10463_v46, %v10461_v29 }
 0x480   :  { %v8212_v35 = vunpack.i.h.bf16 %v8210_v15  ;;  %v8211_v32 = vunpack.i.l.bf16 %v8210_v15  ;;  %v10454_v18 = vpop.f32.mrf.mxu1  ;;  %v4435_v15 = vsel %vm71_vm4, %v4383_v54, %v8206_v26  ;;  %v8513_v21 = vpack.i.bf16 %v2917_v43, %v2916_v1  ;;  %v10482_v54 = vld [vmem:[#allocation3 + $0x51] sm:$0xff] }
 0x481   :  { %11804 = vst [vmem:[#allocation21_spill] sm:$0xff] %v10454_v18  ;;  %v4436_v20 = vsel %vm71_vm4, %v4384_v58, %v8207_v14  ;;  %v10480_v58 = vld [vmem:[#allocation3 + $0x49] sm:$0xff] }
 0x482   :  { %v4489_v18 = vsel %vm4461_vm5, %v4436_v20, %v8212_v35  ;;  %v10476_v14 = vpop.permute.xlu0 %8274  ;;  %11806 = vst [vmem:[#allocation23_spill] sm:$0xff] %v10480_v58  ;;  %v8217_v35 = vunpack.i.h.bf16 %v10378_v48  ;;  %v2971_v20 = vld [vmem:[#allocation3 + $0x108] sm:$0xff]  ;;  %v8418_v1 = vpack.i.bf16 %v10482_v54, %v10480_v58 }
 0x483   :  { %11807 = vst [vmem:[#allocation24_spill] sm:$0xff] %v10482_v54 }
 0x484   :  { %v4386_v10 = vsel %vm40_vm3, %v10242_v44, %v8217_v35 }
 0x485   :  { %8389 = vrot.lane.b32.xlu2 %v10443_v37, %s8922_s30 }
 0x486   :  { %8504 = vrot.lane.b32.xlu1 %v8503_v56, %s8921_s14  ;;  %v4488_v56 = vsel %vm4461_vm5, %v4435_v15, %v8211_v32  ;;  %v8247_v15 = vunpack.i.h.bf16 %v10426_v60 }
 0x487   :  { %8499 = vrot.lane.b32.xlu0 %v8498_v42, %s8920_s13  ;;  %v10457_v28 = vpop.permute.xlu2 %8224  ;;  %v2969_v42 = vld [vmem:[#allocation3 + $0xf0] sm:$0xff]  ;;  %v4709_v16 = vpack.c.bf16 %v4489_v18, %v4488_v56  ;;  %v8216_v18 = vunpack.i.l.bf16 %v10378_v48  ;;  %v8222_v48 = vunpack.i.h.bf16 %v10386_v11 }
 0x488   :  { %v8518_v40 = vpack.i.bf16 %v2970_v39, %v2969_v42  ;;  %v10473_v26 = vpop.f32.mrf.mxu1  ;;  %v2918_v39 = vld [vmem:[#allocation3 + $0xf2] sm:$0xff] }
 0x489   :  { %11805 = vst [vmem:[#allocation22_spill] sm:$0xff] %v10473_v26  ;;  %v7902_v42 = vld [vmem:[%s11782_s3 + $0x78] sm:$0xff]  ;;  %v8221_v26 = vunpack.i.l.bf16 %v10386_v11  ;;  %v4400_v11 = vsel %vm40_vm3, %v10437_v38, %v8247_v15 }
 0x48a   :  { %5105 = vmatpush.bf16.msra.mxu2 %v7902_v42  ;;  %v10520_v38 = vpop.permute.xlu0 %8289  ;;  %v4452_v15 = vsel %vm71_vm4, %v4400_v11, %v8252_v45  ;;  %v8232_v11 = vunpack.i.h.bf16 %v10397_v9 }
 0x48d   :  { %8404 = vrot.lane.b32.xlu2 %v8403_v34, %s8922_s30  ;;  %5041 = vmatmul.bf16.gmra.mxu1 %v4709_v16  ;;  %v2972_v34 = vld [vmem:[#allocation3 + $0x110] sm:$0xff]  ;;  %v10488_v16 = vpop.permute.xlu1 %8279 }
 0x48e   :  { %8519 = vrot.lane.b32.xlu1 %v8518_v40, %s8921_s14  ;;  %v2919_v40 = vld [vmem:[#allocation3 + $0xfa] sm:$0xff]  ;;  %v8533_v43 = vpack.i.bf16 %v2972_v34, %v2971_v20  ;;  %v8227_v34 = vunpack.i.h.bf16 %v10457_v28 }
 0x48f   :  { %8514 = vrot.lane.b32.xlu0 %v8513_v21, %s8920_s13  ;;  %v10478_v32 = vpop.permute.xlu2 %8239  ;;  %v8246_v21 = vunpack.i.l.bf16 %v10426_v60  ;;  %v8528_v56 = vpack.i.bf16 %v2919_v40, %v2918_v39  ;;  %v4385_v60 = vsel %vm40_vm3, %v10240_v57, %v8216_v18  ;;  %v8226_v39 = vunpack.i.l.bf16 %v10457_v28  ;;  %v10512_v18 = vld [vmem:[#allocation3 + $0x61] sm:$0xff]  ;;  %v10514_v40 = vld [vmem:[#allocation3 + $0x69] sm:$0xff] }
 0x490   :  { %v2974_v28 = vld [vmem:[#allocation3 + $0x128] sm:$0xff]  ;;  %v4437_v20 = vsel %vm71_vm4, %v4385_v60, %v8221_v26  ;;  %v2973_v60 = vld [vmem:[#allocation3 + $0x120] sm:$0xff] }
 0x491   :  { %v4399_v44 = vsel %vm40_vm3, %v10435_v36, %v8246_v21  ;;  %v2920_v21 = vld [vmem:[#allocation3 + $0x10a] sm:$0xff]  ;;  %v4490_v42 = vsel %vm4461_vm5, %v4437_v20, %v8226_v39  ;;  %v10537_v39 = vld [vmem:[#allocation3 + $0x79] sm:$0xff] }
 0x492   :  { %v4451_v36 = vsel %vm71_vm4, %v4399_v44, %v8251_v27  ;;  %v8231_v44 = vunpack.i.l.bf16 %v10397_v9  ;;  %v8236_v9 = vunpack.i.l.bf16 %v10410_v0 }
 0x495   :  { %8419 = vrot.lane.b32.xlu2 %v8418_v1, %s8922_s30  ;;  %v4438_v1 = vsel %vm71_vm4, %v4386_v10, %v8222_v48  ;;  %v8433_v48 = vpack.i.bf16 %v10514_v40, %v10512_v18  ;;  %v10530_v54 = vpop.permute.xlu1 %8294 }
 0x496   :  { %8534 = vrot.lane.b32.xlu1 %v8533_v43, %s8921_s14  ;;  %v10518_v43 = vpop.f32.mrf.mxu1 }
 0x497   :  { %8529 = vrot.lane.b32.xlu0 %v8528_v56, %s8920_s13  ;;  %v8255_v57 = vpop.permute.xlu2 %8254  ;;  %11808 = vst [vmem:[#allocation25_spill] sm:$0xff] %v10518_v43  ;;  %v2921_v56 = vld [vmem:[#allocation3 + $0x112] sm:$0xff]  ;;  %v8548_v43 = vpack.i.bf16 %v2974_v28, %v2973_v60  ;;  %v2923_v28 = vld [vmem:[#allocation3 + $0x12a] sm:$0xff]  ;;  %v8242_v60 = vunpack.i.h.bf16 %v10478_v32 }
 0x498   :  { %v8257_v35 = vunpack.i.h.bf16 %v8255_v57  ;;  %v8256_v17 = vunpack.i.l.bf16 %v8255_v57  ;;  %v4491_v57 = vsel %vm4461_vm5, %v4438_v1, %v8227_v34  ;;  %v8543_v27 = vpack.i.bf16 %v2921_v56, %v2920_v21 }
 0x499   :  { %v4712_v45 = vpack.c.bf16 %v4491_v57, %v4490_v42  ;;  %v8277_v1 = vunpack.i.h.bf16 %v10476_v14  ;;  %v8237_v56 = vunpack.i.h.bf16 %v10410_v0  ;;  %v4388_v42 = vsel %vm40_vm3, %v10256_v53, %v8232_v11 }
 0x49a   :  { %v4504_v58 = vsel %vm4461_vm5, %v4451_v36, %v8256_v17  ;;  %v4505_v26 = vsel %vm4461_vm5, %v4452_v15, %v8257_v35  ;;  %v10544_v35 = vld [vmem:[#allocation3 + $0x81] sm:$0xff]  ;;  %v10550_v36 = vpop.permute.xlu0 %8304  ;;  %v4387_v57 = vsel %vm40_vm3, %v10254_v50, %v8231_v44 }
 0x49b   :  { %v4733_v10 = vpack.c.bf16 %v4505_v26, %v4504_v58  ;;  %v7901_v58 = vld [vmem:[%s11782_s3 + $0x70] sm:$0xff]  ;;  %v2922_v17 = vld [vmem:[#allocation3 + $0x122] sm:$0xff]  ;;  %v8448_v15 = vpack.i.bf16 %v10544_v35, %v10537_v39  ;;  %v8282_v26 = vunpack.i.h.bf16 %v10488_v16  ;;  %v4402_v0 = vsel %vm40_vm3, %v10292_v31, %v8277_v1  ;;  %v2924_v31 = vld [vmem:[#allocation3 + $0x13a] sm:$0xff] }
 0x49c   :  { %5106 = vmatpush.bf16.msra.mxu2 %v7901_v58  ;;  %v8558_v21 = vpack.i.bf16 %v2923_v28, %v2922_v17  ;;  %v2977_v58 = vld [vmem:[#allocation3 + $0x150] sm:$0xff]  ;;  %v4440_v11 = vsel %vm71_vm4, %v4388_v42, %v8237_v56  ;;  %v2925_v44 = vld [vmem:[#allocation3 + $0x142] sm:$0xff] }
 0x49d   :  { %8434 = vrot.lane.b32.xlu2 %v8433_v48, %s8922_s30  ;;  %5046 = vmatmul.bf16.gmra.mxu1 %v4712_v45  ;;  %v10571_v50 = vpop.permute.xlu1 %8309  ;;  %v10574_v45 = vld [vmem:[#allocation3 + $0x91] sm:$0xff]  ;;  %v4493_v17 = vsel %vm4461_vm5, %v4440_v11, %v8242_v60  ;;  %v4454_v1 = vsel %vm71_vm4, %v4402_v0, %v8282_v26  ;;  %v10600_v0 = vld [vmem:[#allocation3 + $0xa9] sm:$0xff] }
 0x49e   :  { %8549 = vrot.lane.b32.xlu1 %v8548_v43, %s8921_s14  ;;  %5081 = vmatmul.bf16.vlgmr.msrb.gmra.mxu2 %v4733_v10  ;;  %v10546_v20 = vpop.f32.mrf.mxu1  ;;  %v8276_v43 = vunpack.i.l.bf16 %v10476_v14  ;;  %v8281_v14 = vunpack.i.l.bf16 %v10488_v16  ;;  %v8241_v10 = vunpack.i.l.bf16 %v10478_v32  ;;  %v10576_v32 = vld [vmem:[#allocation3 + $0x99] sm:$0xff]  ;;  %v2927_v11 = vld [vmem:[#allocation3 + $0x18a] sm:$0xff] }
 0x49f   :  { %8544 = vrot.lane.b32.xlu0 %v8543_v27, %s8920_s13  ;;  %v10535_v34 = vpop.permute.xlu2 %8269  ;;  %v8463_v56 = vpack.i.bf16 %v10576_v32, %v10574_v45 }
 0x4a0   :  { %v4401_v53 = vsel %vm40_vm3, %v10289_v51, %v8276_v43  ;;  %v2978_v43 = vld [vmem:[#allocation3 + $0x158] sm:$0xff] }
 0x4a1   :  { %v4453_v28 = vsel %vm71_vm4, %v4401_v53, %v8281_v14  ;;  %v7900_v14 = vld [vmem:[%s11782_s3 + $0x68] sm:$0xff]  ;;  %v8262_v53 = vunpack.i.h.bf16 %v10449_v33 }
 0x4a2   :  { %v10593_v60 = vpop.permute.xlu0 %8319  ;;  %5107 = vmatpush.bf16.msra.mxu2 %v7900_v14  ;;  %v10635_v14 = vld [vmem:[#allocation3 + $0xc1] sm:$0xff] }
 0x4a5   :  { %8449 = vrot.lane.b32.xlu2 %v8448_v15, %s8922_s30 }
 0x4a6   :  { %8564 = vrot.lane.b32.xlu1 %v10231_v61, %s8921_s14  ;;  %v4439_v61 = vsel %vm71_vm4, %v4387_v57, %v8236_v9  ;;  %v8578_v9 = vpack.i.bf16 %v2978_v43, %v2977_v58  ;;  %v8573_v57 = vpack.i.bf16 %v2925_v44, %v2924_v31  ;;  %v10606_v58 = vld [vmem:[#allocation3 + $0xb1] sm:$0xff]  ;;  %v8307_v31 = vunpack.i.h.bf16 %v10550_v36 }
 0x4a7   :  { %8559 = vrot.lane.b32.xlu0 %v8558_v21, %s8920_s13  ;;  %v8285_v16 = vpop.permute.xlu2 %8284  ;;  %v4492_v51 = vsel %vm4461_vm5, %v4439_v61, %v8241_v10  ;;  %v2926_v61 = vld [vmem:[#allocation3 + $0x182] sm:$0xff]  ;;  %v8306_v44 = vunpack.i.l.bf16 %v10550_v36  ;;  %v8266_v43 = vunpack.i.l.bf16 %v10459_v4 }
 0x4a8   :  { %v8287_v48 = vunpack.i.h.bf16 %v8285_v16  ;;  %v8286_v27 = vunpack.i.l.bf16 %v8285_v16  ;;  %v10586_v16 = vpop.f32.mrf.mxu1  ;;  %v4715_v10 = vpack.c.bf16 %v4493_v17, %v4492_v51  ;;  %v8478_v17 = vpack.i.bf16 %v10606_v58, %v10600_v0 }
 0x4aa   :  { %v4506_v15 = vsel %vm4461_vm5, %v4453_v28, %v8286_v27  ;;  %v4507_v21 = vsel %vm4461_vm5, %v4454_v1, %v8287_v48  ;;  %v8261_v48 = vunpack.i.l.bf16 %v10449_v33  ;;  %v10604_v27 = vpop.permute.xlu1 %8324  ;;  %v8588_v28 = vpack.i.bf16 %v2927_v11, %v2926_v61  ;;  %v7899_v33 = vld [vmem:[%s11782_s3 + $0x60] sm:$0xff] }
 0x4ab   :  { %v4736_v42 = vpack.c.bf16 %v4507_v21, %v4506_v15  ;;  %v8267_v1 = vunpack.i.h.bf16 %v10459_v4  ;;  %v4390_v15 = vsel %vm40_vm3, %v10271_v5, %v8262_v53  ;;  %v8312_v21 = vunpack.i.h.bf16 %v10571_v50  ;;  %5108 = vmatpush.bf16.msra.mxu2 %v7899_v33 }
 0x4ac   :  { %v4389_v36 = vsel %vm40_vm3, %v10268_v23, %v8261_v48  ;;  %v4404_v4 = vsel %vm40_vm3, %v10324_v63, %v8307_v31  ;;  %v4403_v5 = vsel %vm40_vm3, %v10322_v49, %v8306_v44  ;;  %v8335_v23 = vpop.permute.xlu0 %8334  ;;  %v2928_v48 = vld [vmem:[#allocation3 + $0x19a] sm:$0xff]  ;;  %v2929_v63 = vld [vmem:[#allocation3 + $0x1a2] sm:$0xff] }
 0x4ad   :  { %8464 = vrot.lane.b32.xlu2 %v8463_v56, %s8922_s30  ;;  %5051 = vmatmul.bf16.gmra.mxu1 %v4715_v10  ;;  %v8311_v56 = vunpack.i.l.bf16 %v10571_v50  ;;  %v4441_v53 = vsel %vm71_vm4, %v4389_v36, %v8266_v43  ;;  %v4456_v31 = vsel %vm71_vm4, %v4404_v4, %v8312_v21  ;;  %v7898_v36 = vld [vmem:[%s11782_s3 + $0x58] sm:$0xff]  ;;  %v8291_v4 = vunpack.i.l.bf16 %v10520_v38 }
 0x4ae   :  { %8579 = vrot.lane.b32.xlu1 %v8578_v9, %s8921_s14  ;;  %5086 = vmatmul.bf16.gmra.mxu2 %v4736_v42  ;;  %v8272_v9 = vunpack.i.h.bf16 %v10535_v34  ;;  %v8271_v42 = vunpack.i.l.bf16 %v10535_v34  ;;  %v10637_v34 = vld [vmem:[#allocation3 + $0xc9] sm:$0xff] }
 0x4af   :  { %8574 = vrot.lane.b32.xlu0 %v8573_v57, %s8920_s13  ;;  %v10598_v26 = vpop.permute.xlu2 %8299  ;;  %v4455_v11 = vsel %vm71_vm4, %v4403_v5, %v8311_v56  ;;  %v8493_v33 = vpack.i.bf16 %v10637_v34, %v10635_v14  ;;  %v2930_v56 = vld [vmem:[#allocation3 + $0x1b2] sm:$0xff]  ;;  %5109 = vmatpush.bf16.msra.mxu2 %v7898_v36 }
 0x4b0   :  { %v10610_v51 = vpop.f32.mrf.mxu1  ;;  %v4494_v61 = vsel %vm4461_vm5, %v4441_v53, %v8271_v42  ;;  %v8292_v42 = vunpack.i.h.bf16 %v10520_v38  ;;  %v10662_v5 = vld [vmem:[#allocation3 + $0xd9] sm:$0xff]  ;;  %v8336_v53 = vunpack.i.l.bf16 %v8335_v23  ;;  %v8297_v38 = vunpack.i.h.bf16 %v10530_v54 }
 0x4b1   :  { %v10698_v36 = vld [vmem:[#allocation3 + $0xf9] sm:$0xff] }
 0x4b2   :  { %v8340_v44 = vpop.permute.xlu1 %8339 }
 0x4b5   :  { %8479 = vrot.lane.b32.xlu2 %v8478_v17, %s8922_s30 }
 0x4b6   :  { %8594 = vrot.lane.b32.xlu1 %v10260_v30, %s8921_s14  ;;  %v4442_v30 = vsel %vm71_vm4, %v4390_v15, %v8267_v1  ;;  %v8603_v1 = vpack.i.bf16 %v2929_v63, %v2928_v48  ;;  %v7897_v63 = vld [vmem:[%s11782_s3 + $0x50] sm:$0xff] }
 0x4b7   :  { %8589 = vrot.lane.b32.xlu0 %v8588_v28, %s8920_s13  ;;  %v8315_v50 = vpop.permute.xlu2 %8314  ;;  %v4495_v49 = vsel %vm4461_vm5, %v4442_v30, %v8272_v9  ;;  %5110 = vmatpush.bf16.msra.mxu2 %v7897_v63 }
 0x4b8   :  { %v8317_v57 = vunpack.i.h.bf16 %v8315_v50  ;;  %v8316_v10 = vunpack.i.l.bf16 %v8315_v50  ;;  %v4718_v15 = vpack.c.bf16 %v4495_v49, %v4494_v61  ;;  %v10652_v9 = vpop.f32.mrf.mxu1  ;;  %v10664_v50 = vld [vmem:[#allocation3 + $0xe1] sm:$0xff]  ;;  %v8296_v61 = vunpack.i.l.bf16 %v10530_v54 }
 0x4b9   :  { %v8508_v30 = vpack.i.bf16 %v10664_v50, %v10662_v5  ;;  %v4392_v49 = vsel %vm40_vm3, %v10307_v7, %v8292_v42  ;;  %v7896_v54 = vld [vmem:[%s11782_s3 + $0x48] sm:$0xff] }
 0x4ba   :  { %v4508_v17 = vsel %vm4461_vm5, %v4455_v11, %v8316_v10  ;;  %v4509_v28 = vsel %vm4461_vm5, %v4456_v31, %v8317_v57  ;;  %v2931_v57 = vld [vmem:[#allocation3 + $0x1ba] sm:$0xff]  ;;  %v10666_v10 = vpop.permute.xlu0 %8349  ;;  %v4391_v11 = vsel %vm40_vm3, %v10305_v2, %v8291_v4  ;;  %v10679_v31 = vpop.permute.xlu1 %8354  ;;  %v4405_v2 = vsel %vm40_vm3, %v10351_v19, %v8336_v53  ;;  %v2933_v19 = vld [vmem:[#allocation3 + $0x1d2] sm:$0xff] }
 0x4bb   :  { %v4739_v43 = vpack.c.bf16 %v4509_v28, %v4508_v17  ;;  %v8618_v48 = vpack.i.bf16 %v2931_v57, %v2930_v56  ;;  %v8342_v17 = vunpack.i.h.bf16 %v8340_v44  ;;  %v8341_v28 = vunpack.i.l.bf16 %v8340_v44  ;;  %v2932_v56 = vld [vmem:[#allocation3 + $0x1ca] sm:$0xff]  ;;  %5111 = vmatpush.bf16.msra.mxu2 %v7896_v54 }
 0x4bc   :  { %v10723_v54 = vld [vmem:[#allocation3 + $0x109] sm:$0xff] }
 0x4bd   :  { %8494 = vrot.lane.b32.xlu2 %v8493_v33, %s8922_s30  ;;  %5056 = vmatmul.bf16.gmra.mxu1 %v4718_v15  ;;  %v8302_v33 = vunpack.i.h.bf16 %v10598_v26  ;;  %v10696_v15 = vld [vmem:[#allocation3 + $0xf1] sm:$0xff]  ;;  %v4457_v57 = vsel %vm71_vm4, %v4405_v2, %v8341_v28  ;;  %v8321_v2 = vunpack.i.l.bf16 %v10593_v60 }
 0x4be   :  { %8609 = vrot.lane.b32.xlu1 %v10276_v41, %s8921_s14  ;;  %5091 = vmatmul.bf16.gmra.mxu2 %v4739_v43  ;;  %v8337_v41 = vunpack.i.h.bf16 %v8335_v23  ;;  %v8301_v43 = vunpack.i.l.bf16 %v10598_v26  ;;  %v8523_v63 = vpack.i.bf16 %v10698_v36, %v10696_v15 }
 0x4bf   :  { %8604 = vrot.lane.b32.xlu0 %v8603_v1, %s8920_s13  ;;  %v10658_v21 = vpop.permute.xlu2 %8329 }
 0x4c0   :  { %v10681_v23 = vpop.f32.mrf.mxu1  ;;  %v4406_v7 = vsel %vm40_vm3, %v10353_v52, %v8337_v41  ;;  %v4444_v52 = vsel %vm71_vm4, %v4392_v49, %v8297_v38 }
 0x4c1   :  { %v4497_v4 = vsel %vm4461_vm5, %v4444_v52, %v8302_v33  ;;  %v4458_v41 = vsel %vm71_vm4, %v4406_v7, %v8342_v17  ;;  %v8322_v7 = vunpack.i.h.bf16 %v10593_v60  ;;  %v8326_v60 = vunpack.i.l.bf16 %v10604_v27 }
 0x4c2   :  { %v8370_v17 = vpop.permute.xlu1 %8369 }
 0x4c5   :  { %8509 = vrot.lane.b32.xlu2 %v8508_v30, %s8922_s30 }
 0x4c6   :  { %8624 = vrot.lane.b32.xlu1 %v10311_v6, %s8921_s14  ;;  %v4443_v6 = vsel %vm71_vm4, %v4391_v11, %v8296_v61  ;;  %v8633_v61 = vpack.i.bf16 %v2933_v19, %v2932_v56  ;;  %v7895_v11 = vld [vmem:[%s11782_s3 + $0x40] sm:$0xff]  ;;  %v7910_v56 = vld [vmem:[%s11784_s5 + $0x28] sm:$0xff]  ;;  %v8327_v19 = vunpack.i.h.bf16 %v10604_v27  ;;  %s8923_s3 = smov [#allocation7]  }
 0x4c7   :  { %8619 = vrot.lane.b32.xlu0 %v8618_v48, %s8920_s13  ;;  %v8345_v44 = vpop.permute.xlu2 %8344  ;;  %v4496_v42 = vsel %vm4461_vm5, %v4443_v6, %v8301_v43  ;;  %v8365_v48 = vpop.permute.xlu0 %8364  ;;  %v2934_v43 = vld [vmem:[#allocation3 + $0x1e2] sm:$0xff]  ;;  %5112 = vmatpush.bf16.msra.mxu2 %v7895_v11  ;;  %s6732_s25 = sshll.u32 %s8923_s3, 4  ;;  %s6733_s25 = int_to_ptr.vmem [resolvable:$true] %s6732_s25 }
 0x4c8   :  { %v8347_v26 = vunpack.i.h.bf16 %v8345_v44  ;;  %v8346_v1 = vunpack.i.l.bf16 %v8345_v44  ;;  %v4721_v49 = vpack.c.bf16 %v4497_v4, %v4496_v42  ;;  %v10717_v28 = vpop.f32.mrf.mxu1  ;;  %v10725_v44 = vld [vmem:[#allocation3 + $0x111] sm:$0xff]  ;;  %v4394_v42 = vsel %vm40_vm3, %v10335_v8, %v8322_v7  ;;  %6078 = vmatpush.bf16.msrb.mxu3 %v7910_v56  ;;  %v10756_v11 = vld [vmem:[#allocation3 + $0x129] sm:$0xff] }
 0x4c9   :  { %v8538_v6 = vpack.i.bf16 %v10725_v44, %v10723_v54  ;;  %v4393_v4 = vsel %vm40_vm3, %v10333_v12, %v8321_v2 }
 0x4ca   :  { %v4510_v53 = vsel %vm4461_vm5, %v4457_v57, %v8346_v1  ;;  %v4511_v30 = vsel %vm4461_vm5, %v4458_v41, %v8347_v26  ;;  %v2935_v26 = vld [vmem:[#allocation3 + $0x1ea] sm:$0xff]  ;;  %v8366_v1 = vunpack.i.l.bf16 %v8365_v48  ;;  %v8372_v57 = vunpack.i.h.bf16 %v8370_v17 }
 0x4cb   :  { %v4742_v38 = vpack.c.bf16 %v4511_v30, %v4510_v53  ;;  %v8648_v52 = vpack.i.bf16 %v2935_v26, %v2934_v43  ;;  %v8371_v41 = vunpack.i.l.bf16 %v8370_v17  ;;  %v8332_v30 = vunpack.i.h.bf16 %v10658_v21  ;;  %v2936_v17 = vld [vmem:[#allocation3 + $0x1fa] sm:$0xff] }
 0x4cc   :  { %v4407_v8 = vsel %vm40_vm3, %v10380_v25, %v8366_v1  ;;  %v2937_v25 = vld [vmem:[#allocation3 + $0x202] sm:$0xff] }
 0x4cd   :  { %8524 = vrot.lane.b32.xlu2 %v8523_v63, %s8922_s30  ;;  %5061 = vmatmul.bf16.gmra.mxu1 %v4721_v49  ;;  %v10754_v49 = vld [vmem:[#allocation3 + $0x121] sm:$0xff]  ;;  %v4459_v2 = vsel %vm71_vm4, %v4407_v8, %v8371_v41  ;;  %v8663_v56 = vpack.i.bf16 %v2937_v25, %v2936_v17  ;;  %v8351_v41 = vunpack.i.l.bf16 %v10666_v10  ;;  %v8356_v17 = vunpack.i.l.bf16 %v10679_v31 }
 0x4ce   :  { %8639 = vrot.lane.b32.xlu1 %v10341_v47, %s8921_s14  ;;  %5096 = vmatmul.bf16.gmra.mxu2 %v4742_v38  ;;  %v8367_v47 = vunpack.i.h.bf16 %v8365_v48  ;;  %v8331_v48 = vunpack.i.l.bf16 %v10658_v21  ;;  %v10752_v38 = vpop.permute.xlu1 %8384 }
 0x4cf   :  { %8634 = vrot.lane.b32.xlu0 %v8633_v61, %s8920_s13  ;;  %v10719_v33 = vpop.permute.xlu2 %8359  ;;  %v10738_v53 = vpop.permute.xlu0 %8379  ;;  %v4395_v25 = vsel %vm40_vm3, %v10364_v24, %v8351_v41 }
 0x4d0   :  { %v4408_v27 = vsel %vm40_vm3, %v10382_v22, %v8367_v47  ;;  %v10750_v12 = vpop.f32.mrf.mxu1  ;;  %v4446_v22 = vsel %vm71_vm4, %v4394_v42, %v8327_v19 }
 0x4d1   :  { %v4499_v7 = vsel %vm4461_vm5, %v4446_v22, %v8332_v30  ;;  %v4460_v26 = vsel %vm71_vm4, %v4408_v27, %v8372_v57  ;;  %v8352_v57 = vunpack.i.h.bf16 %v10666_v10  ;;  %v10776_v30 = vld [vmem:[#allocation3 + $0x139] sm:$0xff]  ;;  %v8357_v22 = vunpack.i.h.bf16 %v10679_v31 }
 0x4d2   :  { %v2939_v27 = vld [vmem:[#allocation3 + $0x21a] sm:$0xff] }
 0x4d3   :  { %v4396_v10 = vsel %vm40_vm3, %v10366_v59, %v8352_v57 }
 0x4d5   :  { %8539 = vrot.lane.b32.xlu2 %v8538_v6, %s8922_s30  ;;  %v8553_v6 = vpack.i.bf16 %v10756_v11, %v10754_v49 }
 0x4d6   :  { %8654 = vrot.lane.b32.xlu1 %v10372_v55, %s8921_s14  ;;  %v4445_v55 = vsel %vm71_vm4, %v4393_v4, %v8326_v60  ;;  %v2938_v4 = vld [vmem:[#allocation3 + $0x212] sm:$0xff] }
 0x4d7   :  { %8649 = vrot.lane.b32.xlu0 %v8648_v52, %s8920_s13  ;;  %v8375_v63 = vpop.permute.xlu2 %8374  ;;  %v4498_v43 = vsel %vm4461_vm5, %v4445_v55, %v8331_v48  ;;  %v8395_v60 = vpop.permute.xlu0 %8394  ;;  %v10778_v48 = vld [vmem:[#allocation3 + $0x141] sm:$0xff]  ;;  %v8678_v55 = vpack.i.bf16 %v2939_v27, %v2938_v4  ;;  %v4447_v4 = vsel %vm71_vm4, %v4395_v25, %v8356_v17  ;;  %v2940_v27 = vld [vmem:[#allocation3 + $0x22a] sm:$0xff] }
 0x4d8   :  { %v8377_v21 = vunpack.i.h.bf16 %v8375_v63  ;;  %v8376_v61 = vunpack.i.l.bf16 %v8375_v63  ;;  %v4724_v19 = vpack.c.bf16 %v4499_v7, %v4498_v43  ;;  %v10780_v8 = vpop.f32.mrf.mxu1  ;;  %v8397_v63 = vunpack.i.h.bf16 %v8395_v60 }
 0x4da   :  { %v4512_v47 = vsel %vm4461_vm5, %v4459_v2, %v8376_v61  ;;  %v4513_v1 = vsel %vm4461_vm5, %v4460_v26, %v8377_v21  ;;  %v8396_v21 = vunpack.i.l.bf16 %v8395_v60  ;;  %v8568_v61 = vpack.i.bf16 %v10778_v48, %v10776_v30  ;;  %v2848_v2 = vld [vmem:[#allocation3 + $0x19] sm:$0xff]  ;;  %v2849_v26 = vld [vmem:[#allocation3 + $0x21] sm:$0xff] }
 0x4db   :  { %v4745_v52 = vpack.c.bf16 %v4513_v1, %v4512_v47  ;;  %v8362_v47 = vunpack.i.h.bf16 %v10719_v33  ;;  %v8361_v1 = vunpack.i.l.bf16 %v10719_v33  ;;  %v4515_v31 = vsel %vm40_vm3, %v2849_v26, %v8397_v63  ;;  %v2994_v60 = vld [vmem:[#allocation3 + $0x248] sm:$0xff] }
 0x4dc   :  { %v4514_v59 = vsel %vm40_vm3, %v2848_v2, %v8396_v21  ;;  %v4448_v33 = vsel %vm71_vm4, %v4396_v10, %v8357_v22  ;;  %v3030_v2 = vld [vmem:[#allocation3 + $0x159] sm:$0xff] }
 0x4dd   :  { %8554 = vrot.lane.b32.xlu2 %v8553_v6, %s8922_s30  ;;  %5066 = vmatmul.bf16.gmra.mxu1 %v4724_v19  ;;  %v2993_v19 = vld [vmem:[#allocation3 + $0x240] sm:$0xff]  ;;  %v4500_v63 = vsel %vm4461_vm5, %v4447_v4, %v8361_v1  ;;  %v4501_v21 = vsel %vm4461_vm5, %v4448_v33, %v8362_v47  ;;  %v2943_v1 = vld [vmem:[#allocation3 + $0x24a] sm:$0xff] }
 0x4de   :  { %8669 = vrot.lane.b32.xlu1 %v10403_v3, %s8921_s14  ;;  %5101 = vmatmul.bf16.gmra.mxu2 %v4745_v52  ;;  %v8400_v3 = vpop.permute.xlu1 %8399  ;;  %v8698_v22 = vpack.i.bf16 %v2994_v60, %v2993_v19  ;;  %v4727_v26 = vpack.c.bf16 %v4501_v21, %v4500_v63  ;;  %v2942_v47 = vld [vmem:[#allocation3 + $0x242] sm:$0xff]  ;;  %v8386_v63 = vunpack.i.l.bf16 %v10752_v38 }
 0x4df   :  { %8664 = vrot.lane.b32.xlu0 %v8663_v56, %s8920_s13  ;;  %v10772_v42 = vpop.permute.xlu2 %8389  ;;  %v8402_v43 = vunpack.i.h.bf16 %v8400_v3  ;;  %v8401_v7 = vunpack.i.l.bf16 %v8400_v3  ;;  %v3029_v56 = vld [vmem:[#allocation3 + $0x151] sm:$0xff] }
 0x4e0   :  { %v10800_v57 = vpop.f32.mrf.mxu1  ;;  %v2941_v3 = vld [vmem:[#allocation3 + $0x232] sm:$0xff]  ;;  %v8583_v25 = vpack.i.bf16 %v3030_v2, %v3029_v56 }
 0x4e1   :  { %v4567_v41 = vsel %vm71_vm4, %v4515_v31, %v8402_v43  ;;  %v8693_v10 = vpack.i.bf16 %v2941_v3, %v2940_v27  ;;  %v8410_v43 = vpop.permute.xlu0 %8409  ;;  %v8382_v31 = vunpack.i.h.bf16 %v10738_v53  ;;  %v8708_v27 = vpack.i.bf16 %v2943_v1, %v2942_v47  ;;  %v2945_v1 = vld [vmem:[#allocation3 + $0x262] sm:$0xff] }
 0x4e2   :  { %v8412_v19 = vunpack.i.h.bf16 %v8410_v43  ;;  %v8411_v60 = vunpack.i.l.bf16 %v8410_v43  ;;  %v8387_v3 = vunpack.i.h.bf16 %v10752_v38  ;;  %v2998_v43 = vld [vmem:[#allocation3 + $0x278] sm:$0xff] }
 0x4e3   :  { %v4398_v21 = vsel %vm40_vm3, %v10395_v13, %v8382_v31 }
 0x4e4   :  { %v4516_v38 = vsel %vm40_vm3, %v10461_v29, %v8411_v60  ;;  %v4450_v47 = vsel %vm71_vm4, %v4398_v21, %v8387_v3  ;;  %v3036_v21 = vld [vmem:[#allocation3 + $0x1d1] sm:$0xff] }
 0x4e5   :  { %8569 = vrot.lane.b32.xlu2 %v8568_v61, %s8922_s30 }
 0x4e6   :  { %8684 = vrot.lane.b32.xlu1 %v10443_v37, %s8921_s14  ;;  %v4566_v37 = vsel %vm71_vm4, %v4514_v59, %v8401_v7  ;;  %v2995_v7 = vld [vmem:[#allocation3 + $0x258] sm:$0xff]  ;;  %v8381_v59 = vunpack.i.l.bf16 %v10738_v53  ;;  %v8415_v56 = vpop.permute.xlu1 %8414  ;;  %v7881_v53 = vld [vmem:[%s11779_s0 + $0x3a0] sm:$0xff] }
 0x4e7   :  { %8679 = vrot.lane.b32.xlu0 %v8678_v55, %s8920_s13  ;;  %v8405_v24 = vpop.permute.xlu2 %8404  ;;  %v8416_v2 = vunpack.i.l.bf16 %v8415_v56  ;;  %7347 = vmatmul.msk.bf16.gmra.mxu3 %vm939_vm2, %v7881_v53 }
 0x4e8   :  { %v8407_v6 = vunpack.i.h.bf16 %v8405_v24  ;;  %v8406_v52 = vunpack.i.l.bf16 %v8405_v24  ;;  %v10813_v24 = vld [vmem:[#allocation3 + $0x199] sm:$0xff]  ;;  %v10817_v4 = vpop.f32.mrf.mxu1 }
 0x4e9   :  { %v8425_v3 = vpop.permute.xlu0 %8424 }
 0x4ea   :  { %v4618_v61 = vsel %vm4461_vm5, %v4566_v37, %v8406_v52  ;;  %v4619_v55 = vsel %vm4461_vm5, %v4567_v41, %v8407_v6  ;;  %v10815_v6 = vld [vmem:[#allocation3 + $0x1a1] sm:$0xff] }
 0x4eb   :  { %v4671_v17 = vpack.c.bf16 %v4619_v55, %v4618_v61  ;;  %v2996_v52 = vld [vmem:[#allocation3 + $0x260] sm:$0xff]  ;;  %v8598_v37 = vpack.i.bf16 %v10815_v6, %v10813_v24  ;;  %v4397_v61 = vsel %vm40_vm3, %v10393_v62, %v8381_v59  ;;  %v8417_v55 = vunpack.i.h.bf16 %v8415_v56  ;;  %v10840_v62 = vld [vmem:[#allocation3 + $0x1b1] sm:$0xff] }
 0x4ec   :  { %v8713_v41 = vpack.i.bf16 %v2996_v52, %v2995_v7  ;;  %v4449_v7 = vsel %vm71_vm4, %v4397_v61, %v8386_v63  ;;  %v4568_v59 = vsel %vm71_vm4, %v4516_v38, %v8416_v2  ;;  %v3035_v63 = vld [vmem:[#allocation3 + $0x1c9] sm:$0xff]  ;;  %v2946_v2 = vld [vmem:[#allocation3 + $0x272] sm:$0xff]  ;;  %v8426_v38 = vunpack.i.l.bf16 %v8425_v3 }
 0x4ed   :  { %8584 = vrot.lane.b32.xlu2 %v8583_v25, %s8922_s30  ;;  %5071 = vmatmul.bf16.gmra.mxu1 %v4727_v26  ;;  %v8391_v25 = vunpack.i.l.bf16 %v10772_v42  ;;  %v10842_v26 = vld [vmem:[#allocation3 + $0x1b9] sm:$0xff]  ;;  %v2999_v61 = vld [vmem:[#allocation3 + $0x288] sm:$0xff] }
 0x4ee   :  { %8699 = vrot.lane.b32.xlu1 %v8698_v22, %s8921_s14  ;;  %5113 = vmatmul.bf16.vlgmr.msra.gmra.mxu2 %v4671_v17  ;;  %v8392_v17 = vunpack.i.h.bf16 %v10772_v42  ;;  %v4517_v22 = vsel %vm40_vm3, %v10463_v46, %v8412_v19  ;;  %v2997_v42 = vld [vmem:[#allocation3 + $0x270] sm:$0xff]  ;;  %v2944_v46 = vld [vmem:[#allocation3 + $0x25a] sm:$0xff] }
 0x4ef   :  { %8694 = vrot.lane.b32.xlu0 %v8693_v10, %s8920_s13  ;;  %v8420_v33 = vpop.permute.xlu2 %8419  ;;  %v4502_v29 = vsel %vm4461_vm5, %v4449_v7, %v8391_v25  ;;  %v4569_v52 = vsel %vm71_vm4, %v4517_v22, %v8417_v55  ;;  %v3000_v55 = vld [vmem:[#allocation3 + $0x290] sm:$0xff]  ;;  %v8430_v25 = vpop.permute.xlu1 %8429  ;;  %v8427_v22 = vunpack.i.h.bf16 %v8425_v3  ;;  %v7882_v7 = vld [vmem:[%s11779_s0 + $0x3a8] sm:$0xff] }
 0x4f0   :  { %v8422_v13 = vunpack.i.h.bf16 %v8420_v33  ;;  %v8421_v10 = vunpack.i.l.bf16 %v8420_v33  ;;  %v4503_v31 = vsel %vm4461_vm5, %v4450_v47, %v8392_v17  ;;  %v8613_v33 = vpack.i.bf16 %v10842_v26, %v10840_v62  ;;  %v2947_v17 = vld [vmem:[#allocation3 + $0x27a] sm:$0xff]  ;;  %v2949_v3 = vld [vmem:[#allocation3 + $0x292] sm:$0xff] }
 0x4f1   :  { %v8738_v47 = vpack.i.bf16 %v2947_v17, %v2946_v2 }
 0x4f2   :  { %v4620_v56 = vsel %vm4461_vm5, %v4568_v59, %v8421_v10  ;;  %v4621_v19 = vsel %vm4461_vm5, %v4569_v52, %v8422_v13  ;;  %v11810_v59 = vld [vmem:[#allocation23_spill] sm:$0xff] }
 0x4f3   :  { %v4674_v53 = vpack.c.bf16 %v4621_v19, %v4620_v56  ;;  %v4518_v52 = vsel %vm40_vm3, %v11810_v59, %v8426_v38 }
 0x4f5   :  { %8599 = vrot.lane.b32.xlu2 %v8598_v37, %s8922_s30  ;;  %v8728_v37 = vpack.i.bf16 %v2998_v43, %v2997_v42  ;;  %v8628_v42 = vpack.i.bf16 %v3036_v21, %v3035_v63  ;;  %v8743_v43 = vpack.i.bf16 %v3000_v55, %v2999_v61  ;;  %v3058_v61 = vld [vmem:[#allocation3 + $0x3a] sm:$0xff] }
 0x4f6   :  { %8714 = vrot.lane.b32.xlu1 %v8713_v41, %s8921_s14  ;;  %v8723_v41 = vpack.i.bf16 %v2945_v1, %v2944_v46  ;;  %v8432_v46 = vunpack.i.h.bf16 %v8430_v25  ;;  %v8431_v1 = vunpack.i.l.bf16 %v8430_v25 }
 0x4f7   :  { %8709 = vrot.lane.b32.xlu0 %v8708_v27, %s8920_s13  ;;  %v4730_v27 = vpack.c.bf16 %v4503_v31, %v4502_v29  ;;  %v8435_v13 = vpop.permute.xlu2 %8434  ;;  %v11809_v29 = vld [vmem:[#allocation24_spill] sm:$0xff]  ;;  %7348 = vmatmul.msk.bf16.gmra.mxu3 %vm939_vm2, %v7882_v7 }
 0x4f8   :  { %v4519_v31 = vsel %vm40_vm3, %v11809_v29, %v8427_v22  ;;  %v8437_v56 = vunpack.i.h.bf16 %v8435_v13  ;;  %v8436_v19 = vunpack.i.l.bf16 %v8435_v13  ;;  %v4570_v63 = vsel %vm71_vm4, %v4518_v52, %v8431_v1  ;;  %v3040_v7 = vld [vmem:[#allocation3 + $0x201] sm:$0xff]  ;;  %v8445_v1 = vpop.permute.xlu1 %8444 }
 0x4f9   :  { %v4571_v21 = vsel %vm71_vm4, %v4519_v31, %v8432_v46  ;;  %v2951_v46 = vld [vmem:[#allocation3 + $0x2aa] sm:$0xff] }
 0x4fa   :  { %v5039_v60 = vpop.f32.mrf.mxu1  ;;  %v4622_v55 = vsel %vm4461_vm5, %v4570_v63, %v8436_v19  ;;  %v4623_v2 = vsel %vm4461_vm5, %v4571_v21, %v8437_v56  ;;  %v3041_v63 = vld [vmem:[#allocation3 + $0x211] sm:$0xff]  ;;  %v3042_v21 = vld [vmem:[#allocation3 + $0x219] sm:$0xff] }
 0x4fb   :  { %v3037_v60 = vld [vmem:[#allocation3 + $0x1e1] sm:$0xff] }
 0x4fd   :  { %8614 = vrot.lane.b32.xlu2 %v8613_v33, %s8922_s30  ;;  %5076 = vmatmul.bf16.gmra.mxu1 %v4730_v27  ;;  %v3057_v33 = vld [vmem:[#allocation3 + $0x32] sm:$0xff]  ;;  %v3002_v27 = vld [vmem:[#allocation3 + $0x2a8] sm:$0xff] }
 0x4fe   :  { %8729 = vrot.lane.b32.xlu1 %v8728_v37, %s8921_s14  ;;  %5118 = vmatmul.bf16.gmra.mxu2 %v4674_v53  ;;  %v3038_v37 = vld [vmem:[#allocation3 + $0x1e9] sm:$0xff]  ;;  %v4672_v13 = vpack.c.bf16 %v3058_v61, %v3057_v33  ;;  %v8447_v33 = vunpack.i.h.bf16 %v8445_v1 }
 0x4ff   :  { %8724 = vrot.lane.b32.xlu0 %v8723_v41, %s8920_s13  ;;  %v3001_v41 = vld [vmem:[#allocation3 + $0x2a0] sm:$0xff]  ;;  %v2948_v53 = vld [vmem:[#allocation3 + $0x28a] sm:$0xff]  ;;  %v8643_v25 = vpack.i.bf16 %v3038_v37, %v3037_v60  ;;  %v8450_v59 = vpop.permute.xlu2 %8449  ;;  %v8446_v37 = vunpack.i.l.bf16 %v8445_v1 }
 0x500   :  { %v8758_v22 = vpack.i.bf16 %v3002_v27, %v3001_v41  ;;  %v8753_v38 = vpack.i.bf16 %v2949_v3, %v2948_v53  ;;  %v7883_v60 = vld [vmem:[%s11779_s0 + $0x3b0] sm:$0xff]  ;;  %v8452_v53 = vunpack.i.h.bf16 %v8450_v59  ;;  %v8451_v3 = vunpack.i.l.bf16 %v8450_v59 }
 0x502   :  { %v5040_v10 = vpop.f32.mrf.mxu1 }
 0x503   :  { %v4677_v10 = vpack.c.bf16 %v4623_v2, %v4622_v55  ;;  %v3059_v2 = vld [vmem:[#allocation3 + $0x4a] sm:$0xff] }
 0x505   :  { %8629 = vrot.lane.b32.xlu2 %v8628_v42, %s8922_s30  ;;  %v8440_v42 = vpop.permute.xlu0 %8439 }
 0x506   :  { %8744 = vrot.lane.b32.xlu1 %v8743_v43, %s8921_s14  ;;  %v3039_v43 = vld [vmem:[#allocation3 + $0x1f9] sm:$0xff]  ;;  %v8442_v29 = vunpack.i.h.bf16 %v8440_v42  ;;  %v8441_v31 = vunpack.i.l.bf16 %v8440_v42 }
 0x507   :  { %8739 = vrot.lane.b32.xlu0 %v8738_v47, %s8920_s13  ;;  %v2950_v47 = vld [vmem:[#allocation3 + $0x2a2] sm:$0xff]  ;;  %v8658_v56 = vpack.i.bf16 %v3040_v7, %v3039_v43  ;;  %7349 = vmatmul.msk.bf16.gmra.mxu3 %vm939_vm2, %v7883_v60  ;;  %v3044_v7 = vld [vmem:[#allocation3 + $0x231] sm:$0xff] }
 0x508   :  { %v8773_v19 = vpack.i.bf16 %v2951_v46, %v2950_v47  ;;  %v4521_v41 = vsel %vm40_vm3, %v10514_v40, %v8442_v29  ;;  %v4520_v27 = vsel %vm40_vm3, %v10512_v18, %v8441_v31  ;;  %v3043_v43 = vld [vmem:[#allocation3 + $0x229] sm:$0xff]  ;;  %v8460_v47 = vpop.permute.xlu1 %8459  ;;  %v8465_v31 = vpop.permute.xlu2 %8464 }
 0x509   :  { %v4572_v61 = vsel %vm71_vm4, %v4520_v27, %v8446_v37  ;;  %v4573_v55 = vsel %vm71_vm4, %v4521_v41, %v8447_v33  ;;  %v8462_v60 = vunpack.i.h.bf16 %v8460_v47  ;;  %v8461_v33 = vunpack.i.l.bf16 %v8460_v47 }
 0x50a   :  { %v10872_v17 = vpop.f32.mrf.mxu1  ;;  %v8467_v27 = vunpack.i.h.bf16 %v8465_v31 }
 0x50d   :  { %8644 = vrot.lane.b32.xlu2 %v8643_v25, %s8922_s30  ;;  %7423 = vmatmul.msk.bf16.vlgmr.msrb.gmra.mxu1 %vm40_vm3, %v4672_v13  ;;  %v3060_v25 = vld [vmem:[#allocation3 + $0x52] sm:$0xff]  ;;  %v8673_v13 = vpack.i.bf16 %v3042_v21, %v3041_v63  ;;  %v8455_v42 = vpop.permute.xlu0 %8454  ;;  %v3046_v63 = vld [vmem:[#allocation3 + $0x249] sm:$0xff] }
 0x50e   :  { %8759 = vrot.lane.b32.xlu1 %v8758_v22, %s8921_s14  ;;  %5123 = vmatmul.bf16.gmra.mxu2 %v4677_v10  ;;  %v4624_v22 = vsel %vm4461_vm5, %v4572_v61, %v8451_v3  ;;  %v4675_v18 = vpack.c.bf16 %v3060_v25, %v3059_v2  ;;  %v8457_v46 = vunpack.i.h.bf16 %v8455_v42  ;;  %v8456_v1 = vunpack.i.l.bf16 %v8455_v42  ;;  %v3045_v3 = vld [vmem:[#allocation3 + $0x241] sm:$0xff]  ;;  %v3062_v2 = vld [vmem:[#allocation3 + $0x6a] sm:$0xff]  ;;  %v3047_v42 = vld [vmem:[#allocation3 + $0x259] sm:$0xff] }
 0x50f   :  { %8754 = vrot.lane.b32.xlu0 %v8753_v38, %s8920_s13  ;;  %v4625_v38 = vsel %vm4461_vm5, %v4573_v55, %v8452_v53  ;;  %v8466_v53 = vunpack.i.l.bf16 %v8465_v31  ;;  %v3061_v55 = vld [vmem:[#allocation3 + $0x62] sm:$0xff] }
 0x510   :  { %v4680_v10 = vpack.c.bf16 %v4625_v38, %v4624_v22  ;;  %v4523_v37 = vsel %vm40_vm3, %v10544_v35, %v8457_v46  ;;  %v4522_v41 = vsel %vm40_vm3, %v10537_v39, %v8456_v1  ;;  %v8703_v39 = vpack.i.bf16 %v3046_v63, %v3045_v3  ;;  %v8480_v31 = vpop.permute.xlu2 %8479  ;;  %v3049_v63 = vld [vmem:[#allocation3 + $0x271] sm:$0xff] }
 0x511   :  { %v4574_v21 = vsel %vm71_vm4, %v4522_v41, %v8461_v33  ;;  %v4575_v61 = vsel %vm71_vm4, %v4523_v37, %v8462_v60  ;;  %v7909_v60 = vld [vmem:[%s11784_s5 + $0x20] sm:$0xff]  ;;  %v8481_v3 = vunpack.i.l.bf16 %v8480_v31 }
 0x512   :  { %v10878_v52 = vpop.f32.mrf.mxu1  ;;  %v4626_v22 = vsel %vm4461_vm5, %v4574_v21, %v8466_v53  ;;  %v4627_v35 = vsel %vm4461_vm5, %v4575_v61, %v8467_v27  ;;  %6079 = vmatpush.bf16.msrb.mxu3 %v7909_v60  ;;  %v8482_v53 = vunpack.i.h.bf16 %v8480_v31  ;;  %v3050_v21 = vld [vmem:[#allocation3 + $0x279] sm:$0xff] }
 0x515   :  { %8659 = vrot.lane.b32.xlu2 %v8658_v56, %s8922_s30  ;;  %v8688_v56 = vpack.i.bf16 %v3044_v7, %v3043_v43  ;;  %v3048_v43 = vld [vmem:[#allocation3 + $0x261] sm:$0xff]  ;;  %v8475_v7 = vpop.permute.xlu1 %8474 }
 0x516   :  { %8774 = vrot.lane.b32.xlu1 %v8773_v19, %s8920_s13  ;;  %v7884_v19 = vld [vmem:[%s11779_s0 + $0x3b8] sm:$0xff]  ;;  %v8477_v33 = vunpack.i.h.bf16 %v8475_v7  ;;  %v8476_v37 = vunpack.i.l.bf16 %v8475_v7 }
 0x517   :  { %7350 = vmatmul.msk.bf16.gmra.mxu3 %vm939_vm2, %v7884_v19  ;;  %v8718_v19 = vpack.i.bf16 %v3048_v43, %v3047_v42  ;;  %v3051_v43 = vld [vmem:[#allocation3 + $0x289] sm:$0xff]  ;;  %v3052_v7 = vld [vmem:[#allocation3 + $0x291] sm:$0xff] }
 0x518   :  { %v8495_v60 = vpop.permute.xlu2 %8494 }
 0x51a   :  { %v10894_v40 = vpop.f32.mrf.mxu1 }
 0x51d   :  { %8674 = vrot.lane.b32.xlu2 %v8673_v13, %s8922_s30  ;;  %7424 = vmatmul.msk.bf16.gmra.mxu1 %vm40_vm3, %v4675_v18  ;;  %v4678_v13 = vpack.c.bf16 %v3062_v2, %v3061_v55  ;;  %v4683_v18 = vpack.c.bf16 %v4627_v35, %v4626_v22  ;;  %v3063_v2 = vld [vmem:[#allocation3 + $0x7a] sm:$0xff]  ;;  %v3064_v22 = vld [vmem:[#allocation3 + $0x82] sm:$0xff] }
 0x51e   :  { %5128 = vmatmul.bf16.gmra.mxu2 %v4680_v10  ;;  %v8470_v10 = vpop.permute.xlu0 %8469 }
 0x51f   :  { %v8472_v47 = vunpack.i.h.bf16 %v8470_v10  ;;  %v8471_v46 = vunpack.i.l.bf16 %v8470_v10 }
 0x521   :  { %v10898_v29 = vpop.f32.mrf.mxu2  ;;  %v4525_v41 = vsel %vm40_vm3, %v10576_v32, %v8472_v47  ;;  %v4524_v27 = vsel %vm40_vm3, %v10574_v45, %v8471_v46  ;;  %v4681_v45 = vpack.c.bf16 %v3064_v22, %v3063_v2  ;;  %v8490_v47 = vpop.permute.xlu1 %8489 }
 0x522   :  { %11811 = vst [vmem:[#allocation24_spill] sm:$0xff] %v10898_v29  ;;  %v10900_v59 = vpop.f32.mrf.mxu1  ;;  %v4576_v61 = vsel %vm71_vm4, %v4524_v27, %v8476_v37  ;;  %v4577_v55 = vsel %vm71_vm4, %v4525_v41, %v8477_v33  ;;  %v8748_v37 = vpack.i.bf16 %v3052_v7, %v3051_v43  ;;  %v8492_v41 = vunpack.i.h.bf16 %v8490_v47 }
 0x523   :  { %v8491_v27 = vunpack.i.l.bf16 %v8490_v47 }
 0x525   :  { %8689 = vrot.lane.b32.xlu2 %v8688_v56, %s8922_s30 }
 0x526   :  { %v8485_v42 = vpop.permute.xlu0 %8484 }
 0x527   :  { %v8487_v46 = vunpack.i.h.bf16 %v8485_v42  ;;  %v8486_v31 = vunpack.i.l.bf16 %v8485_v42 }
 0x529   :  { %v10913_v25 = vpop.f32.mrf.mxu2  ;;  %v8505_v47 = vpop.permute.xlu1 %8504 }
 0x52a   :  { %11812 = vst [vmem:[#allocation23_spill] sm:$0xff] %v10913_v25  ;;  %v10917_v38 = vpop.f32.mrf.mxu1 }
 0x52d   :  { %8704 = vrot.lane.b32.xlu2 %v8703_v39, %s8922_s30  ;;  %7425 = vmatmul.msk.bf16.gmra.mxu1 %vm40_vm3, %v4678_v13  ;;  %v4628_v39 = vsel %vm4461_vm5, %v4576_v61, %v8481_v3  ;;  %v4629_v13 = vsel %vm4461_vm5, %v4577_v55, %v8482_v53  ;;  %v4527_v53 = vsel %vm40_vm3, %v10606_v58, %v8487_v46  ;;  %v3053_v61 = vld [vmem:[#allocation3 + $0x2a1] sm:$0xff]  ;;  %v3054_v55 = vld [vmem:[#allocation3 + $0x2a9] sm:$0xff] }
 0x52e   :  { %5133 = vmatmul.bf16.gmra.mxu2 %v4683_v18  ;;  %v8733_v18 = vpack.i.bf16 %v3050_v21, %v3049_v63  ;;  %v4686_v10 = vpack.c.bf16 %v4629_v13, %v4628_v39  ;;  %v4526_v3 = vsel %vm40_vm3, %v10600_v0, %v8486_v31  ;;  %v8497_v63 = vunpack.i.h.bf16 %v8495_v60  ;;  %v3065_v39 = vld [vmem:[#allocation3 + $0x92] sm:$0xff]  ;;  %v3066_v13 = vld [vmem:[#allocation3 + $0x9a] sm:$0xff]  ;;  %v8500_v7 = vpop.permute.xlu0 %8499 }
 0x52f   :  { %v8496_v21 = vunpack.i.l.bf16 %v8495_v60  ;;  %v4578_v2 = vsel %vm71_vm4, %v4526_v3, %v8491_v27  ;;  %v4579_v22 = vsel %vm71_vm4, %v4527_v53, %v8492_v41  ;;  %v8763_v42 = vpack.i.bf16 %v3054_v55, %v3053_v61 }
 0x530   :  { %v4684_v0 = vpack.c.bf16 %v3066_v13, %v3065_v39  ;;  %v8502_v46 = vunpack.i.h.bf16 %v8500_v7  ;;  %v8501_v31 = vunpack.i.l.bf16 %v8500_v7  ;;  %v8507_v27 = vunpack.i.h.bf16 %v8505_v47  ;;  %v3068_v39 = vld [vmem:[#allocation3 + $0xb2] sm:$0xff] }
 0x531   :  { %v10921_v1 = vpop.f32.mrf.mxu2  ;;  %v8506_v53 = vunpack.i.l.bf16 %v8505_v47 }
 0x532   :  { %11813 = vst [vmem:[#allocation26_spill] sm:$0xff] %v10921_v1  ;;  %v10923_v56 = vpop.f32.mrf.mxu1  ;;  %v4529_v3 = vsel %vm40_vm3, %v10637_v34, %v8502_v46 }
 0x535   :  { %8719 = vrot.lane.b32.xlu2 %v8718_v19, %s8922_s30 }
 0x539   :  { %v10935_v35 = vpop.f32.mrf.mxu2 }
 0x53a   :  { %11814 = vst [vmem:[#allocation27_spill] sm:$0xff] %v10935_v35  ;;  %v10939_v32 = vpop.f32.mrf.mxu1 }
 0x53d   :  { %8734 = vrot.lane.b32.xlu2 %v8733_v18, %s8922_s30  ;;  %7426 = vmatmul.msk.bf16.gmra.mxu1 %vm40_vm3, %v4681_v45  ;;  %v4630_v45 = vsel %vm4461_vm5, %v4578_v2, %v8496_v21  ;;  %v4581_v2 = vsel %vm71_vm4, %v4529_v3, %v8507_v27 }
 0x53e   :  { %5138 = vmatmul.bf16.gmra.mxu2 %v4686_v10  ;;  %v4631_v10 = vsel %vm4461_vm5, %v4579_v22, %v8497_v63  ;;  %v4528_v63 = vsel %vm40_vm3, %v10635_v14, %v8501_v31  ;;  %v3067_v22 = vld [vmem:[#allocation3 + $0xaa] sm:$0xff]  ;;  %v8515_v14 = vpop.permute.xlu0 %8514 }
 0x53f   :  { %v4689_v43 = vpack.c.bf16 %v4631_v10, %v4630_v45  ;;  %v4580_v55 = vsel %vm71_vm4, %v4528_v63, %v8506_v53  ;;  %v4687_v34 = vpack.c.bf16 %v3068_v39, %v3067_v22  ;;  %v8517_v7 = vunpack.i.h.bf16 %v8515_v14  ;;  %v3069_v22 = vld [vmem:[#allocation3 + $0xc2] sm:$0xff]  ;;  %v3070_v39 = vld [vmem:[#allocation3 + $0xca] sm:$0xff] }
 0x540   :  { %v8516_v47 = vunpack.i.l.bf16 %v8515_v14  ;;  %v4690_v14 = vpack.c.bf16 %v3070_v39, %v3069_v22  ;;  %v3071_v39 = vld [vmem:[#allocation3 + $0xda] sm:$0xff] }
 0x541   :  { %v10943_v19 = vpop.f32.mrf.mxu2  ;;  %v4531_v3 = vsel %vm40_vm3, %v10664_v50, %v8517_v7 }
 0x542   :  { %11815 = vst [vmem:[#allocation28_spill] sm:$0xff] %v10943_v19  ;;  %v10945_v33 = vpop.f32.mrf.mxu1  ;;  %v4530_v63 = vsel %vm40_vm3, %v10662_v5, %v8516_v47 }
 0x545   :  { %8749 = vrot.lane.b32.xlu2 %v8748_v37, %s8922_s30  ;;  %v8510_v37 = vpop.permute.xlu2 %8509 }
 0x546   :  { %v8512_v21 = vunpack.i.h.bf16 %v8510_v37  ;;  %v8511_v61 = vunpack.i.l.bf16 %v8510_v37  ;;  %v8530_v5 = vpop.permute.xlu0 %8529 }
 0x547   :  { %v8532_v7 = vunpack.i.h.bf16 %v8530_v5  ;;  %v8531_v47 = vunpack.i.l.bf16 %v8530_v5 }
 0x548   :  { %v4632_v45 = vsel %vm4461_vm5, %v4580_v55, %v8511_v61  ;;  %v4633_v10 = vsel %vm4461_vm5, %v4581_v2, %v8512_v21 }
 0x549   :  { %v10954_v18 = vpop.f32.mrf.mxu2 }
 0x54a   :  { %11816 = vst [vmem:[#allocation29_spill] sm:$0xff] %v10954_v18  ;;  %v10958_v58 = vpop.f32.mrf.mxu1 }
 0x54d   :  { %8764 = vrot.lane.b32.xlu2 %v8763_v42, %s8922_s30  ;;  %7427 = vmatmul.msk.bf16.gmra.mxu1 %vm40_vm3, %v4684_v0  ;;  %v4692_v0 = vpack.c.bf16 %v4633_v10, %v4632_v45  ;;  %v8525_v31 = vpop.permute.xlu2 %8524 }
 0x54e   :  { %5143 = vmatmul.bf16.gmra.mxu2 %v4689_v43  ;;  %v8520_v43 = vpop.permute.xlu1 %8519  ;;  %v8527_v21 = vunpack.i.h.bf16 %v8525_v31  ;;  %v8526_v61 = vunpack.i.l.bf16 %v8525_v31 }
 0x54f   :  { %v8522_v27 = vunpack.i.h.bf16 %v8520_v43  ;;  %v8521_v53 = vunpack.i.l.bf16 %v8520_v43 }
 0x551   :  { %v10962_v60 = vpop.f32.mrf.mxu2  ;;  %v4582_v55 = vsel %vm71_vm4, %v4530_v63, %v8521_v53  ;;  %v4583_v2 = vsel %vm71_vm4, %v4531_v3, %v8522_v27  ;;  %v4533_v63 = vsel %vm40_vm3, %v10698_v36, %v8532_v7 }
 0x552   :  { %11817 = vst [vmem:[#allocation30_spill] sm:$0xff] %v10962_v60  ;;  %v10964_v41 = vpop.f32.mrf.mxu1  ;;  %v4634_v10 = vsel %vm4461_vm5, %v4582_v55, %v8526_v61 }
 0x555   :  { %v8540_v31 = vpop.permute.xlu2 %8539 }
 0x556   :  { %v8535_v43 = vpop.permute.xlu1 %8534  ;;  %v8542_v61 = vunpack.i.h.bf16 %v8540_v31  ;;  %v8541_v55 = vunpack.i.l.bf16 %v8540_v31 }
 0x557   :  { %v8537_v53 = vunpack.i.h.bf16 %v8535_v43  ;;  %v8536_v3 = vunpack.i.l.bf16 %v8535_v43  ;;  %v8545_v43 = vpop.permute.xlu0 %8544 }
 0x558   :  { %v8547_v31 = vunpack.i.h.bf16 %v8545_v43 }
 0x559   :  { %v10972_v13 = vpop.f32.mrf.mxu2  ;;  %v4585_v22 = vsel %vm71_vm4, %v4533_v63, %v8537_v53  ;;  %v8546_v53 = vunpack.i.l.bf16 %v8545_v43 }
 0x55a   :  { %11818 = vst [vmem:[#allocation31_spill] sm:$0xff] %v10972_v13  ;;  %v10976_v42 = vpop.f32.mrf.mxu1 }
 0x55d   :  { %7428 = vmatmul.msk.bf16.gmra.mxu1 %vm40_vm3, %v4687_v34  ;;  %v4635_v34 = vsel %vm4461_vm5, %v4583_v2, %v8527_v21  ;;  %v4532_v21 = vsel %vm40_vm3, %v10696_v15, %v8531_v47  ;;  %v8555_v63 = vpop.permute.xlu2 %8554 }
 0x55e   :  { %5148 = vmatmul.bf16.gmra.mxu2 %v4692_v0  ;;  %v4695_v50 = vpack.c.bf16 %v4635_v34, %v4634_v10  ;;  %v4584_v2 = vsel %vm71_vm4, %v4532_v21, %v8536_v3  ;;  %v8550_v47 = vpop.permute.xlu1 %8549 }
 0x561   :  { %v5102_v46 = vpop.f32.mrf.mxu2 }
 0x562   :  { %v10979_v37 = vpop.f32.mrf.mxu1 }
 0x569   :  { %v5103_v45 = vpop.f32.mrf.mxu2 }
 0x56a   :  { %v10989_v0 = vpop.f32.mrf.mxu1  ;;  %v3072_v45 = vld [vmem:[#allocation3 + $0xe2] sm:$0xff]  ;;  %v11002_v10 = vpop.f32.mrf.mxu3 }
 0x56b   :  { %v4693_v5 = vpack.c.bf16 %v3072_v45, %v3071_v39  ;;  %v8557_v39 = vunpack.i.h.bf16 %v8555_v63  ;;  %v8556_v45 = vunpack.i.l.bf16 %v8555_v63 }
 0x56d   :  { %7429 = vmatmul.msk.bf16.gmra.mxu1 %vm40_vm3, %v4690_v14  ;;  %v4636_v14 = vsel %vm4461_vm5, %v4584_v2, %v8541_v55  ;;  %v8552_v55 = vunpack.i.h.bf16 %v8550_v47  ;;  %v8551_v2 = vunpack.i.l.bf16 %v8550_v47 }
 0x56e   :  { %5153 = vmatmul.bf16.gmra.mxu2 %v4695_v50  ;;  %v4637_v50 = vsel %vm4461_vm5, %v4585_v22, %v8542_v61  ;;  %v4535_v61 = vsel %vm40_vm3, %v10725_v44, %v8547_v31  ;;  %v4534_v22 = vsel %vm40_vm3, %v10723_v54, %v8546_v53  ;;  %v8560_v54 = vpop.permute.xlu0 %8559  ;;  %v8565_v53 = vpop.permute.xlu1 %8564 }
 0x56f   :  { %v4698_v15 = vpack.c.bf16 %v4637_v50, %v4636_v14  ;;  %v4586_v14 = vsel %vm71_vm4, %v4534_v22, %v8551_v2  ;;  %v4587_v50 = vsel %vm71_vm4, %v4535_v61, %v8552_v55  ;;  %v8562_v63 = vunpack.i.h.bf16 %v8560_v54  ;;  %v8570_v22 = vpop.permute.xlu2 %8569 }
 0x570   :  { %v4638_v13 = vsel %vm4461_vm5, %v4586_v14, %v8556_v45  ;;  %v4639_v18 = vsel %vm4461_vm5, %v4587_v50, %v8557_v39  ;;  %v8561_v2 = vunpack.i.l.bf16 %v8560_v54  ;;  %v8567_v14 = vunpack.i.h.bf16 %v8565_v53 }
 0x571   :  { %v10992_v46 = vpop.f32.mrf.mxu2  ;;  %v4701_v31 = vpack.c.bf16 %v4639_v18, %v4638_v13  ;;  %v8566_v39 = vunpack.i.l.bf16 %v8565_v53  ;;  %v4537_v50 = vsel %vm40_vm3, %v10756_v11, %v8562_v63  ;;  %v8572_v13 = vunpack.i.h.bf16 %v8570_v22  ;;  %v3075_v11 = vld [vmem:[#allocation3 + $0x10a] sm:$0xff]  ;;  %v3076_v53 = vld [vmem:[#allocation3 + $0x112] sm:$0xff] }
 0x572   :  { %v10994_v27 = vpop.f32.mrf.mxu1  ;;  %v11011_v7 = vpop.f32.mrf.mxu3  ;;  %v4536_v18 = vsel %vm40_vm3, %v10754_v49, %v8561_v2  ;;  %v4589_v54 = vsel %vm71_vm4, %v4537_v50, %v8567_v14  ;;  %v11819_v63 = vld [vmem:[#allocation10_spill] sm:$0xff]  ;;  %v11820_v2 = vld [vmem:[#allocation12_spill] sm:$0xff]  ;;  %v4699_v14 = vpack.c.bf16 %v3076_v53, %v3075_v11 }
 0x573   :  { %v5115_v49 = vadd.f32 %v10992_v46, %v11819_v63  ;;  %v4641_v25 = vsel %vm4461_vm5, %v4589_v54, %v8572_v13 }
 0x576   :  { %v8575_v29 = vpop.permute.xlu0 %8574  ;;  %v8580_v13 = vpop.permute.xlu1 %8579 }
 0x577   :  { %v8585_v11 = vpop.permute.xlu2 %8584 }
 0x579   :  { %v11004_v34 = vpop.f32.mrf.mxu2 }
 0x57a   :  { %v11008_v36 = vpop.f32.mrf.mxu1  ;;  %v11023_v47 = vpop.f32.mrf.mxu3 }
 0x57d   :  { %7430 = vmatmul.msk.bf16.gmra.mxu1 %vm40_vm3, %v4693_v5  ;;  %v3073_v5 = vld [vmem:[#allocation3 + $0xf2] sm:$0xff] }
 0x57e   :  { %5158 = vmatmul.bf16.gmra.mxu2 %v4698_v15  ;;  %v3074_v15 = vld [vmem:[#allocation3 + $0xfa] sm:$0xff] }
 0x57f   :  { %v4696_v44 = vpack.c.bf16 %v3074_v15, %v3073_v5  ;;  %v8571_v5 = vunpack.i.l.bf16 %v8570_v22  ;;  %v7908_v15 = vld [vmem:[%s11784_s5 + $0x18] sm:$0xff] }
 0x580   :  { %6080 = vmatpush.bf16.msrb.mxu3 %v7908_v15 }
 0x581   :  { %v5119_v3 = vpop.f32.mrf.mxu2 }
 0x582   :  { %v11013_v21 = vpop.f32.mrf.mxu1  ;;  %v11028_v61 = vpop.f32.mrf.mxu3  ;;  %v5120_v22 = vadd.f32 %v5119_v3, %v11820_v2  ;;  %v7920_v3 = vld [vmem:[%s11784_s5 + $0x78] sm:$0xff] }
 0x583   :  { %6105 = vmatpush.bf16.msra.mxu1 %v7920_v3 }
 0x589   :  { %v5121_v43 = vpop.f32.mrf.mxu2 }
 0x58a   :  { %v5249_v60 = vpop.f32.mrf.mxu1  ;;  %v1906_v1 = vpop.f32.mrf.mxu3 }
 0x58d   :  { %7431 = vmatmul.msk.bf16.gmra.mxu1 %vm40_vm3, %v4696_v44  ;;  %v7928_v44 = vld [vmem:[%s11784_s5 + $0xb8] sm:$0xff] }
 0x58e   :  { %5163 = vmatmul.bf16.gmra.mxu2 %v4701_v31  ;;  %v4588_v31 = vsel %vm71_vm4, %v4536_v18, %v8566_v39  ;;  %v5250_v39 = vadd.f32 %v5249_v60, %v5115_v49  ;;  %v11821_v60 = vld [vmem:[#allocation11_spill] sm:$0xff] }
 0x58f   :  { %6134 = vmatpush.bf16.msrb.mxu2 %v7928_v44  ;;  %v4640_v35 = vsel %vm4461_vm5, %v4588_v31, %v8571_v5  ;;  %v2032_v44 = vmax.f32 %v11002_v10, %v1906_v1  ;;  %v8577_v5 = vunpack.i.h.bf16 %v8575_v29  ;;  %v8576_v1 = vunpack.i.l.bf16 %v8575_v29 }
 0x590   :  { %v4704_v50 = vpack.c.bf16 %v4641_v25, %v4640_v35  ;;  %v5117_v10 = vadd.f32 %v11004_v34, %v11821_v60  ;;  %v11822_v25 = vld [vmem:[#allocation13_spill] sm:$0xff] }
 0x591   :  { %v11026_v55 = vpop.f32.mrf.mxu2  ;;  %2152 = vst.msk [vmem:[#allocation2 + $0x3a0] sm:$0xff] %vm40_vm3, %v2032_v44  ;;  %v5122_v35 = vadd.f32 %v5121_v43, %v11822_v25  ;;  %v4539_v29 = vsel %vm40_vm3, %v10778_v48, %v8577_v5  ;;  %v4538_v34 = vsel %vm40_vm3, %v10776_v30, %v8576_v1  ;;  %v8587_v43 = vunpack.i.h.bf16 %v8585_v11  ;;  %v11077_v25 = vld [vmem:[%s11783_s4] ss:$0 sm:$0xff] }
 0x592   :  { %v5251_v45 = vpop.f32.mrf.mxu1  ;;  %v1908_v54 = vpop.f32.mrf.mxu3  ;;  %v8586_v44 = vunpack.i.l.bf16 %v8585_v11 }
 0x593   :  { %v2033_v63 = vmax.f32 %v11011_v7, %v1908_v54  ;;  %v5252_v49 = vadd.f32 %v5251_v45, %v5117_v10  ;;  %v3077_v45 = vld [vmem:[#allocation3 + $0x122] sm:$0xff] }
 0x595   :  { %2153 = vst.msk [vmem:[#allocation2 + $0x3a8] sm:$0xff] %vm40_vm3, %v2033_v63 }
 0x599   :  { %v11045_v19 = vpop.f32.mrf.mxu2 }
 0x59a   :  { %v5254_v15 = vpop.f32.mrf.mxu1  ;;  %v1911_v3 = vpop.f32.mrf.mxu3 }
 0x59b   :  { %v5255_v18 = vadd.f32 %v5254_v15, %v5120_v22  ;;  %v8582_v22 = vunpack.i.h.bf16 %v8580_v13  ;;  %v8581_v15 = vunpack.i.l.bf16 %v8580_v13 }
 0x59c   :  { %v2272_v5 = vld [vmem:[#allocation2 + $0x3a0] ss:$2 sm:$0xff]  ;;  %v2392_v1 = vld [vmem:[#allocation2 + $0x3a1] ss:$2 sm:$0xff] }
 0x59d   :  { %v5375_v46 = vmax.f32 %v5250_v39, %v5255_v18  ;;  %7432 = vmatmul.msk.bf16.gmra.mxu1 %vm40_vm3, %v4699_v14  ;;  %v4590_v18 = vsel %vm71_vm4, %v4538_v34, %v8581_v15  ;;  %v4591_v7 = vsel %vm71_vm4, %v4539_v29, %v8582_v22  ;;  %v3078_v14 = vld [vmem:[#allocation3 + $0x12a] sm:$0xff]  ;;  %v2453_v10 = vmax.f32 %v2272_v5, %v2392_v1 }
 0x59e   :  { %5168 = vmatmul.bf16.gmra.mxu2 %v4704_v50  ;;  %v4642_v48 = vsel %vm4461_vm5, %v4590_v18, %v8586_v44  ;;  %v4702_v30 = vpack.c.bf16 %v3078_v14, %v3077_v45  ;;  %v2875_v5 = vld [vmem:[#allocation3 + $0x189] sm:$0xff] }
 0x59f   :  { %5399 = vst.msk [vmem:[#allocation4] sm:$0xff] %vm71_vm4, %v5375_v46  ;;  %v4643_v46 = vsel %vm4461_vm5, %v4591_v7, %v8587_v43  ;;  %v2034_v7 = vmax.f32 %v11023_v47, %v1911_v3  ;;  %v3079_v3 = vld [vmem:[#allocation3 + $0x13a] sm:$0xff] }
 0x5a0   :  { %v4707_v60 = vpack.c.bf16 %v4643_v46, %v4642_v48 }
 0x5a1   :  { %v11059_v31 = vpop.f32.mrf.mxu2  ;;  %2154 = vst.msk [vmem:[#allocation2 + $0x3b0] sm:$0xff] %vm40_vm3, %v2034_v7 }
 0x5a2   :  { %v5256_v53 = vpop.f32.mrf.mxu1  ;;  %v1913_v44 = vpop.f32.mrf.mxu3 }
 0x5a3   :  { %v5257_v2 = vadd.f32 %v5256_v53, %v5122_v35  ;;  %v8590_v35 = vpop.permute.xlu0 %8589  ;;  %v8870_v53 = vld [vmem:[%s11781_s2] ss:$0 sm:$0xff]  ;;  %v2035_v45 = vmax.f32 %v11028_v61, %v1913_v44  ;;  %s6734_s2 = sshll.u32 %s11790_s11, 4  ;;  %s6735_s2 = int_to_ptr.hbm [resolvable:$true] %s6734_s2 }
 0x5a4   :  { %v2517_v63 = vadd.f32 %v8870_v53, %v2453_v10  ;;  %v8592_v15 = vunpack.i.h.bf16 %v8590_v35  ;;  %v8591_v29 = vunpack.i.l.bf16 %v8590_v35 }
 0x5a5   :  { %v5376_v39 = vmax.f32 %v5252_v49, %v5257_v2  ;;  %v8595_v2 = vpop.permute.xlu1 %8594  ;;  %2155 = vst.msk [vmem:[#allocation2 + $0x3b8] sm:$0xff] %vm40_vm3, %v2035_v45 }
 0x5a6   :  { %v2577_v22 = vmax.f32 %v2517_v63, 0.0  ;;  %v8597_v48 = vunpack.i.h.bf16 %v8595_v2  ;;  %v8596_v46 = vunpack.i.l.bf16 %v8595_v2  ;;  %v4541_v1 = vsel %vm40_vm3, %v2875_v5, %v8592_v15 }
 0x5a7   :  { %5400 = vst.msk [vmem:[#allocation4 + $0x8] sm:$0xff] %vm71_vm4, %v5376_v39  ;;  %v8600_v39 = vpop.permute.xlu2 %8599 }
 0x5a8   :  { %2637 = vst.msk [vmem:[#allocation3 + $0x2b8] sm:$0xff] %vm40_vm3, %v2577_v22  ;;  %v8602_v10 = vunpack.i.h.bf16 %v8600_v39  ;;  %v8601_v35 = vunpack.i.l.bf16 %v8600_v39  ;;  %v4593_v61 = vsel %vm71_vm4, %v4541_v1, %v8597_v48 }
 0x5a9   :  { %v11070_v50 = vpop.f32.mrf.mxu2 }
 0x5aa   :  { %v5259_v13 = vpop.f32.mrf.mxu1 }
 0x5ad   :  { %7433 = vmatmul.msk.bf16.gmra.mxu1 %vm40_vm3, %v4702_v30  ;;  %v2874_v30 = vld [vmem:[#allocation3 + $0x181] sm:$0xff]  ;;  %v8610_v1 = vpop.permute.xlu1 %8609 }
 0x5ae   :  { %v5423_v54 = vld [vmem:[#allocation4] ss:$2 sm:$0xff]  ;;  %v5447_v11 = vld [vmem:[#allocation4 + $0x1] ss:$2 sm:$0xff]  ;;  %5173 = vmatmul.bf16.gmra.mxu2 %v4707_v60  ;;  %v4540_v60 = vsel %vm40_vm3, %v2874_v30, %v8591_v29  ;;  %v4645_v29 = vsel %vm4461_vm5, %v4593_v61, %v8602_v10 }
 0x5af   :  { %v5470_v49 = vmax.f32 %v5423_v54, %v5447_v11  ;;  %v4592_v47 = vsel %vm71_vm4, %v4540_v60, %v8596_v46  ;;  %v3080_v54 = vld [vmem:[#allocation3 + $0x142] sm:$0xff]  ;;  %v11823_v11 = vld [vmem:[#allocation14_spill] sm:$0xff]  ;;  %v11825_v10 = vld [vmem:[#allocation15_spill] sm:$0xff] }
 0x5b0   :  { %v5125_v63 = vadd.f32 %v11026_v55, %v11823_v11  ;;  %v4644_v15 = vsel %vm4461_vm5, %v4592_v47, %v8601_v35  ;;  %v4705_v7 = vpack.c.bf16 %v3080_v54, %v3079_v3  ;;  %v2274_v46 = vld [vmem:[#allocation2 + $0x3b0] ss:$2 sm:$0xff]  ;;  %v2394_v55 = vld [vmem:[#allocation2 + $0x3b1] ss:$2 sm:$0xff]  ;;  %v8615_v3 = vpop.permute.xlu2 %8614 }
 0x5b1   :  { %v5486_v34 = vadd.f32 %v11077_v25, %v5470_v49  ;;  %v11084_v43 = vpop.f32.mrf.mxu2  ;;  %v11824_v49 = vld [vmem:[#allocation16_spill] sm:$0xff]  ;;  %v4710_v45 = vpack.c.bf16 %v4645_v29, %v4644_v15  ;;  %v2454_v30 = vmax.f32 %v2274_v46, %v2394_v55  ;;  %v11826_v35 = vld [vmem:[#allocation17_spill] sm:$0xff]  ;;  %v8611_v15 = vunpack.i.l.bf16 %v8610_v1 }
 0x5b2   :  { %v5261_v18 = vpop.f32.mrf.mxu1  ;;  %v5130_v2 = vadd.f32 %v11059_v31, %v11824_v49  ;;  %v5260_v44 = vadd.f32 %v5259_v13, %v5125_v63  ;;  %v5127_v13 = vadd.f32 %v11045_v19, %v11825_v10  ;;  %v5132_v47 = vadd.f32 %v11070_v50, %v11826_v35 }
 0x5b3   :  { %v5498_v14 = vmax.f32 %v5486_v34, 0.0  ;;  %v2518_v5 = vadd.f32 %v8870_v53, %v2454_v30  ;;  %v8617_v19 = vunpack.i.h.bf16 %v8615_v3 }
 0x5b4   :  { %v5262_v63 = vadd.f32 %v5261_v18, %v5127_v13 }
 0x5b5   :  { %5510 = vst.msk [vmem:[#allocation5] sm:$0xff] %vm71_vm4, %v5498_v14  ;;  %v8605_v14 = vpop.permute.xlu0 %8604  ;;  %v2578_v11 = vmax.f32 %v2518_v5, 0.0  ;;  %v8625_v13 = vpop.permute.xlu1 %8624 }
 0x5b6   :  { %v8607_v31 = vunpack.i.h.bf16 %v8605_v14  ;;  %v8606_v60 = vunpack.i.l.bf16 %v8605_v14 }
 0x5b7   :  { %2638 = vst.msk [vmem:[#allocation3 + $0x2c0] sm:$0xff] %vm40_vm3, %v2578_v11 }
 0x5b8   :  { %v4543_v29 = vsel %vm40_vm3, %v10815_v6, %v8607_v31  ;;  %v4542_v53 = vsel %vm40_vm3, %v10813_v24, %v8606_v60  ;;  %v8630_v11 = vpop.permute.xlu2 %8629 }
 0x5b9   :  { %v11100_v22 = vpop.f32.mrf.mxu2  ;;  %v4594_v50 = vsel %vm71_vm4, %v4542_v53, %v8611_v15  ;;  %v8626_v15 = vunpack.i.l.bf16 %v8625_v13 }
 0x5ba   :  { %v5264_v34 = vpop.f32.mrf.mxu1 }
 0x5bb   :  { %v5265_v39 = vadd.f32 %v5264_v34, %v5130_v2  ;;  %v8612_v2 = vunpack.i.h.bf16 %v8610_v1  ;;  %v8616_v34 = vunpack.i.l.bf16 %v8615_v3 }
 0x5bd   :  { %v5377_v48 = vmax.f32 %v5260_v44, %v5265_v39  ;;  %7434 = vmatmul.msk.bf16.gmra.mxu1 %vm40_vm3, %v4705_v7  ;;  %v4595_v18 = vsel %vm71_vm4, %v4543_v29, %v8612_v2  ;;  %v3081_v39 = vld [vmem:[#allocation3 + $0x152] sm:$0xff]  ;;  %v8620_v5 = vpop.permute.xlu0 %8619  ;;  %v8627_v2 = vunpack.i.h.bf16 %v8625_v13 }
 0x5be   :  { %5176 = vmatmul.bf16.gmra.mxu2 %v4710_v45  ;;  %v4646_v45 = vsel %vm4461_vm5, %v4594_v50, %v8616_v34  ;;  %v4647_v6 = vsel %vm4461_vm5, %v4595_v18, %v8617_v19  ;;  %v3055_v24 = vld [vmem:[#allocation3 + $0x2b9] sm:$0xff]  ;;  %v3056_v55 = vld [vmem:[#allocation3 + $0x2c1] sm:$0xff]  ;;  %v8622_v35 = vunpack.i.h.bf16 %v8620_v5  ;;  %v8632_v19 = vunpack.i.h.bf16 %v8630_v11  ;;  %v7919_v50 = vld [vmem:[%s11784_s5 + $0x70] sm:$0xff] }
 0x5bf   :  { %5401 = vst.msk [vmem:[#allocation4 + $0x10] sm:$0xff] %vm71_vm4, %v5377_v48  ;;  %v3082_v48 = vld [vmem:[#allocation3 + $0x15a] sm:$0xff]  ;;  %v4713_v30 = vpack.c.bf16 %v4647_v6, %v4646_v45  ;;  %v8788_v31 = vpack.i.bf16 %v3056_v55, %v3055_v24  ;;  %v8631_v34 = vunpack.i.l.bf16 %v8630_v11  ;;  %6106 = vmatpush.bf16.msra.mxu1 %v7919_v50  ;;  %v11827_v45 = vld [vmem:[#allocation18_spill] sm:$0xff] }
 0x5c0   :  { %v4708_v46 = vpack.c.bf16 %v3082_v48, %v3081_v39  ;;  %v4545_v29 = vsel %vm40_vm3, %v10842_v26, %v8622_v35  ;;  %v3083_v39 = vld [vmem:[#allocation3 + $0x19a] sm:$0xff]  ;;  %v5135_v6 = vadd.f32 %v11084_v43, %v11827_v45  ;;  %v11828_v48 = vld [vmem:[#allocation20_spill] sm:$0xff]  ;;  %v5530_v13 = vld [vmem:[#allocation5 + $0x1] sm:$0xff] }
 0x5c1   :  { %v5139_v61 = vpop.f32.mrf.mxu2  ;;  %8789 = vrot.lane.b32.xlu1 %v8788_v31, %s8922_s30  ;;  %v4597_v26 = vsel %vm71_vm4, %v4545_v29, %v8627_v2  ;;  %v3003_v11 = vld [vmem:[#allocation3 + $0x2b8] sm:$0xff] }
 0x5c2   :  { %v5266_v54 = vpop.f32.mrf.mxu1 }
 0x5c3   :  { %v5267_v49 = vadd.f32 %v5266_v54, %v5132_v47  ;;  %v8621_v47 = vunpack.i.l.bf16 %v8620_v5 }
 0x5c5   :  { %v5378_v44 = vmax.f32 %v5262_v63, %v5267_v49  ;;  %v4544_v53 = vsel %vm40_vm3, %v10840_v62, %v8621_v47  ;;  %v3084_v62 = vld [vmem:[#allocation3 + $0x1a2] sm:$0xff]  ;;  %v8635_v47 = vpop.permute.xlu0 %8634 }
 0x5c6   :  { %v4596_v18 = vsel %vm71_vm4, %v4544_v53, %v8626_v15  ;;  %v8636_v2 = vunpack.i.l.bf16 %v8635_v47  ;;  %v11829_v15 = vld [vmem:[#allocation19_spill] sm:$0xff]  ;;  %v11830_v53 = vld [vmem:[#allocation21_spill] sm:$0xff] }
 0x5c7   :  { %5402 = vst.msk [vmem:[#allocation4 + $0x18] sm:$0xff] %vm71_vm4, %v5378_v44  ;;  %v7927_v44 = vld [vmem:[%s11784_s5 + $0xb0] sm:$0xff]  ;;  %v4648_v55 = vsel %vm4461_vm5, %v4596_v18, %v8631_v34  ;;  %v5137_v29 = vadd.f32 %v11100_v22, %v11829_v15 }
 0x5c8   :  { %6135 = vmatpush.bf16.msrb.mxu2 %v7927_v44  ;;  %v8645_v44 = vpop.permute.xlu2 %8644 }
 0x5c9   :  { %v11118_v7 = vpop.f32.mrf.mxu2 }
 0x5ca   :  { %v5269_v14 = vpop.f32.mrf.mxu1 }
 0x5cb   :  { %v5270_v5 = vadd.f32 %v5269_v14, %v5135_v6  ;;  %v3004_v14 = vld [vmem:[#allocation3 + $0x2c0] sm:$0xff]  ;;  %v8871_v6 = vld [vmem:[#allocation3 + $0x1d1] sm:$0xff] }
 0x5cd   :  { %7435 = vmatmul.msk.bf16.gmra.mxu1 %vm40_vm3, %v4708_v46  ;;  %v5140_v46 = vadd.f32 %v5139_v61, %v11828_v48  ;;  %v8637_v61 = vunpack.i.h.bf16 %v8635_v47 }
 0x5ce   :  { %v5425_v1 = vld [vmem:[#allocation4 + $0x10] ss:$2 sm:$0xff]  ;;  %v5449_v60 = vld [vmem:[#allocation4 + $0x11] ss:$2 sm:$0xff]  ;;  %5181 = vmatmul.bf16.gmra.mxu2 %v4713_v30  ;;  %v4649_v30 = vsel %vm4461_vm5, %v4597_v26, %v8632_v19  ;;  %v5142_v19 = vadd.f32 %v11118_v7, %v11830_v53 }
 0x5cf   :  { %v5471_v10 = vmax.f32 %v5425_v1, %v5449_v60  ;;  %v4711_v60 = vpack.c.bf16 %v3084_v62, %v3083_v39  ;;  %v8783_v39 = vpack.i.bf16 %v3004_v14, %v3003_v11  ;;  %v4547_v48 = vsel %vm40_vm3, %v8871_v6, %v8637_v61  ;;  %v8650_v61 = vpop.permute.xlu0 %8649  ;;  %v8874_v6 = vld [vmem:[#allocation3 + $0x1e1] sm:$0xff] }
 0x5d0   :  { %v8652_v15 = vunpack.i.h.bf16 %v8650_v61 }
 0x5d1   :  { %v5487_v3 = vadd.f32 %v11077_v25, %v5471_v10  ;;  %v11125_v54 = vpop.f32.mrf.mxu2  ;;  %v4716_v10 = vpack.c.bf16 %v4649_v30, %v4648_v55  ;;  %v8647_v30 = vunpack.i.h.bf16 %v8645_v44 }
 0x5d2   :  { %v5271_v63 = vpop.f32.mrf.mxu1 }
 0x5d3   :  { %v5499_v49 = vmax.f32 %v5487_v3, 0.0  ;;  %v5272_v18 = vadd.f32 %v5271_v63, %v5137_v29  ;;  %v8651_v29 = vunpack.i.l.bf16 %v8650_v61 }
 0x5d5   :  { %5511 = vst.msk [vmem:[#allocation5 + $0x10] sm:$0xff] %vm71_vm4, %v5499_v49  ;;  %v8640_v49 = vpop.permute.xlu1 %8639 }
 0x5d6   :  { %v8642_v62 = vunpack.i.h.bf16 %v8640_v49  ;;  %v8641_v45 = vunpack.i.l.bf16 %v8640_v49 }
 0x5d8   :  { %v4599_v63 = vsel %vm71_vm4, %v4547_v48, %v8642_v62  ;;  %v8873_v62 = vld [vmem:[#allocation3 + $0x1e9] sm:$0xff]  ;;  %v4548_v48 = vsel %vm40_vm3, %v8874_v6, %v8651_v29 }
 0x5d9   :  { %v11143_v24 = vpop.f32.mrf.mxu2 }
 0x5da   :  { %v5274_v31 = vpop.f32.mrf.mxu1 }
 0x5db   :  { %v5275_v1 = vadd.f32 %v5274_v31, %v5140_v46  ;;  %v8872_v46 = vld [vmem:[#allocation3 + $0x1c9] sm:$0xff]  ;;  %v8646_v31 = vunpack.i.l.bf16 %v8645_v44  ;;  %v8660_v44 = vpop.permute.xlu2 %8659 }
 0x5dc   :  { %v11147_v35 = vld [vmem:[#allocation5 + $0x11] sm:$0xff]  ;;  %v4546_v55 = vsel %vm40_vm3, %v8872_v46, %v8636_v2  ;;  %v8662_v46 = vunpack.i.h.bf16 %v8660_v44 }
 0x5dd   :  { %v5379_v3 = vmax.f32 %v5270_v5, %v5275_v1  ;;  %7436 = vmatmul.msk.bf16.gmra.mxu1 %vm40_vm3, %v4711_v60  ;;  %v8768_v43 = vpack.i.bf16 %v11147_v35, %v5530_v13  ;;  %v4598_v7 = vsel %vm71_vm4, %v4546_v55, %v8641_v45  ;;  %v3085_v5 = vld [vmem:[#allocation3 + $0x1b2] sm:$0xff]  ;;  %v3086_v1 = vld [vmem:[#allocation3 + $0x1ba] sm:$0xff]  ;;  %v4651_v13 = vsel %vm4461_vm5, %v4599_v63, %v8647_v30  ;;  %v8655_v2 = vpop.permute.xlu1 %8654 }
 0x5de   :  { %5186 = vmatmul.bf16.gmra.mxu2 %v4716_v10  ;;  %v4650_v10 = vsel %vm4461_vm5, %v4598_v7, %v8646_v31  ;;  %v4549_v45 = vsel %vm40_vm3, %v8873_v62, %v8652_v15  ;;  %v8661_v55 = vunpack.i.l.bf16 %v8660_v44  ;;  %v7907_v30 = vld [vmem:[%s11784_s5 + $0x10] sm:$0xff] }
 0x5df   :  { %5403 = vst.msk [vmem:[#allocation4 + $0x20] sm:$0xff] %vm71_vm4, %v5379_v3  ;;  %8769 = vrot.lane.b32.xlu0 %v8768_v43, %s8921_s14  ;;  %v4714_v3 = vpack.c.bf16 %v3086_v1, %v3085_v5  ;;  %v4719_v43 = vpack.c.bf16 %v4651_v13, %v4650_v10  ;;  %6081 = vmatpush.bf16.msrb.mxu3 %v7907_v30  ;;  %v3087_v7 = vld [vmem:[#allocation3 + $0x1ca] sm:$0xff]  ;;  %v3088_v63 = vld [vmem:[#allocation3 + $0x1d2] sm:$0xff] }
 0x5e0   :  { %v11831_v5 = vld [vmem:[#allocation22_spill] sm:$0xff] }
 0x5e1   :  { %v5149_v34 = vpop.f32.mrf.mxu2  ;;  %v5145_v1 = vadd.f32 %v11125_v54, %v11831_v5  ;;  %v8875_v5 = vld [vmem:[#allocation3 + $0x201] sm:$0xff] }
 0x5e2   :  { %v5276_v50 = vpop.f32.mrf.mxu1  ;;  %v5150_v10 = vadd.f32 %v5149_v34, %v10546_v20  ;;  %v8665_v20 = vpop.permute.xlu0 %8664 }
 0x5e3   :  { %v5277_v26 = vadd.f32 %v5276_v50, %v5142_v19  ;;  %v8666_v62 = vunpack.i.l.bf16 %v8665_v20 }
 0x5e5   :  { %v5380_v22 = vmax.f32 %v5272_v18, %v5277_v26  ;;  %v8657_v26 = vunpack.i.h.bf16 %v8655_v2 }
 0x5e7   :  { %5404 = vst.msk [vmem:[#allocation4 + $0x28] sm:$0xff] %vm71_vm4, %v5380_v22  ;;  %8784 = vrot.lane.b32.xlu0 %v8783_v39, %s8921_s14  ;;  %v8656_v39 = vunpack.i.l.bf16 %v8655_v2  ;;  %v4601_v22 = vsel %vm71_vm4, %v4549_v45, %v8657_v26  ;;  %v11186_v2 = vld [vmem:[#allocation5 + $0x10] sm:$0xff]  ;;  %v8667_v26 = vunpack.i.h.bf16 %v8665_v20  ;;  %v11832_v45 = vld [vmem:[#allocation25_spill] sm:$0xff] }
 0x5e8   :  { %v5147_v6 = vadd.f32 %v11143_v24, %v11832_v45 }
 0x5e9   :  { %v11163_v60 = vpop.f32.mrf.mxu2  ;;  %v4600_v31 = vsel %vm71_vm4, %v4548_v48, %v8656_v39  ;;  %v8670_v39 = vpop.permute.xlu1 %8669 }
 0x5ea   :  { %v5279_v47 = vpop.f32.mrf.mxu1  ;;  %v5152_v48 = vadd.f32 %v11163_v60, %v10586_v16 }
 0x5ed   :  { %7437 = vmatmul.msk.bf16.gmra.mxu1 %vm40_vm3, %v4714_v3  ;;  %v4652_v3 = vsel %vm4461_vm5, %v4600_v31, %v8661_v55  ;;  %v8675_v55 = vpop.permute.xlu2 %8674 }
 0x5ee   :  { %v5427_v11 = vld [vmem:[#allocation4 + $0x20] ss:$2 sm:$0xff]  ;;  %v5451_v14 = vld [vmem:[#allocation4 + $0x21] ss:$2 sm:$0xff]  ;;  %5191 = vmatmul.bf16.gmra.mxu2 %v4719_v43  ;;  %v4653_v43 = vsel %vm4461_vm5, %v4601_v22, %v8662_v46 }
 0x5ef   :  { %v5472_v49 = vmax.f32 %v5427_v11, %v5451_v14  ;;  %v5280_v11 = vadd.f32 %v5279_v47, %v5145_v1  ;;  %v4722_v15 = vpack.c.bf16 %v4653_v43, %v4652_v3  ;;  %v4551_v1 = vsel %vm40_vm3, %v8875_v5, %v8667_v26  ;;  %v8877_v5 = vld [vmem:[#allocation3 + $0x219] sm:$0xff] }
 0x5f0   :  { %v8677_v43 = vunpack.i.h.bf16 %v8675_v55 }
 0x5f1   :  { %v5488_v53 = vadd.f32 %v11077_v25, %v5472_v49  ;;  %v11169_v19 = vpop.f32.mrf.mxu2  ;;  %v4717_v49 = vpack.c.bf16 %v3088_v63, %v3087_v7  ;;  %v8672_v7 = vunpack.i.h.bf16 %v8670_v39  ;;  %v8671_v63 = vunpack.i.l.bf16 %v8670_v39 }
 0x5f2   :  { %v5281_v50 = vpop.f32.mrf.mxu1 }
 0x5f3   :  { %v5500_v18 = vmax.f32 %v5488_v53, 0.0  ;;  %v11190_v53 = vld [vmem:[#allocation5 + $0x12] sm:$0xff]  ;;  %v5282_v31 = vadd.f32 %v5281_v50, %v5147_v6  ;;  %v4603_v60 = vsel %vm71_vm4, %v4551_v1, %v8672_v7  ;;  %v3090_v50 = vld [vmem:[#allocation3 + $0x1ea] sm:$0xff] }
 0x5f5   :  { %5512 = vst.msk [vmem:[#allocation5 + $0x20] sm:$0xff] %vm71_vm4, %v5500_v18  ;;  %v7926_v18 = vld [vmem:[%s11784_s5 + $0xa8] sm:$0xff] }
 0x5f6   :  { %6136 = vmatpush.bf16.msrb.mxu2 %v7926_v18 }
 0x5f9   :  { %v11182_v13 = vpop.f32.mrf.mxu2 }
 0x5fa   :  { %v5284_v61 = vpop.f32.mrf.mxu1 }
 0x5fb   :  { %v5285_v14 = vadd.f32 %v5284_v61, %v5150_v10  ;;  %v8876_v10 = vld [vmem:[#allocation3 + $0x1f9] sm:$0xff]  ;;  %v8676_v61 = vunpack.i.l.bf16 %v8675_v55 }
 0x5fc   :  { %v11188_v29 = vld [vmem:[#allocation5 + $0x20] sm:$0xff]  ;;  %v4550_v3 = vsel %vm40_vm3, %v8876_v10, %v8666_v62  ;;  %v8685_v62 = vpop.permute.xlu1 %8684 }
 0x5fd   :  { %v11192_v54 = vld [vmem:[#allocation5 + $0x22] sm:$0xff]  ;;  %v5381_v34 = vmax.f32 %v5280_v11, %v5285_v14  ;;  %7438 = vmatmul.msk.bf16.gmra.mxu1 %vm40_vm3, %v4717_v49  ;;  %v8803_v44 = vpack.i.bf16 %v11188_v29, %v11186_v2  ;;  %v4602_v16 = vsel %vm71_vm4, %v4550_v3, %v8671_v63  ;;  %v3089_v11 = vld [vmem:[#allocation3 + $0x1e2] sm:$0xff]  ;;  %v8687_v7 = vunpack.i.h.bf16 %v8685_v62 }
 0x5fe   :  { %v8798_v47 = vpack.i.bf16 %v11192_v54, %v11190_v53  ;;  %5196 = vmatmul.bf16.gmra.mxu2 %v4722_v15  ;;  %v4654_v49 = vsel %vm4461_vm5, %v4602_v16, %v8676_v61  ;;  %v4655_v15 = vsel %vm4461_vm5, %v4603_v60, %v8677_v43  ;;  %v8686_v63 = vunpack.i.l.bf16 %v8685_v62  ;;  %v8878_v10 = vld [vmem:[#allocation3 + $0x211] sm:$0xff] }
 0x5ff   :  { %5405 = vst.msk [vmem:[#allocation4 + $0x30] sm:$0xff] %vm71_vm4, %v5381_v34  ;;  %8804 = vrot.lane.b32.xlu1 %v8803_v44, %s8921_s14  ;;  %v4720_v34 = vpack.c.bf16 %v3090_v50, %v3089_v11  ;;  %v4725_v44 = vpack.c.bf16 %v4655_v15, %v4654_v49  ;;  %v3091_v11 = vld [vmem:[#allocation3 + $0x1fa] sm:$0xff]  ;;  %v3092_v50 = vld [vmem:[#allocation3 + $0x202] sm:$0xff]  ;;  %v5155_v49 = vadd.f32 %v11169_v19, %v10610_v51 }
 0x600   :  { %8799 = vrot.lane.b32.xlu0 %v8798_v47, %s8921_s14  ;;  %v8680_v47 = vpop.permute.xlu0 %8679  ;;  %v4723_v62 = vpack.c.bf16 %v3092_v50, %v3091_v11 }
 0x601   :  { %v5159_v46 = vpop.f32.mrf.mxu2  ;;  %v8682_v45 = vunpack.i.h.bf16 %v8680_v47  ;;  %v8681_v6 = vunpack.i.l.bf16 %v8680_v47 }
 0x602   :  { %v5286_v30 = vpop.f32.mrf.mxu1  ;;  %v5160_v15 = vadd.f32 %v5159_v46, %v10681_v23 }
 0x603   :  { %v5287_v22 = vadd.f32 %v5286_v30, %v5152_v48  ;;  %v8690_v30 = vpop.permute.xlu2 %8689  ;;  %v4553_v1 = vsel %vm40_vm3, %v8877_v5, %v8682_v45  ;;  %v4552_v3 = vsel %vm40_vm3, %v8878_v10, %v8681_v6  ;;  %v11235_v6 = vld [vmem:[#allocation5 + $0x21] sm:$0xff] }
 0x604   :  { %v8692_v43 = vunpack.i.h.bf16 %v8690_v30  ;;  %v8691_v61 = vunpack.i.l.bf16 %v8690_v30  ;;  %v4604_v16 = vsel %vm71_vm4, %v4552_v3, %v8686_v63  ;;  %v4605_v60 = vsel %vm71_vm4, %v4553_v1, %v8687_v7  ;;  %v8700_v19 = vpop.permute.xlu1 %8699 }
 0x605   :  { %v5382_v24 = vmax.f32 %v5282_v31, %v5287_v22 }
 0x606   :  { %v4657_v47 = vsel %vm4461_vm5, %v4605_v60, %v8692_v43  ;;  %v8702_v43 = vunpack.i.h.bf16 %v8700_v19  ;;  %v8880_v60 = vld [vmem:[#allocation3 + $0x229] sm:$0xff] }
 0x607   :  { %5406 = vst.msk [vmem:[#allocation4 + $0x38] sm:$0xff] %vm71_vm4, %v5382_v24  ;;  %v7918_v24 = vld [vmem:[%s11784_s5 + $0x68] sm:$0xff] }
 0x608   :  { %6107 = vmatpush.bf16.msra.mxu1 %v7918_v24  ;;  %v8695_v30 = vpop.permute.xlu0 %8694  ;;  %v8879_v24 = vld [vmem:[#allocation3 + $0x231] sm:$0xff] }
 0x609   :  { %v5161_v14 = vpop.f32.mrf.mxu2  ;;  %v8697_v23 = vunpack.i.h.bf16 %v8695_v30  ;;  %v8696_v46 = vunpack.i.l.bf16 %v8695_v30 }
 0x60a   :  { %v5289_v20 = vpop.f32.mrf.mxu1  ;;  %v5162_v7 = vadd.f32 %v5161_v14, %v10717_v28  ;;  %v3094_v14 = vld [vmem:[#allocation3 + $0x21a] sm:$0xff] }
 0x60b   :  { %v8705_v5 = vpop.permute.xlu2 %8704  ;;  %v4554_v11 = vsel %vm40_vm3, %v8880_v60, %v8696_v46  ;;  %v8882_v60 = vld [vmem:[#allocation3 + $0x241] sm:$0xff] }
 0x60c   :  { %v8707_v50 = vunpack.i.h.bf16 %v8705_v5 }
 0x60d   :  { %7439 = vmatmul.msk.bf16.gmra.mxu1 %vm40_vm3, %v4720_v34 }
 0x60e   :  { %v5429_v18 = vld [vmem:[#allocation4 + $0x30] ss:$2 sm:$0xff]  ;;  %v5453_v26 = vld [vmem:[#allocation4 + $0x31] ss:$2 sm:$0xff]  ;;  %5201 = vmatmul.bf16.gmra.mxu2 %v4725_v44  ;;  %v4656_v44 = vsel %vm4461_vm5, %v4604_v16, %v8691_v61  ;;  %v8701_v61 = vunpack.i.l.bf16 %v8700_v19  ;;  %v4555_v16 = vsel %vm40_vm3, %v8879_v24, %v8697_v23  ;;  %v8715_v23 = vpop.permute.xlu1 %8714 }
 0x60f   :  { %v5473_v39 = vmax.f32 %v5429_v18, %v5453_v26  ;;  %v5290_v26 = vadd.f32 %v5289_v20, %v5155_v49  ;;  %v4728_v45 = vpack.c.bf16 %v4657_v47, %v4656_v44  ;;  %v5157_v20 = vadd.f32 %v11182_v13, %v10652_v9  ;;  %v3093_v13 = vld [vmem:[#allocation3 + $0x212] sm:$0xff]  ;;  %v8881_v24 = vld [vmem:[#allocation3 + $0x249] sm:$0xff] }
 0x610   :  { %v8706_v49 = vunpack.i.l.bf16 %v8705_v5  ;;  %v4606_v9 = vsel %vm71_vm4, %v4554_v11, %v8701_v61  ;;  %v4607_v28 = vsel %vm71_vm4, %v4555_v16, %v8702_v43  ;;  %v8717_v43 = vunpack.i.h.bf16 %v8715_v23 }
 0x611   :  { %v5489_v48 = vadd.f32 %v11077_v25, %v5473_v39  ;;  %v11218_v55 = vpop.f32.mrf.mxu2  ;;  %v4659_v47 = vsel %vm4461_vm5, %v4607_v28, %v8707_v50  ;;  %v8716_v61 = vunpack.i.l.bf16 %v8715_v23  ;;  %v7905_v28 = vld [vmem:[%s11784_s5] sm:$0xff] }
 0x612   :  { %v5291_v31 = vpop.f32.mrf.mxu1  ;;  %v4658_v44 = vsel %vm4461_vm5, %v4606_v9, %v8706_v49  ;;  %v7925_v9 = vld [vmem:[%s11784_s5 + $0xa0] sm:$0xff] }
 0x613   :  { %v5501_v22 = vmax.f32 %v5489_v48, 0.0  ;;  %v5292_v10 = vadd.f32 %v5291_v31, %v5157_v20  ;;  %v8720_v5 = vpop.permute.xlu2 %8719  ;;  %6137 = vmatpush.bf16.msrb.mxu2 %v7925_v9 }
 0x614   :  { %v8722_v49 = vunpack.i.h.bf16 %v8720_v5 }
 0x615   :  { %5513 = vst.msk [vmem:[#allocation5 + $0x30] sm:$0xff] %vm71_vm4, %v5501_v22 }
 0x619   :  { %v11231_v34 = vpop.f32.mrf.mxu2 }
 0x61a   :  { %v5294_v18 = vpop.f32.mrf.mxu1 }
 0x61b   :  { %v5295_v39 = vadd.f32 %v5294_v18, %v5160_v15 }
 0x61c   :  { %v11237_v48 = vld [vmem:[#allocation5 + $0x31] sm:$0xff] }
 0x61d   :  { %v5383_v22 = vmax.f32 %v5290_v26, %v5295_v39  ;;  %7440 = vmatmul.msk.bf16.gmra.mxu1 %vm40_vm3, %v4723_v62  ;;  %v11242_v51 = vpack.i.bf16 %v11237_v48, %v11235_v6  ;;  %v8710_v26 = vpop.permute.xlu0 %8709  ;;  %v4726_v39 = vpack.c.bf16 %v3094_v14, %v3093_v13  ;;  %v4731_v62 = vpack.c.bf16 %v4659_v47, %v4658_v44  ;;  %v3095_v44 = vld [vmem:[#allocation3 + $0x22a] sm:$0xff]  ;;  %v3096_v47 = vld [vmem:[#allocation3 + $0x232] sm:$0xff] }
 0x61e   :  { %5206 = vmatmul.bf16.gmra.mxu2 %v4728_v45  ;;  %v8712_v19 = vunpack.i.h.bf16 %v8710_v26  ;;  %v8711_v46 = vunpack.i.l.bf16 %v8710_v26  ;;  %v5165_v26 = vadd.f32 %v11218_v55, %v10750_v12 }
 0x61f   :  { %5407 = vst.msk [vmem:[#allocation4 + $0x40] sm:$0xff] %vm71_vm4, %v5383_v22  ;;  %8779 = vrot.lane.b32.xlu2 %v11242_v51, %s8921_s14 }
 0x620   :  { %v4557_v16 = vsel %vm40_vm3, %v8881_v24, %v8712_v19  ;;  %v4556_v11 = vsel %vm40_vm3, %v8882_v60, %v8711_v46  ;;  %v4729_v46 = vpack.c.bf16 %v3096_v47, %v3095_v44  ;;  %v8883_v44 = vld [vmem:[#allocation3 + $0x261] sm:$0xff] }
 0x621   :  { %v5169_v63 = vpop.f32.mrf.mxu2  ;;  %v4608_v13 = vsel %vm71_vm4, %v4556_v11, %v8716_v61  ;;  %v4609_v14 = vsel %vm71_vm4, %v4557_v16, %v8717_v43  ;;  %v8730_v61 = vpop.permute.xlu1 %8729  ;;  %v5167_v16 = vadd.f32 %v11231_v34, %v10780_v8 }
 0x622   :  { %v5296_v1 = vpop.f32.mrf.mxu1 }
 0x623   :  { %v5297_v3 = vadd.f32 %v5296_v1, %v5162_v7 }
 0x625   :  { %v5384_v15 = vmax.f32 %v5292_v10, %v5297_v3  ;;  %v7906_v3 = vld [vmem:[%s11784_s5 + $0x8] sm:$0xff]  ;;  %v8725_v50 = vpop.permute.xlu0 %8724 }
 0x626   :  { %6082 = vmatpush.bf16.msrb.mxu3 %v7906_v3  ;;  %v8727_v43 = vunpack.i.h.bf16 %v8725_v50  ;;  %v8726_v24 = vunpack.i.l.bf16 %v8725_v50 }
 0x627   :  { %5408 = vst.msk [vmem:[#allocation4 + $0x48] sm:$0xff] %vm71_vm4, %v5384_v15  ;;  %v8721_v15 = vunpack.i.l.bf16 %v8720_v5 }
 0x628   :  { %v4559_v47 = vsel %vm40_vm3, %v8883_v44, %v8727_v43 }
 0x629   :  { %v11255_v31 = vpop.f32.mrf.mxu2 }
 0x62a   :  { %v5299_v18 = vpop.f32.mrf.mxu1  ;;  %6083 = vmatpush.bf16.msrb.mxu3 %v7905_v28  ;;  %v5172_v60 = vadd.f32 %v11255_v31, %v10817_v4  ;;  %v3097_v31 = vld [vmem:[#allocation3 + $0x242] sm:$0xff] }
 0x62b   :  { %v5300_v23 = vadd.f32 %v5299_v18, %v5165_v26  ;;  %v8884_v26 = vld [vmem:[#allocation3 + $0x259] sm:$0xff] }
 0x62c   :  { %v4558_v50 = vsel %vm40_vm3, %v8884_v26, %v8726_v24 }
 0x62d   :  { %7441 = vmatmul.msk.bf16.gmra.mxu1 %vm40_vm3, %v4726_v39  ;;  %v5170_v39 = vadd.f32 %v5169_v63, %v10800_v57  ;;  %v7917_v57 = vld [vmem:[%s11784_s5 + $0x60] sm:$0xff]  ;;  %v8740_v3 = vpop.permute.xlu0 %8739 }
 0x62e   :  { %v5431_v45 = vld [vmem:[#allocation4 + $0x40] ss:$2 sm:$0xff]  ;;  %v5455_v30 = vld [vmem:[#allocation4 + $0x41] ss:$2 sm:$0xff]  ;;  %5211 = vmatmul.bf16.gmra.mxu2 %v4731_v62  ;;  %6108 = vmatpush.bf16.msra.mxu1 %v7917_v57  ;;  %v8741_v43 = vunpack.i.l.bf16 %v8740_v3 }
 0x62f   :  { %v5474_v22 = vmax.f32 %v5431_v45, %v5455_v30  ;;  %v4660_v45 = vsel %vm4461_vm5, %v4608_v13, %v8721_v15  ;;  %v4661_v30 = vsel %vm4461_vm5, %v4609_v14, %v8722_v49  ;;  %v8735_v49 = vpop.permute.xlu2 %8734  ;;  %v8732_v13 = vunpack.i.h.bf16 %v8730_v61 }
 0x630   :  { %v4734_v5 = vpack.c.bf16 %v4661_v30, %v4660_v45  ;;  %v8731_v14 = vunpack.i.l.bf16 %v8730_v61 }
 0x631   :  { %v5490_v20 = vadd.f32 %v11077_v25, %v5474_v22  ;;  %v5174_v7 = vpop.f32.mrf.mxu2  ;;  %v4611_v34 = vsel %vm71_vm4, %v4559_v47, %v8732_v13  ;;  %v8885_v47 = vld [vmem:[#allocation3 + $0x279] sm:$0xff] }
 0x632   :  { %v5301_v1 = vpop.f32.mrf.mxu1  ;;  %v11282_v7 = vld [vmem:[#allocation5 + $0x32] sm:$0xff]  ;;  %v4610_v4 = vsel %vm71_vm4, %v4558_v50, %v8731_v14  ;;  %v5522_v14 = vld [vmem:[#allocation5] sm:$0xff] }
 0x633   :  { %v5502_v10 = vmax.f32 %v5490_v20, 0.0  ;;  %v11280_v20 = vld [vmem:[#allocation5 + $0x30] sm:$0xff]  ;;  %v5302_v9 = vadd.f32 %v5301_v1, %v5167_v16  ;;  %v3098_v1 = vld [vmem:[#allocation3 + $0x24a] sm:$0xff] }
 0x635   :  { %5514 = vst.msk [vmem:[#allocation5 + $0x40] sm:$0xff] %vm71_vm4, %v5502_v10  ;;  %v11307_v45 = vpop.permute.xlu0 %8754 }
 0x639   :  { %v5175_v62 = vpop.f32.mrf.mxu2 }
 0x63a   :  { %v5304_v22 = vpop.f32.mrf.mxu1  ;;  %v8736_v62 = vunpack.i.l.bf16 %v8735_v49 }
 0x63b   :  { %v5305_v19 = vadd.f32 %v5304_v22, %v5170_v39  ;;  %v8737_v39 = vunpack.i.h.bf16 %v8735_v49 }
 0x63c   :  { %v11284_v10 = vld [vmem:[#allocation5 + $0x40] sm:$0xff]  ;;  %v4662_v22 = vsel %vm4461_vm5, %v4610_v4, %v8736_v62 }
 0x63d   :  { %v5566_v12 = vld [vmem:[#allocation5 + $0x42] sm:$0xff]  ;;  %v5385_v55 = vmax.f32 %v5300_v23, %v5305_v19  ;;  %7442 = vmatmul.msk.bf16.gmra.mxu1 %vm40_vm3, %v4729_v46  ;;  %v8818_v63 = vpack.i.bf16 %v11284_v10, %v11280_v20  ;;  %v4663_v23 = vsel %vm4461_vm5, %v4611_v34, %v8737_v39  ;;  %v4732_v46 = vpack.c.bf16 %v3098_v1, %v3097_v31  ;;  %v3099_v1 = vld [vmem:[#allocation3 + $0x25a] sm:$0xff] }
 0x63e   :  { %v8813_v18 = vpack.i.bf16 %v5566_v12, %v11282_v7  ;;  %5216 = vmatmul.bf16.gmra.mxu2 %v4734_v5  ;;  %v4737_v5 = vpack.c.bf16 %v4663_v23, %v4662_v22  ;;  %v8886_v39 = vld [vmem:[#allocation3 + $0x271] sm:$0xff]  ;;  %v3100_v22 = vld [vmem:[#allocation3 + $0x262] sm:$0xff] }
 0x63f   :  { %5409 = vst.msk [vmem:[#allocation4 + $0x50] sm:$0xff] %vm71_vm4, %v5385_v55  ;;  %8819 = vrot.lane.b32.xlu1 %v8818_v63, %s8921_s14  ;;  %v8745_v63 = vpop.permute.xlu1 %8744 }
 0x640   :  { %8814 = vrot.lane.b32.xlu0 %v8813_v18, %s8921_s14  ;;  %v8742_v18 = vunpack.i.h.bf16 %v8740_v3  ;;  %v8746_v44 = vunpack.i.l.bf16 %v8745_v63 }
 0x641   :  { %v11300_v11 = vpop.f32.mrf.mxu2 }
 0x642   :  { %v5306_v15 = vpop.f32.mrf.mxu1  ;;  %v4561_v26 = vsel %vm40_vm3, %v8885_v47, %v8742_v18  ;;  %v7922_v47 = vld [vmem:[%s11784_s5 + $0x88] sm:$0xff] }
 0x643   :  { %v5307_v28 = vadd.f32 %v5306_v15, %v5172_v60  ;;  %v8750_v60 = vpop.permute.xlu2 %8749 }
 0x644   :  { %v8752_v62 = vunpack.i.h.bf16 %v8750_v60 }
 0x645   :  { %v5386_v8 = vmax.f32 %v5302_v9, %v5307_v28  ;;  %v8747_v28 = vunpack.i.h.bf16 %v8745_v63  ;;  %v8756_v63 = vunpack.i.l.bf16 %v11307_v45 }
 0x647   :  { %5410 = vst.msk [vmem:[#allocation4 + $0x58] sm:$0xff] %vm71_vm4, %v5386_v8  ;;  %v8751_v8 = vunpack.i.l.bf16 %v8750_v60  ;;  %v4613_v31 = vsel %vm71_vm4, %v4561_v26, %v8747_v28  ;;  %v8888_v28 = vld [vmem:[#allocation3 + $0x289] sm:$0xff] }
 0x649   :  { %v11309_v30 = vpop.f32.mrf.mxu2 }
 0x64a   :  { %v5309_v19 = vpop.f32.mrf.mxu1 }
 0x64b   :  { %v4665_v19 = vsel %vm4461_vm5, %v4613_v31, %v8752_v62 }
 0x64d   :  { %7443 = vmatmul.msk.bf16.gmra.mxu1 %vm40_vm3, %v4732_v46 }
 0x64e   :  { %v5433_v12 = vld [vmem:[#allocation4 + $0x50] ss:$2 sm:$0xff]  ;;  %v5457_v57 = vld [vmem:[#allocation4 + $0x51] ss:$2 sm:$0xff]  ;;  %5221 = vmatmul.bf16.gmra.mxu2 %v4737_v5  ;;  %v4735_v5 = vpack.c.bf16 %v3100_v22, %v3099_v1 }
 0x64f   :  { %v5475_v55 = vmax.f32 %v5433_v12, %v5457_v57  ;;  %v8760_v57 = vpop.permute.xlu1 %8759 }
 0x650   :  { %v8762_v60 = vunpack.i.h.bf16 %v8760_v57 }
 0x651   :  { %v5491_v61 = vadd.f32 %v11077_v25, %v5475_v55  ;;  %v5182_v24 = vpop.f32.mrf.mxu2  ;;  %v8770_v16 = vpop.permute.xlu0 %8769  ;;  %v4560_v25 = vsel %vm40_vm3, %v8886_v39, %v8741_v43  ;;  %v8757_v55 = vunpack.i.h.bf16 %v11307_v45  ;;  %v7924_v43 = vld [vmem:[%s11784_s5 + $0x98] sm:$0xff]  ;;  %v7923_v45 = vld [vmem:[%s11784_s5 + $0x90] sm:$0xff] }
 0x652   :  { %v8772_v49 = vunpack.i.h.bf16 %v8770_v16  ;;  %v8771_v15 = vunpack.i.l.bf16 %v8770_v16  ;;  %v5310_v9 = vpop.f32.mrf.mxu1  ;;  %v4612_v34 = vsel %vm71_vm4, %v4560_v25, %v8746_v44  ;;  %6138 = vmatpush.bf16.msrb.mxu2 %v7924_v43  ;;  %v3102_v39 = vld [vmem:[#allocation3 + $0x27a] sm:$0xff]  ;;  %v5178_v25 = vadd.f32 %v11300_v11, %v10872_v17 }
 0x653   :  { %v5503_v13 = vmax.f32 %v5491_v61, 0.0  ;;  %v8765_v61 = vpop.permute.xlu2 %8764  ;;  %v5183_v62 = vadd.f32 %v5182_v24, %v10894_v40  ;;  %v7921_v17 = vld [vmem:[%s11784_s5 + $0x80] sm:$0xff]  ;;  %v7916_v11 = vld [vmem:[%s11784_s5 + $0x58] sm:$0xff] }
 0x654   :  { %v5725_v50 = vsel %vm71_vm4, %v11186_v2, %v8772_v49  ;;  %v5724_v3 = vsel %vm71_vm4, %v5522_v14, %v8771_v15  ;;  %v4664_v2 = vsel %vm4461_vm5, %v4612_v34, %v8751_v8  ;;  %v8761_v49 = vunpack.i.l.bf16 %v8760_v57  ;;  %v8887_v15 = vld [vmem:[#allocation3 + $0x291] sm:$0xff]  ;;  %6109 = vmatpush.bf16.msra.mxu1 %v7916_v11 }
 0x655   :  { %5515 = vst.msk [vmem:[#allocation5 + $0x50] sm:$0xff] %vm71_vm4, %v5503_v13  ;;  %v5756_v4 = vpack.c.bf16 %v5725_v50, %v5724_v3  ;;  %v4740_v12 = vpack.c.bf16 %v4665_v19, %v4664_v2  ;;  %v4563_v9 = vsel %vm40_vm3, %v8887_v15, %v8757_v55  ;;  %v4562_v13 = vsel %vm40_vm3, %v8888_v28, %v8756_v63  ;;  %v3101_v3 = vld [vmem:[#allocation3 + $0x272] sm:$0xff]  ;;  %v8889_v28 = vld [vmem:[#allocation3 + $0x2a9] sm:$0xff] }
 0x656   :  { %v8767_v14 = vunpack.i.h.bf16 %v8765_v61  ;;  %v8766_v44 = vunpack.i.l.bf16 %v8765_v61  ;;  %6139 = vmatpush.bf16.msrb.mxu2 %v7923_v45  ;;  %v4614_v26 = vsel %vm71_vm4, %v4562_v13, %v8761_v49  ;;  %v4615_v50 = vsel %vm71_vm4, %v4563_v9, %v8762_v60 }
 0x657   :  { %6084 = vmatmul.bf16.vlgmr.msrb.gmra.mxu3 %v5756_v4  ;;  %v8775_v31 = vpop.permute.xlu1 %8774  ;;  %v4738_v19 = vpack.c.bf16 %v3102_v39, %v3101_v3  ;;  %v5180_v57 = vadd.f32 %v11309_v30, %v10878_v52  ;;  %v3103_v30 = vld [vmem:[#allocation3 + $0x28a] sm:$0xff] }
 0x658   :  { %v4666_v4 = vsel %vm4461_vm5, %v4614_v26, %v8766_v44  ;;  %v4667_v34 = vsel %vm4461_vm5, %v4615_v50, %v8767_v14  ;;  %v8777_v24 = vunpack.i.h.bf16 %v8775_v31  ;;  %v8890_v14 = vld [vmem:[#allocation3 + $0x2a1] sm:$0xff] }
 0x659   :  { %v5184_v23 = vpop.f32.mrf.mxu2  ;;  %v8785_v40 = vpop.permute.xlu0 %8784 }
 0x65a   :  { %v5312_v46 = vpop.f32.mrf.mxu1  ;;  %6140 = vmatpush.bf16.msrb.mxu2 %v7922_v47  ;;  %v5185_v55 = vadd.f32 %v5184_v23, %v10900_v59  ;;  %v8787_v43 = vunpack.i.h.bf16 %v8785_v40  ;;  %v8786_v61 = vunpack.i.l.bf16 %v8785_v40  ;;  %v4565_v13 = vsel %vm40_vm3, %v8889_v28, %v8777_v24  ;;  %v3104_v23 = vld [vmem:[#allocation3 + $0x292] sm:$0xff] }
 0x65b   :  { %v5313_v22 = vadd.f32 %v5312_v46, %v5178_v25  ;;  %v8776_v46 = vunpack.i.l.bf16 %v8775_v31 }
 0x65c   :  { %v4617_v52 = vsel %vm71_vm4, %v4565_v13, %v8787_v43  ;;  %v7915_v43 = vld [vmem:[%s11784_s5 + $0x50] sm:$0xff] }
 0x65d   :  { %7444 = vmatmul.msk.bf16.gmra.mxu1 %vm40_vm3, %v4735_v5  ;;  %v4743_v5 = vpack.c.bf16 %v4667_v34, %v4666_v4  ;;  %v4564_v44 = vsel %vm40_vm3, %v8890_v14, %v8776_v46  ;;  %v4741_v34 = vpack.c.bf16 %v3104_v23, %v3103_v30 }
 0x65e   :  { %5226 = vmatmul.bf16.gmra.mxu2 %v4740_v12  ;;  %v4616_v59 = vsel %vm71_vm4, %v4564_v44, %v8786_v61  ;;  %6110 = vmatpush.bf16.msra.mxu1 %v7915_v43  ;;  %v7914_v61 = vld [vmem:[%s11784_s5 + $0x48] sm:$0xff] }
 0x65f   :  { %6141 = vmatpush.bf16.msrb.mxu2 %v7921_v17  ;;  %v8790_v60 = vpop.permute.xlu1 %8789  ;;  %v11376_v17 = vld [vmem:[%s11783_s4] ss:$0 sm:$0xff] }
 0x660   :  { %v8792_v45 = vunpack.i.h.bf16 %v8790_v60  ;;  %v8791_v47 = vunpack.i.l.bf16 %v8790_v60  ;;  %v3105_v60 = vld [vmem:[#allocation3 + $0x2a2] sm:$0xff] }
 0x661   :  { %v11328_v18 = vpop.f32.mrf.mxu2 }
 0x662   :  { %v5314_v16 = vpop.f32.mrf.mxu1  ;;  %v4668_v3 = vsel %vm4461_vm5, %v4616_v59, %v8791_v47  ;;  %v4669_v39 = vsel %vm4461_vm5, %v4617_v52, %v8792_v45  ;;  %6111 = vmatpush.bf16.msra.mxu1 %v7914_v61 }
 0x663   :  { %v5315_v15 = vadd.f32 %v5314_v16, %v5180_v57  ;;  %v4746_v31 = vpack.c.bf16 %v4669_v39, %v4668_v3  ;;  %v3108_v3 = vld [vmem:[#allocation3 + $0x2c2] sm:$0xff] }
 0x669   :  { %v11346_v8 = vpop.f32.mrf.mxu2 }
 0x66a   :  { %v5317_v1 = vpop.f32.mrf.mxu1 }
 0x66b   :  { %v5318_v2 = vadd.f32 %v5317_v1, %v5183_v62 }
 0x66d   :  { %v5387_v12 = vmax.f32 %v5313_v22, %v5318_v2  ;;  %7445 = vmatmul.msk.bf16.gmra.mxu1 %vm40_vm3, %v4738_v19 }
 0x66e   :  { %5231 = vmatmul.bf16.gmra.mxu2 %v4743_v5 }
 0x66f   :  { %5411 = vst.msk [vmem:[#allocation4 + $0x60] sm:$0xff] %vm71_vm4, %v5387_v12 }
 0x671   :  { %v5192_v63 = vpop.f32.mrf.mxu2 }
 0x672   :  { %v5319_v49 = vpop.f32.mrf.mxu1 }
 0x673   :  { %v5320_v9 = vadd.f32 %v5319_v49, %v5185_v55  ;;  %v3106_v49 = vld [vmem:[#allocation3 + $0x2aa] sm:$0xff] }
 0x675   :  { %v5388_v26 = vmax.f32 %v5315_v15, %v5320_v9  ;;  %v5188_v15 = vadd.f32 %v11328_v18, %v10917_v38  ;;  %v5193_v9 = vadd.f32 %v5192_v63, %v10939_v32  ;;  %v7913_v38 = vld [vmem:[%s11784_s5 + $0x40] sm:$0xff]  ;;  %v5190_v32 = vadd.f32 %v11346_v8, %v10923_v56  ;;  %v8805_v56 = vpop.permute.xlu1 %8804 }
 0x676   :  { %6112 = vmatpush.bf16.msra.mxu1 %v7913_v38 }
 0x677   :  { %5412 = vst.msk [vmem:[#allocation4 + $0x68] sm:$0xff] %vm71_vm4, %v5388_v26  ;;  %v4744_v26 = vpack.c.bf16 %v3106_v49, %v3105_v60 }
 0x679   :  { %v5194_v50 = vpop.f32.mrf.mxu2  ;;  %v8780_v16 = vpop.permute.xlu2 %8779 }
 0x67a   :  { %v8782_v25 = vunpack.i.h.bf16 %v8780_v16  ;;  %v8781_v62 = vunpack.i.l.bf16 %v8780_v16  ;;  %v5322_v4 = vpop.f32.mrf.mxu1  ;;  %v3107_v16 = vld [vmem:[#allocation3 + $0x2ba] sm:$0xff] }
 0x67b   :  { %v5323_v45 = vadd.f32 %v5322_v4, %v5188_v15 }
 0x67c   :  { %v5726_v1 = vsel %vm71_vm4, %v11188_v29, %v8781_v62  ;;  %v5727_v22 = vsel %vm71_vm4, %v11280_v20, %v8782_v25  ;;  %v8800_v29 = vpop.permute.xlu0 %8799  ;;  %v4747_v62 = vpack.c.bf16 %v3108_v3, %v3107_v16 }
 0x67d   :  { %7446 = vmatmul.msk.bf16.gmra.mxu1 %vm40_vm3, %v4741_v34  ;;  %v5761_v2 = vpack.c.bf16 %v5727_v22, %v5726_v1  ;;  %v8802_v57 = vunpack.i.h.bf16 %v8800_v29  ;;  %v8801_v55 = vunpack.i.l.bf16 %v8800_v29  ;;  %v8807_v22 = vunpack.i.h.bf16 %v8805_v56 }
 0x67e   :  { %v5435_v19 = vld [vmem:[#allocation4 + $0x60] ss:$2 sm:$0xff]  ;;  %v5459_v5 = vld [vmem:[#allocation4 + $0x61] ss:$2 sm:$0xff]  ;;  %5236 = vmatmul.bf16.gmra.mxu2 %v4746_v31 }
 0x67f   :  { %v5476_v12 = vmax.f32 %v5435_v19, %v5459_v5  ;;  %6089 = vmatmul.bf16.gmra.mxu3 %v5761_v2  ;;  %v5741_v28 = vsel %vm71_vm4, %v11235_v6, %v8802_v57  ;;  %v5740_v13 = vsel %vm71_vm4, %v11147_v35, %v8801_v55  ;;  %v5195_v35 = vadd.f32 %v5194_v50, %v10945_v33  ;;  %v5538_v19 = vld [vmem:[#allocation5 + $0x2] sm:$0xff] }
 0x680   :  { %v5758_v52 = vpack.c.bf16 %v5741_v28, %v5740_v13  ;;  %v8806_v2 = vunpack.i.l.bf16 %v8805_v56 }
 0x681   :  { %v5492_v40 = vadd.f32 %v11376_v17, %v5476_v12  ;;  %v5197_v11 = vpop.f32.mrf.mxu2  ;;  %v5733_v12 = vsel %vm71_vm4, %v11190_v53, %v8807_v22 }
 0x682   :  { %v5324_v24 = vpop.f32.mrf.mxu1  ;;  %v5732_v5 = vsel %vm71_vm4, %v5538_v19, %v8806_v2 }
 0x683   :  { %v5504_v46 = vmax.f32 %v5492_v40, 0.0  ;;  %v5325_v63 = vadd.f32 %v5324_v24, %v5190_v32  ;;  %v5198_v40 = vadd.f32 %v5197_v11, %v10958_v58  ;;  %v5757_v57 = vpack.c.bf16 %v5733_v12, %v5732_v5 }
 0x685   :  { %5516 = vst.msk [vmem:[#allocation5 + $0x60] sm:$0xff] %vm71_vm4, %v5504_v46 }
 0x689   :  { %v5199_v14 = vpop.f32.mrf.mxu2 }
 0x68a   :  { %v5327_v44 = vpop.f32.mrf.mxu1  ;;  %v5200_v58 = vadd.f32 %v5199_v14, %v10964_v41 }
 0x68b   :  { %v5328_v47 = vadd.f32 %v5327_v44, %v5193_v9 }
 0x68c   :  { %v5534_v61 = vld [vmem:[#allocation5 + $0x61] sm:$0xff] }
 0x68d   :  { %v5389_v59 = vmax.f32 %v5323_v45, %v5328_v47  ;;  %7447 = vmatmul.msk.bf16.gmra.mxu1 %vm40_vm3, %v4744_v26 }
 0x68e   :  { %6142 = vmatmul.bf16.vlgmr.msrb.gmra.mxu2 %v5758_v52 }
 0x68f   :  { %5413 = vst.msk [vmem:[#allocation4 + $0x70] sm:$0xff] %vm71_vm4, %v5389_v59  ;;  %v11417_v59 = vld [vmem:[#allocation5 + $0x41] sm:$0xff] }
 0x691   :  { %v5202_v6 = vpop.f32.mrf.mxu2 }
 0x692   :  { %v5329_v18 = vpop.f32.mrf.mxu1  ;;  %v5203_v29 = vadd.f32 %v5202_v6, %v10976_v42 }
 0x693   :  { %v5330_v30 = vadd.f32 %v5329_v18, %v5195_v35 }
 0x695   :  { %v5390_v23 = vmax.f32 %v5325_v63, %v5330_v30 }
 0x697   :  { %5414 = vst.msk [vmem:[#allocation4 + $0x78] sm:$0xff] %vm71_vm4, %v5390_v23 }
 0x699   :  { %v5204_v39 = vpop.f32.mrf.mxu2 }
 0x69a   :  { %v5332_v25 = vpop.f32.mrf.mxu1  ;;  %v5205_v42 = vadd.f32 %v5204_v39, %v10979_v37 }
 0x69b   :  { %v5333_v55 = vadd.f32 %v5332_v25, %v5198_v40 }
 0x69d   :  { %7448 = vmatmul.msk.bf16.gmra.mxu1 %vm40_vm3, %v4747_v62 }
 0x69e   :  { %v5437_v4 = vld [vmem:[#allocation4 + $0x70] ss:$2 sm:$0xff]  ;;  %v5461_v34 = vld [vmem:[#allocation4 + $0x71] ss:$2 sm:$0xff] }
 0x69f   :  { %v5477_v31 = vmax.f32 %v5437_v4, %v5461_v34 }
 0x6a1   :  { %v5493_v33 = vadd.f32 %v11376_v17, %v5477_v31  ;;  %v5207_v8 = vpop.f32.mrf.mxu2 }
 0x6a2   :  { %v5334_v50 = vpop.f32.mrf.mxu1  ;;  %v5208_v62 = vadd.f32 %v5207_v8, %v10989_v0 }
 0x6a3   :  { %v5505_v1 = vmax.f32 %v5493_v33, 0.0  ;;  %v5335_v13 = vadd.f32 %v5334_v50, %v5200_v58 }
 0x6a5   :  { %5517 = vst.msk [vmem:[#allocation5 + $0x70] sm:$0xff] %vm71_vm4, %v5505_v1 }
 0x6a9   :  { %v5209_v24 = vpop.f32.mrf.mxu2 }
 0x6aa   :  { %v5337_v46 = vpop.f32.mrf.mxu1 }
 0x6ab   :  { %v5338_v43 = vadd.f32 %v5337_v46, %v5203_v29 }
 0x6ac   :  { %v11410_v60 = vld [vmem:[#allocation5 + $0x71] sm:$0xff] }
 0x6ad   :  { %v5391_v49 = vmax.f32 %v5333_v55, %v5338_v43  ;;  %6113 = vmatmul.bf16.vlgmr.msra.gmra.mxu1 %v5757_v57  ;;  %v8793_v15 = vpack.i.bf16 %v11410_v60, %v5534_v61  ;;  %v11432_v56 = vld [vmem:[#allocation5 + $0x70] sm:$0xff] }
 0x6ae   :  { %v11436_v50 = vld [vmem:[#allocation5 + $0x72] sm:$0xff] }
 0x6af   :  { %5415 = vst.msk [vmem:[#allocation4 + $0x80] sm:$0xff] %vm71_vm4, %v5391_v49  ;;  %8794 = vrot.lane.b32.xlu2 %v8793_v15, %s8921_s14 }
 0x6b1   :  { %v5212_v53 = vpop.f32.mrf.mxu2  ;;  %v8820_v11 = vpop.permute.xlu1 %8819 }
 0x6b2   :  { %v8815_v9 = vpop.permute.xlu0 %8814  ;;  %v5339_v28 = vpop.f32.mrf.mxu1  ;;  %v8822_v26 = vunpack.i.h.bf16 %v8820_v11  ;;  %v8821_v52 = vunpack.i.l.bf16 %v8820_v11 }
 0x6b3   :  { %v8817_v44 = vunpack.i.h.bf16 %v8815_v9  ;;  %v8816_v45 = vunpack.i.l.bf16 %v8815_v9  ;;  %v5340_v47 = vadd.f32 %v5339_v28, %v5205_v42 }
 0x6b4   :  { %v5734_v14 = vsel %vm71_vm4, %v11192_v54, %v8821_v52  ;;  %v5735_v35 = vsel %vm71_vm4, %v11282_v7, %v8822_v26  ;;  %v5213_v54 = vadd.f32 %v5212_v53, %v11008_v36  ;;  %v5210_v36 = vadd.f32 %v5209_v24, %v10994_v27  ;;  %v11833_v27 = vld [vmem:[#allocation24_spill] sm:$0xff]  ;;  %v11834_v24 = vld [vmem:[#allocation26_spill] sm:$0xff]  ;;  %v11835_v52 = vld [vmem:[#allocation23_spill] sm:$0xff] }
 0x6b5   :  { %v5392_v38 = vmax.f32 %v5335_v13, %v5340_v47  ;;  %v5742_v32 = vsel %vm71_vm4, %v11237_v48, %v8816_v45  ;;  %v5743_v41 = vsel %vm71_vm4, %v11417_v59, %v8817_v44  ;;  %v5762_v63 = vpack.c.bf16 %v5735_v35, %v5734_v14 }
 0x6b6   :  { %v5763_v37 = vpack.c.bf16 %v5743_v41, %v5742_v32  ;;  %v11836_v32 = vld [vmem:[#allocation27_spill] sm:$0xff] }
 0x6b7   :  { %5416 = vst.msk [vmem:[#allocation4 + $0x88] sm:$0xff] %vm71_vm4, %v5392_v38 }
 0x6b8   :  { %6147 = vmatmul.bf16.gmra.mxu2 %v5763_v37 }
 0x6b9   :  { %v5214_v6 = vpop.f32.mrf.mxu2 }
 0x6ba   :  { %v5342_v18 = vpop.f32.mrf.mxu1  ;;  %v5215_v8 = vadd.f32 %v5214_v6, %v11013_v21 }
 0x6bb   :  { %v5343_v34 = vadd.f32 %v5342_v18, %v5208_v62 }
 0x6bd   :  { %6118 = vmatmul.bf16.gmra.mxu1 %v5762_v63 }
 0x6be   :  { %v5439_v30 = vld [vmem:[#allocation4 + $0x80] ss:$2 sm:$0xff]  ;;  %v5463_v23 = vld [vmem:[#allocation4 + $0x81] ss:$2 sm:$0xff] }
 0x6bf   :  { %v5478_v48 = vmax.f32 %v5439_v30, %v5463_v23  ;;  %v5583_v23 = vld [vmem:[#allocation5 + $0x51] sm:$0xff] }
 0x6c1   :  { %v5494_v16 = vadd.f32 %v11376_v17, %v5478_v48  ;;  %v5217_v3 = vpop.f32.mrf.mxu2  ;;  %v8838_v48 = vpack.i.bf16 %v5583_v23, %v11417_v59 }
 0x6c2   :  { %v5344_v39 = vpop.f32.mrf.mxu1  ;;  %v5218_v21 = vadd.f32 %v5217_v3, %v11833_v27 }
 0x6c3   :  { %v5506_v25 = vmax.f32 %v5494_v16, 0.0  ;;  %v5345_v12 = vadd.f32 %v5344_v39, %v5210_v36 }
 0x6c5   :  { %5518 = vst.msk [vmem:[#allocation5 + $0x80] sm:$0xff] %vm71_vm4, %v5506_v25 }
 0x6c9   :  { %v5219_v4 = vpop.f32.mrf.mxu2 }
 0x6ca   :  { %v5347_v7 = vpop.f32.mrf.mxu1  ;;  %v5220_v38 = vadd.f32 %v5219_v4, %v11835_v52 }
 0x6cb   :  { %v5348_v31 = vadd.f32 %v5347_v7, %v5213_v54 }
 0x6cc   :  { %v11434_v33 = vld [vmem:[#allocation5 + $0x80] sm:$0xff] }
 0x6cd   :  { %v11438_v1 = vld [vmem:[#allocation5 + $0x82] sm:$0xff]  ;;  %v5393_v22 = vmax.f32 %v5343_v34, %v5348_v31  ;;  %v8833_v2 = vpack.i.bf16 %v11434_v33, %v11432_v56 }
 0x6ce   :  { %v8828_v0 = vpack.i.bf16 %v11438_v1, %v11436_v50  ;;  %v11454_v44 = vld [vmem:[#allocation5 + $0x81] sm:$0xff] }
 0x6cf   :  { %5417 = vst.msk [vmem:[#allocation4 + $0x90] sm:$0xff] %vm71_vm4, %v5393_v22  ;;  %8834 = vrot.lane.b32.xlu1 %v8833_v2, %s8921_s14  ;;  %v11838_v34 = vld [vmem:[#allocation30_spill] sm:$0xff] }
 0x6d0   :  { %8829 = vrot.lane.b32.xlu0 %v8828_v0, %s8921_s14 }
 0x6d1   :  { %v5222_v19 = vpop.f32.mrf.mxu2 }
 0x6d2   :  { %v5349_v5 = vpop.f32.mrf.mxu1  ;;  %v5223_v53 = vadd.f32 %v5222_v19, %v11834_v24 }
 0x6d3   :  { %v5350_v40 = vadd.f32 %v5349_v5, %v5215_v8  ;;  %v5526_v5 = vld [vmem:[#allocation5 + $0x60] sm:$0xff] }
 0x6d5   :  { %v5394_v29 = vmax.f32 %v5345_v12, %v5350_v40 }
 0x6d7   :  { %5418 = vst.msk [vmem:[#allocation4 + $0x98] sm:$0xff] %vm71_vm4, %v5394_v29 }
 0x6d9   :  { %v5224_v46 = vpop.f32.mrf.mxu2 }
 0x6da   :  { %v5352_v57 = vpop.f32.mrf.mxu1  ;;  %v5225_v41 = vadd.f32 %v5224_v46, %v11836_v32 }
 0x6db   :  { %v5353_v28 = vadd.f32 %v5352_v57, %v5218_v21 }
 0x6de   :  { %v5441_v55 = vld [vmem:[#allocation4 + $0x90] ss:$2 sm:$0xff]  ;;  %v5465_v43 = vld [vmem:[#allocation4 + $0x91] ss:$2 sm:$0xff] }
 0x6df   :  { %v5479_v61 = vmax.f32 %v5441_v55, %v5465_v43 }
 0x6e1   :  { %v5495_v49 = vadd.f32 %v11376_v17, %v5479_v61  ;;  %v5227_v15 = vpop.f32.mrf.mxu2 }
 0x6e2   :  { %v5354_v58 = vpop.f32.mrf.mxu1 }
 0x6e3   :  { %v5507_v42 = vmax.f32 %v5495_v49, 0.0  ;;  %v5355_v35 = vadd.f32 %v5354_v58, %v5220_v38 }
 0x6e5   :  { %5519 = vst.msk [vmem:[#allocation5 + $0x90] sm:$0xff] %vm71_vm4, %v5507_v42  ;;  %v11840_v42 = vld [vmem:[#allocation31_spill] sm:$0xff] }
 0x6e9   :  { %v5229_v11 = vpop.f32.mrf.mxu2 }
 0x6ea   :  { %v5357_v9 = vpop.f32.mrf.mxu1 }
 0x6eb   :  { %v5358_v13 = vadd.f32 %v5357_v9, %v5223_v53  ;;  %v7936_v9 = vld [vmem:[%s11784_s5 + $0xf8] sm:$0xff] }
 0x6ec   :  { %v11456_v45 = vld [vmem:[#allocation5 + $0x91] sm:$0xff]  ;;  %6163 = vmatpush.bf16.msra.mxu3 %v7936_v9 }
 0x6ed   :  { %v5395_v47 = vmax.f32 %v5353_v28, %v5358_v13  ;;  %v8808_v26 = vpack.i.bf16 %v11456_v45, %v11454_v44  ;;  %v11474_v12 = vld [vmem:[#allocation5 + $0x92] sm:$0xff] }
 0x6ee   :  { %v11481_v57 = vld [vmem:[#allocation5 + $0x90] sm:$0xff] }
 0x6ef   :  { %5419 = vst.msk [vmem:[#allocation4 + $0xa0] sm:$0xff] %vm71_vm4, %v5395_v47  ;;  %8809 = vrot.lane.b32.xlu2 %v8808_v26, %s8921_s14  ;;  %v7935_v47 = vld [vmem:[%s11784_s5 + $0xf0] sm:$0xff] }
 0x6f0   :  { %6164 = vmatpush.bf16.msra.mxu3 %v7935_v47  ;;  %v7937_v47 = vld [vmem:[%s11784_s5 + $0x100] sm:$0xff] }
 0x6f1   :  { %v5232_v37 = vpop.f32.mrf.mxu2 }
 0x6f2   :  { %v5359_v14 = vpop.f32.mrf.mxu1  ;;  %v5233_v31 = vadd.f32 %v5232_v37, %v11838_v34  ;;  %v7934_v37 = vld [vmem:[%s11784_s5 + $0xe8] sm:$0xff] }
 0x6f3   :  { %v5360_v6 = vadd.f32 %v5359_v14, %v5225_v41  ;;  %v11506_v14 = vpop.f32.mrf.mxu3 }
 0x6f4   :  { %6165 = vmatpush.bf16.msra.mxu3 %v7934_v37 }
 0x6f5   :  { %v5396_v18 = vmax.f32 %v5355_v35, %v5360_v6  ;;  %v7933_v6 = vld [vmem:[%s11784_s5 + $0xe0] sm:$0xff] }
 0x6f7   :  { %5420 = vst.msk [vmem:[#allocation4 + $0xa8] sm:$0xff] %vm71_vm4, %v5396_v18  ;;  %8824 = vrot.lane.b32.xlu2 %v11242_v51, %s8921_s14  ;;  %v11837_v51 = vld [vmem:[#allocation28_spill] sm:$0xff] }
 0x6f8   :  { %v5228_v7 = vadd.f32 %v5227_v15, %v11837_v51  ;;  %6166 = vmatpush.bf16.msra.mxu3 %v7933_v6 }
 0x6f9   :  { %v5234_v63 = vpop.f32.mrf.mxu2 }
 0x6fa   :  { %v5362_v30 = vpop.f32.mrf.mxu1  ;;  %v5235_v27 = vadd.f32 %v5234_v63, %v11840_v42 }
 0x6fb   :  { %v5363_v8 = vadd.f32 %v5362_v30, %v5228_v7  ;;  %v7932_v30 = vld [vmem:[%s11784_s5 + $0xd8] sm:$0xff]  ;;  %v11520_v23 = vpop.f32.mrf.mxu3 }
 0x6fc   :  { %6167 = vmatpush.bf16.msra.mxu3 %v7932_v30 }
 0x6fe   :  { %v5443_v16 = vld [vmem:[#allocation4 + $0xa0] ss:$2 sm:$0xff]  ;;  %v5467_v3 = vld [vmem:[#allocation4 + $0xa1] ss:$2 sm:$0xff] }
 0x6ff   :  { %v5480_v39 = vmax.f32 %v5443_v16, %v5467_v3  ;;  %8839 = vrot.lane.b32.xlu2 %v8838_v48, %s8921_s14  ;;  %v7931_v16 = vld [vmem:[%s11784_s5 + $0xd0] sm:$0xff]  ;;  %v7940_v3 = vld [vmem:[%s11784_s5 + $0x118] sm:$0xff] }
 0x700   :  { %6168 = vmatpush.bf16.msra.mxu3 %v7931_v16  ;;  %7993 = vmatpush.bf16.msra.mxu2 %v7940_v3 }
 0x701   :  { %v5496_v25 = vadd.f32 %v11376_v17, %v5480_v39  ;;  %v5237_v62 = vpop.f32.mrf.mxu2  ;;  %v7930_v39 = vld [vmem:[%s11784_s5 + $0xc8] sm:$0xff]  ;;  %6196 = vmatpush.bf16.msrb.mxu1 %v7940_v3 }
 0x702   :  { %v5364_v54 = vpop.f32.mrf.mxu1 }
 0x703   :  { %v5508_v4 = vmax.f32 %v5496_v25, 0.0  ;;  %v6090_v25 = vpop.f32.mrf.mxu3 }
 0x704   :  { %6169 = vmatpush.bf16.msra.mxu3 %v7930_v39 }
 0x705   :  { %5520 = vst.msk [vmem:[#allocation5 + $0xa0] sm:$0xff] %vm71_vm4, %v5508_v4  ;;  %v7929_v4 = vld [vmem:[%s11784_s5 + $0xc0] sm:$0xff] }
 0x707   :  { %8854 = vrot.lane.b32.xlu2 %v8808_v26, %s8921_s14 }
 0x708   :  { %6170 = vmatpush.bf16.msra.mxu3 %v7929_v4 }
 0x709   :  { %v5238_v22 = vpop.f32.mrf.mxu2  ;;  %v8795_v59 = vpop.permute.xlu2 %8794 }
 0x70a   :  { %v8797_v2 = vunpack.i.h.bf16 %v8795_v59  ;;  %v8796_v0 = vunpack.i.l.bf16 %v8795_v59  ;;  %v5367_v36 = vpop.f32.mrf.mxu1 }
 0x70b   :  { %v5368_v19 = vadd.f32 %v5367_v36, %v5233_v31 }
 0x70c   :  { %v5728_v40 = vsel %vm71_vm4, %v5526_v5, %v8796_v0  ;;  %v5729_v29 = vsel %vm71_vm4, %v11432_v56, %v8797_v2  ;;  %v11479_v46 = vld [vmem:[#allocation5 + $0xa2] sm:$0xff]  ;;  %v11839_v56 = vld [vmem:[#allocation29_spill] sm:$0xff] }
 0x70d   :  { %v11483_v55 = vld [vmem:[#allocation5 + $0xa0] sm:$0xff]  ;;  %v5397_v43 = vmax.f32 %v5363_v8, %v5368_v19  ;;  %v5766_v61 = vpack.c.bf16 %v5729_v29, %v5728_v40  ;;  %v8843_v49 = vpack.i.bf16 %v11479_v46, %v11474_v12  ;;  %v5230_v58 = vadd.f32 %v5229_v11, %v11839_v56 }
 0x70e   :  { %v8848_v15 = vpack.i.bf16 %v11483_v55, %v11481_v57  ;;  %v11513_v18 = vld [vmem:[#allocation5 + $0xa1] sm:$0xff] }
 0x70f   :  { %5421 = vst.msk [vmem:[#allocation4 + $0xb0] sm:$0xff] %vm71_vm4, %v5397_v43  ;;  %6094 = vmatmul.bf16.gmra.mxu3 %v5766_v61  ;;  %8844 = vrot.lane.b32.xlu0 %v8843_v49, %s8921_s14  ;;  %v5365_v24 = vadd.f32 %v5364_v54, %v5230_v58  ;;  %v7939_v2 = vld [vmem:[%s11784_s5 + $0x110] sm:$0xff] }
 0x710   :  { %8849 = vrot.lane.b32.xlu1 %v8848_v15, %s8921_s14  ;;  %v5542_v0 = vld [vmem:[#allocation5 + $0x62] sm:$0xff]  ;;  %7994 = vmatpush.bf16.msra.mxu2 %v7939_v2 }
 0x711   :  { %6197 = vmatpush.bf16.msrb.mxu1 %v7939_v2 }
 0x712   :  { %v5369_v21 = vpop.f32.mrf.mxu1 }
 0x713   :  { %v5370_v53 = vadd.f32 %v5369_v21, %v5235_v27  ;;  %v5572_v27 = vld [vmem:[#allocation5 + $0x20] sm:$0xff] }
 0x715   :  { %v5398_v28 = vmax.f32 %v5365_v24, %v5370_v53 }
 0x717   :  { %5422 = vst.msk [vmem:[#allocation4 + $0xb8] sm:$0xff] %vm71_vm4, %v5398_v28 }
 0x71a   :  { %v5372_v13 = vpop.f32.mrf.mxu1 }
 0x71e   :  { %v5445_v26 = vld [vmem:[#allocation4 + $0xb0] ss:$2 sm:$0xff]  ;;  %v5469_v11 = vld [vmem:[#allocation4 + $0xb1] ss:$2 sm:$0xff] }
 0x71f   :  { %v5481_v52 = vmax.f32 %v5445_v26, %v5469_v11  ;;  %v5575_v26 = vld [vmem:[#allocation5 + $0x50] sm:$0xff] }
 0x721   :  { %v5497_v38 = vadd.f32 %v11376_v17, %v5481_v52 }
 0x722   :  { %v5373_v32 = vpop.f32.mrf.mxu1 }
 0x723   :  { %v5509_v41 = vmax.f32 %v5497_v38, 0.0 }
 0x725   :  { %5521 = vst.msk [vmem:[#allocation5 + $0xb0] sm:$0xff] %vm71_vm4, %v5509_v41 }
 0x72a   :  { %v11508_v35 = vpop.f32.mrf.mxu1 }
 0x72c   :  { %v5587_v17 = vld [vmem:[#allocation5 + $0xb1] sm:$0xff] }
 0x72d   :  { %v8858_v63 = vpack.i.bf16 %v5587_v17, %v11513_v18  ;;  %v5595_v2 = vld [vmem:[#allocation5 + $0xb2] sm:$0xff] }
 0x72f   :  { %8859 = vrot.lane.b32.xlu0 %v8858_v63, %s8921_s14 }
 0x732   :  { %v11522_v48 = vpop.f32.mrf.mxu1 }
 0x73a   :  { %v6119_v62 = vpop.f32.mrf.mxu1 }
 0x73b   :  { %v11533_v54 = vadd.f32 %v6119_v62, %v6090_v25 }
 0x741   :  { %v8835_v51 = vpop.permute.xlu1 %8834 }
 0x742   :  { %v8830_v7 = vpop.permute.xlu0 %8829  ;;  %v8837_v34 = vunpack.i.h.bf16 %v8835_v51  ;;  %v8836_v31 = vunpack.i.l.bf16 %v8835_v51 }
 0x743   :  { %v8832_v22 = vunpack.i.h.bf16 %v8830_v7  ;;  %v8831_v59 = vunpack.i.l.bf16 %v8830_v7  ;;  %v5589_v7 = vld [vmem:[#allocation5 + $0x32] sm:$0xff] }
 0x744   :  { %v5736_v36 = vsel %vm71_vm4, %v5542_v0, %v8836_v31  ;;  %v5737_v8 = vsel %vm71_vm4, %v11436_v50, %v8837_v34  ;;  %v5588_v34 = vld [vmem:[#allocation5 + $0x22] sm:$0xff]  ;;  %v5770_v31 = vpack.c.bf16 %v11474_v12, %v11438_v1  ;;  %v5579_v0 = vld [vmem:[#allocation5 + $0xb0] sm:$0xff] }
 0x745   :  { %v5744_v19 = vsel %vm71_vm4, %v11410_v60, %v8831_v59  ;;  %v5745_v5 = vsel %vm71_vm4, %v11454_v44, %v8832_v22  ;;  %v5767_v40 = vpack.c.bf16 %v5737_v8, %v5736_v36  ;;  %v7938_v60 = vld [vmem:[%s11784_s5 + $0x108] sm:$0xff]  ;;  %v5760_v22 = vpack.c.bf16 %v5589_v7, %v5588_v34  ;;  %v7959_v7 = vld [vmem:[%s11786_s7 + $0x90] sm:$0xff] }
 0x746   :  { %v5768_v29 = vpack.c.bf16 %v5745_v5, %v5744_v19  ;;  %7995 = vmatpush.bf16.msra.mxu2 %v7938_v60  ;;  %6198 = vmatpush.bf16.msrb.mxu1 %v7938_v60  ;;  %v5591_v36 = vld [vmem:[#allocation5 + $0x52] sm:$0xff] }
 0x747   :  { %6123 = vmatmul.bf16.gmra.mxu1 %v5767_v40  ;;  %v5590_v40 = vld [vmem:[#allocation5 + $0x42] sm:$0xff] }
 0x748   :  { %6152 = vmatmul.bf16.gmra.mxu2 %v5768_v29  ;;  %v11586_v29 = vpop.f32.mrf.mxu3 }
 0x749   :  { %v8810_v43 = vpop.permute.xlu2 %8809 }
 0x74a   :  { %v8812_v61 = vunpack.i.h.bf16 %v8810_v43  ;;  %v8811_v49 = vunpack.i.l.bf16 %v8810_v43  ;;  %7996 = vmatpush.bf16.msra.mxu2 %v7937_v47  ;;  %6199 = vmatpush.bf16.msrb.mxu1 %v7937_v47 }
 0x74c   :  { %v5730_v15 = vsel %vm71_vm4, %v11434_v33, %v8811_v49  ;;  %v5731_v50 = vsel %vm71_vm4, %v11481_v57, %v8812_v61  ;;  %v6143_v49 = vpop.f32.mrf.mxu2 }
 0x74d   :  { %v5771_v56 = vpack.c.bf16 %v5731_v50, %v5730_v15 }
 0x74f   :  { %6099 = vmatmul.bf16.gmra.mxu3 %v5771_v56 }
 0x751   :  { %v8825_v44 = vpop.permute.xlu2 %8824 }
 0x752   :  { %v8827_v58 = vunpack.i.h.bf16 %v8825_v44  ;;  %v8826_v42 = vunpack.i.l.bf16 %v8825_v44 }
 0x754   :  { %v5749_v21 = vsel %vm71_vm4, %v11280_v20, %v8827_v58  ;;  %v5748_v24 = vsel %vm71_vm4, %v5572_v27, %v8826_v42  ;;  %v6145_v15 = vpop.f32.mrf.mxu2  ;;  %v7964_v42 = vld [vmem:[%s11786_s7 + $0xb8] sm:$0xff] }
 0x755   :  { %v5759_v53 = vpack.c.bf16 %v5749_v21, %v5748_v24  ;;  %6617 = vmatpush.bf16.msrb.mxu3 %v7964_v42  ;;  %v7948_v21 = vld [vmem:[%s11786_s7 + $0x38] sm:$0xff]  ;;  %v7957_v42 = vld [vmem:[%s11786_s7 + $0x80] sm:$0xff] }
 0x756   :  { %6591 = vmatpush.bf16.msrb.mxu2 %v7948_v21 }
 0x759   :  { %v8840_v9 = vpop.permute.xlu2 %8839 }
 0x75a   :  { %v8842_v28 = vunpack.i.h.bf16 %v8840_v9  ;;  %v8841_v13 = vunpack.i.l.bf16 %v8840_v9  ;;  %v7963_v9 = vld [vmem:[%s11786_s7 + $0xb0] sm:$0xff] }
 0x75b   :  { %6618 = vmatpush.bf16.msrb.mxu3 %v7963_v9  ;;  %v7951_v9 = vld [vmem:[%s11786_s7 + $0x50] sm:$0xff] }
 0x75c   :  { %v5750_v11 = vsel %vm71_vm4, %v11284_v10, %v8841_v13  ;;  %v5751_v52 = vsel %vm71_vm4, %v5575_v26, %v8842_v28  ;;  %v11596_v56 = vpop.f32.mrf.mxu2  ;;  %v7946_v13 = vld [vmem:[%s11786_s7 + $0x28] sm:$0xff] }
 0x75d   :  { %v5764_v20 = vpack.c.bf16 %v5751_v52, %v5750_v11  ;;  %v7945_v11 = vld [vmem:[%s11786_s7 + $0x20] sm:$0xff] }
 0x75f   :  { %6171 = vmatmul.bf16.vlgmr.msra.gmra.mxu3 %v5759_v53  ;;  %v7947_v53 = vld [vmem:[%s11786_s7 + $0x30] sm:$0xff] }
 0x760   :  { %6592 = vmatpush.bf16.msrb.mxu2 %v7947_v53 }
 0x761   :  { %v8855_v38 = vpop.permute.xlu2 %8854 }
 0x762   :  { %v8857_v32 = vunpack.i.h.bf16 %v8855_v38  ;;  %v8856_v41 = vunpack.i.l.bf16 %v8855_v38  ;;  %v7944_v38 = vld [vmem:[%s11786_s7 + $0x18] sm:$0xff] }
 0x764   :  { %v5752_v37 = vsel %vm71_vm4, %v11434_v33, %v8856_v41  ;;  %v5753_v6 = vsel %vm71_vm4, %v11481_v57, %v8857_v32  ;;  %v11600_v44 = vpop.f32.mrf.mxu2  ;;  %6593 = vmatpush.bf16.msrb.mxu2 %v7946_v13  ;;  %v7943_v32 = vld [vmem:[%s11786_s7 + $0x10] sm:$0xff] }
 0x765   :  { %v5769_v17 = vpack.c.bf16 %v5753_v6, %v5752_v37  ;;  %v7967_v13 = vld [vmem:[%s11786_s7 + $0xd0] sm:$0xff] }
 0x768   :  { %6594 = vmatpush.bf16.msrb.mxu2 %v7945_v11 }
 0x76c   :  { %6595 = vmatpush.bf16.msrb.mxu2 %v7944_v38 }
 0x76f   :  { %6176 = vmatmul.bf16.gmra.mxu3 %v5764_v20  ;;  %v7962_v20 = vld [vmem:[%s11786_s7 + $0xa8] sm:$0xff] }
 0x770   :  { %6619 = vmatpush.bf16.msrb.mxu3 %v7962_v20  ;;  %6596 = vmatpush.bf16.msrb.mxu2 %v7943_v32 }
 0x77f   :  { %6181 = vmatmul.bf16.gmra.mxu3 %v5769_v17  ;;  %v7961_v17 = vld [vmem:[%s11786_s7 + $0xa0] sm:$0xff] }
 0x780   :  { %6620 = vmatpush.bf16.msrb.mxu3 %v7961_v17  ;;  %v7950_v17 = vld [vmem:[%s11786_s7 + $0x48] sm:$0xff] }
 0x781   :  { %v8845_v63 = vpop.permute.xlu0 %8844 }
 0x782   :  { %v8847_v30 = vunpack.i.h.bf16 %v8845_v63  ;;  %v8846_v10 = vunpack.i.l.bf16 %v8845_v63  ;;  %v8850_v16 = vpop.permute.xlu1 %8849  ;;  %v7942_v63 = vld [vmem:[%s11786_s7 + $0x8] sm:$0xff] }
 0x783   :  { %v8852_v3 = vunpack.i.h.bf16 %v8850_v16  ;;  %v8851_v39 = vunpack.i.l.bf16 %v8850_v16  ;;  %6597 = vmatpush.bf16.msrb.mxu2 %v7942_v63  ;;  %v7956_v16 = vld [vmem:[%s11786_s7 + $0x78] sm:$0xff] }
 0x784   :  { %v5746_v25 = vsel %vm71_vm4, %v11456_v45, %v8846_v10  ;;  %v5747_v62 = vsel %vm71_vm4, %v11513_v18, %v8847_v30  ;;  %v7941_v10 = vld [vmem:[%s11786_s7] sm:$0xff] }
 0x785   :  { %v5738_v33 = vsel %vm71_vm4, %v11438_v1, %v8851_v39  ;;  %v5739_v57 = vsel %vm71_vm4, %v11474_v12, %v8852_v3  ;;  %v5773_v4 = vpack.c.bf16 %v5747_v62, %v5746_v25  ;;  %v5775_v1 = vpack.c.bf16 %v5595_v2, %v11479_v46  ;;  %v11598_v46 = vpop.f32.mrf.mxu1 }
 0x786   :  { %v5772_v51 = vpack.c.bf16 %v5739_v57, %v5738_v33  ;;  %v5765_v12 = vpack.c.bf16 %v5591_v36, %v5590_v40  ;;  %v6115_v25 = vadd.f32 %v11508_v35, %v11506_v14  ;;  %v6117_v62 = vadd.f32 %v11522_v48, %v11520_v23  ;;  %v7972_v33 = vld [vmem:[%s11786_s7 + $0xf8] sm:$0xff]  ;;  %v7955_v57 = vld [vmem:[%s11786_s7 + $0x70] sm:$0xff] }
 0x787   :  { %6157 = vmatmul.bf16.gmra.mxu2 %v5773_v4  ;;  %6630 = vmatpush.bf16.msra.mxu1 %v7972_v33  ;;  %v7960_v4 = vld [vmem:[%s11786_s7 + $0x98] sm:$0xff]  ;;  %v7971_v14 = vld [vmem:[%s11786_s7 + $0xf0] sm:$0xff]  ;;  %v6122_v53 = vadd.f32 %v11598_v46, %v11586_v29  ;;  %v6149_v29 = vadd.f32 %v11596_v56, %v11533_v54  ;;  %v7966_v54 = vld [vmem:[%s11786_s7 + $0xc8] sm:$0xff] }
 0x788   :  { %6128 = vmatmul.bf16.gmra.mxu1 %v5772_v51  ;;  %6598 = vmatpush.bf16.msrb.mxu2 %v7941_v10  ;;  %v6144_v35 = vadd.f32 %v6143_v49, %v6115_v25  ;;  %v6146_v23 = vadd.f32 %v6145_v15, %v6117_v62  ;;  %v7954_v51 = vld [vmem:[%s11786_s7 + $0x68] sm:$0xff]  ;;  %v7952_v15 = vld [vmem:[%s11786_s7 + $0x58] sm:$0xff] }
 0x789   :  { %6621 = vmatpush.bf16.msrb.mxu3 %v7960_v4  ;;  %v6151_v46 = vadd.f32 %v11600_v44, %v6122_v53 }
 0x78b   :  { %6631 = vmatpush.bf16.msra.mxu1 %v7971_v14 }
 0x78d   :  { %6622 = vmatpush.bf16.msrb.mxu3 %v7959_v7 }
 0x792   :  { %v11588_v43 = vpop.f32.mrf.mxu3 }
 0x797   :  { %7595 = vmatmul.msk.bf16.vlgmr.msra.gmra.mxu2 %vm71_vm4, %v5770_v31 }
 0x798   :  { %7593 = vmatmul.msk.bf16.vlgmr.msrb.gmra.mxu1 %vm71_vm4, %v5760_v22  ;;  %6604 = vmatpush.bf16.msra.mxu2 %v7956_v16  ;;  %v7970_v22 = vld [vmem:[%s11786_s7 + $0xe8] sm:$0xff] }
 0x799   :  { %6632 = vmatpush.bf16.msra.mxu1 %v7970_v22 }
 0x79a   :  { %v11590_v61 = vpop.f32.mrf.mxu3 }
 0x79c   :  { %6605 = vmatpush.bf16.msra.mxu2 %v7955_v57 }
 0x7a0   :  { %6606 = vmatpush.bf16.msra.mxu2 %v7954_v51 }
 0x7a1   :  { %v8860_v45 = vpop.permute.xlu0 %8859 }
 0x7a2   :  { %v8862_v18 = vunpack.i.h.bf16 %v8860_v45  ;;  %v8861_v59 = vunpack.i.l.bf16 %v8860_v45 }
 0x7a4   :  { %v5754_v8 = vsel %vm71_vm4, %v11483_v55, %v8861_v59  ;;  %v5755_v19 = vsel %vm71_vm4, %v5579_v0, %v8862_v18 }
 0x7a5   :  { %v5774_v5 = vpack.c.bf16 %v5755_v19, %v5754_v8  ;;  %v7953_v8 = vld [vmem:[%s11786_s7 + $0x60] sm:$0xff] }
 0x7a6   :  { %6607 = vmatpush.bf16.msra.mxu2 %v7953_v8 }
 0x7a7   :  { %6186 = vmatmul.bf16.gmra.mxu3 %v5774_v5  ;;  %7596 = vmatmul.msk.bf16.gmra.mxu2 %vm71_vm4, %v5775_v1  ;;  %v7969_v1 = vld [vmem:[%s11786_s7 + $0xe0] sm:$0xff] }
 0x7a8   :  { %7594 = vmatmul.msk.bf16.gmra.mxu1 %vm71_vm4, %v5765_v12  ;;  %v7958_v12 = vld [vmem:[%s11786_s7 + $0x88] sm:$0xff] }
 0x7a9   :  { %6623 = vmatpush.bf16.msrb.mxu3 %v7958_v12  ;;  %6633 = vmatpush.bf16.msra.mxu1 %v7969_v1 }
 0x7aa   :  { %6608 = vmatpush.bf16.msra.mxu2 %v7952_v15 }
 0x7ad   :  { %6624 = vmatpush.bf16.msrb.mxu3 %v7957_v42 }
 0x7ae   :  { %6609 = vmatpush.bf16.msra.mxu2 %v7951_v9  ;;  %v7980_v9 = vld [vmem:[%s11788_s9 + $0x38] sm:$0xff] }
 0x7b2   :  { %6610 = vmatpush.bf16.msra.mxu2 %v7950_v17 }
 0x7c4   :  { %v6124_v58 = vpop.f32.mrf.mxu1 }
 0x7c5   :  { %v6125_v45 = vadd.f32 %v6124_v58, %v11588_v43 }
 0x7cb   :  { %v6153_v24 = vpop.f32.mrf.mxu2 }
 0x7cc   :  { %v6126_v28 = vpop.f32.mrf.mxu1  ;;  %v6154_v19 = vadd.f32 %v6153_v24, %v6125_v45 }
 0x7cd   :  { %v6127_v18 = vadd.f32 %v6126_v28, %v11590_v61  ;;  %v11706_v28 = vld [vmem:[%s11785_s6] ss:$0 sm:$0xff] }
 0x7d2   :  { %v11592_v55 = vpop.f32.mrf.mxu3 }
 0x7d3   :  { %v6155_v26 = vpop.f32.mrf.mxu2 }
 0x7d4   :  { %v6156_v5 = vadd.f32 %v6155_v26, %v6127_v18 }
 0x7da   :  { %v11594_v50 = vpop.f32.mrf.mxu3 }
 0x7e2   :  { %v6172_v60 = vpop.f32.mrf.mxu3 }
 0x7e3   :  { %v6173_v34 = vadd.f32 %v6172_v60, %v6144_v35 }
 0x7ea   :  { %v6174_v27 = vpop.f32.mrf.mxu3 }
 0x7eb   :  { %v6175_v31 = vadd.f32 %v6174_v27, %v6146_v23  ;;  %v7968_v27 = vld [vmem:[%s11786_s7 + $0xd8] sm:$0xff] }
 0x7ec   :  { %6634 = vmatpush.bf16.msra.mxu1 %v7968_v27 }
 0x7f0   :  { %6635 = vmatpush.bf16.msra.mxu1 %v7967_v13 }
 0x7f2   :  { %v11617_v47 = vpop.f32.mrf.mxu3 }
 0x7f3   :  { %v6178_v63 = vadd.f32 %v11617_v47, %v6149_v29  ;;  %v7949_v47 = vld [vmem:[%s11786_s7 + $0x40] sm:$0xff] }
 0x7f4   :  { %6636 = vmatpush.bf16.msra.mxu1 %v7966_v54  ;;  %6611 = vmatpush.bf16.msra.mxu2 %v7949_v47 }
 0x7fa   :  { %v11633_v41 = vpop.f32.mrf.mxu3 }
 0x7fb   :  { %v6180_v10 = vadd.f32 %v11633_v41, %v6151_v46 }
 0x802   :  { %v6182_v3 = vpop.f32.mrf.mxu3 }
 0x803   :  { %v6183_v43 = vadd.f32 %v6182_v3, %v6154_v19 }
 0x805   :  { %v11622_v52 = vpop.f32.mrf.mxu1 }
 0x806   :  { %v6130_v56 = vadd.f32 %v11622_v52, %v11592_v55  ;;  %v7965_v52 = vld [vmem:[%s11786_s7 + $0xc0] sm:$0xff] }
 0x807   :  { %6637 = vmatpush.bf16.msra.mxu1 %v7965_v52 }
 0x80a   :  { %v11635_v37 = vpop.f32.mrf.mxu2  ;;  %v6184_v2 = vpop.f32.mrf.mxu3 }
 0x80b   :  { %v6185_v61 = vadd.f32 %v6184_v2, %v6156_v5  ;;  %v6159_v41 = vadd.f32 %v11635_v37, %v6130_v56 }
 0x80d   :  { %v11637_v6 = vpop.f32.mrf.mxu1 }
 0x80e   :  { %v6132_v33 = vadd.f32 %v11637_v6, %v11594_v50 }
 0x812   :  { %v11645_v30 = vpop.f32.mrf.mxu2 }
 0x815   :  { %v6201_v39 = vpop.f32.mrf.mxu1 }
 0x816   :  { %v6202_v0 = vadd.f32 %v6201_v39, %v6173_v34 }
 0x81a   :  { %v6211_v48 = vpop.f32.mrf.mxu2 }
 0x81b   :  { %v6212_v60 = vadd.f32 %v6211_v48, %v6183_v43  ;;  %v6161_v48 = vadd.f32 %v11645_v30, %v6132_v33 }
 0x81d   :  { %v6203_v59 = vpop.f32.mrf.mxu1 }
 0x81e   :  { %v6204_v36 = vadd.f32 %v6203_v59, %v6175_v31 }
 0x820   :  { %v6221_v40 = vmax.f32 %v6202_v0, %v6204_v36 }
 0x822   :  { %6225 = vst [vmem:[#allocation6] sm:$0xff] %v6221_v40  ;;  %v6213_v49 = vpop.f32.mrf.mxu2 }
 0x823   :  { %v6214_v58 = vadd.f32 %v6213_v49, %v6185_v61 }
 0x825   :  { %v6223_v21 = vmax.f32 %v6212_v60, %v6214_v58  ;;  %v6206_v24 = vpop.f32.mrf.mxu1 }
 0x826   :  { %v6207_v3 = vadd.f32 %v6206_v24, %v6178_v63 }
 0x827   :  { %6227 = vst [vmem:[#allocation6 + $0x10] sm:$0xff] %v6223_v21 }
 0x829   :  { %v6230_v26 = vld [vmem:[#allocation6] sm:$0x1]  ;;  %v6232_v11 = vld [vmem:[#allocation6 + $0x1] sm:$0x1]  ;;  %v6245_v50 = vld [vmem:[#allocation6 + $0x2] sm:$0x1] }
 0x82a   :  { %v6187_v20 = vpop.f32.mrf.mxu3  ;;  %v6216_v38 = vpop.f32.mrf.mxu2  ;;  %v6234_v32 = vmax.f32 %v6230_v26, %v6232_v11  ;;  %v6247_v6 = vld [vmem:[#allocation6 + $0x3] sm:$0x1] }
 0x82b   :  { %v6188_v51 = vadd.f32 %v6187_v20, %v6159_v41  ;;  %v6249_v36 = vmax.f32 %v6245_v50, %v6247_v6 }
 0x82c   :  { %v6239_v16 = vadd.f32 %v11706_v28, %v6234_v32 }
 0x82d   :  { %v6208_v44 = vpop.f32.mrf.mxu1  ;;  %v6217_v59 = vadd.f32 %v6216_v38, %v6188_v51  ;;  %v6251_v1 = vadd.f32 %v11706_v28, %v6249_v36  ;;  %v7975_v36 = vld [vmem:[%s11788_s9 + $0x10] sm:$0xff] }
 0x82e   :  { %v6209_v39 = vadd.f32 %v6208_v44, %v6180_v10  ;;  %v6231_v25 = vld [vmem:[#allocation6 + $0x10] sm:$0x1]  ;;  %v6233_v62 = vld [vmem:[#allocation6 + $0x11] sm:$0x1]  ;;  %v6241_v4 = vmax.f32 %v6239_v16, 0.0 }
 0x82f   :  { %v6235_v57 = vmax.f32 %v6231_v25, %v6233_v62  ;;  %v6246_v14 = vld [vmem:[#allocation6 + $0x12] sm:$0x1]  ;;  %v6248_v35 = vld [vmem:[#allocation6 + $0x13] sm:$0x1]  ;;  %v6253_v24 = vmax.f32 %v6251_v1, 0.0 }
 0x830   :  { %v6222_v55 = vmax.f32 %v6207_v3, %v6209_v39  ;;  %v6250_v23 = vmax.f32 %v6246_v14, %v6248_v35  ;;  %v6243_v22 = vpack.c.bf16 %v6241_v4, %v6241_v4 }
 0x831   :  { %v6240_v7 = vadd.f32 %v11706_v28, %v6235_v57  ;;  %v6255_v38 = vpack.c.bf16 %v6253_v24, %v6253_v24 }
 0x832   :  { %6226 = vst [vmem:[#allocation6 + $0x8] sm:$0xff] %v6222_v55  ;;  %v6189_v37 = vpop.f32.mrf.mxu3  ;;  %v6252_v45 = vadd.f32 %v11706_v28, %v6250_v23  ;;  %v6218_v18 = vpop.f32.mrf.mxu2  ;;  %v6284_v8 = vunpack.c.l.b16 %v6243_v22 }
 0x833   :  { %v6190_v34 = vadd.f32 %v6189_v37, %v6161_v48  ;;  %v6242_v31 = vmax.f32 %v6240_v7, 0.0  ;;  %v6297_v3 = vunpack.c.l.b16 %v6255_v38 }
 0x834   :  { %v6254_v5 = vmax.f32 %v6252_v45, 0.0  ;;  %v7597_v60 = vunpack.i.l.s16 %v6284_v8  ;;  %v7973_v8 = vld [vmem:[%s11788_s9] sm:$0xff] }
 0x835   :  { %v6219_v2 = vadd.f32 %v6218_v18, %v6190_v34  ;;  %v6244_v0 = vpack.c.bf16 %v6242_v31, %v6242_v31  ;;  %v7599_v4 = vunpack.i.l.s16 %v6297_v3  ;;  %v7979_v18 = vld [vmem:[%s11788_s9 + $0x30] sm:$0xff] }
 0x836   :  { %v6256_v42 = vpack.c.bf16 %v6254_v5, %v6254_v5 }
 0x837   :  { %v6224_v30 = vmax.f32 %v6217_v59, %v6219_v2  ;;  %v6285_v19 = vunpack.c.l.b16 %v6244_v0  ;;  %v7978_v59 = vld [vmem:[%s11788_s9 + $0x28] sm:$0xff]  ;;  %v7977_v2 = vld [vmem:[%s11788_s9 + $0x20] sm:$0xff]  ;;  %v7976_v0 = vld [vmem:[%s11788_s9 + $0x18] sm:$0xff] }
 0x838   :  { %v6298_v11 = vunpack.c.l.b16 %v6256_v42 }
 0x839   :  { %6228 = vst [vmem:[#allocation6 + $0x18] sm:$0xff] %v6224_v30  ;;  %v7598_v40 = vunpack.i.l.s16 %v6285_v19  ;;  %v6258_v12 = vld [vmem:[#allocation6 + $0x8] sm:$0x1]  ;;  %v6260_v43 = vld [vmem:[#allocation6 + $0x9] sm:$0x1]  ;;  %v7974_v30 = vld [vmem:[%s11788_s9 + $0x8] sm:$0xff] }
 0x83a   :  { %v6262_v61 = vmax.f32 %v6258_v12, %v6260_v43  ;;  %v6270_v49 = vld [vmem:[#allocation6 + $0xa] sm:$0x1]  ;;  %v6272_v15 = vld [vmem:[#allocation6 + $0xb] sm:$0x1]  ;;  %v7600_v54 = vunpack.i.l.s16 %v6298_v11 }
 0x83b   :  { %v6290_v58 = vrot.slane %v7598_v40, 7  ;;  %v6274_v27 = vmax.f32 %v6270_v49, %v6272_v15  ;;  %v8866_v40 = vld [vmem:[%s11787_s8] ss:$0 sm:$0xff] }
 0x83c   :  { %v6264_v53 = vadd.f32 %v11706_v28, %v6262_v61  ;;  %v6303_v41 = vrot.slane %v7600_v54, 7 }
 0x83d   :  { %v6292_v21 = vsel %vm6291_vm6, %v6290_v58, %v7597_v60  ;;  %v6276_v26 = vadd.f32 %v11706_v28, %v6274_v27 }
 0x83e   :  { %v6293_v13 = vpack.c.b16 %v6292_v21, %v6292_v21  ;;  %v6266_v17 = vmax.f32 %v6264_v53, 0.0  ;;  %v6304_v23 = vsel %vm6291_vm6, %v6303_v41, %v7599_v4  ;;  %v8867_v53 = vld [vmem:[%s11789_s10] ss:$0 sm:$0xff] }
 0x83f   :  { %v6278_v16 = vmax.f32 %v6276_v26, 0.0 }
 0x840   :  { %6599 = vmatmul.bf16.vlgmr.msrb.gmra.mxu2 %v6293_v13  ;;  %v6259_v29 = vld [vmem:[#allocation6 + $0x18] sm:$0x1]  ;;  %v6261_v46 = vld [vmem:[#allocation6 + $0x19] sm:$0x1]  ;;  %v6271_v20 = vld [vmem:[#allocation6 + $0x1a] sm:$0x1]  ;;  %v6268_v25 = vpack.c.bf16 %v6266_v17, %v6266_v17 }
 0x841   :  { %v6263_v32 = vmax.f32 %v6259_v29, %v6261_v46  ;;  %v6273_v63 = vld [vmem:[#allocation6 + $0x1b] sm:$0x1]  ;;  %6713 = vmatpush.bf16.msrb.mxu2 %v7980_v9  ;;  %v6280_v47 = vpack.c.bf16 %v6278_v16, %v6278_v16 }
 0x842   :  { %v6275_v10 = vmax.f32 %v6271_v20, %v6273_v63  ;;  %v6309_v14 = vunpack.c.l.b16 %v6268_v25 }
 0x843   :  { %v6265_v56 = vadd.f32 %v11706_v28, %v6263_v32  ;;  %v6321_v55 = vunpack.c.l.b16 %v6280_v47 }
 0x844   :  { %v6277_v44 = vadd.f32 %v11706_v28, %v6275_v10  ;;  %v7601_v7 = vunpack.i.l.s16 %v6309_v14  ;;  %v6305_v28 = vpack.c.b16 %v6304_v23, %v6304_v23 }
 0x845   :  { %v6267_v39 = vmax.f32 %v6265_v56, 0.0  ;;  %v7603_v50 = vunpack.i.l.s16 %v6321_v55  ;;  %6714 = vmatpush.bf16.msrb.mxu2 %v7979_v18 }
 0x846   :  { %v6279_v62 = vmax.f32 %v6277_v44, 0.0 }
 0x847   :  { %v6269_v33 = vpack.c.bf16 %v6267_v39, %v6267_v39 }
 0x848   :  { %v6281_v57 = vpack.c.bf16 %v6279_v62, %v6279_v62 }
 0x849   :  { %v6310_v35 = vunpack.c.l.b16 %v6269_v33  ;;  %6715 = vmatpush.bf16.msrb.mxu2 %v7978_v59 }
 0x84a   :  { %v6322_v52 = vunpack.c.l.b16 %v6281_v57 }
 0x84b   :  { %v7602_v48 = vunpack.i.l.s16 %v6310_v35 }
 0x84c   :  { %v7604_v51 = vunpack.i.l.s16 %v6322_v52 }
 0x84d   :  { %v6315_v37 = vrot.slane %v7602_v48, 7  ;;  %6716 = vmatpush.bf16.msrb.mxu2 %v7977_v2 }
 0x84e   :  { %v6327_v6 = vrot.slane %v7604_v51, 7 }
 0x84f   :  { %v6316_v34 = vsel %vm6291_vm6, %v6315_v37, %v7601_v7 }
 0x850   :  { %6612 = vmatmul.bf16.vlgmr.msra.gmra.mxu2 %v6305_v28  ;;  %v6317_v31 = vpack.c.b16 %v6316_v34, %v6316_v34  ;;  %v6328_v22 = vsel %vm6291_vm6, %v6327_v6, %v7603_v50 }
 0x851   :  { %v6329_v45 = vpack.c.b16 %v6328_v22, %v6328_v22  ;;  %6717 = vmatpush.bf16.msrb.mxu2 %v7976_v0 }
 0x852   :  { %6625 = vmatmul.bf16.vlgmr.msrb.gmra.mxu3 %v6317_v31 }
 0x853   :  { %6638 = vmatmul.bf16.vlgmr.msra.gmra.mxu1 %v6329_v45 }
 0x855   :  { %6718 = vmatpush.bf16.msrb.mxu2 %v7975_v36 }
 0x859   :  { %6719 = vmatpush.bf16.msrb.mxu2 %v7974_v30 }
 0x85d   :  { %6720 = vmatpush.bf16.msrb.mxu2 %v7973_v8 }
 0x8c3   :  { %v6600_v19 = vpop.f32.mrf.mxu2 }
 0x8c4   :  { %v6601_v12 = vadd.f32 %v8866_v40, %v6600_v19 }
 0x8cb   :  { %v6602_v5 = vpop.f32.mrf.mxu2 }
 0x8d0   :  { %v6639_v1 = vpop.f32.mrf.mxu1 }
 0x8d3   :  { %v6613_v43 = vpop.f32.mrf.mxu2 }
 0x8d4   :  { %v6614_v61 = vadd.f32 %v6613_v43, %v6601_v12 }
 0x8d5   :  { %v6626_v49 = vpop.f32.mrf.mxu3 }
 0x8d6   :  { %v6627_v15 = vadd.f32 %v6626_v49, %v6614_v61 }
 0x8d8   :  { %v6640_v60 = vadd.f32 %v6639_v1, %v6627_v15  ;;  %v6641_v58 = vpop.f32.mrf.mxu1 }
 0x8da   :  { %v6643_v42 = vmax.f32 %v6640_v60, 0.0 }
 0x8db   :  { %v6615_v27 = vpop.f32.mrf.mxu2 }
 0x8dc   :  { %v6644_v21 = vpack.c.bf16 %v6643_v42, %v6643_v42 }
 0x8dd   :  { %v6628_v24 = vpop.f32.mrf.mxu3 }
 0x8de   :  { %6721 = vmatmul.bf16.vlgmr.msrb.gmra.mxu2 %v6644_v21 }
 0x961   :  { %v6722_v9 = vpop.f32.mrf.mxu2 }
 0x962   :  { %v6723_v13 = vadd.f32 %v8867_v53, %v6722_v9 }
 0x964   :  { %6726 = vst [vmem:[#allocation7] sm:$0x3] %v6723_v13 }
 0x965   :  { %6737 = dma.vmem_to_hbm [thread:$0]  %s6733_s25, 32, %s6735_s2, [#allocation8]  }
 0x969   :  { %v6724_v26 = vpop.f32.mrf.mxu2 }
 0x96a   :  { %8916 = dma.done.wait [#allocation8], 32  }
 0x96b   :  { %8917 = vsyncadd [#allocation8], 4294967264 }
 0x96c   :  { %6742 = vsyncpa [#allocation8], 1 }

</bundles_post_ra>
